<compile_context>
chip_gen: v6e
topology: v6e:2x2x1
jax: 0.10.0
libtpu: 0.0.40
codegen_flags: <defaults>
</compile_context>

<pallas_src>
import jax
import jax.numpy as jnp
import numpy as np
from jax import lax
from jax.experimental import pallas as pl
from jax.experimental.pallas import tpu as pltpu

K = 4          # kernel size of every ConvTranspose2d in the module
BN_EPS = 1e-5  # nn.BatchNorm2d default eps

_LAYER_CFG = [(1, 0), (2, 1), (2, 1), (2, 1), (2, 1)]   # (stride, padding)

_VMEM = pl.BlockSpec(memory_space=pltpu.MemorySpace.VMEM)


# ---------------------------------------------------------------------------
# Pallas kernels
# ---------------------------------------------------------------------------
def _matmul_kernel(x_ref, w_ref, o_ref):
    # layer 0: (B, Cin) @ (Cin, K*K*Cout) -> lane-dense (B, 1024) f32
    o_ref[...] = jnp.dot(x_ref[...], w_ref[...],
                         preferred_element_type=jnp.float32)


def _make_conv_bn_kernel(wp, cout, mpad, count):
    """Fused phase-decomposed ConvT(k4,s2,p1) + BatchNorm + ReLU.

    x_ref : (Cin, Mfull)  bf16  channel-major flattened padded activation
    w_ref : (4, 4, Cout, Cin) bf16  per-(phase, tap) weights
    g/b   : (Cout, 1) f32  BN gamma / beta
    m_ref : (1, mpad) f32  validity mask of the padded output grid
    o_ref : (4, Cout, mpad) f32  normalized per-phase outputs
    """
    inv_n = 1.0 / count

    def kernel(x_ref, w_ref, g_ref, b_ref, m_ref, o_ref):
        mask = m_ref[...]
        s1 = jnp.zeros((cout, 1), jnp.float32)
        # pass 1: conv (4 taps per phase, accumulating MXU dots) + partial sums
        for p in (0, 1):
            for q in (0, 1):
                acc = None
                for d in (0, 1):
                    for e in (0, 1):
                        off = (p + d) * wp + (q + e)
                        t = jnp.dot(w_ref[2 * p + q, 2 * d + e],
                                    x_ref[:, off:off + mpad],
                                    preferred_element_type=jnp.float32)
                        acc = t if acc is None else acc + t
                s1 = s1 + jnp.sum(acc * mask, axis=1, keepdims=True)
                o_ref[2 * p + q] = acc
        mean = s1 * inv_n
        # pass 2: centered variance (avoids E[x^2]-E[x]^2 cancellation)
        s2 = jnp.zeros((cout, 1), jnp.float32)
        for ph in range(4):
            dv = (o_ref[ph] - mean) * mask
            s2 = s2 + jnp.sum(dv * dv, axis=1, keepdims=True)
        scale = g_ref[...] * lax.rsqrt(s2 * inv_n + BN_EPS)
        shift = b_ref[...] - mean * scale
        # pass 3: apply BN + ReLU in place
        for ph in range(4):
            o_ref[ph] = jnp.maximum(o_ref[ph] * scale + shift, 0.0)

    return kernel


def _make_conv_tanh_kernel(wp, cout, mpad):
    """Fused phase-decomposed ConvT(k4,s2,p1) + tanh (final layer, no BN)."""
    def kernel(x_ref, w_ref, o_ref):
        for p in (0, 1):
            for q in (0, 1):
                acc = None
                for d in (0, 1):
                    for e in (0, 1):
                        off = (p + d) * wp + (q + e)
                        t = jnp.dot(w_ref[2 * p + q, 2 * d + e],
                                    x_ref[:, off:off + mpad],
                                    preferred_element_type=jnp.float32)
                        acc = t if acc is None else acc + t
                o_ref[2 * p + q] = jnp.tanh(acc)

    return kernel


# ---------------------------------------------------------------------------
# pallas_call wrappers (everything fits in VMEM at these sizes -> no grid)
# ---------------------------------------------------------------------------
def _layer0_call(x, w):
    b = x.shape[0]
    n = w.shape[1]
    return pl.pallas_call(
        _matmul_kernel,
        out_shape=jax.ShapeDtypeStruct((b, n), jnp.float32),
        in_specs=[_VMEM, _VMEM],
        out_specs=_VMEM,
    )(x, w)


def _conv_bn_call(xf, w_t, gamma, beta, mask, b, h, w):
    cout = w_t.shape[2]
    wp = w + 2
    mpad = b * (h + 2) * wp
    kernel = _make_conv_bn_kernel(wp, cout, mpad, float(4 * b * h * w))
    return pl.pallas_call(
        kernel,
        out_shape=jax.ShapeDtypeStruct((4, cout, mpad), jnp.float32),
        in_specs=[_VMEM] * 5,
        out_specs=_VMEM,
    )(xf, w_t, gamma, beta, mask)


def _conv_tanh_call(xf, w_t, b, h, w):
    cout = w_t.shape[2]
    wp = w + 2
    mpad = b * (h + 2) * wp
    kernel = _make_conv_tanh_kernel(wp, cout, mpad)
    return pl.pallas_call(
        kernel,
        out_shape=jax.ShapeDtypeStruct((4, cout, mpad), jnp.float32),
        in_specs=[_VMEM, _VMEM],
        out_specs=_VMEM,
    )(xf, w_t)


# ---------------------------------------------------------------------------
# Tiny XLA glue: layout prep (pad / channel-major flatten) and phase interleave
# ---------------------------------------------------------------------------
def _prep_input(x_nhwc):
    """Normalized NHWC activation -> (C, B*(H+2)*(W+2) [+slack]) bf16 operand."""
    b, h, w, c = x_nhwc.shape
    hp, wp = h + 2, w + 2
    mpad = b * hp * wp
    mfull = -(-(mpad + 2 * wp + 2) // 128) * 128      # room for max tap offset
    xp = jnp.pad(x_nhwc, ((0, 0), (1, 1), (1, 1), (0, 0)))
    xf = jnp.transpose(xp, (3, 0, 1, 2)).reshape(c, mpad)
    xf = jnp.pad(xf, ((0, 0), (0, mfull - mpad)))
    return xf.astype(jnp.bfloat16)


def _valid_mask(b, h, w):
    """1.0 where a column of the padded output grid is a real output pixel."""
    hp, wp = h + 2, w + 2
    m = np.zeros((b, hp, wp), np.float32)
    m[:, :h, :w] = 1.0
    return jnp.asarray(m.reshape(1, b * hp * wp))


def _unflatten_phases(y, b, h, w):
    """(4, C, B*(H+2)*(W+2)) phase outputs -> NHWC (B, 2H, 2W, C)."""
    c = y.shape[1]
    yv = y.reshape(2, 2, c, b, h + 2, w + 2)[:, :, :, :, :h, :w]
    return jnp.transpose(yv, (3, 4, 0, 5, 1, 2)).reshape(b, 2 * h, 2 * w, c)


def _unflatten_final(y, b, h, w):
    """(4, 3, B*(H+2)*(W+2)) phase outputs -> NCHW image (B, 3, 2H, 2W)."""
    yv = y.reshape(2, 2, 3, b, h + 2, w + 2)[:, :, :, :, :h, :w]
    return jnp.transpose(yv, (3, 2, 4, 0, 5, 1)).reshape(b, 3, 2 * h, 2 * w)


# ---------------------------------------------------------------------------
# Parameters
# ---------------------------------------------------------------------------
def init_params(key, noise_dim, class_dim, feature_map_size):
    """DCGAN-style weights_init: conv ~ N(0,0.02); BN gamma ~ N(1,0.02), beta=0."""
    f = feature_map_size
    chans = [noise_dim + class_dim, f * 8, f * 4, f * 2, f, 3]
    params = []
    for i in range(5):
        key, kw_, kg = jax.random.split(key, 3)
        w = 0.02 * jax.random.normal(kw_, (chans[i], chans[i + 1], K, K),
                                     jnp.float32)
        if i < 4:
            gamma = 1.0 + 0.02 * jax.random.normal(kg, (chans[i + 1],),
                                                   jnp.float32)
            beta = jnp.zeros((chans[i + 1],), jnp.float32)
        else:
            gamma, beta = None, None
        params.append((w, gamma, beta))
    return params


def prepare_params(params):
    """One-time weight re-layout: phase/tap split, flip baked in, bf16 cast."""
    fp = []
    for li, (w, gamma, beta) in enumerate(params):
        cin, cout = w.shape[0], w.shape[1]
        if li == 0:
            # 1x1 input, stride 1, pad 0: output pixel (kh,kw) uses W[:,:,kh,kw]
            wm = jnp.transpose(w, (0, 2, 3, 1)).reshape(cin, K * K * cout)
            fp.append((wm.astype(jnp.bfloat16), gamma, beta))
        else:
            # stride 2, pad 1: phase (p,q) tap (d,e) uses kernel element
            # (3 - p - 2d, 3 - q - 2e); stored as (Cout, Cin) for the
            # channel-major matmul orientation.
            phases = []
            for p in (0, 1):
                for q in (0, 1):
                    taps = [jnp.transpose(w[:, :, 3 - p - 2 * d, 3 - q - 2 * e],
                                          (1, 0))
                            for d in (0, 1) for e in (0, 1)]
                    phases.append(jnp.stack(taps, axis=0))     # (4, Cout, Cin)
            wt = jnp.stack(phases, axis=0)                      # (4, 4, Cout, Cin)
            fp.append((wt.astype(jnp.bfloat16), gamma, beta))
    return fp


# ---------------------------------------------------------------------------
# Forward
# ---------------------------------------------------------------------------
def wacgan_generator_forward(z, c, fparams):
    b = z.shape[0]
    x_in = jnp.concatenate([z, c], axis=1).astype(jnp.bfloat16)    # (B, Cin)

    # -- layer 0: 1x1-input ConvT as ONE lane-dense matmul, BN + ReLU --------
    w0, g0, b0 = fparams[0]
    c0 = g0.shape[0]
    y0 = _layer0_call(x_in, w0).reshape(b, K * K, c0)              # f32
    mu = jnp.mean(y0, axis=(0, 1))
    var = jnp.mean(jnp.square(y0 - mu), axis=(0, 1))
    scale = g0 * lax.rsqrt(var + BN_EPS)
    shift = b0 - mu * scale
    x = jnp.maximum(y0 * scale + shift, 0.0).reshape(b, K, K, c0)  # NHWC f32
    # TODO(synk): layer-0's 2x1024-element BN finalize stays in XLA; folding it
    # into the layer-1 kernel needs a lane-group reduction not worth it here.

    # -- layers 1..3: fused phase-decomposed ConvT + BN + ReLU ----------------
    for li in range(1, 4):
        w_t, g, bt = fparams[li]
        _, h, w, _ = x.shape
        y = _conv_bn_call(_prep_input(x), w_t, g.reshape(-1, 1),
                          bt.reshape(-1, 1), _valid_mask(b, h, w), b, h, w)
        x = _unflatten_phases(y, b, h, w)

    # -- layer 4: fused phase-decomposed ConvT + tanh -------------------------
    w4, _, _ = fparams[4]
    _, h, w, _ = x.shape
    y = _conv_tanh_call(_prep_input(x), w4, b, h, w)
    return _unflatten_final(y, b, h, w)                            # (B,3,64,64)


# ---------------------------------------------------------------------------
# Precision-mirrored pure-JAX reference (correctness check only)
# ---------------------------------------------------------------------------
def _ref_forward(z, c, params):
    x = jnp.concatenate([z, c], axis=1).astype(jnp.float32)[:, :, None, None]
    for li, (stride, pad) in enumerate(_LAYER_CFG):
        w, gamma, beta = params[li]
        wb = w.astype(jnp.bfloat16)
        w_oihw = jnp.transpose(jnp.flip(wb, (2, 3)), (1, 0, 2, 3))
        q = K - 1 - pad
        y = lax.conv_general_dilated(
            x.astype(jnp.bfloat16), w_oihw, window_strides=(1, 1),
            padding=((q, q), (q, q)), lhs_dilation=(stride, stride),
            dimension_numbers=("NCHW", "OIHW", "NCHW"),
            preferred_element_type=jnp.float32)
        if li < 4:
            mean = jnp.mean(y, axis=(0, 2, 3), keepdims=True)
            var = jnp.mean(jnp.square(y - mean), axis=(0, 2, 3), keepdims=True)
            scale = gamma.reshape(1, -1, 1, 1) * lax.rsqrt(var + BN_EPS)
            shift = beta.reshape(1, -1, 1, 1) - mean * scale
            x = jnp.maximum(y * scale + shift, 0.0)
        else:
            x = jnp.tanh(y)
    return x


if __name__ == "__main__":
    batch, noise_dim, class_dim, feature_map_size = 2, 16, 8, 8

    key = jax.random.PRNGKey(0)
    kz, kc, kp = jax.random.split(key, 3)
    z = jax.random.normal(kz, (batch, noise_dim), jnp.float32)
    c = jax.random.normal(kc, (batch, class_dim), jnp.float32)   # conditioning
    params = init_params(kp, noise_dim, class_dim, feature_map_size)
    fparams = prepare_params(params)                             # one-time re-layout

    out = jax.jit(wacgan_generator_forward)(z, c, fparams)
    out = jax.block_until_ready(out)
    assert out.shape == (batch, 3, 64, 64), out.shape

    ref = np.asarray(_ref_forward(z, c, params))
    if not np.allclose(np.asarray(out), ref, atol=2e-2, rtol=2e-2):
        err = float(np.max(np.abs(np.asarray(out) - ref)))
        raise AssertionError(
            f"Pallas output does not match JAX reference (max abs err {err})")

    print("KERNEL_OK")
</pallas_src>

<mosaic_0001>
module attributes {stable_mosaic.version = 11 : i64} {
  func.func @_matmul_kernel(%arg0: memref<2x24xbf16, #tpu.memory_space<vmem>>, %arg1: memref<24x1024xbf16, #tpu.memory_space<vmem>>, %arg2: memref<2x1024xf32, #tpu.memory_space<vmem>>) attributes {dimension_semantics = [], scalar_prefetch = 0 : i64, scratch_operands = 0 : i64, tpu.core_type = #tpu.core_type<tc>} {
    %c0 = arith.constant 0 : index
    %c0_0 = arith.constant 0 : index
    %0 = vector.load %arg0[%c0, %c0_0] : memref<2x24xbf16, #tpu.memory_space<vmem>>, vector<2x24xbf16>
    %c0_1 = arith.constant 0 : index
    %c0_2 = arith.constant 0 : index
    %1 = vector.load %arg1[%c0_1, %c0_2] : memref<24x1024xbf16, #tpu.memory_space<vmem>>, vector<24x1024xbf16>
    %cst = arith.constant dense<0.000000e+00> : vector<2x1024xf32>
    %2 = tpu.matmul %0, %1, %cst {dimension_numbers = #tpu.dot_dimension_numbers<[1], [0], [0], [1], [0, 0, 1, 1], [], []>} : vector<2x24xbf16>, vector<24x1024xbf16>, vector<2x1024xf32> -> vector<2x1024xf32>
    %c0_3 = arith.constant 0 : index
    %c0_4 = arith.constant 0 : index
    %3 = vector.load %arg2[%c0_3, %c0_4] : memref<2x1024xf32, #tpu.memory_space<vmem>>, vector<2x1024xf32>
    tpu.vector_store %arg2[%c0_3, %c0_4], %2 {strides = array<i32>} : memref<2x1024xf32, #tpu.memory_space<vmem>>, vector<2x1024xf32>,
    return
  }
}

module attributes {stable_mosaic.version = 11 : i64} {
  func.func @kernel(%arg0: memref<64x128xbf16, #tpu.memory_space<vmem>>, %arg1: memref<4x4x32x64xbf16, #tpu.memory_space<vmem>>, %arg2: memref<32x1xf32, #tpu.memory_space<vmem>>, %arg3: memref<32x1xf32, #tpu.memory_space<vmem>>, %arg4: memref<1x72xf32, #tpu.memory_space<vmem>>, %arg5: memref<4x32x72xf32, #tpu.memory_space<vmem>>) attributes {dimension_semantics = [], scalar_prefetch = 0 : i64, scratch_operands = 0 : i64, tpu.core_type = #tpu.core_type<tc>} {
    %c0 = arith.constant 0 : index
    %c0_0 = arith.constant 0 : index
    %0 = vector.load %arg4[%c0, %c0_0] : memref<1x72xf32, #tpu.memory_space<vmem>>, vector<1x72xf32>
    %cst = arith.constant 0.000000e+00 : f32
    %1 = vector.broadcast %cst : f32 to vector<32x1xf32>
    %c0_1 = arith.constant 0 : index
    %c0_2 = arith.constant 0 : index
    %c0_3 = arith.constant 0 : index
    %c0_4 = arith.constant 0 : index
    %2 = vector.load %arg1[%c0_1, %c0_2, %c0_3, %c0_4] : memref<4x4x32x64xbf16, #tpu.memory_space<vmem>>, vector<1x1x32x64xbf16>
    %3 = vector.shape_cast %2 : vector<1x1x32x64xbf16> to vector<32x64xbf16>
    %c0_5 = arith.constant 0 : index
    %c0_6 = arith.constant 0 : index
    %4 = vector.load %arg0[%c0_5, %c0_6] : memref<64x128xbf16, #tpu.memory_space<vmem>>, vector<64x72xbf16>
    %cst_7 = arith.constant dense<0.000000e+00> : vector<32x72xf32>
    %5 = tpu.matmul %3, %4, %cst_7 {dimension_numbers = #tpu.dot_dimension_numbers<[1], [0], [0], [1], [0, 0, 1, 1], [], []>} : vector<32x64xbf16>, vector<64x72xbf16>, vector<32x72xf32> -> vector<32x72xf32>
    %c0_8 = arith.constant 0 : index
    %c1 = arith.constant 1 : index
    %c0_9 = arith.constant 0 : index
    %c0_10 = arith.constant 0 : index
    %6 = vector.load %arg1[%c0_8, %c1, %c0_9, %c0_10] : memref<4x4x32x64xbf16, #tpu.memory_space<vmem>>, vector<1x1x32x64xbf16>
    %7 = vector.shape_cast %6 : vector<1x1x32x64xbf16> to vector<32x64xbf16>
    %c0_11 = arith.constant 0 : index
    %c1_12 = arith.constant 1 : index
    %8 = vector.load %arg0[%c0_11, %c1_12] : memref<64x128xbf16, #tpu.memory_space<vmem>>, vector<64x72xbf16>
    %cst_13 = arith.constant dense<0.000000e+00> : vector<32x72xf32>
    %9 = tpu.matmul %7, %8, %cst_13 {dimension_numbers = #tpu.dot_dimension_numbers<[1], [0], [0], [1], [0, 0, 1, 1], [], []>} : vector<32x64xbf16>, vector<64x72xbf16>, vector<32x72xf32> -> vector<32x72xf32>
    %10 = arith.addf %5, %9 : vector<32x72xf32>
    %c0_14 = arith.constant 0 : index
    %c2 = arith.constant 2 : index
    %c0_15 = arith.constant 0 : index
    %c0_16 = arith.constant 0 : index
    %11 = vector.load %arg1[%c0_14, %c2, %c0_15, %c0_16] : memref<4x4x32x64xbf16, #tpu.memory_space<vmem>>, vector<1x1x32x64xbf16>
    %12 = vector.shape_cast %11 : vector<1x1x32x64xbf16> to vector<32x64xbf16>
    %c0_17 = arith.constant 0 : index
    %c6 = arith.constant 6 : index
    %13 = vector.load %arg0[%c0_17, %c6] : memref<64x128xbf16, #tpu.memory_space<vmem>>, vector<64x72xbf16>
    %cst_18 = arith.constant dense<0.000000e+00> : vector<32x72xf32>
    %14 = tpu.matmul %12, %13, %cst_18 {dimension_numbers = #tpu.dot_dimension_numbers<[1], [0], [0], [1], [0, 0, 1, 1], [], []>} : vector<32x64xbf16>, vector<64x72xbf16>, vector<32x72xf32> -> vector<32x72xf32>
    %15 = arith.addf %10, %14 : vector<32x72xf32>
    %c0_19 = arith.constant 0 : index
    %c3 = arith.constant 3 : index
    %c0_20 = arith.constant 0 : index
    %c0_21 = arith.constant 0 : index
    %16 = vector.load %arg1[%c0_19, %c3, %c0_20, %c0_21] : memref<4x4x32x64xbf16, #tpu.memory_space<vmem>>, vector<1x1x32x64xbf16>
    %17 = vector.shape_cast %16 : vector<1x1x32x64xbf16> to vector<32x64xbf16>
    %c0_22 = arith.constant 0 : index
    %c7 = arith.constant 7 : index
    %18 = vector.load %arg0[%c0_22, %c7] : memref<64x128xbf16, #tpu.memory_space<vmem>>, vector<64x72xbf16>
    %cst_23 = arith.constant dense<0.000000e+00> : vector<32x72xf32>
    %19 = tpu.matmul %17, %18, %cst_23 {dimension_numbers = #tpu.dot_dimension_numbers<[1], [0], [0], [1], [0, 0, 1, 1], [], []>} : vector<32x64xbf16>, vector<64x72xbf16>, vector<32x72xf32> -> vector<32x72xf32>
    %20 = arith.addf %15, %19 : vector<32x72xf32>
    %21 = vector.broadcast %0 : vector<1x72xf32> to vector<32x72xf32>
    %22 = arith.mulf %20, %21 : vector<32x72xf32>
    %cst_24 = arith.constant dense<0.000000e+00> : vector<32xf32>
    %23 = vector.multi_reduction <add>, %22, %cst_24 [1] : vector<32x72xf32> to vector<32xf32>
    %24 = vector.shape_cast %23 : vector<32xf32> to vector<32x1xf32>
    %25 = arith.addf %1, %24 : vector<32x1xf32>
    %c0_25 = arith.constant 0 : index
    %c0_26 = arith.constant 0 : index
    %c0_27 = arith.constant 0 : index
    %26 = vector.load %arg5[%c0_25, %c0_26, %c0_27] : memref<4x32x72xf32, #tpu.memory_space<vmem>>, vector<1x32x72xf32>
    %27 = vector.shape_cast %26 : vector<1x32x72xf32> to vector<32x72xf32>
    %28 = vector.shape_cast %20 : vector<32x72xf32> to vector<1x32x72xf32>
    tpu.vector_store %arg5[%c0_25, %c0_26, %c0_27], %28 {strides = array<i32>} : memref<4x32x72xf32, #tpu.memory_space<vmem>>, vector<1x32x72xf32>,
    %c1_28 = arith.constant 1 : index
    %c0_29 = arith.constant 0 : index
    %c0_30 = arith.constant 0 : index
    %c0_31 = arith.constant 0 : index
    %29 = vector.load %arg1[%c1_28, %c0_29, %c0_30, %c0_31] : memref<4x4x32x64xbf16, #tpu.memory_space<vmem>>, vector<1x1x32x64xbf16>
    %30 = vector.shape_cast %29 : vector<1x1x32x64xbf16> to vector<32x64xbf16>
    %c0_32 = arith.constant 0 : index
    %c1_33 = arith.constant 1 : index
    %31 = vector.load %arg0[%c0_32, %c1_33] : memref<64x128xbf16, #tpu.memory_space<vmem>>, vector<64x72xbf16>
    %cst_34 = arith.constant dense<0.000000e+00> : vector<32x72xf32>
    %32 = tpu.matmul %30, %31, %cst_34 {dimension_numbers = #tpu.dot_dimension_numbers<[1], [0], [0], [1], [0, 0, 1, 1], [], []>} : vector<32x64xbf16>, vector<64x72xbf16>, vector<32x72xf32> -> vector<32x72xf32>
    %c1_35 = arith.constant 1 : index
    %c1_36 = arith.constant 1 : index
    %c0_37 = arith.constant 0 : index
    %c0_38 = arith.constant 0 : index
    %33 = vector.load %arg1[%c1_35, %c1_36, %c0_37, %c0_38] : memref<4x4x32x64xbf16, #tpu.memory_space<vmem>>, vector<1x1x32x64xbf16>
    %34 = vector.shape_cast %33 : vector<1x1x32x64xbf16> to vector<32x64xbf16>
    %c0_39 = arith.constant 0 : index
    %c2_40 = arith.constant 2 : index
    %35 = vector.load %arg0[%c0_39, %c2_40] : memref<64x128xbf16, #tpu.memory_space<vmem>>, vector<64x72xbf16>
    %cst_41 = arith.constant dense<0.000000e+00> : vector<32x72xf32>
    %36 = tpu.matmul %34, %35, %cst_41 {dimension_numbers = #tpu.dot_dimension_numbers<[1], [0], [0], [1], [0, 0, 1, 1], [], []>} : vector<32x64xbf16>, vector<64x72xbf16>, vector<32x72xf32> -> vector<32x72xf32>
    %37 = arith.addf %32, %36 : vector<32x72xf32>
    %c1_42 = arith.constant 1 : index
    %c2_43 = arith.constant 2 : index
    %c0_44 = arith.constant 0 : index
    %c0_45 = arith.constant 0 : index
    %38 = vector.load %arg1[%c1_42, %c2_43, %c0_44, %c0_45] : memref<4x4x32x64xbf16, #tpu.memory_space<vmem>>, vector<1x1x32x64xbf16>
    %39 = vector.shape_cast %38 : vector<1x1x32x64xbf16> to vector<32x64xbf16>
    %c0_46 = arith.constant 0 : index
    %c7_47 = arith.constant 7 : index
    %40 = vector.load %arg0[%c0_46, %c7_47] : memref<64x128xbf16, #tpu.memory_space<vmem>>, vector<64x72xbf16>
    %cst_48 = arith.constant dense<0.000000e+00> : vector<32x72xf32>
    %41 = tpu.matmul %39, %40, %cst_48 {dimension_numbers = #tpu.dot_dimension_numbers<[1], [0], [0], [1], [0, 0, 1, 1], [], []>} : vector<32x64xbf16>, vector<64x72xbf16>, vector<32x72xf32> -> vector<32x72xf32>
    %42 = arith.addf %37, %41 : vector<32x72xf32>
    %c1_49 = arith.constant 1 : index
    %c3_50 = arith.constant 3 : index
    %c0_51 = arith.constant 0 : index
    %c0_52 = arith.constant 0 : index
    %43 = vector.load %arg1[%c1_49, %c3_50, %c0_51, %c0_52] : memref<4x4x32x64xbf16, #tpu.memory_space<vmem>>, vector<1x1x32x64xbf16>
    %44 = vector.shape_cast %43 : vector<1x1x32x64xbf16> to vector<32x64xbf16>
    %c0_53 = arith.constant 0 : index
    %c8 = arith.constant 8 : index
    %45 = vector.load %arg0[%c0_53, %c8] : memref<64x128xbf16, #tpu.memory_space<vmem>>, vector<64x72xbf16>
    %cst_54 = arith.constant dense<0.000000e+00> : vector<32x72xf32>
    %46 = tpu.matmul %44, %45, %cst_54 {dimension_numbers = #tpu.dot_dimension_numbers<[1], [0], [0], [1], [0, 0, 1, 1], [], []>} : vector<32x64xbf16>, vector<64x72xbf16>, vector<32x72xf32> -> vector<32x72xf32>
    %47 = arith.addf %42, %46 : vector<32x72xf32>
    %48 = vector.broadcast %0 : vector<1x72xf32> to vector<32x72xf32>
    %49 = arith.mulf %47, %48 : vector<32x72xf32>
    %cst_55 = arith.constant dense<0.000000e+00> : vector<32xf32>
    %50 = vector.multi_reduction <add>, %49, %cst_55 [1] : vector<32x72xf32> to vector<32xf32>
    %51 = vector.shape_cast %50 : vector<32xf32> to vector<32x1xf32>
    %52 = arith.addf %25, %51 : vector<32x1xf32>
    %c1_56 = arith.constant 1 : index
    %c0_57 = arith.constant 0 : index
    %c0_58 = arith.constant 0 : index
    %53 = vector.load %arg5[%c1_56, %c0_57, %c0_58] : memref<4x32x72xf32, #tpu.memory_space<vmem>>, vector<1x32x72xf32>
    %54 = vector.shape_cast %53 : vector<1x32x72xf32> to vector<32x72xf32>
    %55 = vector.shape_cast %47 : vector<32x72xf32> to vector<1x32x72xf32>
    tpu.vector_store %arg5[%c1_56, %c0_57, %c0_58], %55 {strides = array<i32>} : memref<4x32x72xf32, #tpu.memory_space<vmem>>, vector<1x32x72xf32>,
    %c2_59 = arith.constant 2 : index
    %c0_60 = arith.constant 0 : index
    %c0_61 = arith.constant 0 : index
    %c0_62 = arith.constant 0 : index
    %56 = vector.load %arg1[%c2_59, %c0_60, %c0_61, %c0_62] : memref<4x4x32x64xbf16, #tpu.memory_space<vmem>>, vector<1x1x32x64xbf16>
    %57 = vector.shape_cast %56 : vector<1x1x32x64xbf16> to vector<32x64xbf16>
    %c0_63 = arith.constant 0 : index
    %c6_64 = arith.constant 6 : index
    %58 = vector.load %arg0[%c0_63, %c6_64] : memref<64x128xbf16, #tpu.memory_space<vmem>>, vector<64x72xbf16>
    %cst_65 = arith.constant dense<0.000000e+00> : vector<32x72xf32>
    %59 = tpu.matmul %57, %58, %cst_65 {dimension_numbers = #tpu.dot_dimension_numbers<[1], [0], [0], [1], [0, 0, 1, 1], [], []>} : vector<32x64xbf16>, vector<64x72xbf16>, vector<32x72xf32> -> vector<32x72xf32>
    %c2_66 = arith.constant 2 : index
    %c1_67 = arith.constant 1 : index
    %c0_68 = arith.constant 0 : index
    %c0_69 = arith.constant 0 : index
    %60 = vector.load %arg1[%c2_66, %c1_67, %c0_68, %c0_69] : memref<4x4x32x64xbf16, #tpu.memory_space<vmem>>, vector<1x1x32x64xbf16>
    %61 = vector.shape_cast %60 : vector<1x1x32x64xbf16> to vector<32x64xbf16>
    %c0_70 = arith.constant 0 : index
    %c7_71 = arith.constant 7 : index
    %62 = vector.load %arg0[%c0_70, %c7_71] : memref<64x128xbf16, #tpu.memory_space<vmem>>, vector<64x72xbf16>
    %cst_72 = arith.constant dense<0.000000e+00> : vector<32x72xf32>
    %63 = tpu.matmul %61, %62, %cst_72 {dimension_numbers = #tpu.dot_dimension_numbers<[1], [0], [0], [1], [0, 0, 1, 1], [], []>} : vector<32x64xbf16>, vector<64x72xbf16>, vector<32x72xf32> -> vector<32x72xf32>
    %64 = arith.addf %59, %63 : vector<32x72xf32>
    %c2_73 = arith.constant 2 : index
    %c2_74 = arith.constant 2 : index
    %c0_75 = arith.constant 0 : index
    %c0_76 = arith.constant 0 : index
    %65 = vector.load %arg1[%c2_73, %c2_74, %c0_75, %c0_76] : memref<4x4x32x64xbf16, #tpu.memory_space<vmem>>, vector<1x1x32x64xbf16>
    %66 = vector.shape_cast %65 : vector<1x1x32x64xbf16> to vector<32x64xbf16>
    %c0_77 = arith.constant 0 : index
    %c12 = arith.constant 12 : index
    %67 = vector.load %arg0[%c0_77, %c12] : memref<64x128xbf16, #tpu.memory_space<vmem>>, vector<64x72xbf16>
    %cst_78 = arith.constant dense<0.000000e+00> : vector<32x72xf32>
    %68 = tpu.matmul %66, %67, %cst_78 {dimension_numbers = #tpu.dot_dimension_numbers<[1], [0], [0], [1], [0, 0, 1, 1], [], []>} : vector<32x64xbf16>, vector<64x72xbf16>, vector<32x72xf32> -> vector<32x72xf32>
    %69 = arith.addf %64, %68 : vector<32x72xf32>
    %c2_79 = arith.constant 2 : index
    %c3_80 = arith.constant 3 : index
    %c0_81 = arith.constant 0 : index
    %c0_82 = arith.constant 0 : index
    %70 = vector.load %arg1[%c2_79, %c3_80, %c0_81, %c0_82] : memref<4x4x32x64xbf16, #tpu.memory_space<vmem>>, vector<1x1x32x64xbf16>
    %71 = vector.shape_cast %70 : vector<1x1x32x64xbf16> to vector<32x64xbf16>
    %c0_83 = arith.constant 0 : index
    %c13 = arith.constant 13 : index
    %72 = vector.load %arg0[%c0_83, %c13] : memref<64x128xbf16, #tpu.memory_space<vmem>>, vector<64x72xbf16>
    %cst_84 = arith.constant dense<0.000000e+00> : vector<32x72xf32>
    %73 = tpu.matmul %71, %72, %cst_84 {dimension_numbers = #tpu.dot_dimension_numbers<[1], [0], [0], [1], [0, 0, 1, 1], [], []>} : vector<32x64xbf16>, vector<64x72xbf16>, vector<32x72xf32> -> vector<32x72xf32>
    %74 = arith.addf %69, %73 : vector<32x72xf32>
    %75 = vector.broadcast %0 : vector<1x72xf32> to vector<32x72xf32>
    %76 = arith.mulf %74, %75 : vector<32x72xf32>
    %cst_85 = arith.constant dense<0.000000e+00> : vector<32xf32>
    %77 = vector.multi_reduction <add>, %76, %cst_85 [1] : vector<32x72xf32> to vector<32xf32>
    %78 = vector.shape_cast %77 : vector<32xf32> to vector<32x1xf32>
    %79 = arith.addf %52, %78 : vector<32x1xf32>
    %c2_86 = arith.constant 2 : index
    %c0_87 = arith.constant 0 : index
    %c0_88 = arith.constant 0 : index
    %80 = vector.load %arg5[%c2_86, %c0_87, %c0_88] : memref<4x32x72xf32, #tpu.memory_space<vmem>>, vector<1x32x72xf32>
    %81 = vector.shape_cast %80 : vector<1x32x72xf32> to vector<32x72xf32>
    %82 = vector.shape_cast %74 : vector<32x72xf32> to vector<1x32x72xf32>
    tpu.vector_store %arg5[%c2_86, %c0_87, %c0_88], %82 {strides = array<i32>} : memref<4x32x72xf32, #tpu.memory_space<vmem>>, vector<1x32x72xf32>,
    %c3_89 = arith.constant 3 : index
    %c0_90 = arith.constant 0 : index
    %c0_91 = arith.constant 0 : index
    %c0_92 = arith.constant 0 : index
    %83 = vector.load %arg1[%c3_89, %c0_90, %c0_91, %c0_92] : memref<4x4x32x64xbf16, #tpu.memory_space<vmem>>, vector<1x1x32x64xbf16>
    %84 = vector.shape_cast %83 : vector<1x1x32x64xbf16> to vector<32x64xbf16>
    %c0_93 = arith.constant 0 : index
    %c7_94 = arith.constant 7 : index
    %85 = vector.load %arg0[%c0_93, %c7_94] : memref<64x128xbf16, #tpu.memory_space<vmem>>, vector<64x72xbf16>
    %cst_95 = arith.constant dense<0.000000e+00> : vector<32x72xf32>
    %86 = tpu.matmul %84, %85, %cst_95 {dimension_numbers = #tpu.dot_dimension_numbers<[1], [0], [0], [1], [0, 0, 1, 1], [], []>} : vector<32x64xbf16>, vector<64x72xbf16>, vector<32x72xf32> -> vector<32x72xf32>
    %c3_96 = arith.constant 3 : index
    %c1_97 = arith.constant 1 : index
    %c0_98 = arith.constant 0 : index
    %c0_99 = arith.constant 0 : index
    %87 = vector.load %arg1[%c3_96, %c1_97, %c0_98, %c0_99] : memref<4x4x32x64xbf16, #tpu.memory_space<vmem>>, vector<1x1x32x64xbf16>
    %88 = vector.shape_cast %87 : vector<1x1x32x64xbf16> to vector<32x64xbf16>
    %c0_100 = arith.constant 0 : index
    %c8_101 = arith.constant 8 : index
    %89 = vector.load %arg0[%c0_100, %c8_101] : memref<64x128xbf16, #tpu.memory_space<vmem>>, vector<64x72xbf16>
    %cst_102 = arith.constant dense<0.000000e+00> : vector<32x72xf32>
    %90 = tpu.matmul %88, %89, %cst_102 {dimension_numbers = #tpu.dot_dimension_numbers<[1], [0], [0], [1], [0, 0, 1, 1], [], []>} : vector<32x64xbf16>, vector<64x72xbf16>, vector<32x72xf32> -> vector<32x72xf32>
    %91 = arith.addf %86, %90 : vector<32x72xf32>
    %c3_103 = arith.constant 3 : index
    %c2_104 = arith.constant 2 : index
    %c0_105 = arith.constant 0 : index
    %c0_106 = arith.constant 0 : index
    %92 = vector.load %arg1[%c3_103, %c2_104, %c0_105, %c0_106] : memref<4x4x32x64xbf16, #tpu.memory_space<vmem>>, vector<1x1x32x64xbf16>
    %93 = vector.shape_cast %92 : vector<1x1x32x64xbf16> to vector<32x64xbf16>
    %c0_107 = arith.constant 0 : index
    %c13_108 = arith.constant 13 : index
    %94 = vector.load %arg0[%c0_107, %c13_108] : memref<64x128xbf16, #tpu.memory_space<vmem>>, vector<64x72xbf16>
    %cst_109 = arith.constant dense<0.000000e+00> : vector<32x72xf32>
    %95 = tpu.matmul %93, %94, %cst_109 {dimension_numbers = #tpu.dot_dimension_numbers<[1], [0], [0], [1], [0, 0, 1, 1], [], []>} : vector<32x64xbf16>, vector<64x72xbf16>, vector<32x72xf32> -> vector<32x72xf32>
    %96 = arith.addf %91, %95 : vector<32x72xf32>
    %c3_110 = arith.constant 3 : index
    %c3_111 = arith.constant 3 : index
    %c0_112 = arith.constant 0 : index
    %c0_113 = arith.constant 0 : index
    %97 = vector.load %arg1[%c3_110, %c3_111, %c0_112, %c0_113] : memref<4x4x32x64xbf16, #tpu.memory_space<vmem>>, vector<1x1x32x64xbf16>
    %98 = vector.shape_cast %97 : vector<1x1x32x64xbf16> to vector<32x64xbf16>
    %c0_114 = arith.constant 0 : index
    %c14 = arith.constant 14 : index
    %99 = vector.load %arg0[%c0_114, %c14] : memref<64x128xbf16, #tpu.memory_space<vmem>>, vector<64x72xbf16>
    %cst_115 = arith.constant dense<0.000000e+00> : vector<32x72xf32>
    %100 = tpu.matmul %98, %99, %cst_115 {dimension_numbers = #tpu.dot_dimension_numbers<[1], [0], [0], [1], [0, 0, 1, 1], [], []>} : vector<32x64xbf16>, vector<64x72xbf16>, vector<32x72xf32> -> vector<32x72xf32>
    %101 = arith.addf %96, %100 : vector<32x72xf32>
    %102 = vector.broadcast %0 : vector<1x72xf32> to vector<32x72xf32>
    %103 = arith.mulf %101, %102 : vector<32x72xf32>
    %cst_116 = arith.constant dense<0.000000e+00> : vector<32xf32>
    %104 = vector.multi_reduction <add>, %103, %cst_116 [1] : vector<32x72xf32> to vector<32xf32>
    %105 = vector.shape_cast %104 : vector<32xf32> to vector<32x1xf32>
    %106 = arith.addf %79, %105 : vector<32x1xf32>
    %c3_117 = arith.constant 3 : index
    %c0_118 = arith.constant 0 : index
    %c0_119 = arith.constant 0 : index
    %107 = vector.load %arg5[%c3_117, %c0_118, %c0_119] : memref<4x32x72xf32, #tpu.memory_space<vmem>>, vector<1x32x72xf32>
    %108 = vector.shape_cast %107 : vector<1x32x72xf32> to vector<32x72xf32>
    %109 = vector.shape_cast %101 : vector<32x72xf32> to vector<1x32x72xf32>
    tpu.vector_store %arg5[%c3_117, %c0_118, %c0_119], %109 {strides = array<i32>} : memref<4x32x72xf32, #tpu.memory_space<vmem>>, vector<1x32x72xf32>,
    %cst_120 = arith.constant 7.812500e-03 : f32
    %110 = vector.broadcast %cst_120 : f32 to vector<32x1xf32>
    %111 = arith.mulf %106, %110 : vector<32x1xf32>
    %cst_121 = arith.constant 0.000000e+00 : f32
    %112 = vector.broadcast %cst_121 : f32 to vector<32x1xf32>
    %c0_122 = arith.constant 0 : index
    %c0_123 = arith.constant 0 : index
    %c0_124 = arith.constant 0 : index
    %113 = vector.load %arg5[%c0_122, %c0_123, %c0_124] : memref<4x32x72xf32, #tpu.memory_space<vmem>>, vector<1x32x72xf32>
    %114 = vector.shape_cast %113 : vector<1x32x72xf32> to vector<32x72xf32>
    %115 = vector.broadcast %111 : vector<32x1xf32> to vector<32x72xf32>
    %116 = arith.subf %114, %115 : vector<32x72xf32>
    %117 = vector.broadcast %0 : vector<1x72xf32> to vector<32x72xf32>
    %118 = arith.mulf %116, %117 : vector<32x72xf32>
    %119 = arith.mulf %118, %118 : vector<32x72xf32>
    %cst_125 = arith.constant dense<0.000000e+00> : vector<32xf32>
    %120 = vector.multi_reduction <add>, %119, %cst_125 [1] : vector<32x72xf32> to vector<32xf32>
    %121 = vector.shape_cast %120 : vector<32xf32> to vector<32x1xf32>
    %122 = arith.addf %112, %121 : vector<32x1xf32>
    %c1_126 = arith.constant 1 : index
    %c0_127 = arith.constant 0 : index
    %c0_128 = arith.constant 0 : index
    %123 = vector.load %arg5[%c1_126, %c0_127, %c0_128] : memref<4x32x72xf32, #tpu.memory_space<vmem>>, vector<1x32x72xf32>
    %124 = vector.shape_cast %123 : vector<1x32x72xf32> to vector<32x72xf32>
    %125 = vector.broadcast %111 : vector<32x1xf32> to vector<32x72xf32>
    %126 = arith.subf %124, %125 : vector<32x72xf32>
    %127 = vector.broadcast %0 : vector<1x72xf32> to vector<32x72xf32>
    %128 = arith.mulf %126, %127 : vector<32x72xf32>
    %129 = arith.mulf %128, %128 : vector<32x72xf32>
    %cst_129 = arith.constant dense<0.000000e+00> : vector<32xf32>
    %130 = vector.multi_reduction <add>, %129, %cst_129 [1] : vector<32x72xf32> to vector<32xf32>
    %131 = vector.shape_cast %130 : vector<32xf32> to vector<32x1xf32>
    %132 = arith.addf %122, %131 : vector<32x1xf32>
    %c2_130 = arith.constant 2 : index
    %c0_131 = arith.constant 0 : index
    %c0_132 = arith.constant 0 : index
    %133 = vector.load %arg5[%c2_130, %c0_131, %c0_132] : memref<4x32x72xf32, #tpu.memory_space<vmem>>, vector<1x32x72xf32>
    %134 = vector.shape_cast %133 : vector<1x32x72xf32> to vector<32x72xf32>
    %135 = vector.broadcast %111 : vector<32x1xf32> to vector<32x72xf32>
    %136 = arith.subf %134, %135 : vector<32x72xf32>
    %137 = vector.broadcast %0 : vector<1x72xf32> to vector<32x72xf32>
    %138 = arith.mulf %136, %137 : vector<32x72xf32>
    %139 = arith.mulf %138, %138 : vector<32x72xf32>
    %cst_133 = arith.constant dense<0.000000e+00> : vector<32xf32>
    %140 = vector.multi_reduction <add>, %139, %cst_133 [1] : vector<32x72xf32> to vector<32xf32>
    %141 = vector.shape_cast %140 : vector<32xf32> to vector<32x1xf32>
    %142 = arith.addf %132, %141 : vector<32x1xf32>
    %c3_134 = arith.constant 3 : index
    %c0_135 = arith.constant 0 : index
    %c0_136 = arith.constant 0 : index
    %143 = vector.load %arg5[%c3_134, %c0_135, %c0_136] : memref<4x32x72xf32, #tpu.memory_space<vmem>>, vector<1x32x72xf32>
    %144 = vector.shape_cast %143 : vector<1x32x72xf32> to vector<32x72xf32>
    %145 = vector.broadcast %111 : vector<32x1xf32> to vector<32x72xf32>
    %146 = arith.subf %144, %145 : vector<32x72xf32>
    %147 = vector.broadcast %0 : vector<1x72xf32> to vector<32x72xf32>
    %148 = arith.mulf %146, %147 : vector<32x72xf32>
    %149 = arith.mulf %148, %148 : vector<32x72xf32>
    %cst_137 = arith.constant dense<0.000000e+00> : vector<32xf32>
    %150 = vector.multi_reduction <add>, %149, %cst_137 [1] : vector<32x72xf32> to vector<32xf32>
    %151 = vector.shape_cast %150 : vector<32xf32> to vector<32x1xf32>
    %152 = arith.addf %142, %151 : vector<32x1xf32>
    %c0_138 = arith.constant 0 : index
    %c0_139 = arith.constant 0 : index
    %153 = vector.load %arg2[%c0_138, %c0_139] : memref<32x1xf32, #tpu.memory_space<vmem>>, vector<32x1xf32>
    %cst_140 = arith.constant 7.812500e-03 : f32
    %154 = vector.broadcast %cst_140 : f32 to vector<32x1xf32>
    %155 = arith.mulf %152, %154 : vector<32x1xf32>
    %cst_141 = arith.constant 9.99999974E-6 : f32
    %156 = vector.broadcast %cst_141 : f32 to vector<32x1xf32>
    %157 = arith.addf %155, %156 : vector<32x1xf32>
    %158 = math.rsqrt %157 : vector<32x1xf32>
    %159 = arith.mulf %153, %158 : vector<32x1xf32>
    %c0_142 = arith.constant 0 : index
    %c0_143 = arith.constant 0 : index
    %160 = vector.load %arg3[%c0_142, %c0_143] : memref<32x1xf32, #tpu.memory_space<vmem>>, vector<32x1xf32>
    %161 = arith.mulf %111, %159 : vector<32x1xf32>
    %162 = arith.subf %160, %161 : vector<32x1xf32>
    %c0_144 = arith.constant 0 : index
    %c0_145 = arith.constant 0 : index
    %c0_146 = arith.constant 0 : index
    %163 = vector.load %arg5[%c0_144, %c0_145, %c0_146] : memref<4x32x72xf32, #tpu.memory_space<vmem>>, vector<1x32x72xf32>
    %164 = vector.shape_cast %163 : vector<1x32x72xf32> to vector<32x72xf32>
    %165 = vector.broadcast %159 : vector<32x1xf32> to vector<32x72xf32>
    %166 = arith.mulf %164, %165 : vector<32x72xf32>
    %167 = vector.broadcast %162 : vector<32x1xf32> to vector<32x72xf32>
    %168 = arith.addf %166, %167 : vector<32x72xf32>
    %cst_147 = arith.constant 0.000000e+00 : f32
    %169 = vector.broadcast %cst_147 : f32 to vector<32x72xf32>
    %170 = arith.maximumf %168, %169 : vector<32x72xf32>
    %c0_148 = arith.constant 0 : index
    %c0_149 = arith.constant 0 : index
    %c0_150 = arith.constant 0 : index
    %171 = vector.load %arg5[%c0_148, %c0_149, %c0_150] : memref<4x32x72xf32, #tpu.memory_space<vmem>>, vector<1x32x72xf32>
    %172 = vector.shape_cast %171 : vector<1x32x72xf32> to vector<32x72xf32>
    %173 = vector.shape_cast %170 : vector<32x72xf32> to vector<1x32x72xf32>
    tpu.vector_store %arg5[%c0_148, %c0_149, %c0_150], %173 {strides = array<i32>} : memref<4x32x72xf32, #tpu.memory_space<vmem>>, vector<1x32x72xf32>,
    %c1_151 = arith.constant 1 : index
    %c0_152 = arith.constant 0 : index
    %c0_153 = arith.constant 0 : index
    %174 = vector.load %arg5[%c1_151, %c0_152, %c0_153] : memref<4x32x72xf32, #tpu.memory_space<vmem>>, vector<1x32x72xf32>
    %175 = vector.shape_cast %174 : vector<1x32x72xf32> to vector<32x72xf32>
    %176 = vector.broadcast %159 : vector<32x1xf32> to vector<32x72xf32>
    %177 = arith.mulf %175, %176 : vector<32x72xf32>
    %178 = vector.broadcast %162 : vector<32x1xf32> to vector<32x72xf32>
    %179 = arith.addf %177, %178 : vector<32x72xf32>
    %cst_154 = arith.constant 0.000000e+00 : f32
    %180 = vector.broadcast %cst_154 : f32 to vector<32x72xf32>
    %181 = arith.maximumf %179, %180 : vector<32x72xf32>
    %c1_155 = arith.constant 1 : index
    %c0_156 = arith.constant 0 : index
    %c0_157 = arith.constant 0 : index
    %182 = vector.load %arg5[%c1_155, %c0_156, %c0_157] : memref<4x32x72xf32, #tpu.memory_space<vmem>>, vector<1x32x72xf32>
    %183 = vector.shape_cast %182 : vector<1x32x72xf32> to vector<32x72xf32>
    %184 = vector.shape_cast %181 : vector<32x72xf32> to vector<1x32x72xf32>
    tpu.vector_store %arg5[%c1_155, %c0_156, %c0_157], %184 {strides = array<i32>} : memref<4x32x72xf32, #tpu.memory_space<vmem>>, vector<1x32x72xf32>,
    %c2_158 = arith.constant 2 : index
    %c0_159 = arith.constant 0 : index
    %c0_160 = arith.constant 0 : index
    %185 = vector.load %arg5[%c2_158, %c0_159, %c0_160] : memref<4x32x72xf32, #tpu.memory_space<vmem>>, vector<1x32x72xf32>
    %186 = vector.shape_cast %185 : vector<1x32x72xf32> to vector<32x72xf32>
    %187 = vector.broadcast %159 : vector<32x1xf32> to vector<32x72xf32>
    %188 = arith.mulf %186, %187 : vector<32x72xf32>
    %189 = vector.broadcast %162 : vector<32x1xf32> to vector<32x72xf32>
    %190 = arith.addf %188, %189 : vector<32x72xf32>
    %cst_161 = arith.constant 0.000000e+00 : f32
    %191 = vector.broadcast %cst_161 : f32 to vector<32x72xf32>
    %192 = arith.maximumf %190, %191 : vector<32x72xf32>
    %c2_162 = arith.constant 2 : index
    %c0_163 = arith.constant 0 : index
    %c0_164 = arith.constant 0 : index
    %193 = vector.load %arg5[%c2_162, %c0_163, %c0_164] : memref<4x32x72xf32, #tpu.memory_space<vmem>>, vector<1x32x72xf32>
    %194 = vector.shape_cast %193 : vector<1x32x72xf32> to vector<32x72xf32>
    %195 = vector.shape_cast %192 : vector<32x72xf32> to vector<1x32x72xf32>
    tpu.vector_store %arg5[%c2_162, %c0_163, %c0_164], %195 {strides = array<i32>} : memref<4x32x72xf32, #tpu.memory_space<vmem>>, vector<1x32x72xf32>,
    %c3_165 = arith.constant 3 : index
    %c0_166 = arith.constant 0 : index
    %c0_167 = arith.constant 0 : index
    %196 = vector.load %arg5[%c3_165, %c0_166, %c0_167] : memref<4x32x72xf32, #tpu.memory_space<vmem>>, vector<1x32x72xf32>
    %197 = vector.shape_cast %196 : vector<1x32x72xf32> to vector<32x72xf32>
    %198 = vector.broadcast %159 : vector<32x1xf32> to vector<32x72xf32>
    %199 = arith.mulf %197, %198 : vector<32x72xf32>
    %200 = vector.broadcast %162 : vector<32x1xf32> to vector<32x72xf32>
    %201 = arith.addf %199, %200 : vector<32x72xf32>
    %cst_168 = arith.constant 0.000000e+00 : f32
    %202 = vector.broadcast %cst_168 : f32 to vector<32x72xf32>
    %203 = arith.maximumf %201, %202 : vector<32x72xf32>
    %c3_169 = arith.constant 3 : index
    %c0_170 = arith.constant 0 : index
    %c0_171 = arith.constant 0 : index
    %204 = vector.load %arg5[%c3_169, %c0_170, %c0_171] : memref<4x32x72xf32, #tpu.memory_space<vmem>>, vector<1x32x72xf32>
    %205 = vector.shape_cast %204 : vector<1x32x72xf32> to vector<32x72xf32>
    %206 = vector.shape_cast %203 : vector<32x72xf32> to vector<1x32x72xf32>
    tpu.vector_store %arg5[%c3_169, %c0_170, %c0_171], %206 {strides = array<i32>} : memref<4x32x72xf32, #tpu.memory_space<vmem>>, vector<1x32x72xf32>,
    return
  }
}

module attributes {stable_mosaic.version = 11 : i64} {
  func.func @kernel(%arg0: memref<32x256xbf16, #tpu.memory_space<vmem>>, %arg1: memref<4x4x16x32xbf16, #tpu.memory_space<vmem>>, %arg2: memref<16x1xf32, #tpu.memory_space<vmem>>, %arg3: memref<16x1xf32, #tpu.memory_space<vmem>>, %arg4: memref<1x200xf32, #tpu.memory_space<vmem>>, %arg5: memref<4x16x200xf32, #tpu.memory_space<vmem>>) attributes {dimension_semantics = [], scalar_prefetch = 0 : i64, scratch_operands = 0 : i64, tpu.core_type = #tpu.core_type<tc>} {
    %c0 = arith.constant 0 : index
    %c0_0 = arith.constant 0 : index
    %0 = vector.load %arg4[%c0, %c0_0] : memref<1x200xf32, #tpu.memory_space<vmem>>, vector<1x200xf32>
    %cst = arith.constant 0.000000e+00 : f32
    %1 = vector.broadcast %cst : f32 to vector<16x1xf32>
    %c0_1 = arith.constant 0 : index
    %c0_2 = arith.constant 0 : index
    %c0_3 = arith.constant 0 : index
    %c0_4 = arith.constant 0 : index
    %2 = vector.load %arg1[%c0_1, %c0_2, %c0_3, %c0_4] : memref<4x4x16x32xbf16, #tpu.memory_space<vmem>>, vector<1x1x16x32xbf16>
    %3 = vector.shape_cast %2 : vector<1x1x16x32xbf16> to vector<16x32xbf16>
    %c0_5 = arith.constant 0 : index
    %c0_6 = arith.constant 0 : index
    %4 = vector.load %arg0[%c0_5, %c0_6] : memref<32x256xbf16, #tpu.memory_space<vmem>>, vector<32x200xbf16>
    %cst_7 = arith.constant dense<0.000000e+00> : vector<16x200xf32>
    %5 = tpu.matmul %3, %4, %cst_7 {dimension_numbers = #tpu.dot_dimension_numbers<[1], [0], [0], [1], [0, 0, 1, 1], [], []>} : vector<16x32xbf16>, vector<32x200xbf16>, vector<16x200xf32> -> vector<16x200xf32>
    %c0_8 = arith.constant 0 : index
    %c1 = arith.constant 1 : index
    %c0_9 = arith.constant 0 : index
    %c0_10 = arith.constant 0 : index
    %6 = vector.load %arg1[%c0_8, %c1, %c0_9, %c0_10] : memref<4x4x16x32xbf16, #tpu.memory_space<vmem>>, vector<1x1x16x32xbf16>
    %7 = vector.shape_cast %6 : vector<1x1x16x32xbf16> to vector<16x32xbf16>
    %c0_11 = arith.constant 0 : index
    %c1_12 = arith.constant 1 : index
    %8 = vector.load %arg0[%c0_11, %c1_12] : memref<32x256xbf16, #tpu.memory_space<vmem>>, vector<32x200xbf16>
    %cst_13 = arith.constant dense<0.000000e+00> : vector<16x200xf32>
    %9 = tpu.matmul %7, %8, %cst_13 {dimension_numbers = #tpu.dot_dimension_numbers<[1], [0], [0], [1], [0, 0, 1, 1], [], []>} : vector<16x32xbf16>, vector<32x200xbf16>, vector<16x200xf32> -> vector<16x200xf32>
    %10 = arith.addf %5, %9 : vector<16x200xf32>
    %c0_14 = arith.constant 0 : index
    %c2 = arith.constant 2 : index
    %c0_15 = arith.constant 0 : index
    %c0_16 = arith.constant 0 : index
    %11 = vector.load %arg1[%c0_14, %c2, %c0_15, %c0_16] : memref<4x4x16x32xbf16, #tpu.memory_space<vmem>>, vector<1x1x16x32xbf16>
    %12 = vector.shape_cast %11 : vector<1x1x16x32xbf16> to vector<16x32xbf16>
    %c0_17 = arith.constant 0 : index
    %c10 = arith.constant 10 : index
    %13 = vector.load %arg0[%c0_17, %c10] : memref<32x256xbf16, #tpu.memory_space<vmem>>, vector<32x200xbf16>
    %cst_18 = arith.constant dense<0.000000e+00> : vector<16x200xf32>
    %14 = tpu.matmul %12, %13, %cst_18 {dimension_numbers = #tpu.dot_dimension_numbers<[1], [0], [0], [1], [0, 0, 1, 1], [], []>} : vector<16x32xbf16>, vector<32x200xbf16>, vector<16x200xf32> -> vector<16x200xf32>
    %15 = arith.addf %10, %14 : vector<16x200xf32>
    %c0_19 = arith.constant 0 : index
    %c3 = arith.constant 3 : index
    %c0_20 = arith.constant 0 : index
    %c0_21 = arith.constant 0 : index
    %16 = vector.load %arg1[%c0_19, %c3, %c0_20, %c0_21] : memref<4x4x16x32xbf16, #tpu.memory_space<vmem>>, vector<1x1x16x32xbf16>
    %17 = vector.shape_cast %16 : vector<1x1x16x32xbf16> to vector<16x32xbf16>
    %c0_22 = arith.constant 0 : index
    %c11 = arith.constant 11 : index
    %18 = vector.load %arg0[%c0_22, %c11] : memref<32x256xbf16, #tpu.memory_space<vmem>>, vector<32x200xbf16>
    %cst_23 = arith.constant dense<0.000000e+00> : vector<16x200xf32>
    %19 = tpu.matmul %17, %18, %cst_23 {dimension_numbers = #tpu.dot_dimension_numbers<[1], [0], [0], [1], [0, 0, 1, 1], [], []>} : vector<16x32xbf16>, vector<32x200xbf16>, vector<16x200xf32> -> vector<16x200xf32>
    %20 = arith.addf %15, %19 : vector<16x200xf32>
    %21 = vector.broadcast %0 : vector<1x200xf32> to vector<16x200xf32>
    %22 = arith.mulf %20, %21 : vector<16x200xf32>
    %cst_24 = arith.constant dense<0.000000e+00> : vector<16xf32>
    %23 = vector.multi_reduction <add>, %22, %cst_24 [1] : vector<16x200xf32> to vector<16xf32>
    %24 = vector.shape_cast %23 : vector<16xf32> to vector<16x1xf32>
    %25 = arith.addf %1, %24 : vector<16x1xf32>
    %c0_25 = arith.constant 0 : index
    %c0_26 = arith.constant 0 : index
    %c0_27 = arith.constant 0 : index
    %26 = vector.load %arg5[%c0_25, %c0_26, %c0_27] : memref<4x16x200xf32, #tpu.memory_space<vmem>>, vector<1x16x200xf32>
    %27 = vector.shape_cast %26 : vector<1x16x200xf32> to vector<16x200xf32>
    %28 = vector.shape_cast %20 : vector<16x200xf32> to vector<1x16x200xf32>
    tpu.vector_store %arg5[%c0_25, %c0_26, %c0_27], %28 {strides = array<i32>} : memref<4x16x200xf32, #tpu.memory_space<vmem>>, vector<1x16x200xf32>,
    %c1_28 = arith.constant 1 : index
    %c0_29 = arith.constant 0 : index
    %c0_30 = arith.constant 0 : index
    %c0_31 = arith.constant 0 : index
    %29 = vector.load %arg1[%c1_28, %c0_29, %c0_30, %c0_31] : memref<4x4x16x32xbf16, #tpu.memory_space<vmem>>, vector<1x1x16x32xbf16>
    %30 = vector.shape_cast %29 : vector<1x1x16x32xbf16> to vector<16x32xbf16>
    %c0_32 = arith.constant 0 : index
    %c1_33 = arith.constant 1 : index
    %31 = vector.load %arg0[%c0_32, %c1_33] : memref<32x256xbf16, #tpu.memory_space<vmem>>, vector<32x200xbf16>
    %cst_34 = arith.constant dense<0.000000e+00> : vector<16x200xf32>
    %32 = tpu.matmul %30, %31, %cst_34 {dimension_numbers = #tpu.dot_dimension_numbers<[1], [0], [0], [1], [0, 0, 1, 1], [], []>} : vector<16x32xbf16>, vector<32x200xbf16>, vector<16x200xf32> -> vector<16x200xf32>
    %c1_35 = arith.constant 1 : index
    %c1_36 = arith.constant 1 : index
    %c0_37 = arith.constant 0 : index
    %c0_38 = arith.constant 0 : index
    %33 = vector.load %arg1[%c1_35, %c1_36, %c0_37, %c0_38] : memref<4x4x16x32xbf16, #tpu.memory_space<vmem>>, vector<1x1x16x32xbf16>
    %34 = vector.shape_cast %33 : vector<1x1x16x32xbf16> to vector<16x32xbf16>
    %c0_39 = arith.constant 0 : index
    %c2_40 = arith.constant 2 : index
    %35 = vector.load %arg0[%c0_39, %c2_40] : memref<32x256xbf16, #tpu.memory_space<vmem>>, vector<32x200xbf16>
    %cst_41 = arith.constant dense<0.000000e+00> : vector<16x200xf32>
    %36 = tpu.matmul %34, %35, %cst_41 {dimension_numbers = #tpu.dot_dimension_numbers<[1], [0], [0], [1], [0, 0, 1, 1], [], []>} : vector<16x32xbf16>, vector<32x200xbf16>, vector<16x200xf32> -> vector<16x200xf32>
    %37 = arith.addf %32, %36 : vector<16x200xf32>
    %c1_42 = arith.constant 1 : index
    %c2_43 = arith.constant 2 : index
    %c0_44 = arith.constant 0 : index
    %c0_45 = arith.constant 0 : index
    %38 = vector.load %arg1[%c1_42, %c2_43, %c0_44, %c0_45] : memref<4x4x16x32xbf16, #tpu.memory_space<vmem>>, vector<1x1x16x32xbf16>
    %39 = vector.shape_cast %38 : vector<1x1x16x32xbf16> to vector<16x32xbf16>
    %c0_46 = arith.constant 0 : index
    %c11_47 = arith.constant 11 : index
    %40 = vector.load %arg0[%c0_46, %c11_47] : memref<32x256xbf16, #tpu.memory_space<vmem>>, vector<32x200xbf16>
    %cst_48 = arith.constant dense<0.000000e+00> : vector<16x200xf32>
    %41 = tpu.matmul %39, %40, %cst_48 {dimension_numbers = #tpu.dot_dimension_numbers<[1], [0], [0], [1], [0, 0, 1, 1], [], []>} : vector<16x32xbf16>, vector<32x200xbf16>, vector<16x200xf32> -> vector<16x200xf32>
    %42 = arith.addf %37, %41 : vector<16x200xf32>
    %c1_49 = arith.constant 1 : index
    %c3_50 = arith.constant 3 : index
    %c0_51 = arith.constant 0 : index
    %c0_52 = arith.constant 0 : index
    %43 = vector.load %arg1[%c1_49, %c3_50, %c0_51, %c0_52] : memref<4x4x16x32xbf16, #tpu.memory_space<vmem>>, vector<1x1x16x32xbf16>
    %44 = vector.shape_cast %43 : vector<1x1x16x32xbf16> to vector<16x32xbf16>
    %c0_53 = arith.constant 0 : index
    %c12 = arith.constant 12 : index
    %45 = vector.load %arg0[%c0_53, %c12] : memref<32x256xbf16, #tpu.memory_space<vmem>>, vector<32x200xbf16>
    %cst_54 = arith.constant dense<0.000000e+00> : vector<16x200xf32>
    %46 = tpu.matmul %44, %45, %cst_54 {dimension_numbers = #tpu.dot_dimension_numbers<[1], [0], [0], [1], [0, 0, 1, 1], [], []>} : vector<16x32xbf16>, vector<32x200xbf16>, vector<16x200xf32> -> vector<16x200xf32>
    %47 = arith.addf %42, %46 : vector<16x200xf32>
    %48 = vector.broadcast %0 : vector<1x200xf32> to vector<16x200xf32>
    %49 = arith.mulf %47, %48 : vector<16x200xf32>
    %cst_55 = arith.constant dense<0.000000e+00> : vector<16xf32>
    %50 = vector.multi_reduction <add>, %49, %cst_55 [1] : vector<16x200xf32> to vector<16xf32>
    %51 = vector.shape_cast %50 : vector<16xf32> to vector<16x1xf32>
    %52 = arith.addf %25, %51 : vector<16x1xf32>
    %c1_56 = arith.constant 1 : index
    %c0_57 = arith.constant 0 : index
    %c0_58 = arith.constant 0 : index
    %53 = vector.load %arg5[%c1_56, %c0_57, %c0_58] : memref<4x16x200xf32, #tpu.memory_space<vmem>>, vector<1x16x200xf32>
    %54 = vector.shape_cast %53 : vector<1x16x200xf32> to vector<16x200xf32>
    %55 = vector.shape_cast %47 : vector<16x200xf32> to vector<1x16x200xf32>
    tpu.vector_store %arg5[%c1_56, %c0_57, %c0_58], %55 {strides = array<i32>} : memref<4x16x200xf32, #tpu.memory_space<vmem>>, vector<1x16x200xf32>,
    %c2_59 = arith.constant 2 : index
    %c0_60 = arith.constant 0 : index
    %c0_61 = arith.constant 0 : index
    %c0_62 = arith.constant 0 : index
    %56 = vector.load %arg1[%c2_59, %c0_60, %c0_61, %c0_62] : memref<4x4x16x32xbf16, #tpu.memory_space<vmem>>, vector<1x1x16x32xbf16>
    %57 = vector.shape_cast %56 : vector<1x1x16x32xbf16> to vector<16x32xbf16>
    %c0_63 = arith.constant 0 : index
    %c10_64 = arith.constant 10 : index
    %58 = vector.load %arg0[%c0_63, %c10_64] : memref<32x256xbf16, #tpu.memory_space<vmem>>, vector<32x200xbf16>
    %cst_65 = arith.constant dense<0.000000e+00> : vector<16x200xf32>
    %59 = tpu.matmul %57, %58, %cst_65 {dimension_numbers = #tpu.dot_dimension_numbers<[1], [0], [0], [1], [0, 0, 1, 1], [], []>} : vector<16x32xbf16>, vector<32x200xbf16>, vector<16x200xf32> -> vector<16x200xf32>
    %c2_66 = arith.constant 2 : index
    %c1_67 = arith.constant 1 : index
    %c0_68 = arith.constant 0 : index
    %c0_69 = arith.constant 0 : index
    %60 = vector.load %arg1[%c2_66, %c1_67, %c0_68, %c0_69] : memref<4x4x16x32xbf16, #tpu.memory_space<vmem>>, vector<1x1x16x32xbf16>
    %61 = vector.shape_cast %60 : vector<1x1x16x32xbf16> to vector<16x32xbf16>
    %c0_70 = arith.constant 0 : index
    %c11_71 = arith.constant 11 : index
    %62 = vector.load %arg0[%c0_70, %c11_71] : memref<32x256xbf16, #tpu.memory_space<vmem>>, vector<32x200xbf16>
    %cst_72 = arith.constant dense<0.000000e+00> : vector<16x200xf32>
    %63 = tpu.matmul %61, %62, %cst_72 {dimension_numbers = #tpu.dot_dimension_numbers<[1], [0], [0], [1], [0, 0, 1, 1], [], []>} : vector<16x32xbf16>, vector<32x200xbf16>, vector<16x200xf32> -> vector<16x200xf32>
    %64 = arith.addf %59, %63 : vector<16x200xf32>
    %c2_73 = arith.constant 2 : index
    %c2_74 = arith.constant 2 : index
    %c0_75 = arith.constant 0 : index
    %c0_76 = arith.constant 0 : index
    %65 = vector.load %arg1[%c2_73, %c2_74, %c0_75, %c0_76] : memref<4x4x16x32xbf16, #tpu.memory_space<vmem>>, vector<1x1x16x32xbf16>
    %66 = vector.shape_cast %65 : vector<1x1x16x32xbf16> to vector<16x32xbf16>
    %c0_77 = arith.constant 0 : index
    %c20 = arith.constant 20 : index
    %67 = vector.load %arg0[%c0_77, %c20] : memref<32x256xbf16, #tpu.memory_space<vmem>>, vector<32x200xbf16>
    %cst_78 = arith.constant dense<0.000000e+00> : vector<16x200xf32>
    %68 = tpu.matmul %66, %67, %cst_78 {dimension_numbers = #tpu.dot_dimension_numbers<[1], [0], [0], [1], [0, 0, 1, 1], [], []>} : vector<16x32xbf16>, vector<32x200xbf16>, vector<16x200xf32> -> vector<16x200xf32>
    %69 = arith.addf %64, %68 : vector<16x200xf32>
    %c2_79 = arith.constant 2 : index
    %c3_80 = arith.constant 3 : index
    %c0_81 = arith.constant 0 : index
    %c0_82 = arith.constant 0 : index
    %70 = vector.load %arg1[%c2_79, %c3_80, %c0_81, %c0_82] : memref<4x4x16x32xbf16, #tpu.memory_space<vmem>>, vector<1x1x16x32xbf16>
    %71 = vector.shape_cast %70 : vector<1x1x16x32xbf16> to vector<16x32xbf16>
    %c0_83 = arith.constant 0 : index
    %c21 = arith.constant 21 : index
    %72 = vector.load %arg0[%c0_83, %c21] : memref<32x256xbf16, #tpu.memory_space<vmem>>, vector<32x200xbf16>
    %cst_84 = arith.constant dense<0.000000e+00> : vector<16x200xf32>
    %73 = tpu.matmul %71, %72, %cst_84 {dimension_numbers = #tpu.dot_dimension_numbers<[1], [0], [0], [1], [0, 0, 1, 1], [], []>} : vector<16x32xbf16>, vector<32x200xbf16>, vector<16x200xf32> -> vector<16x200xf32>
    %74 = arith.addf %69, %73 : vector<16x200xf32>
    %75 = vector.broadcast %0 : vector<1x200xf32> to vector<16x200xf32>
    %76 = arith.mulf %74, %75 : vector<16x200xf32>
    %cst_85 = arith.constant dense<0.000000e+00> : vector<16xf32>
    %77 = vector.multi_reduction <add>, %76, %cst_85 [1] : vector<16x200xf32> to vector<16xf32>
    %78 = vector.shape_cast %77 : vector<16xf32> to vector<16x1xf32>
    %79 = arith.addf %52, %78 : vector<16x1xf32>
    %c2_86 = arith.constant 2 : index
    %c0_87 = arith.constant 0 : index
    %c0_88 = arith.constant 0 : index
    %80 = vector.load %arg5[%c2_86, %c0_87, %c0_88] : memref<4x16x200xf32, #tpu.memory_space<vmem>>, vector<1x16x200xf32>
    %81 = vector.shape_cast %80 : vector<1x16x200xf32> to vector<16x200xf32>
    %82 = vector.shape_cast %74 : vector<16x200xf32> to vector<1x16x200xf32>
    tpu.vector_store %arg5[%c2_86, %c0_87, %c0_88], %82 {strides = array<i32>} : memref<4x16x200xf32, #tpu.memory_space<vmem>>, vector<1x16x200xf32>,
    %c3_89 = arith.constant 3 : index
    %c0_90 = arith.constant 0 : index
    %c0_91 = arith.constant 0 : index
    %c0_92 = arith.constant 0 : index
    %83 = vector.load %arg1[%c3_89, %c0_90, %c0_91, %c0_92] : memref<4x4x16x32xbf16, #tpu.memory_space<vmem>>, vector<1x1x16x32xbf16>
    %84 = vector.shape_cast %83 : vector<1x1x16x32xbf16> to vector<16x32xbf16>
    %c0_93 = arith.constant 0 : index
    %c11_94 = arith.constant 11 : index
    %85 = vector.load %arg0[%c0_93, %c11_94] : memref<32x256xbf16, #tpu.memory_space<vmem>>, vector<32x200xbf16>
    %cst_95 = arith.constant dense<0.000000e+00> : vector<16x200xf32>
    %86 = tpu.matmul %84, %85, %cst_95 {dimension_numbers = #tpu.dot_dimension_numbers<[1], [0], [0], [1], [0, 0, 1, 1], [], []>} : vector<16x32xbf16>, vector<32x200xbf16>, vector<16x200xf32> -> vector<16x200xf32>
    %c3_96 = arith.constant 3 : index
    %c1_97 = arith.constant 1 : index
    %c0_98 = arith.constant 0 : index
    %c0_99 = arith.constant 0 : index
    %87 = vector.load %arg1[%c3_96, %c1_97, %c0_98, %c0_99] : memref<4x4x16x32xbf16, #tpu.memory_space<vmem>>, vector<1x1x16x32xbf16>
    %88 = vector.shape_cast %87 : vector<1x1x16x32xbf16> to vector<16x32xbf16>
    %c0_100 = arith.constant 0 : index
    %c12_101 = arith.constant 12 : index
    %89 = vector.load %arg0[%c0_100, %c12_101] : memref<32x256xbf16, #tpu.memory_space<vmem>>, vector<32x200xbf16>
    %cst_102 = arith.constant dense<0.000000e+00> : vector<16x200xf32>
    %90 = tpu.matmul %88, %89, %cst_102 {dimension_numbers = #tpu.dot_dimension_numbers<[1], [0], [0], [1], [0, 0, 1, 1], [], []>} : vector<16x32xbf16>, vector<32x200xbf16>, vector<16x200xf32> -> vector<16x200xf32>
    %91 = arith.addf %86, %90 : vector<16x200xf32>
    %c3_103 = arith.constant 3 : index
    %c2_104 = arith.constant 2 : index
    %c0_105 = arith.constant 0 : index
    %c0_106 = arith.constant 0 : index
    %92 = vector.load %arg1[%c3_103, %c2_104, %c0_105, %c0_106] : memref<4x4x16x32xbf16, #tpu.memory_space<vmem>>, vector<1x1x16x32xbf16>
    %93 = vector.shape_cast %92 : vector<1x1x16x32xbf16> to vector<16x32xbf16>
    %c0_107 = arith.constant 0 : index
    %c21_108 = arith.constant 21 : index
    %94 = vector.load %arg0[%c0_107, %c21_108] : memref<32x256xbf16, #tpu.memory_space<vmem>>, vector<32x200xbf16>
    %cst_109 = arith.constant dense<0.000000e+00> : vector<16x200xf32>
    %95 = tpu.matmul %93, %94, %cst_109 {dimension_numbers = #tpu.dot_dimension_numbers<[1], [0], [0], [1], [0, 0, 1, 1], [], []>} : vector<16x32xbf16>, vector<32x200xbf16>, vector<16x200xf32> -> vector<16x200xf32>
    %96 = arith.addf %91, %95 : vector<16x200xf32>
    %c3_110 = arith.constant 3 : index
    %c3_111 = arith.constant 3 : index
    %c0_112 = arith.constant 0 : index
    %c0_113 = arith.constant 0 : index
    %97 = vector.load %arg1[%c3_110, %c3_111, %c0_112, %c0_113] : memref<4x4x16x32xbf16, #tpu.memory_space<vmem>>, vector<1x1x16x32xbf16>
    %98 = vector.shape_cast %97 : vector<1x1x16x32xbf16> to vector<16x32xbf16>
    %c0_114 = arith.constant 0 : index
    %c22 = arith.constant 22 : index
    %99 = vector.load %arg0[%c0_114, %c22] : memref<32x256xbf16, #tpu.memory_space<vmem>>, vector<32x200xbf16>
    %cst_115 = arith.constant dense<0.000000e+00> : vector<16x200xf32>
    %100 = tpu.matmul %98, %99, %cst_115 {dimension_numbers = #tpu.dot_dimension_numbers<[1], [0], [0], [1], [0, 0, 1, 1], [], []>} : vector<16x32xbf16>, vector<32x200xbf16>, vector<16x200xf32> -> vector<16x200xf32>
    %101 = arith.addf %96, %100 : vector<16x200xf32>
    %102 = vector.broadcast %0 : vector<1x200xf32> to vector<16x200xf32>
    %103 = arith.mulf %101, %102 : vector<16x200xf32>
    %cst_116 = arith.constant dense<0.000000e+00> : vector<16xf32>
    %104 = vector.multi_reduction <add>, %103, %cst_116 [1] : vector<16x200xf32> to vector<16xf32>
    %105 = vector.shape_cast %104 : vector<16xf32> to vector<16x1xf32>
    %106 = arith.addf %79, %105 : vector<16x1xf32>
    %c3_117 = arith.constant 3 : index
    %c0_118 = arith.constant 0 : index
    %c0_119 = arith.constant 0 : index
    %107 = vector.load %arg5[%c3_117, %c0_118, %c0_119] : memref<4x16x200xf32, #tpu.memory_space<vmem>>, vector<1x16x200xf32>
    %108 = vector.shape_cast %107 : vector<1x16x200xf32> to vector<16x200xf32>
    %109 = vector.shape_cast %101 : vector<16x200xf32> to vector<1x16x200xf32>
    tpu.vector_store %arg5[%c3_117, %c0_118, %c0_119], %109 {strides = array<i32>} : memref<4x16x200xf32, #tpu.memory_space<vmem>>, vector<1x16x200xf32>,
    %cst_120 = arith.constant 0.001953125 : f32
    %110 = vector.broadcast %cst_120 : f32 to vector<16x1xf32>
    %111 = arith.mulf %106, %110 : vector<16x1xf32>
    %cst_121 = arith.constant 0.000000e+00 : f32
    %112 = vector.broadcast %cst_121 : f32 to vector<16x1xf32>
    %c0_122 = arith.constant 0 : index
    %c0_123 = arith.constant 0 : index
    %c0_124 = arith.constant 0 : index
    %113 = vector.load %arg5[%c0_122, %c0_123, %c0_124] : memref<4x16x200xf32, #tpu.memory_space<vmem>>, vector<1x16x200xf32>
    %114 = vector.shape_cast %113 : vector<1x16x200xf32> to vector<16x200xf32>
    %115 = vector.broadcast %111 : vector<16x1xf32> to vector<16x200xf32>
    %116 = arith.subf %114, %115 : vector<16x200xf32>
    %117 = vector.broadcast %0 : vector<1x200xf32> to vector<16x200xf32>
    %118 = arith.mulf %116, %117 : vector<16x200xf32>
    %119 = arith.mulf %118, %118 : vector<16x200xf32>
    %cst_125 = arith.constant dense<0.000000e+00> : vector<16xf32>
    %120 = vector.multi_reduction <add>, %119, %cst_125 [1] : vector<16x200xf32> to vector<16xf32>
    %121 = vector.shape_cast %120 : vector<16xf32> to vector<16x1xf32>
    %122 = arith.addf %112, %121 : vector<16x1xf32>
    %c1_126 = arith.constant 1 : index
    %c0_127 = arith.constant 0 : index
    %c0_128 = arith.constant 0 : index
    %123 = vector.load %arg5[%c1_126, %c0_127, %c0_128] : memref<4x16x200xf32, #tpu.memory_space<vmem>>, vector<1x16x200xf32>
    %124 = vector.shape_cast %123 : vector<1x16x200xf32> to vector<16x200xf32>
    %125 = vector.broadcast %111 : vector<16x1xf32> to vector<16x200xf32>
    %126 = arith.subf %124, %125 : vector<16x200xf32>
    %127 = vector.broadcast %0 : vector<1x200xf32> to vector<16x200xf32>
    %128 = arith.mulf %126, %127 : vector<16x200xf32>
    %129 = arith.mulf %128, %128 : vector<16x200xf32>
    %cst_129 = arith.constant dense<0.000000e+00> : vector<16xf32>
    %130 = vector.multi_reduction <add>, %129, %cst_129 [1] : vector<16x200xf32> to vector<16xf32>
    %131 = vector.shape_cast %130 : vector<16xf32> to vector<16x1xf32>
    %132 = arith.addf %122, %131 : vector<16x1xf32>
    %c2_130 = arith.constant 2 : index
    %c0_131 = arith.constant 0 : index
    %c0_132 = arith.constant 0 : index
    %133 = vector.load %arg5[%c2_130, %c0_131, %c0_132] : memref<4x16x200xf32, #tpu.memory_space<vmem>>, vector<1x16x200xf32>
    %134 = vector.shape_cast %133 : vector<1x16x200xf32> to vector<16x200xf32>
    %135 = vector.broadcast %111 : vector<16x1xf32> to vector<16x200xf32>
    %136 = arith.subf %134, %135 : vector<16x200xf32>
    %137 = vector.broadcast %0 : vector<1x200xf32> to vector<16x200xf32>
    %138 = arith.mulf %136, %137 : vector<16x200xf32>
    %139 = arith.mulf %138, %138 : vector<16x200xf32>
    %cst_133 = arith.constant dense<0.000000e+00> : vector<16xf32>
    %140 = vector.multi_reduction <add>, %139, %cst_133 [1] : vector<16x200xf32> to vector<16xf32>
    %141 = vector.shape_cast %140 : vector<16xf32> to vector<16x1xf32>
    %142 = arith.addf %132, %141 : vector<16x1xf32>
    %c3_134 = arith.constant 3 : index
    %c0_135 = arith.constant 0 : index
    %c0_136 = arith.constant 0 : index
    %143 = vector.load %arg5[%c3_134, %c0_135, %c0_136] : memref<4x16x200xf32, #tpu.memory_space<vmem>>, vector<1x16x200xf32>
    %144 = vector.shape_cast %143 : vector<1x16x200xf32> to vector<16x200xf32>
    %145 = vector.broadcast %111 : vector<16x1xf32> to vector<16x200xf32>
    %146 = arith.subf %144, %145 : vector<16x200xf32>
    %147 = vector.broadcast %0 : vector<1x200xf32> to vector<16x200xf32>
    %148 = arith.mulf %146, %147 : vector<16x200xf32>
    %149 = arith.mulf %148, %148 : vector<16x200xf32>
    %cst_137 = arith.constant dense<0.000000e+00> : vector<16xf32>
    %150 = vector.multi_reduction <add>, %149, %cst_137 [1] : vector<16x200xf32> to vector<16xf32>
    %151 = vector.shape_cast %150 : vector<16xf32> to vector<16x1xf32>
    %152 = arith.addf %142, %151 : vector<16x1xf32>
    %c0_138 = arith.constant 0 : index
    %c0_139 = arith.constant 0 : index
    %153 = vector.load %arg2[%c0_138, %c0_139] : memref<16x1xf32, #tpu.memory_space<vmem>>, vector<16x1xf32>
    %cst_140 = arith.constant 0.001953125 : f32
    %154 = vector.broadcast %cst_140 : f32 to vector<16x1xf32>
    %155 = arith.mulf %152, %154 : vector<16x1xf32>
    %cst_141 = arith.constant 9.99999974E-6 : f32
    %156 = vector.broadcast %cst_141 : f32 to vector<16x1xf32>
    %157 = arith.addf %155, %156 : vector<16x1xf32>
    %158 = math.rsqrt %157 : vector<16x1xf32>
    %159 = arith.mulf %153, %158 : vector<16x1xf32>
    %c0_142 = arith.constant 0 : index
    %c0_143 = arith.constant 0 : index
    %160 = vector.load %arg3[%c0_142, %c0_143] : memref<16x1xf32, #tpu.memory_space<vmem>>, vector<16x1xf32>
    %161 = arith.mulf %111, %159 : vector<16x1xf32>
    %162 = arith.subf %160, %161 : vector<16x1xf32>
    %c0_144 = arith.constant 0 : index
    %c0_145 = arith.constant 0 : index
    %c0_146 = arith.constant 0 : index
    %163 = vector.load %arg5[%c0_144, %c0_145, %c0_146] : memref<4x16x200xf32, #tpu.memory_space<vmem>>, vector<1x16x200xf32>
    %164 = vector.shape_cast %163 : vector<1x16x200xf32> to vector<16x200xf32>
    %165 = vector.broadcast %159 : vector<16x1xf32> to vector<16x200xf32>
    %166 = arith.mulf %164, %165 : vector<16x200xf32>
    %167 = vector.broadcast %162 : vector<16x1xf32> to vector<16x200xf32>
    %168 = arith.addf %166, %167 : vector<16x200xf32>
    %cst_147 = arith.constant 0.000000e+00 : f32
    %169 = vector.broadcast %cst_147 : f32 to vector<16x200xf32>
    %170 = arith.maximumf %168, %169 : vector<16x200xf32>
    %c0_148 = arith.constant 0 : index
    %c0_149 = arith.constant 0 : index
    %c0_150 = arith.constant 0 : index
    %171 = vector.load %arg5[%c0_148, %c0_149, %c0_150] : memref<4x16x200xf32, #tpu.memory_space<vmem>>, vector<1x16x200xf32>
    %172 = vector.shape_cast %171 : vector<1x16x200xf32> to vector<16x200xf32>
    %173 = vector.shape_cast %170 : vector<16x200xf32> to vector<1x16x200xf32>
    tpu.vector_store %arg5[%c0_148, %c0_149, %c0_150], %173 {strides = array<i32>} : memref<4x16x200xf32, #tpu.memory_space<vmem>>, vector<1x16x200xf32>,
    %c1_151 = arith.constant 1 : index
    %c0_152 = arith.constant 0 : index
    %c0_153 = arith.constant 0 : index
    %174 = vector.load %arg5[%c1_151, %c0_152, %c0_153] : memref<4x16x200xf32, #tpu.memory_space<vmem>>, vector<1x16x200xf32>
    %175 = vector.shape_cast %174 : vector<1x16x200xf32> to vector<16x200xf32>
    %176 = vector.broadcast %159 : vector<16x1xf32> to vector<16x200xf32>
    %177 = arith.mulf %175, %176 : vector<16x200xf32>
    %178 = vector.broadcast %162 : vector<16x1xf32> to vector<16x200xf32>
    %179 = arith.addf %177, %178 : vector<16x200xf32>
    %cst_154 = arith.constant 0.000000e+00 : f32
    %180 = vector.broadcast %cst_154 : f32 to vector<16x200xf32>
    %181 = arith.maximumf %179, %180 : vector<16x200xf32>
    %c1_155 = arith.constant 1 : index
    %c0_156 = arith.constant 0 : index
    %c0_157 = arith.constant 0 : index
    %182 = vector.load %arg5[%c1_155, %c0_156, %c0_157] : memref<4x16x200xf32, #tpu.memory_space<vmem>>, vector<1x16x200xf32>
    %183 = vector.shape_cast %182 : vector<1x16x200xf32> to vector<16x200xf32>
    %184 = vector.shape_cast %181 : vector<16x200xf32> to vector<1x16x200xf32>
    tpu.vector_store %arg5[%c1_155, %c0_156, %c0_157], %184 {strides = array<i32>} : memref<4x16x200xf32, #tpu.memory_space<vmem>>, vector<1x16x200xf32>,
    %c2_158 = arith.constant 2 : index
    %c0_159 = arith.constant 0 : index
    %c0_160 = arith.constant 0 : index
    %185 = vector.load %arg5[%c2_158, %c0_159, %c0_160] : memref<4x16x200xf32, #tpu.memory_space<vmem>>, vector<1x16x200xf32>
    %186 = vector.shape_cast %185 : vector<1x16x200xf32> to vector<16x200xf32>
    %187 = vector.broadcast %159 : vector<16x1xf32> to vector<16x200xf32>
    %188 = arith.mulf %186, %187 : vector<16x200xf32>
    %189 = vector.broadcast %162 : vector<16x1xf32> to vector<16x200xf32>
    %190 = arith.addf %188, %189 : vector<16x200xf32>
    %cst_161 = arith.constant 0.000000e+00 : f32
    %191 = vector.broadcast %cst_161 : f32 to vector<16x200xf32>
    %192 = arith.maximumf %190, %191 : vector<16x200xf32>
    %c2_162 = arith.constant 2 : index
    %c0_163 = arith.constant 0 : index
    %c0_164 = arith.constant 0 : index
    %193 = vector.load %arg5[%c2_162, %c0_163, %c0_164] : memref<4x16x200xf32, #tpu.memory_space<vmem>>, vector<1x16x200xf32>
    %194 = vector.shape_cast %193 : vector<1x16x200xf32> to vector<16x200xf32>
    %195 = vector.shape_cast %192 : vector<16x200xf32> to vector<1x16x200xf32>
    tpu.vector_store %arg5[%c2_162, %c0_163, %c0_164], %195 {strides = array<i32>} : memref<4x16x200xf32, #tpu.memory_space<vmem>>, vector<1x16x200xf32>,
    %c3_165 = arith.constant 3 : index
    %c0_166 = arith.constant 0 : index
    %c0_167 = arith.constant 0 : index
    %196 = vector.load %arg5[%c3_165, %c0_166, %c0_167] : memref<4x16x200xf32, #tpu.memory_space<vmem>>, vector<1x16x200xf32>
    %197 = vector.shape_cast %196 : vector<1x16x200xf32> to vector<16x200xf32>
    %198 = vector.broadcast %159 : vector<16x1xf32> to vector<16x200xf32>
    %199 = arith.mulf %197, %198 : vector<16x200xf32>
    %200 = vector.broadcast %162 : vector<16x1xf32> to vector<16x200xf32>
    %201 = arith.addf %199, %200 : vector<16x200xf32>
    %cst_168 = arith.constant 0.000000e+00 : f32
    %202 = vector.broadcast %cst_168 : f32 to vector<16x200xf32>
    %203 = arith.maximumf %201, %202 : vector<16x200xf32>
    %c3_169 = arith.constant 3 : index
    %c0_170 = arith.constant 0 : index
    %c0_171 = arith.constant 0 : index
    %204 = vector.load %arg5[%c3_169, %c0_170, %c0_171] : memref<4x16x200xf32, #tpu.memory_space<vmem>>, vector<1x16x200xf32>
    %205 = vector.shape_cast %204 : vector<1x16x200xf32> to vector<16x200xf32>
    %206 = vector.shape_cast %203 : vector<16x200xf32> to vector<1x16x200xf32>
    tpu.vector_store %arg5[%c3_169, %c0_170, %c0_171], %206 {strides = array<i32>} : memref<4x16x200xf32, #tpu.memory_space<vmem>>, vector<1x16x200xf32>,
    return
  }
}

module attributes {stable_mosaic.version = 11 : i64} {
  func.func @kernel(%arg0: memref<16x768xbf16, #tpu.memory_space<vmem>>, %arg1: memref<4x4x8x16xbf16, #tpu.memory_space<vmem>>, %arg2: memref<8x1xf32, #tpu.memory_space<vmem>>, %arg3: memref<8x1xf32, #tpu.memory_space<vmem>>, %arg4: memref<1x648xf32, #tpu.memory_space<vmem>>, %arg5: memref<4x8x648xf32, #tpu.memory_space<vmem>>) attributes {dimension_semantics = [], scalar_prefetch = 0 : i64, scratch_operands = 0 : i64, tpu.core_type = #tpu.core_type<tc>} {
    %c0 = arith.constant 0 : index
    %c0_0 = arith.constant 0 : index
    %0 = vector.load %arg4[%c0, %c0_0] : memref<1x648xf32, #tpu.memory_space<vmem>>, vector<1x648xf32>
    %cst = arith.constant 0.000000e+00 : f32
    %1 = vector.broadcast %cst : f32 to vector<8x1xf32>
    %c0_1 = arith.constant 0 : index
    %c0_2 = arith.constant 0 : index
    %c0_3 = arith.constant 0 : index
    %c0_4 = arith.constant 0 : index
    %2 = vector.load %arg1[%c0_1, %c0_2, %c0_3, %c0_4] : memref<4x4x8x16xbf16, #tpu.memory_space<vmem>>, vector<1x1x8x16xbf16>
    %3 = vector.shape_cast %2 : vector<1x1x8x16xbf16> to vector<8x16xbf16>
    %c0_5 = arith.constant 0 : index
    %c0_6 = arith.constant 0 : index
    %4 = vector.load %arg0[%c0_5, %c0_6] : memref<16x768xbf16, #tpu.memory_space<vmem>>, vector<16x648xbf16>
    %cst_7 = arith.constant dense<0.000000e+00> : vector<8x648xf32>
    %5 = tpu.matmul %3, %4, %cst_7 {dimension_numbers = #tpu.dot_dimension_numbers<[1], [0], [0], [1], [0, 0, 1, 1], [], []>} : vector<8x16xbf16>, vector<16x648xbf16>, vector<8x648xf32> -> vector<8x648xf32>
    %c0_8 = arith.constant 0 : index
    %c1 = arith.constant 1 : index
    %c0_9 = arith.constant 0 : index
    %c0_10 = arith.constant 0 : index
    %6 = vector.load %arg1[%c0_8, %c1, %c0_9, %c0_10] : memref<4x4x8x16xbf16, #tpu.memory_space<vmem>>, vector<1x1x8x16xbf16>
    %7 = vector.shape_cast %6 : vector<1x1x8x16xbf16> to vector<8x16xbf16>
    %c0_11 = arith.constant 0 : index
    %c1_12 = arith.constant 1 : index
    %8 = vector.load %arg0[%c0_11, %c1_12] : memref<16x768xbf16, #tpu.memory_space<vmem>>, vector<16x648xbf16>
    %cst_13 = arith.constant dense<0.000000e+00> : vector<8x648xf32>
    %9 = tpu.matmul %7, %8, %cst_13 {dimension_numbers = #tpu.dot_dimension_numbers<[1], [0], [0], [1], [0, 0, 1, 1], [], []>} : vector<8x16xbf16>, vector<16x648xbf16>, vector<8x648xf32> -> vector<8x648xf32>
    %10 = arith.addf %5, %9 : vector<8x648xf32>
    %c0_14 = arith.constant 0 : index
    %c2 = arith.constant 2 : index
    %c0_15 = arith.constant 0 : index
    %c0_16 = arith.constant 0 : index
    %11 = vector.load %arg1[%c0_14, %c2, %c0_15, %c0_16] : memref<4x4x8x16xbf16, #tpu.memory_space<vmem>>, vector<1x1x8x16xbf16>
    %12 = vector.shape_cast %11 : vector<1x1x8x16xbf16> to vector<8x16xbf16>
    %c0_17 = arith.constant 0 : index
    %c18 = arith.constant 18 : index
    %13 = vector.load %arg0[%c0_17, %c18] : memref<16x768xbf16, #tpu.memory_space<vmem>>, vector<16x648xbf16>
    %cst_18 = arith.constant dense<0.000000e+00> : vector<8x648xf32>
    %14 = tpu.matmul %12, %13, %cst_18 {dimension_numbers = #tpu.dot_dimension_numbers<[1], [0], [0], [1], [0, 0, 1, 1], [], []>} : vector<8x16xbf16>, vector<16x648xbf16>, vector<8x648xf32> -> vector<8x648xf32>
    %15 = arith.addf %10, %14 : vector<8x648xf32>
    %c0_19 = arith.constant 0 : index
    %c3 = arith.constant 3 : index
    %c0_20 = arith.constant 0 : index
    %c0_21 = arith.constant 0 : index
    %16 = vector.load %arg1[%c0_19, %c3, %c0_20, %c0_21] : memref<4x4x8x16xbf16, #tpu.memory_space<vmem>>, vector<1x1x8x16xbf16>
    %17 = vector.shape_cast %16 : vector<1x1x8x16xbf16> to vector<8x16xbf16>
    %c0_22 = arith.constant 0 : index
    %c19 = arith.constant 19 : index
    %18 = vector.load %arg0[%c0_22, %c19] : memref<16x768xbf16, #tpu.memory_space<vmem>>, vector<16x648xbf16>
    %cst_23 = arith.constant dense<0.000000e+00> : vector<8x648xf32>
    %19 = tpu.matmul %17, %18, %cst_23 {dimension_numbers = #tpu.dot_dimension_numbers<[1], [0], [0], [1], [0, 0, 1, 1], [], []>} : vector<8x16xbf16>, vector<16x648xbf16>, vector<8x648xf32> -> vector<8x648xf32>
    %20 = arith.addf %15, %19 : vector<8x648xf32>
    %21 = vector.broadcast %0 : vector<1x648xf32> to vector<8x648xf32>
    %22 = arith.mulf %20, %21 : vector<8x648xf32>
    %cst_24 = arith.constant dense<0.000000e+00> : vector<8xf32>
    %23 = vector.multi_reduction <add>, %22, %cst_24 [1] : vector<8x648xf32> to vector<8xf32>
    %24 = vector.shape_cast %23 : vector<8xf32> to vector<8x1xf32>
    %25 = arith.addf %1, %24 : vector<8x1xf32>
    %c0_25 = arith.constant 0 : index
    %c0_26 = arith.constant 0 : index
    %c0_27 = arith.constant 0 : index
    %26 = vector.load %arg5[%c0_25, %c0_26, %c0_27] : memref<4x8x648xf32, #tpu.memory_space<vmem>>, vector<1x8x648xf32>
    %27 = vector.shape_cast %26 : vector<1x8x648xf32> to vector<8x648xf32>
    %28 = vector.shape_cast %20 : vector<8x648xf32> to vector<1x8x648xf32>
    tpu.vector_store %arg5[%c0_25, %c0_26, %c0_27], %28 {strides = array<i32>} : memref<4x8x648xf32, #tpu.memory_space<vmem>>, vector<1x8x648xf32>,
    %c1_28 = arith.constant 1 : index
    %c0_29 = arith.constant 0 : index
    %c0_30 = arith.constant 0 : index
    %c0_31 = arith.constant 0 : index
    %29 = vector.load %arg1[%c1_28, %c0_29, %c0_30, %c0_31] : memref<4x4x8x16xbf16, #tpu.memory_space<vmem>>, vector<1x1x8x16xbf16>
    %30 = vector.shape_cast %29 : vector<1x1x8x16xbf16> to vector<8x16xbf16>
    %c0_32 = arith.constant 0 : index
    %c1_33 = arith.constant 1 : index
    %31 = vector.load %arg0[%c0_32, %c1_33] : memref<16x768xbf16, #tpu.memory_space<vmem>>, vector<16x648xbf16>
    %cst_34 = arith.constant dense<0.000000e+00> : vector<8x648xf32>
    %32 = tpu.matmul %30, %31, %cst_34 {dimension_numbers = #tpu.dot_dimension_numbers<[1], [0], [0], [1], [0, 0, 1, 1], [], []>} : vector<8x16xbf16>, vector<16x648xbf16>, vector<8x648xf32> -> vector<8x648xf32>
    %c1_35 = arith.constant 1 : index
    %c1_36 = arith.constant 1 : index
    %c0_37 = arith.constant 0 : index
    %c0_38 = arith.constant 0 : index
    %33 = vector.load %arg1[%c1_35, %c1_36, %c0_37, %c0_38] : memref<4x4x8x16xbf16, #tpu.memory_space<vmem>>, vector<1x1x8x16xbf16>
    %34 = vector.shape_cast %33 : vector<1x1x8x16xbf16> to vector<8x16xbf16>
    %c0_39 = arith.constant 0 : index
    %c2_40 = arith.constant 2 : index
    %35 = vector.load %arg0[%c0_39, %c2_40] : memref<16x768xbf16, #tpu.memory_space<vmem>>, vector<16x648xbf16>
    %cst_41 = arith.constant dense<0.000000e+00> : vector<8x648xf32>
    %36 = tpu.matmul %34, %35, %cst_41 {dimension_numbers = #tpu.dot_dimension_numbers<[1], [0], [0], [1], [0, 0, 1, 1], [], []>} : vector<8x16xbf16>, vector<16x648xbf16>, vector<8x648xf32> -> vector<8x648xf32>
    %37 = arith.addf %32, %36 : vector<8x648xf32>
    %c1_42 = arith.constant 1 : index
    %c2_43 = arith.constant 2 : index
    %c0_44 = arith.constant 0 : index
    %c0_45 = arith.constant 0 : index
    %38 = vector.load %arg1[%c1_42, %c2_43, %c0_44, %c0_45] : memref<4x4x8x16xbf16, #tpu.memory_space<vmem>>, vector<1x1x8x16xbf16>
    %39 = vector.shape_cast %38 : vector<1x1x8x16xbf16> to vector<8x16xbf16>
    %c0_46 = arith.constant 0 : index
    %c19_47 = arith.constant 19 : index
    %40 = vector.load %arg0[%c0_46, %c19_47] : memref<16x768xbf16, #tpu.memory_space<vmem>>, vector<16x648xbf16>
    %cst_48 = arith.constant dense<0.000000e+00> : vector<8x648xf32>
    %41 = tpu.matmul %39, %40, %cst_48 {dimension_numbers = #tpu.dot_dimension_numbers<[1], [0], [0], [1], [0, 0, 1, 1], [], []>} : vector<8x16xbf16>, vector<16x648xbf16>, vector<8x648xf32> -> vector<8x648xf32>
    %42 = arith.addf %37, %41 : vector<8x648xf32>
    %c1_49 = arith.constant 1 : index
    %c3_50 = arith.constant 3 : index
    %c0_51 = arith.constant 0 : index
    %c0_52 = arith.constant 0 : index
    %43 = vector.load %arg1[%c1_49, %c3_50, %c0_51, %c0_52] : memref<4x4x8x16xbf16, #tpu.memory_space<vmem>>, vector<1x1x8x16xbf16>
    %44 = vector.shape_cast %43 : vector<1x1x8x16xbf16> to vector<8x16xbf16>
    %c0_53 = arith.constant 0 : index
    %c20 = arith.constant 20 : index
    %45 = vector.load %arg0[%c0_53, %c20] : memref<16x768xbf16, #tpu.memory_space<vmem>>, vector<16x648xbf16>
    %cst_54 = arith.constant dense<0.000000e+00> : vector<8x648xf32>
    %46 = tpu.matmul %44, %45, %cst_54 {dimension_numbers = #tpu.dot_dimension_numbers<[1], [0], [0], [1], [0, 0, 1, 1], [], []>} : vector<8x16xbf16>, vector<16x648xbf16>, vector<8x648xf32> -> vector<8x648xf32>
    %47 = arith.addf %42, %46 : vector<8x648xf32>
    %48 = vector.broadcast %0 : vector<1x648xf32> to vector<8x648xf32>
    %49 = arith.mulf %47, %48 : vector<8x648xf32>
    %cst_55 = arith.constant dense<0.000000e+00> : vector<8xf32>
    %50 = vector.multi_reduction <add>, %49, %cst_55 [1] : vector<8x648xf32> to vector<8xf32>
    %51 = vector.shape_cast %50 : vector<8xf32> to vector<8x1xf32>
    %52 = arith.addf %25, %51 : vector<8x1xf32>
    %c1_56 = arith.constant 1 : index
    %c0_57 = arith.constant 0 : index
    %c0_58 = arith.constant 0 : index
    %53 = vector.load %arg5[%c1_56, %c0_57, %c0_58] : memref<4x8x648xf32, #tpu.memory_space<vmem>>, vector<1x8x648xf32>
    %54 = vector.shape_cast %53 : vector<1x8x648xf32> to vector<8x648xf32>
    %55 = vector.shape_cast %47 : vector<8x648xf32> to vector<1x8x648xf32>
    tpu.vector_store %arg5[%c1_56, %c0_57, %c0_58], %55 {strides = array<i32>} : memref<4x8x648xf32, #tpu.memory_space<vmem>>, vector<1x8x648xf32>,
    %c2_59 = arith.constant 2 : index
    %c0_60 = arith.constant 0 : index
    %c0_61 = arith.constant 0 : index
    %c0_62 = arith.constant 0 : index
    %56 = vector.load %arg1[%c2_59, %c0_60, %c0_61, %c0_62] : memref<4x4x8x16xbf16, #tpu.memory_space<vmem>>, vector<1x1x8x16xbf16>
    %57 = vector.shape_cast %56 : vector<1x1x8x16xbf16> to vector<8x16xbf16>
    %c0_63 = arith.constant 0 : index
    %c18_64 = arith.constant 18 : index
    %58 = vector.load %arg0[%c0_63, %c18_64] : memref<16x768xbf16, #tpu.memory_space<vmem>>, vector<16x648xbf16>
    %cst_65 = arith.constant dense<0.000000e+00> : vector<8x648xf32>
    %59 = tpu.matmul %57, %58, %cst_65 {dimension_numbers = #tpu.dot_dimension_numbers<[1], [0], [0], [1], [0, 0, 1, 1], [], []>} : vector<8x16xbf16>, vector<16x648xbf16>, vector<8x648xf32> -> vector<8x648xf32>
    %c2_66 = arith.constant 2 : index
    %c1_67 = arith.constant 1 : index
    %c0_68 = arith.constant 0 : index
    %c0_69 = arith.constant 0 : index
    %60 = vector.load %arg1[%c2_66, %c1_67, %c0_68, %c0_69] : memref<4x4x8x16xbf16, #tpu.memory_space<vmem>>, vector<1x1x8x16xbf16>
    %61 = vector.shape_cast %60 : vector<1x1x8x16xbf16> to vector<8x16xbf16>
    %c0_70 = arith.constant 0 : index
    %c19_71 = arith.constant 19 : index
    %62 = vector.load %arg0[%c0_70, %c19_71] : memref<16x768xbf16, #tpu.memory_space<vmem>>, vector<16x648xbf16>
    %cst_72 = arith.constant dense<0.000000e+00> : vector<8x648xf32>
    %63 = tpu.matmul %61, %62, %cst_72 {dimension_numbers = #tpu.dot_dimension_numbers<[1], [0], [0], [1], [0, 0, 1, 1], [], []>} : vector<8x16xbf16>, vector<16x648xbf16>, vector<8x648xf32> -> vector<8x648xf32>
    %64 = arith.addf %59, %63 : vector<8x648xf32>
    %c2_73 = arith.constant 2 : index
    %c2_74 = arith.constant 2 : index
    %c0_75 = arith.constant 0 : index
    %c0_76 = arith.constant 0 : index
    %65 = vector.load %arg1[%c2_73, %c2_74, %c0_75, %c0_76] : memref<4x4x8x16xbf16, #tpu.memory_space<vmem>>, vector<1x1x8x16xbf16>
    %66 = vector.shape_cast %65 : vector<1x1x8x16xbf16> to vector<8x16xbf16>
    %c0_77 = arith.constant 0 : index
    %c36 = arith.constant 36 : index
    %67 = vector.load %arg0[%c0_77, %c36] : memref<16x768xbf16, #tpu.memory_space<vmem>>, vector<16x648xbf16>
    %cst_78 = arith.constant dense<0.000000e+00> : vector<8x648xf32>
    %68 = tpu.matmul %66, %67, %cst_78 {dimension_numbers = #tpu.dot_dimension_numbers<[1], [0], [0], [1], [0, 0, 1, 1], [], []>} : vector<8x16xbf16>, vector<16x648xbf16>, vector<8x648xf32> -> vector<8x648xf32>
    %69 = arith.addf %64, %68 : vector<8x648xf32>
    %c2_79 = arith.constant 2 : index
    %c3_80 = arith.constant 3 : index
    %c0_81 = arith.constant 0 : index
    %c0_82 = arith.constant 0 : index
    %70 = vector.load %arg1[%c2_79, %c3_80, %c0_81, %c0_82] : memref<4x4x8x16xbf16, #tpu.memory_space<vmem>>, vector<1x1x8x16xbf16>
    %71 = vector.shape_cast %70 : vector<1x1x8x16xbf16> to vector<8x16xbf16>
    %c0_83 = arith.constant 0 : index
    %c37 = arith.constant 37 : index
    %72 = vector.load %arg0[%c0_83, %c37] : memref<16x768xbf16, #tpu.memory_space<vmem>>, vector<16x648xbf16>
    %cst_84 = arith.constant dense<0.000000e+00> : vector<8x648xf32>
    %73 = tpu.matmul %71, %72, %cst_84 {dimension_numbers = #tpu.dot_dimension_numbers<[1], [0], [0], [1], [0, 0, 1, 1], [], []>} : vector<8x16xbf16>, vector<16x648xbf16>, vector<8x648xf32> -> vector<8x648xf32>
    %74 = arith.addf %69, %73 : vector<8x648xf32>
    %75 = vector.broadcast %0 : vector<1x648xf32> to vector<8x648xf32>
    %76 = arith.mulf %74, %75 : vector<8x648xf32>
    %cst_85 = arith.constant dense<0.000000e+00> : vector<8xf32>
    %77 = vector.multi_reduction <add>, %76, %cst_85 [1] : vector<8x648xf32> to vector<8xf32>
    %78 = vector.shape_cast %77 : vector<8xf32> to vector<8x1xf32>
    %79 = arith.addf %52, %78 : vector<8x1xf32>
    %c2_86 = arith.constant 2 : index
    %c0_87 = arith.constant 0 : index
    %c0_88 = arith.constant 0 : index
    %80 = vector.load %arg5[%c2_86, %c0_87, %c0_88] : memref<4x8x648xf32, #tpu.memory_space<vmem>>, vector<1x8x648xf32>
    %81 = vector.shape_cast %80 : vector<1x8x648xf32> to vector<8x648xf32>
    %82 = vector.shape_cast %74 : vector<8x648xf32> to vector<1x8x648xf32>
    tpu.vector_store %arg5[%c2_86, %c0_87, %c0_88], %82 {strides = array<i32>} : memref<4x8x648xf32, #tpu.memory_space<vmem>>, vector<1x8x648xf32>,
    %c3_89 = arith.constant 3 : index
    %c0_90 = arith.constant 0 : index
    %c0_91 = arith.constant 0 : index
    %c0_92 = arith.constant 0 : index
    %83 = vector.load %arg1[%c3_89, %c0_90, %c0_91, %c0_92] : memref<4x4x8x16xbf16, #tpu.memory_space<vmem>>, vector<1x1x8x16xbf16>
    %84 = vector.shape_cast %83 : vector<1x1x8x16xbf16> to vector<8x16xbf16>
    %c0_93 = arith.constant 0 : index
    %c19_94 = arith.constant 19 : index
    %85 = vector.load %arg0[%c0_93, %c19_94] : memref<16x768xbf16, #tpu.memory_space<vmem>>, vector<16x648xbf16>
    %cst_95 = arith.constant dense<0.000000e+00> : vector<8x648xf32>
    %86 = tpu.matmul %84, %85, %cst_95 {dimension_numbers = #tpu.dot_dimension_numbers<[1], [0], [0], [1], [0, 0, 1, 1], [], []>} : vector<8x16xbf16>, vector<16x648xbf16>, vector<8x648xf32> -> vector<8x648xf32>
    %c3_96 = arith.constant 3 : index
    %c1_97 = arith.constant 1 : index
    %c0_98 = arith.constant 0 : index
    %c0_99 = arith.constant 0 : index
    %87 = vector.load %arg1[%c3_96, %c1_97, %c0_98, %c0_99] : memref<4x4x8x16xbf16, #tpu.memory_space<vmem>>, vector<1x1x8x16xbf16>
    %88 = vector.shape_cast %87 : vector<1x1x8x16xbf16> to vector<8x16xbf16>
    %c0_100 = arith.constant 0 : index
    %c20_101 = arith.constant 20 : index
    %89 = vector.load %arg0[%c0_100, %c20_101] : memref<16x768xbf16, #tpu.memory_space<vmem>>, vector<16x648xbf16>
    %cst_102 = arith.constant dense<0.000000e+00> : vector<8x648xf32>
    %90 = tpu.matmul %88, %89, %cst_102 {dimension_numbers = #tpu.dot_dimension_numbers<[1], [0], [0], [1], [0, 0, 1, 1], [], []>} : vector<8x16xbf16>, vector<16x648xbf16>, vector<8x648xf32> -> vector<8x648xf32>
    %91 = arith.addf %86, %90 : vector<8x648xf32>
    %c3_103 = arith.constant 3 : index
    %c2_104 = arith.constant 2 : index
    %c0_105 = arith.constant 0 : index
    %c0_106 = arith.constant 0 : index
    %92 = vector.load %arg1[%c3_103, %c2_104, %c0_105, %c0_106] : memref<4x4x8x16xbf16, #tpu.memory_space<vmem>>, vector<1x1x8x16xbf16>
    %93 = vector.shape_cast %92 : vector<1x1x8x16xbf16> to vector<8x16xbf16>
    %c0_107 = arith.constant 0 : index
    %c37_108 = arith.constant 37 : index
    %94 = vector.load %arg0[%c0_107, %c37_108] : memref<16x768xbf16, #tpu.memory_space<vmem>>, vector<16x648xbf16>
    %cst_109 = arith.constant dense<0.000000e+00> : vector<8x648xf32>
    %95 = tpu.matmul %93, %94, %cst_109 {dimension_numbers = #tpu.dot_dimension_numbers<[1], [0], [0], [1], [0, 0, 1, 1], [], []>} : vector<8x16xbf16>, vector<16x648xbf16>, vector<8x648xf32> -> vector<8x648xf32>
    %96 = arith.addf %91, %95 : vector<8x648xf32>
    %c3_110 = arith.constant 3 : index
    %c3_111 = arith.constant 3 : index
    %c0_112 = arith.constant 0 : index
    %c0_113 = arith.constant 0 : index
    %97 = vector.load %arg1[%c3_110, %c3_111, %c0_112, %c0_113] : memref<4x4x8x16xbf16, #tpu.memory_space<vmem>>, vector<1x1x8x16xbf16>
    %98 = vector.shape_cast %97 : vector<1x1x8x16xbf16> to vector<8x16xbf16>
    %c0_114 = arith.constant 0 : index
    %c38 = arith.constant 38 : index
    %99 = vector.load %arg0[%c0_114, %c38] : memref<16x768xbf16, #tpu.memory_space<vmem>>, vector<16x648xbf16>
    %cst_115 = arith.constant dense<0.000000e+00> : vector<8x648xf32>
    %100 = tpu.matmul %98, %99, %cst_115 {dimension_numbers = #tpu.dot_dimension_numbers<[1], [0], [0], [1], [0, 0, 1, 1], [], []>} : vector<8x16xbf16>, vector<16x648xbf16>, vector<8x648xf32> -> vector<8x648xf32>
    %101 = arith.addf %96, %100 : vector<8x648xf32>
    %102 = vector.broadcast %0 : vector<1x648xf32> to vector<8x648xf32>
    %103 = arith.mulf %101, %102 : vector<8x648xf32>
    %cst_116 = arith.constant dense<0.000000e+00> : vector<8xf32>
    %104 = vector.multi_reduction <add>, %103, %cst_116 [1] : vector<8x648xf32> to vector<8xf32>
    %105 = vector.shape_cast %104 : vector<8xf32> to vector<8x1xf32>
    %106 = arith.addf %79, %105 : vector<8x1xf32>
    %c3_117 = arith.constant 3 : index
    %c0_118 = arith.constant 0 : index
    %c0_119 = arith.constant 0 : index
    %107 = vector.load %arg5[%c3_117, %c0_118, %c0_119] : memref<4x8x648xf32, #tpu.memory_space<vmem>>, vector<1x8x648xf32>
    %108 = vector.shape_cast %107 : vector<1x8x648xf32> to vector<8x648xf32>
    %109 = vector.shape_cast %101 : vector<8x648xf32> to vector<1x8x648xf32>
    tpu.vector_store %arg5[%c3_117, %c0_118, %c0_119], %109 {strides = array<i32>} : memref<4x8x648xf32, #tpu.memory_space<vmem>>, vector<1x8x648xf32>,
    %cst_120 = arith.constant 4.8828125E-4 : f32
    %110 = vector.broadcast %cst_120 : f32 to vector<8x1xf32>
    %111 = arith.mulf %106, %110 : vector<8x1xf32>
    %cst_121 = arith.constant 0.000000e+00 : f32
    %112 = vector.broadcast %cst_121 : f32 to vector<8x1xf32>
    %c0_122 = arith.constant 0 : index
    %c0_123 = arith.constant 0 : index
    %c0_124 = arith.constant 0 : index
    %113 = vector.load %arg5[%c0_122, %c0_123, %c0_124] : memref<4x8x648xf32, #tpu.memory_space<vmem>>, vector<1x8x648xf32>
    %114 = vector.shape_cast %113 : vector<1x8x648xf32> to vector<8x648xf32>
    %115 = vector.broadcast %111 : vector<8x1xf32> to vector<8x648xf32>
    %116 = arith.subf %114, %115 : vector<8x648xf32>
    %117 = vector.broadcast %0 : vector<1x648xf32> to vector<8x648xf32>
    %118 = arith.mulf %116, %117 : vector<8x648xf32>
    %119 = arith.mulf %118, %118 : vector<8x648xf32>
    %cst_125 = arith.constant dense<0.000000e+00> : vector<8xf32>
    %120 = vector.multi_reduction <add>, %119, %cst_125 [1] : vector<8x648xf32> to vector<8xf32>
    %121 = vector.shape_cast %120 : vector<8xf32> to vector<8x1xf32>
    %122 = arith.addf %112, %121 : vector<8x1xf32>
    %c1_126 = arith.constant 1 : index
    %c0_127 = arith.constant 0 : index
    %c0_128 = arith.constant 0 : index
    %123 = vector.load %arg5[%c1_126, %c0_127, %c0_128] : memref<4x8x648xf32, #tpu.memory_space<vmem>>, vector<1x8x648xf32>
    %124 = vector.shape_cast %123 : vector<1x8x648xf32> to vector<8x648xf32>
    %125 = vector.broadcast %111 : vector<8x1xf32> to vector<8x648xf32>
    %126 = arith.subf %124, %125 : vector<8x648xf32>
    %127 = vector.broadcast %0 : vector<1x648xf32> to vector<8x648xf32>
    %128 = arith.mulf %126, %127 : vector<8x648xf32>
    %129 = arith.mulf %128, %128 : vector<8x648xf32>
    %cst_129 = arith.constant dense<0.000000e+00> : vector<8xf32>
    %130 = vector.multi_reduction <add>, %129, %cst_129 [1] : vector<8x648xf32> to vector<8xf32>
    %131 = vector.shape_cast %130 : vector<8xf32> to vector<8x1xf32>
    %132 = arith.addf %122, %131 : vector<8x1xf32>
    %c2_130 = arith.constant 2 : index
    %c0_131 = arith.constant 0 : index
    %c0_132 = arith.constant 0 : index
    %133 = vector.load %arg5[%c2_130, %c0_131, %c0_132] : memref<4x8x648xf32, #tpu.memory_space<vmem>>, vector<1x8x648xf32>
    %134 = vector.shape_cast %133 : vector<1x8x648xf32> to vector<8x648xf32>
    %135 = vector.broadcast %111 : vector<8x1xf32> to vector<8x648xf32>
    %136 = arith.subf %134, %135 : vector<8x648xf32>
    %137 = vector.broadcast %0 : vector<1x648xf32> to vector<8x648xf32>
    %138 = arith.mulf %136, %137 : vector<8x648xf32>
    %139 = arith.mulf %138, %138 : vector<8x648xf32>
    %cst_133 = arith.constant dense<0.000000e+00> : vector<8xf32>
    %140 = vector.multi_reduction <add>, %139, %cst_133 [1] : vector<8x648xf32> to vector<8xf32>
    %141 = vector.shape_cast %140 : vector<8xf32> to vector<8x1xf32>
    %142 = arith.addf %132, %141 : vector<8x1xf32>
    %c3_134 = arith.constant 3 : index
    %c0_135 = arith.constant 0 : index
    %c0_136 = arith.constant 0 : index
    %143 = vector.load %arg5[%c3_134, %c0_135, %c0_136] : memref<4x8x648xf32, #tpu.memory_space<vmem>>, vector<1x8x648xf32>
    %144 = vector.shape_cast %143 : vector<1x8x648xf32> to vector<8x648xf32>
    %145 = vector.broadcast %111 : vector<8x1xf32> to vector<8x648xf32>
    %146 = arith.subf %144, %145 : vector<8x648xf32>
    %147 = vector.broadcast %0 : vector<1x648xf32> to vector<8x648xf32>
    %148 = arith.mulf %146, %147 : vector<8x648xf32>
    %149 = arith.mulf %148, %148 : vector<8x648xf32>
    %cst_137 = arith.constant dense<0.000000e+00> : vector<8xf32>
    %150 = vector.multi_reduction <add>, %149, %cst_137 [1] : vector<8x648xf32> to vector<8xf32>
    %151 = vector.shape_cast %150 : vector<8xf32> to vector<8x1xf32>
    %152 = arith.addf %142, %151 : vector<8x1xf32>
    %c0_138 = arith.constant 0 : index
    %c0_139 = arith.constant 0 : index
    %153 = vector.load %arg2[%c0_138, %c0_139] : memref<8x1xf32, #tpu.memory_space<vmem>>, vector<8x1xf32>
    %cst_140 = arith.constant 4.8828125E-4 : f32
    %154 = vector.broadcast %cst_140 : f32 to vector<8x1xf32>
    %155 = arith.mulf %152, %154 : vector<8x1xf32>
    %cst_141 = arith.constant 9.99999974E-6 : f32
    %156 = vector.broadcast %cst_141 : f32 to vector<8x1xf32>
    %157 = arith.addf %155, %156 : vector<8x1xf32>
    %158 = math.rsqrt %157 : vector<8x1xf32>
    %159 = arith.mulf %153, %158 : vector<8x1xf32>
    %c0_142 = arith.constant 0 : index
    %c0_143 = arith.constant 0 : index
    %160 = vector.load %arg3[%c0_142, %c0_143] : memref<8x1xf32, #tpu.memory_space<vmem>>, vector<8x1xf32>
    %161 = arith.mulf %111, %159 : vector<8x1xf32>
    %162 = arith.subf %160, %161 : vector<8x1xf32>
    %c0_144 = arith.constant 0 : index
    %c0_145 = arith.constant 0 : index
    %c0_146 = arith.constant 0 : index
    %163 = vector.load %arg5[%c0_144, %c0_145, %c0_146] : memref<4x8x648xf32, #tpu.memory_space<vmem>>, vector<1x8x648xf32>
    %164 = vector.shape_cast %163 : vector<1x8x648xf32> to vector<8x648xf32>
    %165 = vector.broadcast %159 : vector<8x1xf32> to vector<8x648xf32>
    %166 = arith.mulf %164, %165 : vector<8x648xf32>
    %167 = vector.broadcast %162 : vector<8x1xf32> to vector<8x648xf32>
    %168 = arith.addf %166, %167 : vector<8x648xf32>
    %cst_147 = arith.constant 0.000000e+00 : f32
    %169 = vector.broadcast %cst_147 : f32 to vector<8x648xf32>
    %170 = arith.maximumf %168, %169 : vector<8x648xf32>
    %c0_148 = arith.constant 0 : index
    %c0_149 = arith.constant 0 : index
    %c0_150 = arith.constant 0 : index
    %171 = vector.load %arg5[%c0_148, %c0_149, %c0_150] : memref<4x8x648xf32, #tpu.memory_space<vmem>>, vector<1x8x648xf32>
    %172 = vector.shape_cast %171 : vector<1x8x648xf32> to vector<8x648xf32>
    %173 = vector.shape_cast %170 : vector<8x648xf32> to vector<1x8x648xf32>
    tpu.vector_store %arg5[%c0_148, %c0_149, %c0_150], %173 {strides = array<i32>} : memref<4x8x648xf32, #tpu.memory_space<vmem>>, vector<1x8x648xf32>,
    %c1_151 = arith.constant 1 : index
    %c0_152 = arith.constant 0 : index
    %c0_153 = arith.constant 0 : index
    %174 = vector.load %arg5[%c1_151, %c0_152, %c0_153] : memref<4x8x648xf32, #tpu.memory_space<vmem>>, vector<1x8x648xf32>
    %175 = vector.shape_cast %174 : vector<1x8x648xf32> to vector<8x648xf32>
    %176 = vector.broadcast %159 : vector<8x1xf32> to vector<8x648xf32>
    %177 = arith.mulf %175, %176 : vector<8x648xf32>
    %178 = vector.broadcast %162 : vector<8x1xf32> to vector<8x648xf32>
    %179 = arith.addf %177, %178 : vector<8x648xf32>
    %cst_154 = arith.constant 0.000000e+00 : f32
    %180 = vector.broadcast %cst_154 : f32 to vector<8x648xf32>
    %181 = arith.maximumf %179, %180 : vector<8x648xf32>
    %c1_155 = arith.constant 1 : index
    %c0_156 = arith.constant 0 : index
    %c0_157 = arith.constant 0 : index
    %182 = vector.load %arg5[%c1_155, %c0_156, %c0_157] : memref<4x8x648xf32, #tpu.memory_space<vmem>>, vector<1x8x648xf32>
    %183 = vector.shape_cast %182 : vector<1x8x648xf32> to vector<8x648xf32>
    %184 = vector.shape_cast %181 : vector<8x648xf32> to vector<1x8x648xf32>
    tpu.vector_store %arg5[%c1_155, %c0_156, %c0_157], %184 {strides = array<i32>} : memref<4x8x648xf32, #tpu.memory_space<vmem>>, vector<1x8x648xf32>,
    %c2_158 = arith.constant 2 : index
    %c0_159 = arith.constant 0 : index
    %c0_160 = arith.constant 0 : index
    %185 = vector.load %arg5[%c2_158, %c0_159, %c0_160] : memref<4x8x648xf32, #tpu.memory_space<vmem>>, vector<1x8x648xf32>
    %186 = vector.shape_cast %185 : vector<1x8x648xf32> to vector<8x648xf32>
    %187 = vector.broadcast %159 : vector<8x1xf32> to vector<8x648xf32>
    %188 = arith.mulf %186, %187 : vector<8x648xf32>
    %189 = vector.broadcast %162 : vector<8x1xf32> to vector<8x648xf32>
    %190 = arith.addf %188, %189 : vector<8x648xf32>
    %cst_161 = arith.constant 0.000000e+00 : f32
    %191 = vector.broadcast %cst_161 : f32 to vector<8x648xf32>
    %192 = arith.maximumf %190, %191 : vector<8x648xf32>
    %c2_162 = arith.constant 2 : index
    %c0_163 = arith.constant 0 : index
    %c0_164 = arith.constant 0 : index
    %193 = vector.load %arg5[%c2_162, %c0_163, %c0_164] : memref<4x8x648xf32, #tpu.memory_space<vmem>>, vector<1x8x648xf32>
    %194 = vector.shape_cast %193 : vector<1x8x648xf32> to vector<8x648xf32>
    %195 = vector.shape_cast %192 : vector<8x648xf32> to vector<1x8x648xf32>
    tpu.vector_store %arg5[%c2_162, %c0_163, %c0_164], %195 {strides = array<i32>} : memref<4x8x648xf32, #tpu.memory_space<vmem>>, vector<1x8x648xf32>,
    %c3_165 = arith.constant 3 : index
    %c0_166 = arith.constant 0 : index
    %c0_167 = arith.constant 0 : index
    %196 = vector.load %arg5[%c3_165, %c0_166, %c0_167] : memref<4x8x648xf32, #tpu.memory_space<vmem>>, vector<1x8x648xf32>
    %197 = vector.shape_cast %196 : vector<1x8x648xf32> to vector<8x648xf32>
    %198 = vector.broadcast %159 : vector<8x1xf32> to vector<8x648xf32>
    %199 = arith.mulf %197, %198 : vector<8x648xf32>
    %200 = vector.broadcast %162 : vector<8x1xf32> to vector<8x648xf32>
    %201 = arith.addf %199, %200 : vector<8x648xf32>
    %cst_168 = arith.constant 0.000000e+00 : f32
    %202 = vector.broadcast %cst_168 : f32 to vector<8x648xf32>
    %203 = arith.maximumf %201, %202 : vector<8x648xf32>
    %c3_169 = arith.constant 3 : index
    %c0_170 = arith.constant 0 : index
    %c0_171 = arith.constant 0 : index
    %204 = vector.load %arg5[%c3_169, %c0_170, %c0_171] : memref<4x8x648xf32, #tpu.memory_space<vmem>>, vector<1x8x648xf32>
    %205 = vector.shape_cast %204 : vector<1x8x648xf32> to vector<8x648xf32>
    %206 = vector.shape_cast %203 : vector<8x648xf32> to vector<1x8x648xf32>
    tpu.vector_store %arg5[%c3_169, %c0_170, %c0_171], %206 {strides = array<i32>} : memref<4x8x648xf32, #tpu.memory_space<vmem>>, vector<1x8x648xf32>,
    return
  }
}

module attributes {stable_mosaic.version = 11 : i64} {
  func.func @kernel(%arg0: memref<8x2432xbf16, #tpu.memory_space<vmem>>, %arg1: memref<4x4x3x8xbf16, #tpu.memory_space<vmem>>, %arg2: memref<4x3x2312xf32, #tpu.memory_space<vmem>>) attributes {dimension_semantics = [], scalar_prefetch = 0 : i64, scratch_operands = 0 : i64, tpu.core_type = #tpu.core_type<tc>} {
    %c0 = arith.constant 0 : index
    %c0_0 = arith.constant 0 : index
    %c0_1 = arith.constant 0 : index
    %c0_2 = arith.constant 0 : index
    %0 = vector.load %arg1[%c0, %c0_0, %c0_1, %c0_2] : memref<4x4x3x8xbf16, #tpu.memory_space<vmem>>, vector<1x1x3x8xbf16>
    %1 = vector.shape_cast %0 : vector<1x1x3x8xbf16> to vector<3x8xbf16>
    %c0_3 = arith.constant 0 : index
    %c0_4 = arith.constant 0 : index
    %2 = vector.load %arg0[%c0_3, %c0_4] : memref<8x2432xbf16, #tpu.memory_space<vmem>>, vector<8x2312xbf16>
    %cst = arith.constant dense<0.000000e+00> : vector<3x2312xf32>
    %3 = tpu.matmul %1, %2, %cst {dimension_numbers = #tpu.dot_dimension_numbers<[1], [0], [0], [1], [0, 0, 1, 1], [], []>} : vector<3x8xbf16>, vector<8x2312xbf16>, vector<3x2312xf32> -> vector<3x2312xf32>
    %c0_5 = arith.constant 0 : index
    %c1 = arith.constant 1 : index
    %c0_6 = arith.constant 0 : index
    %c0_7 = arith.constant 0 : index
    %4 = vector.load %arg1[%c0_5, %c1, %c0_6, %c0_7] : memref<4x4x3x8xbf16, #tpu.memory_space<vmem>>, vector<1x1x3x8xbf16>
    %5 = vector.shape_cast %4 : vector<1x1x3x8xbf16> to vector<3x8xbf16>
    %c0_8 = arith.constant 0 : index
    %c1_9 = arith.constant 1 : index
    %6 = vector.load %arg0[%c0_8, %c1_9] : memref<8x2432xbf16, #tpu.memory_space<vmem>>, vector<8x2312xbf16>
    %cst_10 = arith.constant dense<0.000000e+00> : vector<3x2312xf32>
    %7 = tpu.matmul %5, %6, %cst_10 {dimension_numbers = #tpu.dot_dimension_numbers<[1], [0], [0], [1], [0, 0, 1, 1], [], []>} : vector<3x8xbf16>, vector<8x2312xbf16>, vector<3x2312xf32> -> vector<3x2312xf32>
    %8 = arith.addf %3, %7 : vector<3x2312xf32>
    %c0_11 = arith.constant 0 : index
    %c2 = arith.constant 2 : index
    %c0_12 = arith.constant 0 : index
    %c0_13 = arith.constant 0 : index
    %9 = vector.load %arg1[%c0_11, %c2, %c0_12, %c0_13] : memref<4x4x3x8xbf16, #tpu.memory_space<vmem>>, vector<1x1x3x8xbf16>
    %10 = vector.shape_cast %9 : vector<1x1x3x8xbf16> to vector<3x8xbf16>
    %c0_14 = arith.constant 0 : index
    %c34 = arith.constant 34 : index
    %11 = vector.load %arg0[%c0_14, %c34] : memref<8x2432xbf16, #tpu.memory_space<vmem>>, vector<8x2312xbf16>
    %cst_15 = arith.constant dense<0.000000e+00> : vector<3x2312xf32>
    %12 = tpu.matmul %10, %11, %cst_15 {dimension_numbers = #tpu.dot_dimension_numbers<[1], [0], [0], [1], [0, 0, 1, 1], [], []>} : vector<3x8xbf16>, vector<8x2312xbf16>, vector<3x2312xf32> -> vector<3x2312xf32>
    %13 = arith.addf %8, %12 : vector<3x2312xf32>
    %c0_16 = arith.constant 0 : index
    %c3 = arith.constant 3 : index
    %c0_17 = arith.constant 0 : index
    %c0_18 = arith.constant 0 : index
    %14 = vector.load %arg1[%c0_16, %c3, %c0_17, %c0_18] : memref<4x4x3x8xbf16, #tpu.memory_space<vmem>>, vector<1x1x3x8xbf16>
    %15 = vector.shape_cast %14 : vector<1x1x3x8xbf16> to vector<3x8xbf16>
    %c0_19 = arith.constant 0 : index
    %c35 = arith.constant 35 : index
    %16 = vector.load %arg0[%c0_19, %c35] : memref<8x2432xbf16, #tpu.memory_space<vmem>>, vector<8x2312xbf16>
    %cst_20 = arith.constant dense<0.000000e+00> : vector<3x2312xf32>
    %17 = tpu.matmul %15, %16, %cst_20 {dimension_numbers = #tpu.dot_dimension_numbers<[1], [0], [0], [1], [0, 0, 1, 1], [], []>} : vector<3x8xbf16>, vector<8x2312xbf16>, vector<3x2312xf32> -> vector<3x2312xf32>
    %18 = arith.addf %13, %17 : vector<3x2312xf32>
    %19 = math.tanh %18 : vector<3x2312xf32>
    %c0_21 = arith.constant 0 : index
    %c0_22 = arith.constant 0 : index
    %c0_23 = arith.constant 0 : index
    %20 = vector.load %arg2[%c0_21, %c0_22, %c0_23] : memref<4x3x2312xf32, #tpu.memory_space<vmem>>, vector<1x3x2312xf32>
    %21 = vector.shape_cast %20 : vector<1x3x2312xf32> to vector<3x2312xf32>
    %22 = vector.shape_cast %19 : vector<3x2312xf32> to vector<1x3x2312xf32>
    tpu.vector_store %arg2[%c0_21, %c0_22, %c0_23], %22 {strides = array<i32>} : memref<4x3x2312xf32, #tpu.memory_space<vmem>>, vector<1x3x2312xf32>,
    %c1_24 = arith.constant 1 : index
    %c0_25 = arith.constant 0 : index
    %c0_26 = arith.constant 0 : index
    %c0_27 = arith.constant 0 : index
    %23 = vector.load %arg1[%c1_24, %c0_25, %c0_26, %c0_27] : memref<4x4x3x8xbf16, #tpu.memory_space<vmem>>, vector<1x1x3x8xbf16>
    %24 = vector.shape_cast %23 : vector<1x1x3x8xbf16> to vector<3x8xbf16>
    %c0_28 = arith.constant 0 : index
    %c1_29 = arith.constant 1 : index
    %25 = vector.load %arg0[%c0_28, %c1_29] : memref<8x2432xbf16, #tpu.memory_space<vmem>>, vector<8x2312xbf16>
    %cst_30 = arith.constant dense<0.000000e+00> : vector<3x2312xf32>
    %26 = tpu.matmul %24, %25, %cst_30 {dimension_numbers = #tpu.dot_dimension_numbers<[1], [0], [0], [1], [0, 0, 1, 1], [], []>} : vector<3x8xbf16>, vector<8x2312xbf16>, vector<3x2312xf32> -> vector<3x2312xf32>
    %c1_31 = arith.constant 1 : index
    %c1_32 = arith.constant 1 : index
    %c0_33 = arith.constant 0 : index
    %c0_34 = arith.constant 0 : index
    %27 = vector.load %arg1[%c1_31, %c1_32, %c0_33, %c0_34] : memref<4x4x3x8xbf16, #tpu.memory_space<vmem>>, vector<1x1x3x8xbf16>
    %28 = vector.shape_cast %27 : vector<1x1x3x8xbf16> to vector<3x8xbf16>
    %c0_35 = arith.constant 0 : index
    %c2_36 = arith.constant 2 : index
    %29 = vector.load %arg0[%c0_35, %c2_36] : memref<8x2432xbf16, #tpu.memory_space<vmem>>, vector<8x2312xbf16>
    %cst_37 = arith.constant dense<0.000000e+00> : vector<3x2312xf32>
    %30 = tpu.matmul %28, %29, %cst_37 {dimension_numbers = #tpu.dot_dimension_numbers<[1], [0], [0], [1], [0, 0, 1, 1], [], []>} : vector<3x8xbf16>, vector<8x2312xbf16>, vector<3x2312xf32> -> vector<3x2312xf32>
    %31 = arith.addf %26, %30 : vector<3x2312xf32>
    %c1_38 = arith.constant 1 : index
    %c2_39 = arith.constant 2 : index
    %c0_40 = arith.constant 0 : index
    %c0_41 = arith.constant 0 : index
    %32 = vector.load %arg1[%c1_38, %c2_39, %c0_40, %c0_41] : memref<4x4x3x8xbf16, #tpu.memory_space<vmem>>, vector<1x1x3x8xbf16>
    %33 = vector.shape_cast %32 : vector<1x1x3x8xbf16> to vector<3x8xbf16>
    %c0_42 = arith.constant 0 : index
    %c35_43 = arith.constant 35 : index
    %34 = vector.load %arg0[%c0_42, %c35_43] : memref<8x2432xbf16, #tpu.memory_space<vmem>>, vector<8x2312xbf16>
    %cst_44 = arith.constant dense<0.000000e+00> : vector<3x2312xf32>
    %35 = tpu.matmul %33, %34, %cst_44 {dimension_numbers = #tpu.dot_dimension_numbers<[1], [0], [0], [1], [0, 0, 1, 1], [], []>} : vector<3x8xbf16>, vector<8x2312xbf16>, vector<3x2312xf32> -> vector<3x2312xf32>
    %36 = arith.addf %31, %35 : vector<3x2312xf32>
    %c1_45 = arith.constant 1 : index
    %c3_46 = arith.constant 3 : index
    %c0_47 = arith.constant 0 : index
    %c0_48 = arith.constant 0 : index
    %37 = vector.load %arg1[%c1_45, %c3_46, %c0_47, %c0_48] : memref<4x4x3x8xbf16, #tpu.memory_space<vmem>>, vector<1x1x3x8xbf16>
    %38 = vector.shape_cast %37 : vector<1x1x3x8xbf16> to vector<3x8xbf16>
    %c0_49 = arith.constant 0 : index
    %c36 = arith.constant 36 : index
    %39 = vector.load %arg0[%c0_49, %c36] : memref<8x2432xbf16, #tpu.memory_space<vmem>>, vector<8x2312xbf16>
    %cst_50 = arith.constant dense<0.000000e+00> : vector<3x2312xf32>
    %40 = tpu.matmul %38, %39, %cst_50 {dimension_numbers = #tpu.dot_dimension_numbers<[1], [0], [0], [1], [0, 0, 1, 1], [], []>} : vector<3x8xbf16>, vector<8x2312xbf16>, vector<3x2312xf32> -> vector<3x2312xf32>
    %41 = arith.addf %36, %40 : vector<3x2312xf32>
    %42 = math.tanh %41 : vector<3x2312xf32>
    %c1_51 = arith.constant 1 : index
    %c0_52 = arith.constant 0 : index
    %c0_53 = arith.constant 0 : index
    %43 = vector.load %arg2[%c1_51, %c0_52, %c0_53] : memref<4x3x2312xf32, #tpu.memory_space<vmem>>, vector<1x3x2312xf32>
    %44 = vector.shape_cast %43 : vector<1x3x2312xf32> to vector<3x2312xf32>
    %45 = vector.shape_cast %42 : vector<3x2312xf32> to vector<1x3x2312xf32>
    tpu.vector_store %arg2[%c1_51, %c0_52, %c0_53], %45 {strides = array<i32>} : memref<4x3x2312xf32, #tpu.memory_space<vmem>>, vector<1x3x2312xf32>,
    %c2_54 = arith.constant 2 : index
    %c0_55 = arith.constant 0 : index
    %c0_56 = arith.constant 0 : index
    %c0_57 = arith.constant 0 : index
    %46 = vector.load %arg1[%c2_54, %c0_55, %c0_56, %c0_57] : memref<4x4x3x8xbf16, #tpu.memory_space<vmem>>, vector<1x1x3x8xbf16>
    %47 = vector.shape_cast %46 : vector<1x1x3x8xbf16> to vector<3x8xbf16>
    %c0_58 = arith.constant 0 : index
    %c34_59 = arith.constant 34 : index
    %48 = vector.load %arg0[%c0_58, %c34_59] : memref<8x2432xbf16, #tpu.memory_space<vmem>>, vector<8x2312xbf16>
    %cst_60 = arith.constant dense<0.000000e+00> : vector<3x2312xf32>
    %49 = tpu.matmul %47, %48, %cst_60 {dimension_numbers = #tpu.dot_dimension_numbers<[1], [0], [0], [1], [0, 0, 1, 1], [], []>} : vector<3x8xbf16>, vector<8x2312xbf16>, vector<3x2312xf32> -> vector<3x2312xf32>
    %c2_61 = arith.constant 2 : index
    %c1_62 = arith.constant 1 : index
    %c0_63 = arith.constant 0 : index
    %c0_64 = arith.constant 0 : index
    %50 = vector.load %arg1[%c2_61, %c1_62, %c0_63, %c0_64] : memref<4x4x3x8xbf16, #tpu.memory_space<vmem>>, vector<1x1x3x8xbf16>
    %51 = vector.shape_cast %50 : vector<1x1x3x8xbf16> to vector<3x8xbf16>
    %c0_65 = arith.constant 0 : index
    %c35_66 = arith.constant 35 : index
    %52 = vector.load %arg0[%c0_65, %c35_66] : memref<8x2432xbf16, #tpu.memory_space<vmem>>, vector<8x2312xbf16>
    %cst_67 = arith.constant dense<0.000000e+00> : vector<3x2312xf32>
    %53 = tpu.matmul %51, %52, %cst_67 {dimension_numbers = #tpu.dot_dimension_numbers<[1], [0], [0], [1], [0, 0, 1, 1], [], []>} : vector<3x8xbf16>, vector<8x2312xbf16>, vector<3x2312xf32> -> vector<3x2312xf32>
    %54 = arith.addf %49, %53 : vector<3x2312xf32>
    %c2_68 = arith.constant 2 : index
    %c2_69 = arith.constant 2 : index
    %c0_70 = arith.constant 0 : index
    %c0_71 = arith.constant 0 : index
    %55 = vector.load %arg1[%c2_68, %c2_69, %c0_70, %c0_71] : memref<4x4x3x8xbf16, #tpu.memory_space<vmem>>, vector<1x1x3x8xbf16>
    %56 = vector.shape_cast %55 : vector<1x1x3x8xbf16> to vector<3x8xbf16>
    %c0_72 = arith.constant 0 : index
    %c68 = arith.constant 68 : index
    %57 = vector.load %arg0[%c0_72, %c68] : memref<8x2432xbf16, #tpu.memory_space<vmem>>, vector<8x2312xbf16>
    %cst_73 = arith.constant dense<0.000000e+00> : vector<3x2312xf32>
    %58 = tpu.matmul %56, %57, %cst_73 {dimension_numbers = #tpu.dot_dimension_numbers<[1], [0], [0], [1], [0, 0, 1, 1], [], []>} : vector<3x8xbf16>, vector<8x2312xbf16>, vector<3x2312xf32> -> vector<3x2312xf32>
    %59 = arith.addf %54, %58 : vector<3x2312xf32>
    %c2_74 = arith.constant 2 : index
    %c3_75 = arith.constant 3 : index
    %c0_76 = arith.constant 0 : index
    %c0_77 = arith.constant 0 : index
    %60 = vector.load %arg1[%c2_74, %c3_75, %c0_76, %c0_77] : memref<4x4x3x8xbf16, #tpu.memory_space<vmem>>, vector<1x1x3x8xbf16>
    %61 = vector.shape_cast %60 : vector<1x1x3x8xbf16> to vector<3x8xbf16>
    %c0_78 = arith.constant 0 : index
    %c69 = arith.constant 69 : index
    %62 = vector.load %arg0[%c0_78, %c69] : memref<8x2432xbf16, #tpu.memory_space<vmem>>, vector<8x2312xbf16>
    %cst_79 = arith.constant dense<0.000000e+00> : vector<3x2312xf32>
    %63 = tpu.matmul %61, %62, %cst_79 {dimension_numbers = #tpu.dot_dimension_numbers<[1], [0], [0], [1], [0, 0, 1, 1], [], []>} : vector<3x8xbf16>, vector<8x2312xbf16>, vector<3x2312xf32> -> vector<3x2312xf32>
    %64 = arith.addf %59, %63 : vector<3x2312xf32>
    %65 = math.tanh %64 : vector<3x2312xf32>
    %c2_80 = arith.constant 2 : index
    %c0_81 = arith.constant 0 : index
    %c0_82 = arith.constant 0 : index
    %66 = vector.load %arg2[%c2_80, %c0_81, %c0_82] : memref<4x3x2312xf32, #tpu.memory_space<vmem>>, vector<1x3x2312xf32>
    %67 = vector.shape_cast %66 : vector<1x3x2312xf32> to vector<3x2312xf32>
    %68 = vector.shape_cast %65 : vector<3x2312xf32> to vector<1x3x2312xf32>
    tpu.vector_store %arg2[%c2_80, %c0_81, %c0_82], %68 {strides = array<i32>} : memref<4x3x2312xf32, #tpu.memory_space<vmem>>, vector<1x3x2312xf32>,
    %c3_83 = arith.constant 3 : index
    %c0_84 = arith.constant 0 : index
    %c0_85 = arith.constant 0 : index
    %c0_86 = arith.constant 0 : index
    %69 = vector.load %arg1[%c3_83, %c0_84, %c0_85, %c0_86] : memref<4x4x3x8xbf16, #tpu.memory_space<vmem>>, vector<1x1x3x8xbf16>
    %70 = vector.shape_cast %69 : vector<1x1x3x8xbf16> to vector<3x8xbf16>
    %c0_87 = arith.constant 0 : index
    %c35_88 = arith.constant 35 : index
    %71 = vector.load %arg0[%c0_87, %c35_88] : memref<8x2432xbf16, #tpu.memory_space<vmem>>, vector<8x2312xbf16>
    %cst_89 = arith.constant dense<0.000000e+00> : vector<3x2312xf32>
    %72 = tpu.matmul %70, %71, %cst_89 {dimension_numbers = #tpu.dot_dimension_numbers<[1], [0], [0], [1], [0, 0, 1, 1], [], []>} : vector<3x8xbf16>, vector<8x2312xbf16>, vector<3x2312xf32> -> vector<3x2312xf32>
    %c3_90 = arith.constant 3 : index
    %c1_91 = arith.constant 1 : index
    %c0_92 = arith.constant 0 : index
    %c0_93 = arith.constant 0 : index
    %73 = vector.load %arg1[%c3_90, %c1_91, %c0_92, %c0_93] : memref<4x4x3x8xbf16, #tpu.memory_space<vmem>>, vector<1x1x3x8xbf16>
    %74 = vector.shape_cast %73 : vector<1x1x3x8xbf16> to vector<3x8xbf16>
    %c0_94 = arith.constant 0 : index
    %c36_95 = arith.constant 36 : index
    %75 = vector.load %arg0[%c0_94, %c36_95] : memref<8x2432xbf16, #tpu.memory_space<vmem>>, vector<8x2312xbf16>
    %cst_96 = arith.constant dense<0.000000e+00> : vector<3x2312xf32>
    %76 = tpu.matmul %74, %75, %cst_96 {dimension_numbers = #tpu.dot_dimension_numbers<[1], [0], [0], [1], [0, 0, 1, 1], [], []>} : vector<3x8xbf16>, vector<8x2312xbf16>, vector<3x2312xf32> -> vector<3x2312xf32>
    %77 = arith.addf %72, %76 : vector<3x2312xf32>
    %c3_97 = arith.constant 3 : index
    %c2_98 = arith.constant 2 : index
    %c0_99 = arith.constant 0 : index
    %c0_100 = arith.constant 0 : index
    %78 = vector.load %arg1[%c3_97, %c2_98, %c0_99, %c0_100] : memref<4x4x3x8xbf16, #tpu.memory_space<vmem>>, vector<1x1x3x8xbf16>
    %79 = vector.shape_cast %78 : vector<1x1x3x8xbf16> to vector<3x8xbf16>
    %c0_101 = arith.constant 0 : index
    %c69_102 = arith.constant 69 : index
    %80 = vector.load %arg0[%c0_101, %c69_102] : memref<8x2432xbf16, #tpu.memory_space<vmem>>, vector<8x2312xbf16>
    %cst_103 = arith.constant dense<0.000000e+00> : vector<3x2312xf32>
    %81 = tpu.matmul %79, %80, %cst_103 {dimension_numbers = #tpu.dot_dimension_numbers<[1], [0], [0], [1], [0, 0, 1, 1], [], []>} : vector<3x8xbf16>, vector<8x2312xbf16>, vector<3x2312xf32> -> vector<3x2312xf32>
    %82 = arith.addf %77, %81 : vector<3x2312xf32>
    %c3_104 = arith.constant 3 : index
    %c3_105 = arith.constant 3 : index
    %c0_106 = arith.constant 0 : index
    %c0_107 = arith.constant 0 : index
    %83 = vector.load %arg1[%c3_104, %c3_105, %c0_106, %c0_107] : memref<4x4x3x8xbf16, #tpu.memory_space<vmem>>, vector<1x1x3x8xbf16>
    %84 = vector.shape_cast %83 : vector<1x1x3x8xbf16> to vector<3x8xbf16>
    %c0_108 = arith.constant 0 : index
    %c70 = arith.constant 70 : index
    %85 = vector.load %arg0[%c0_108, %c70] : memref<8x2432xbf16, #tpu.memory_space<vmem>>, vector<8x2312xbf16>
    %cst_109 = arith.constant dense<0.000000e+00> : vector<3x2312xf32>
    %86 = tpu.matmul %84, %85, %cst_109 {dimension_numbers = #tpu.dot_dimension_numbers<[1], [0], [0], [1], [0, 0, 1, 1], [], []>} : vector<3x8xbf16>, vector<8x2312xbf16>, vector<3x2312xf32> -> vector<3x2312xf32>
    %87 = arith.addf %82, %86 : vector<3x2312xf32>
    %88 = math.tanh %87 : vector<3x2312xf32>
    %c3_110 = arith.constant 3 : index
    %c0_111 = arith.constant 0 : index
    %c0_112 = arith.constant 0 : index
    %89 = vector.load %arg2[%c3_110, %c0_111, %c0_112] : memref<4x3x2312xf32, #tpu.memory_space<vmem>>, vector<1x3x2312xf32>
    %90 = vector.shape_cast %89 : vector<1x3x2312xf32> to vector<3x2312xf32>
    %91 = vector.shape_cast %88 : vector<3x2312xf32> to vector<1x3x2312xf32>
    tpu.vector_store %arg2[%c3_110, %c0_111, %c0_112], %91 {strides = array<i32>} : memref<4x3x2312xf32, #tpu.memory_space<vmem>>, vector<1x3x2312xf32>,
    return
  }
}

</mosaic_0001>

<bundles_post_ra>
// kernel: wacgan_generator_forward.5
= control target key start
LH: loop header
LB: loop body
LE: loop exit
PB: predicated region body
PF: predicated region fallthrough
CT: control target
= control target key end

     0   :  { %7 = vsyncpa [#allocation3], 0  ;;  %s402_s9 = smov [#allocation2]   ;;  %s446_s0 = inlined_call_operand.vmem [shape: bf16[2,24], index: 0, kind: input, shape index: {}]   ;;  %s447_s1 = inlined_call_operand.hbm [shape: bf16[24,1024], index: 1, kind: input, shape index: {}]   ;;  %s448_s2 = inlined_call_operand.vmem [shape: f32[2,1024], index: 2, kind: output, shape index: {}]  }
   0x1   :  { %s15_s10 = sshll.u32 %s402_s9, 4  ;;  %s16_s10 = int_to_ptr.vmem [resolvable:$true] %s15_s10 }
   0x2   :  { %s388_s11 = scalar_lea.vmem %s16_s10, 1536  ;;  %p393_p1 = scmp.lt.s32.totalorder %s16_s10, %s16_s10 }
   0x3   :  { %p389_p0 = scmp.ne.s32.totalorder %s16_s10, %s388_s11  ;;  %p394_p2 = scmp.lt.s32.totalorder %s388_s11, %s388_s11 }
   0x5   :  { %p395_p3 = por %p394_p2, %p393_p1 }
   0x7   :  { %p396_p4 = pnand %p395_p3, %p389_p0 }
   0x9   :  { %399 = shalt.err (!%p396_p4)
}
   0xa   :  { %s403_s12 = smov 512   ;;  %s404_s13 = smov 32  }
   0xb   :  { %21 = dma.hbm_to_vmem [thread:$0]  %s447_s1, 1536, %s16_s10, [#allocation3], %s403_s12, %s403_s12, %s404_s13  }
   0xc   :  { %400 = dma.done.wait [#allocation3], 1536  }
   0xd   :  { %401 = vsyncadd [#allocation3], 4294965760  ;;  %v405_v0 = vmov 0   ;;  %v35_v1 = vld [vmem:[#allocation2 + $0x40] sm:$0xff]  ;;  %vm103_vm0 = vcmask 1043456   ;;  %v36_v2 = vld [vmem:[#allocation2 + $0x48] sm:$0xff]  ;;  %v305_v36 = vlaneseq }
   0xe   :  { %160 = vmatprep.mubr.bf16.mxu0 %v405_v0  ;;  %201 = vmatprep.mubr.bf16.mxu1 %v405_v0  ;;  %v27_v3 = vld [vmem:[#allocation2] sm:$0xff]  ;;  %v352_v4 = vcombine.high %v35_v1, %v35_v1  ;;  %v354_v5 = vcombine.high %v36_v2, %v36_v2  ;;  %v351_v6 = vcombine.low %v35_v1, %v35_v1  ;;  %v28_v9 = vld [vmem:[#allocation2 + $0x8] sm:$0xff]  ;;  %v37_v13 = vld [vmem:[#allocation2 + $0x50] sm:$0xff]  ;;  %vm99_vm1 = vcmask 195584  }
   0xf   :  { %v353_v7 = vcombine.low %v36_v2, %v36_v2  ;;  %v31_v8 = vld [vmem:[#allocation2 + $0x20] sm:$0xff]  ;;  %v32_v10 = vld [vmem:[#allocation2 + $0x28] sm:$0xff]  ;;  %v38_v14 = vld [vmem:[#allocation2 + $0x58] sm:$0xff]  ;;  %v356_v19 = vcombine.high %v37_v13, %v37_v13  ;;  %v355_v21 = vcombine.low %v37_v13, %v37_v13  ;;  %v406_v34 = vmov 1983009808  }
  0x10   :  { %v344_v11 = vcombine.high %v27_v3, %v31_v8  ;;  %v346_v12 = vcombine.high %v28_v9, %v32_v10  ;;  %359 = vmatprep.subr.msk.bf16.mxu0 %vm103_vm0, %v352_v4  ;;  %361 = vmatprep.subr.msk.bf16.mxu1 %vm103_vm0, %v354_v5  ;;  %v105_v15 = vsel %vm103_vm0, %v351_v6, 0  ;;  %v343_v17 = vcombine.low %v27_v3, %v31_v8  ;;  %v29_v23 = vld [vmem:[#allocation2 + $0x10] sm:$0xff]  ;;  %v30_v25 = vld [vmem:[#allocation2 + $0x18] sm:$0xff]  ;;  %v26_v27 = vld [vmem:[%s446_s0] sm:$0x1] }
  0x11   :  { %v111_v16 = vsel %vm103_vm0, %v353_v7, 0  ;;  %141 = vmatpush1.bf16.msra.mxu0 %v105_v15  ;;  %v345_v18 = vcombine.low %v28_v9, %v32_v10  ;;  %v358_v20 = vcombine.high %v38_v14, %v38_v14  ;;  %v357_v22 = vcombine.low %v38_v14, %v38_v14  ;;  %v33_v24 = vld [vmem:[#allocation2 + $0x30] sm:$0xff]  ;;  %v34_v26 = vld [vmem:[#allocation2 + $0x38] sm:$0xff] }
  0x12   :  { %182 = vmatpush1.bf16.msra.mxu1 %v111_v16  ;;  %142 = vmatprep.subr.bf16.mxu0 %v344_v11  ;;  %v117_v28 = vsel %vm103_vm0, %v355_v21, 0  ;;  %v348_v30 = vcombine.high %v29_v23, %v33_v24  ;;  %v350_v31 = vcombine.high %v30_v25, %v34_v26  ;;  %v347_v32 = vcombine.low %v29_v23, %v33_v24 }
  0x13   :  { %183 = vmatprep.subr.bf16.mxu1 %v346_v12  ;;  %v123_v29 = vsel %vm103_vm0, %v357_v22, 0  ;;  %v349_v33 = vcombine.low %v30_v25, %v34_v26  ;;  %v303_v35 = vunpack.c.l.s4 %v406_v34  ;;  %v306_v38 = vshrl.u32 %v305_v36, 7 }
  0x15   :  { %143 = vmatpush1.bf16.msra.mxu0 %v343_v17  ;;  %v304_v37 = vunpack.c.0.s8 %v303_v35 }
  0x16   :  { %184 = vmatpush1.bf16.msra.mxu1 %v345_v18  ;;  %363 = vmatprep.subr.msk.bf16.mxu0 %vm103_vm0, %v356_v19 }
  0x17   :  { %365 = vmatprep.subr.msk.bf16.mxu1 %vm103_vm0, %v358_v20  ;;  %v307_v41 = vsub.s32 %v304_v37, %v306_v38 }
  0x18   :  { %360 = vmatmul.mubr.msk.bf16.vlgmr.msra.gmra.mxu0 %vm99_vm1, %v26_v27 }
  0x19   :  { %362 = vmatmul.mubr.msk.bf16.vlgmr.msra.gmra.mxu1 %vm99_vm1, %v26_v27  ;;  %223 = vmatpush1.bf16.msra.mxu0 %v117_v28 }
  0x1a   :  { %264 = vmatpush1.bf16.msra.mxu1 %v123_v29  ;;  %224 = vmatprep.subr.bf16.mxu0 %v348_v30 }
  0x1b   :  { %265 = vmatprep.subr.bf16.mxu1 %v350_v31  ;;  %242 = vmatprep.mubr.bf16.mxu0 %v405_v0 }
  0x1c   :  { %283 = vmatprep.mubr.bf16.mxu1 %v405_v0 }
  0x1d   :  { %225 = vmatpush1.bf16.msra.mxu0 %v347_v32 }
  0x1e   :  { %266 = vmatpush1.bf16.msra.mxu1 %v349_v33 }
  0x20   :  { %364 = vmatmul.mubr.msk.bf16.vlgmr.msra.gmra.mxu0 %vm99_vm1, %v26_v27 }
  0x21   :  { %366 = vmatmul.mubr.msk.bf16.vlgmr.msra.gmra.mxu1 %vm99_vm1, %v26_v27 }
  0xd8   :  { %v162_v39 = vpop.f32.mrf.mxu0 }
  0xd9   :  { %v203_v40 = vpop.f32.mrf.mxu1 }
  0xda   :  { %v164_v42 = vpop.f32.mrf.mxu0 }
  0xdb   :  { %v205_v43 = vpop.f32.mrf.mxu1  ;;  %v300_v44 = vcombine.low %v162_v39, %v164_v42 }
  0xdc   :  { %v301_v45 = vcombine.low %v203_v40, %v205_v43  ;;  %v166_v46 = vpop.f32.mrf.mxu0 }
  0xdd   :  { %v207_v47 = vpop.f32.mrf.mxu1  ;;  %v308_v48 = vrot.slane %v300_v44, %v307_v41 }
  0xde   :  { %v315_v49 = vrot.slane %v301_v45, %v307_v41  ;;  %v167_v50 = vpop.f32.mrf.mxu0 }
  0xdf   :  { %v208_v51 = vpop.f32.mrf.mxu1 }
  0xe0   :  { %v316_v52 = vcombine.low %v308_v48, %v315_v49  ;;  %v244_v53 = vpop.f32.mrf.mxu0 }
  0xe1   :  { %v285_v54 = vpop.f32.mrf.mxu1 }
  0xe2   :  { %336 = vst [vmem:[%s448_s2] sm:$0xff] %v316_v52  ;;  %v246_v55 = vpop.f32.mrf.mxu0 }
  0xe3   :  { %v287_v56 = vpop.f32.mrf.mxu1  ;;  %v317_v57 = vcombine.low %v244_v53, %v246_v55 }
  0xe4   :  { %v318_v58 = vcombine.low %v285_v54, %v287_v56  ;;  %v248_v59 = vpop.f32.mrf.mxu0 }
  0xe5   :  { %v289_v60 = vpop.f32.mrf.mxu1  ;;  %v325_v61 = vrot.slane %v317_v57, %v307_v41 }
  0xe6   :  { %v332_v62 = vrot.slane %v318_v58, %v307_v41  ;;  %v249_v63 = vpop.f32.mrf.mxu0 }
  0xe7   :  { %v290_v0 = vpop.f32.mrf.mxu1 }
  0xe8   :  { %v333_v1 = vcombine.low %v325_v61, %v332_v62 }
  0xea   :  { %337 = vst [vmem:[%s448_s2 + $0x8] sm:$0xff] %v333_v1 }
  0xeb   :  { %342 = vsyncpa [#allocation3], 1 }

// kernel: wacgan_generator_forward.6
= control target key start
LH: loop header
LB: loop body
LE: loop exit
PB: predicated region body
PF: predicated region fallthrough
CT: control target
= control target key end

     0   :  { %10 = vsyncpa [#allocation3], 0  ;;  %s2955_s0 = inlined_call_operand.vmem [shape: bf16[64,128], index: 0, kind: input, shape index: {}]   ;;  %s2956_s1 = inlined_call_operand.hbm [shape: bf16[4,4,32,64], index: 1, kind: input, shape index: {}]   ;;  %s2957_s2 = inlined_call_operand.vmem [shape: f32[32,1], index: 2, kind: input, shape index: {}]   ;;  %s2958_s3 = inlined_call_operand.vmem [shape: f32[32,1], index: 3, kind: input, shape index: {}]   ;;  %s2959_s4 = inlined_call_operand.hbm [shape: f32[1,72], index: 4, kind: input, shape index: {}]   ;;  %s2960_s5 = inlined_call_operand.vmem [shape: f32[4,32,72], index: 5, kind: output, shape index: {}]  }
   0x1   :  { %11 = vsyncpa [#allocation5], 0  ;;  %s2420_s18 = smov [#allocation2]  }
   0x2   :  { %s19_s19 = sshll.u32 %s2420_s18, 4  ;;  %s20_s19 = int_to_ptr.vmem [resolvable:$true] %s19_s19 }
   0x3   :  { %s2384_s20 = scalar_lea.vmem %s20_s19, 4096  ;;  %p2389_p1 = scmp.lt.s32.totalorder %s20_s19, %s20_s19 }
   0x4   :  { %p2385_p0 = scmp.ne.s32.totalorder %s20_s19, %s2384_s20  ;;  %p2390_p2 = scmp.lt.s32.totalorder %s2384_s20, %s2384_s20 }
   0x6   :  { %p2391_p3 = por %p2390_p2, %p2389_p1 }
   0x8   :  { %p2392_p4 = pnand %p2391_p3, %p2385_p0 }
   0xa   :  { %2395 = shalt.err (!%p2392_p4)
}
   0xb   :  { %s2421_s21 = smov 64   ;;  %s2422_s22 = smov 4  }
   0xc   :  { %25 = dma.hbm_to_vmem [thread:$0]  %s2956_s1, 4096, %s20_s19, [#allocation3], %s2421_s21, %s2421_s21, %s2422_s22  }
   0xd   :  { %s2423_s25 = smov [#allocation4]  }
   0xe   :  { %s36_s26 = sshll.u32 %s2423_s25, 4  ;;  %s37_s26 = int_to_ptr.vmem [resolvable:$true] %s36_s26 }
   0xf   :  { %s2404_s27 = scalar_lea.vmem %s37_s26, 16  ;;  %s2408_s28 = scalar_lea.vmem %s37_s26, 32 }
  0x10   :  { %p2405_p5 = scmp.ne.s32.totalorder %s37_s26, %s2404_s27  ;;  %p2409_p6 = scmp.lt.s32.totalorder %s37_s26, %s37_s26 }
  0x11   :  { %p2410_p7 = scmp.lt.s32.totalorder %s2408_s28, %s2404_s27 }
  0x13   :  { %p2411_p8 = por %p2410_p7, %p2409_p6 }
  0x15   :  { %p2412_p9 = pnand %p2411_p8, %p2405_p5 }
  0x17   :  { %2415 = shalt.err (!%p2412_p9)
}
  0x18   :  { %39 = dma.hbm_to_vmem [thread:$0]  %s2959_s4, 16, %s37_s26, [#allocation5]  }
  0x19   :  { %2416 = dma.done.wait [#allocation3], 4096  }
  0x1a   :  { %2417 = vsyncadd [#allocation3], 4294963200 }
  0x1b   :  { %2418 = dma.done.wait [#allocation5], 16  }
  0x1c   :  { %2419 = vsyncadd [#allocation5], 4294967280  ;;  %v2320_v0 = vld [vmem:[%s2955_s0 + $0x18] sm:$0xff]   ;;  %v2321_v1 = vld [vmem:[%s2955_s0 + $0x10] sm:$0xff]   ;;  %s2424_s9 = smov 127   ;;  %s2425_s13 = smov 122  }
  0x1d   :  { %101 = vrot.lane.b32.xlu0 %v2320_v0, %s2424_s9  ;;  %v2322_v2 = vld [vmem:[%s2955_s0 + $0x8] sm:$0xff]   ;;  %2125 = vmatprep.subr.bf16.mxu1 %v2320_v0  ;;  %v2323_v3 = vld [vmem:[%s2955_s0] sm:$0xff]   ;;  %s2426_s14 = smov 121   ;;  %vm107_vm0 = vcmask 523264   ;;  %v2338_v6 = vld [vmem:[#allocation2 + $0x10] sm:$0xff]   ;;  %s2427_s17 = smov 126  }
  0x1e   :  { %2126 = vmatpush3.bf16.msra.mxu1 %v2320_v0  ;;  %97 = vrot.lane.b32.xlu1 %v2322_v2, %s2424_s9  ;;  %v2336_v4 = vld [vmem:[#allocation2] sm:$0xff]   ;;  %v2337_v5 = vld [vmem:[#allocation2 + $0x8] sm:$0xff]   ;;  %v2340_v7 = vld [vmem:[#allocation2 + $0x30] sm:$0xff]   ;;  %s2428_s24 = smov 120   ;;  %s2429_s7 = smov 116   ;;  %vm414_vm1 = vcmask 588800  }
  0x1f   :  { %2127 = vmatprep.subr.bf16.mxu1 %v2321_v1  ;;  %2133 = vmatprep.mubr.msk.bf16.mxu1 %vm107_vm0, %v2336_v4  ;;  %v2324_v8 = vld [vmem:[%s2955_s0 + $0x18] sm:$0xff]   ;;  %v2325_v9 = vld [vmem:[%s2955_s0 + $0x10] sm:$0xff]   ;;  %v2326_v10 = vld [vmem:[%s2955_s0 + $0x8] sm:$0xff]   ;;  %s2430_s8 = smov 115  }
  0x20   :  { %2121 = vmatprep.mubr.msk.bf16.mxu0 %vm107_vm0, %v2338_v6  ;;  %v2327_v11 = vld [vmem:[%s2955_s0] sm:$0xff]   ;;  %v2328_v12 = vld [vmem:[%s2955_s0 + $0x18] sm:$0xff]   ;;  %v2329_v13 = vld [vmem:[%s2955_s0 + $0x10] sm:$0xff]  }
  0x21   :  { %99 = vrot.lane.b32.xlu0 %v2321_v1, %s2424_s9  ;;  %v2330_v14 = vld [vmem:[%s2955_s0 + $0x8] sm:$0xff]   ;;  %v2331_v15 = vld [vmem:[%s2955_s0] sm:$0xff]   ;;  %v2332_v16 = vld [vmem:[%s2955_s0 + $0x18] sm:$0xff]  }
  0x22   :  { %2128 = vmatpush3.bf16.msra.mxu1 %v2321_v1  ;;  %95 = vrot.lane.b32.xlu1 %v2323_v3, %s2424_s9  ;;  %v2333_v17 = vld [vmem:[%s2955_s0 + $0x10] sm:$0xff]   ;;  %v2334_v18 = vld [vmem:[%s2955_s0 + $0x8] sm:$0xff]   ;;  %v2335_v19 = vld [vmem:[%s2955_s0] sm:$0xff]  }
  0x23   :  { %2129 = vmatprep.subr.bf16.mxu1 %v2322_v2  ;;  %v2339_v27 = vld [vmem:[#allocation2 + $0x18] sm:$0xff]   ;;  %v2342_v29 = vld [vmem:[#allocation2 + $0x20] sm:$0xff]   ;;  %v2343_v39 = vld [vmem:[#allocation2 + $0x28] sm:$0xff]  }
  0x24   :  { %v2341_v34 = vld [vmem:[#allocation2 + $0x38] sm:$0xff]   ;;  %v2344_v36 = vld [vmem:[#allocation2 + $0x40] sm:$0xff]   ;;  %v2346_v41 = vld [vmem:[#allocation2 + $0x50] sm:$0xff]  }
  0x25   :  { %253 = vrot.lane.b32.xlu0 %v2320_v0, %s2425_s13  ;;  %v2345_v46 = vld [vmem:[#allocation2 + $0x48] sm:$0xff]   ;;  %v2348_v48 = vld [vmem:[#allocation2 + $0x70] sm:$0xff]   ;;  %v2347_v51 = vld [vmem:[#allocation2 + $0x58] sm:$0xff]  }
  0x26   :  { %2130 = vmatpush3.bf16.msra.mxu1 %v2322_v2  ;;  %339 = vrot.lane.b32.xlu1 %v2320_v0, %s2426_s14  ;;  %v2350_v53 = vld [vmem:[#allocation2 + $0x60] sm:$0xff]   ;;  %v2349_v58 = vld [vmem:[#allocation2 + $0x78] sm:$0xff]   ;;  %v2351_v63 = vld [vmem:[#allocation2 + $0x68] sm:$0xff]  }
  0x27   :  { %2131 = vmatprep.subr.bf16.mxu1 %v2323_v3  ;;  %v2352_v60 = vld [vmem:[#allocation2 + $0x80] sm:$0xff]   ;;  %v2353_v6 = vld [vmem:[#allocation2 + $0x88] sm:$0xff]  }
  0x29   :  { %251 = vrot.lane.b32.xlu0 %v2321_v1, %s2425_s13 }
  0x2a   :  { %2132 = vmatpush3.bf16.msra.mxu1 %v2323_v3  ;;  %337 = vrot.lane.b32.xlu1 %v2321_v1, %s2426_s14  ;;  %v2354_v1 = vld [vmem:[#allocation2 + $0x90] sm:$0xff]  }
  0x2d   :  { %249 = vrot.lane.b32.xlu0 %v2322_v2, %s2425_s13  ;;  %2134 = vmatmul.mubr.msk.bf16.vlgmr.msra.gmra.mxu1 %vm107_vm0, %v2337_v5 }
  0x2e   :  { %335 = vrot.lane.b32.xlu1 %v2322_v2, %s2426_s14  ;;  %2157 = vmatprep.mubr.msk.bf16.mxu1 %vm107_vm0, %v2340_v7 }
  0x31   :  { %247 = vrot.lane.b32.xlu0 %v2323_v3, %s2425_s13 }
  0x32   :  { %333 = vrot.lane.b32.xlu1 %v2323_v3, %s2426_s14 }
  0x35   :  { %489 = vrot.lane.b32.xlu0 %v2324_v8, %s2427_s17 }
  0x36   :  { %566 = vrot.lane.b32.xlu1 %v2324_v8, %s2424_s9 }
  0x39   :  { %487 = vrot.lane.b32.xlu0 %v2325_v9, %s2427_s17 }
  0x3a   :  { %564 = vrot.lane.b32.xlu1 %v2325_v9, %s2424_s9 }
  0x3d   :  { %485 = vrot.lane.b32.xlu0 %v2326_v10, %s2427_s17 }
  0x3e   :  { %562 = vrot.lane.b32.xlu1 %v2326_v10, %s2424_s9 }
  0x41   :  { %483 = vrot.lane.b32.xlu0 %v2327_v11, %s2427_s17  ;;  %s2431_s17 = smov 114  }
  0x42   :  { %560 = vrot.lane.b32.xlu1 %v2327_v11, %s2424_s9 }
  0x45   :  { %648 = vrot.lane.b32.xlu0 %v2324_v8, %s2426_s14 }
  0x46   :  { %734 = vrot.lane.b32.xlu1 %v2324_v8, %s2428_s24  ;;  %v2356_v8 = vld [vmem:[#allocation2 + $0xb0] sm:$0xff]  }
  0x49   :  { %646 = vrot.lane.b32.xlu0 %v2325_v9, %s2426_s14 }
  0x4a   :  { %732 = vrot.lane.b32.xlu1 %v2325_v9, %s2428_s24 }
  0x4d   :  { %644 = vrot.lane.b32.xlu0 %v2326_v10, %s2426_s14 }
  0x4e   :  { %730 = vrot.lane.b32.xlu1 %v2326_v10, %s2428_s24 }
  0x51   :  { %642 = vrot.lane.b32.xlu0 %v2327_v11, %s2426_s14 }
  0x52   :  { %728 = vrot.lane.b32.xlu1 %v2327_v11, %s2428_s24  ;;  %v2355_v11 = vld [vmem:[#allocation2 + $0x98] sm:$0xff]  }
  0x55   :  { %878 = vrot.lane.b32.xlu0 %v2328_v12, %s2426_s14 }
  0x56   :  { %955 = vrot.lane.b32.xlu1 %v2328_v12, %s2425_s13 }
  0x59   :  { %876 = vrot.lane.b32.xlu0 %v2329_v13, %s2426_s14 }
  0x5a   :  { %953 = vrot.lane.b32.xlu1 %v2329_v13, %s2425_s13 }
  0x5d   :  { %874 = vrot.lane.b32.xlu0 %v2330_v14, %s2426_s14 }
  0x5e   :  { %951 = vrot.lane.b32.xlu1 %v2330_v14, %s2425_s13 }
  0x61   :  { %872 = vrot.lane.b32.xlu0 %v2331_v15, %s2426_s14 }
  0x62   :  { %949 = vrot.lane.b32.xlu1 %v2331_v15, %s2425_s13 }
  0x65   :  { %1037 = vrot.lane.b32.xlu0 %v2328_v12, %s2429_s7 }
  0x66   :  { %1123 = vrot.lane.b32.xlu1 %v2328_v12, %s2430_s8 }
  0x69   :  { %1035 = vrot.lane.b32.xlu0 %v2329_v13, %s2429_s7 }
  0x6a   :  { %1121 = vrot.lane.b32.xlu1 %v2329_v13, %s2430_s8  ;;  %v2358_v13 = vld [vmem:[#allocation2 + $0xa0] sm:$0xff]  }
  0x6d   :  { %1033 = vrot.lane.b32.xlu0 %v2330_v14, %s2429_s7 }
  0x6e   :  { %1119 = vrot.lane.b32.xlu1 %v2330_v14, %s2430_s8 }
  0x71   :  { %1031 = vrot.lane.b32.xlu0 %v2331_v15, %s2429_s7 }
  0x72   :  { %1117 = vrot.lane.b32.xlu1 %v2331_v15, %s2430_s8 }
  0x75   :  { %1267 = vrot.lane.b32.xlu0 %v2332_v16, %s2428_s24 }
  0x76   :  { %1344 = vrot.lane.b32.xlu1 %v2332_v16, %s2426_s14 }
  0x79   :  { %1265 = vrot.lane.b32.xlu0 %v2333_v17, %s2428_s24 }
  0x7a   :  { %1342 = vrot.lane.b32.xlu1 %v2333_v17, %s2426_s14 }
  0x7d   :  { %1263 = vrot.lane.b32.xlu0 %v2334_v18, %s2428_s24 }
  0x7e   :  { %1340 = vrot.lane.b32.xlu1 %v2334_v18, %s2426_s14 }
  0x81   :  { %1261 = vrot.lane.b32.xlu0 %v2335_v19, %s2428_s24 }
  0x82   :  { %1338 = vrot.lane.b32.xlu1 %v2335_v19, %s2426_s14 }
  0x85   :  { %1426 = vrot.lane.b32.xlu0 %v2332_v16, %s2430_s8 }
  0x86   :  { %1512 = vrot.lane.b32.xlu1 %v2332_v16, %s2431_s17 }
  0x89   :  { %1424 = vrot.lane.b32.xlu0 %v2333_v17, %s2430_s8 }
  0x8a   :  { %1510 = vrot.lane.b32.xlu1 %v2333_v17, %s2431_s17 }
  0x8d   :  { %1422 = vrot.lane.b32.xlu0 %v2334_v18, %s2430_s8 }
  0x8e   :  { %1508 = vrot.lane.b32.xlu1 %v2334_v18, %s2431_s17  ;;  %v2357_v18 = vld [vmem:[#allocation2 + $0xb8] sm:$0xff]  }
  0x8f   :  { %v102_v20 = vpop.permute.xlu0 %101 }
  0x90   :  { %2113 = vmatprep.subr.bf16.mxu0 %v102_v20  ;;  %v98_v21 = vpop.permute.xlu1 %97 }
  0x91   :  { %2114 = vmatpush3.bf16.msra.mxu0 %v102_v20  ;;  %1420 = vrot.lane.b32.xlu0 %v2335_v19, %s2430_s8  ;;  %v2360_v20 = vld [vmem:[#allocation2 + $0xc0] sm:$0xff]  }
  0x92   :  { %1506 = vrot.lane.b32.xlu1 %v2335_v19, %s2431_s17 }
  0x93   :  { %v100_v22 = vpop.permute.xlu0 %99 }
  0x94   :  { %2115 = vmatprep.subr.bf16.mxu0 %v100_v22  ;;  %v96_v23 = vpop.permute.xlu1 %95 }
  0x95   :  { %2116 = vmatpush3.bf16.msra.mxu0 %v100_v22 }
  0x96   :  { %2117 = vmatprep.subr.bf16.mxu0 %v98_v21 }
  0x97   :  { %v254_v24 = vpop.permute.xlu0 %253 }
  0x98   :  { %v340_v25 = vpop.permute.xlu1 %339 }
  0x99   :  { %2118 = vmatpush3.bf16.msra.mxu0 %v98_v21  ;;  %2149 = vmatprep.subr.bf16.mxu1 %v340_v25 }
  0x9a   :  { %2119 = vmatprep.subr.bf16.mxu0 %v96_v23  ;;  %2150 = vmatpush3.bf16.msra.mxu1 %v340_v25  ;;  %v2362_v25 = vld [vmem:[#allocation2 + $0xd0] sm:$0xff]  }
  0x9b   :  { %v252_v26 = vpop.permute.xlu0 %251 }
  0x9c   :  { %v338_v28 = vpop.permute.xlu1 %337 }
  0x9d   :  { %2120 = vmatpush3.bf16.msra.mxu0 %v96_v23  ;;  %2151 = vmatprep.subr.bf16.mxu1 %v338_v28  ;;  %v2359_v23 = vld [vmem:[#allocation2 + $0xa8] sm:$0xff]  }
  0x9e   :  { %2137 = vmatprep.subr.bf16.mxu0 %v254_v24  ;;  %2152 = vmatpush3.bf16.msra.mxu1 %v338_v28 }
  0x9f   :  { %v250_v30 = vpop.permute.xlu0 %249 }
  0xa0   :  { %2122 = vmatmul.mubr.msk.bf16.vlgmr.msra.gmra.mxu0 %vm107_vm0, %v2339_v27  ;;  %v336_v31 = vpop.permute.xlu1 %335 }
  0xa1   :  { %2138 = vmatpush3.bf16.msra.mxu0 %v254_v24  ;;  %2145 = vmatprep.mubr.msk.bf16.mxu0 %vm107_vm0, %v2342_v29 }
  0xa2   :  { %2139 = vmatprep.subr.bf16.mxu0 %v252_v26  ;;  %2153 = vmatprep.subr.bf16.mxu1 %v336_v31 }
  0xa3   :  { %2154 = vmatpush3.bf16.msra.mxu1 %v336_v31  ;;  %v248_v32 = vpop.permute.xlu0 %247 }
  0xa4   :  { %v334_v33 = vpop.permute.xlu1 %333 }
  0xa5   :  { %2140 = vmatpush3.bf16.msra.mxu0 %v252_v26  ;;  %2155 = vmatprep.subr.bf16.mxu1 %v334_v33 }
  0xa6   :  { %2141 = vmatprep.subr.bf16.mxu0 %v250_v30 }
  0xa7   :  { %2156 = vmatpush3.bf16.msra.mxu1 %v334_v33  ;;  %v490_v35 = vpop.permute.xlu0 %489 }
  0xa8   :  { %v567_v37 = vpop.permute.xlu1 %566 }
  0xa9   :  { %2142 = vmatpush3.bf16.msra.mxu0 %v250_v30  ;;  %2173 = vmatprep.subr.bf16.mxu1 %v567_v37  ;;  %v2361_v30 = vld [vmem:[#allocation2 + $0xc8] sm:$0xff]  }
  0xaa   :  { %2143 = vmatprep.subr.bf16.mxu0 %v248_v32  ;;  %2158 = vmatmul.mubr.msk.bf16.vlgmr.msra.gmra.mxu1 %vm107_vm0, %v2341_v34 }
  0xab   :  { %v488_v38 = vpop.permute.xlu0 %487  ;;  %2174 = vmatpush3.bf16.msra.mxu1 %v567_v37  ;;  %2181 = vmatprep.mubr.msk.bf16.mxu1 %vm107_vm0, %v2344_v36  ;;  %v2366_v37 = vld [vmem:[#allocation2 + $0xe0] sm:$0xff]  }
  0xac   :  { %v565_v40 = vpop.permute.xlu1 %564 }
  0xad   :  { %2144 = vmatpush3.bf16.msra.mxu0 %v248_v32  ;;  %2175 = vmatprep.subr.bf16.mxu1 %v565_v40  ;;  %v2364_v32 = vld [vmem:[#allocation2 + $0xf0] sm:$0xff]  }
  0xae   :  { %2161 = vmatprep.subr.bf16.mxu0 %v490_v35 }
  0xaf   :  { %v486_v42 = vpop.permute.xlu0 %485  ;;  %2176 = vmatpush3.bf16.msra.mxu1 %v565_v40 }
  0xb0   :  { %2146 = vmatmul.mubr.msk.bf16.vlgmr.msra.gmra.mxu0 %vm107_vm0, %v2343_v39  ;;  %v563_v43 = vpop.permute.xlu1 %562 }
  0xb1   :  { %2162 = vmatpush3.bf16.msra.mxu0 %v490_v35  ;;  %2169 = vmatprep.mubr.msk.bf16.mxu0 %vm107_vm0, %v2346_v41  ;;  %v2363_v35 = vld [vmem:[#allocation2 + $0xd8] sm:$0xff]  }
  0xb2   :  { %2163 = vmatprep.subr.bf16.mxu0 %v488_v38  ;;  %2177 = vmatprep.subr.bf16.mxu1 %v563_v43 }
  0xb3   :  { %v484_v44 = vpop.permute.xlu0 %483  ;;  %2178 = vmatpush3.bf16.msra.mxu1 %v563_v43  ;;  %v2367_v43 = vld [vmem:[#allocation2 + $0xe8] sm:$0xff]  }
  0xb4   :  { %v561_v45 = vpop.permute.xlu1 %560 }
  0xb5   :  { %2164 = vmatpush3.bf16.msra.mxu0 %v488_v38  ;;  %2179 = vmatprep.subr.bf16.mxu1 %v561_v45 }
  0xb6   :  { %2165 = vmatprep.subr.bf16.mxu0 %v486_v42 }
  0xb7   :  { %v649_v47 = vpop.permute.xlu0 %648  ;;  %2180 = vmatpush3.bf16.msra.mxu1 %v561_v45 }
  0xb8   :  { %v735_v49 = vpop.permute.xlu1 %734 }
  0xb9   :  { %2166 = vmatpush3.bf16.msra.mxu0 %v486_v42  ;;  %2197 = vmatprep.subr.bf16.mxu1 %v735_v49  ;;  %v2365_v42 = vld [vmem:[#allocation2 + $0xf8] sm:$0xff]  }
  0xba   :  { %2167 = vmatprep.subr.bf16.mxu0 %v484_v44  ;;  %2182 = vmatmul.mubr.msk.bf16.vlgmr.msra.gmra.mxu1 %vm107_vm0, %v2345_v46 }
  0xbb   :  { %v647_v50 = vpop.permute.xlu0 %646  ;;  %2198 = vmatpush3.bf16.msra.mxu1 %v735_v49  ;;  %2205 = vmatprep.mubr.msk.bf16.mxu1 %vm107_vm0, %v2348_v48 }
  0xbc   :  { %v733_v52 = vpop.permute.xlu1 %732 }
  0xbd   :  { %2168 = vmatpush3.bf16.msra.mxu0 %v484_v44  ;;  %2199 = vmatprep.subr.bf16.mxu1 %v733_v52 }
  0xbe   :  { %2185 = vmatprep.subr.bf16.mxu0 %v649_v47 }
  0xbf   :  { %v645_v54 = vpop.permute.xlu0 %644  ;;  %2200 = vmatpush3.bf16.msra.mxu1 %v733_v52 }
  0xc0   :  { %2170 = vmatmul.mubr.msk.bf16.vlgmr.msra.gmra.mxu0 %vm107_vm0, %v2347_v51  ;;  %v731_v55 = vpop.permute.xlu1 %730 }
  0xc1   :  { %2186 = vmatpush3.bf16.msra.mxu0 %v649_v47  ;;  %2193 = vmatprep.mubr.msk.bf16.mxu0 %vm107_vm0, %v2350_v53 }
  0xc2   :  { %2187 = vmatprep.subr.bf16.mxu0 %v647_v50  ;;  %2201 = vmatprep.subr.bf16.mxu1 %v731_v55 }
  0xc3   :  { %v643_v56 = vpop.permute.xlu0 %642  ;;  %2202 = vmatpush3.bf16.msra.mxu1 %v731_v55 }
  0xc4   :  { %v729_v57 = vpop.permute.xlu1 %728 }
  0xc5   :  { %2188 = vmatpush3.bf16.msra.mxu0 %v647_v50  ;;  %2203 = vmatprep.subr.bf16.mxu1 %v729_v57 }
  0xc6   :  { %2189 = vmatprep.subr.bf16.mxu0 %v645_v54 }
  0xc7   :  { %v879_v59 = vpop.permute.xlu0 %878  ;;  %2204 = vmatpush3.bf16.msra.mxu1 %v729_v57 }
  0xc8   :  { %v956_v61 = vpop.permute.xlu1 %955 }
  0xc9   :  { %2190 = vmatpush3.bf16.msra.mxu0 %v645_v54  ;;  %2221 = vmatprep.subr.bf16.mxu1 %v956_v61 }
  0xca   :  { %2191 = vmatprep.subr.bf16.mxu0 %v643_v56  ;;  %2206 = vmatmul.mubr.msk.bf16.vlgmr.msra.gmra.mxu1 %vm107_vm0, %v2349_v58 }
  0xcb   :  { %v877_v62 = vpop.permute.xlu0 %876  ;;  %2222 = vmatpush3.bf16.msra.mxu1 %v956_v61  ;;  %2229 = vmatprep.mubr.msk.bf16.mxu1 %vm107_vm0, %v2352_v60 }
  0xcc   :  { %v954_v0 = vpop.permute.xlu1 %953 }
  0xcd   :  { %2192 = vmatpush3.bf16.msra.mxu0 %v643_v56  ;;  %2223 = vmatprep.subr.bf16.mxu1 %v954_v0 }
  0xce   :  { %2209 = vmatprep.subr.bf16.mxu0 %v879_v59 }
  0xcf   :  { %v875_v2 = vpop.permute.xlu0 %874  ;;  %2224 = vmatpush3.bf16.msra.mxu1 %v954_v0 }
  0xd0   :  { %2194 = vmatmul.mubr.msk.bf16.vlgmr.msra.gmra.mxu0 %vm107_vm0, %v2351_v63  ;;  %v952_v3 = vpop.permute.xlu1 %951 }
  0xd1   :  { %2210 = vmatpush3.bf16.msra.mxu0 %v879_v59  ;;  %2217 = vmatprep.mubr.msk.bf16.mxu0 %vm107_vm0, %v2354_v1  ;;  %v2597_v59 = vld [vmem:[#allocation4] ss:$0 sm:$0xff] }
  0xd2   :  { %2211 = vmatprep.subr.bf16.mxu0 %v877_v62  ;;  %2225 = vmatprep.subr.bf16.mxu1 %v952_v3 }
  0xd3   :  { %v873_v4 = vpop.permute.xlu0 %872  ;;  %2226 = vmatpush3.bf16.msra.mxu1 %v952_v3 }
  0xd4   :  { %v950_v5 = vpop.permute.xlu1 %949 }
  0xd5   :  { %2212 = vmatpush3.bf16.msra.mxu0 %v877_v62  ;;  %2227 = vmatprep.subr.bf16.mxu1 %v950_v5 }
  0xd6   :  { %2213 = vmatprep.subr.bf16.mxu0 %v875_v2 }
  0xd7   :  { %v1038_v7 = vpop.permute.xlu0 %1037  ;;  %2228 = vmatpush3.bf16.msra.mxu1 %v950_v5 }
  0xd8   :  { %v1124_v9 = vpop.permute.xlu1 %1123 }
  0xd9   :  { %2214 = vmatpush3.bf16.msra.mxu0 %v875_v2  ;;  %2245 = vmatprep.subr.bf16.mxu1 %v1124_v9 }
  0xda   :  { %2215 = vmatprep.subr.bf16.mxu0 %v873_v4  ;;  %2230 = vmatmul.mubr.msk.bf16.vlgmr.msra.gmra.mxu1 %vm107_vm0, %v2353_v6 }
  0xdb   :  { %v1036_v10 = vpop.permute.xlu0 %1035  ;;  %2246 = vmatpush3.bf16.msra.mxu1 %v1124_v9  ;;  %2253 = vmatprep.mubr.msk.bf16.mxu1 %vm107_vm0, %v2356_v8 }
  0xdc   :  { %v1122_v12 = vpop.permute.xlu1 %1121 }
  0xdd   :  { %2216 = vmatpush3.bf16.msra.mxu0 %v873_v4  ;;  %2247 = vmatprep.subr.bf16.mxu1 %v1122_v12 }
  0xde   :  { %2233 = vmatprep.subr.bf16.mxu0 %v1038_v7 }
  0xdf   :  { %v1034_v14 = vpop.permute.xlu0 %1033  ;;  %2248 = vmatpush3.bf16.msra.mxu1 %v1122_v12 }
  0xe0   :  { %2218 = vmatmul.mubr.msk.bf16.vlgmr.msra.gmra.mxu0 %vm107_vm0, %v2355_v11  ;;  %v1120_v15 = vpop.permute.xlu1 %1119 }
  0xe1   :  { %2234 = vmatpush3.bf16.msra.mxu0 %v1038_v7  ;;  %2241 = vmatprep.mubr.msk.bf16.mxu0 %vm107_vm0, %v2358_v13 }
  0xe2   :  { %2235 = vmatprep.subr.bf16.mxu0 %v1036_v10  ;;  %2249 = vmatprep.subr.bf16.mxu1 %v1120_v15 }
  0xe3   :  { %v1032_v16 = vpop.permute.xlu0 %1031  ;;  %2250 = vmatpush3.bf16.msra.mxu1 %v1120_v15 }
  0xe4   :  { %v1118_v17 = vpop.permute.xlu1 %1117 }
  0xe5   :  { %2236 = vmatpush3.bf16.msra.mxu0 %v1036_v10  ;;  %2251 = vmatprep.subr.bf16.mxu1 %v1118_v17 }
  0xe6   :  { %2237 = vmatprep.subr.bf16.mxu0 %v1034_v14 }
  0xe7   :  { %v1268_v19 = vpop.permute.xlu0 %1267  ;;  %2252 = vmatpush3.bf16.msra.mxu1 %v1118_v17 }
  0xe8   :  { %v1345_v21 = vpop.permute.xlu1 %1344 }
  0xe9   :  { %2238 = vmatpush3.bf16.msra.mxu0 %v1034_v14  ;;  %2269 = vmatprep.subr.bf16.mxu1 %v1345_v21 }
  0xea   :  { %2239 = vmatprep.subr.bf16.mxu0 %v1032_v16  ;;  %2254 = vmatmul.mubr.msk.bf16.vlgmr.msra.gmra.mxu1 %vm107_vm0, %v2357_v18 }
  0xeb   :  { %v1266_v22 = vpop.permute.xlu0 %1265  ;;  %2270 = vmatpush3.bf16.msra.mxu1 %v1345_v21  ;;  %2277 = vmatprep.mubr.msk.bf16.mxu1 %vm107_vm0, %v2360_v20 }
  0xec   :  { %v1343_v24 = vpop.permute.xlu1 %1342 }
  0xed   :  { %2240 = vmatpush3.bf16.msra.mxu0 %v1032_v16  ;;  %2271 = vmatprep.subr.bf16.mxu1 %v1343_v24  ;;  %v2135_v44 = vpop.f32.mrf.mxu1 }
  0xee   :  { %2257 = vmatprep.subr.bf16.mxu0 %v1268_v19 }
  0xef   :  { %v1264_v26 = vpop.permute.xlu0 %1263  ;;  %2272 = vmatpush3.bf16.msra.mxu1 %v1343_v24  ;;  %v217_v45 = vpop.f32.mrf.mxu1 }
  0xf0   :  { %2242 = vmatmul.mubr.msk.bf16.vlgmr.msra.gmra.mxu0 %vm107_vm0, %v2359_v23  ;;  %v1341_v27 = vpop.permute.xlu1 %1340 }
  0xf1   :  { %2258 = vmatpush3.bf16.msra.mxu0 %v1268_v19  ;;  %2265 = vmatprep.mubr.msk.bf16.mxu0 %vm107_vm0, %v2362_v25  ;;  %v2136_v47 = vpop.f32.mrf.mxu1 }
  0xf2   :  { %2259 = vmatprep.subr.bf16.mxu0 %v1266_v22  ;;  %2273 = vmatprep.subr.bf16.mxu1 %v1341_v27 }
  0xf3   :  { %v1262_v28 = vpop.permute.xlu0 %1261  ;;  %2274 = vmatpush3.bf16.msra.mxu1 %v1341_v27  ;;  %v220_v49 = vpop.f32.mrf.mxu1 }
  0xf4   :  { %v1339_v29 = vpop.permute.xlu1 %1338 }
  0xf5   :  { %2260 = vmatpush3.bf16.msra.mxu0 %v1266_v22  ;;  %2275 = vmatprep.subr.bf16.mxu1 %v1339_v29 }
  0xf6   :  { %2261 = vmatprep.subr.bf16.mxu0 %v1264_v26 }
  0xf7   :  { %v1427_v31 = vpop.permute.xlu0 %1426  ;;  %2276 = vmatpush3.bf16.msra.mxu1 %v1339_v29 }
  0xf8   :  { %v1513_v33 = vpop.permute.xlu1 %1512 }
  0xf9   :  { %2262 = vmatpush3.bf16.msra.mxu0 %v1264_v26  ;;  %2293 = vmatprep.subr.bf16.mxu1 %v1513_v33 }
  0xfa   :  { %2263 = vmatprep.subr.bf16.mxu0 %v1262_v28  ;;  %2278 = vmatmul.mubr.msk.bf16.vlgmr.msra.gmra.mxu1 %vm107_vm0, %v2361_v30 }
  0xfb   :  { %v1425_v34 = vpop.permute.xlu0 %1424  ;;  %2294 = vmatpush3.bf16.msra.mxu1 %v1513_v33  ;;  %2301 = vmatprep.mubr.msk.bf16.mxu1 %vm107_vm0, %v2364_v32 }
  0xfc   :  { %v1511_v36 = vpop.permute.xlu1 %1510 }
  0xfd   :  { %2264 = vmatpush3.bf16.msra.mxu0 %v1262_v28  ;;  %2295 = vmatprep.subr.bf16.mxu1 %v1511_v36 }
  0xfe   :  { %2281 = vmatprep.subr.bf16.mxu0 %v1427_v31 }
  0xff   :  { %2296 = vmatpush3.bf16.msra.mxu1 %v1511_v36  ;;  %v1423_v39 = vpop.permute.xlu0 %1422 }
 0x100   :  { %2266 = vmatmul.mubr.msk.bf16.vlgmr.msra.gmra.mxu0 %vm107_vm0, %v2363_v35  ;;  %v1509_v38 = vpop.permute.xlu1 %1508 }
 0x101   :  { %2282 = vmatpush3.bf16.msra.mxu0 %v1427_v31  ;;  %2289 = vmatprep.mubr.msk.bf16.mxu0 %vm107_vm0, %v2366_v37 }
 0x102   :  { %2283 = vmatprep.subr.bf16.mxu0 %v1425_v34  ;;  %2297 = vmatprep.subr.bf16.mxu1 %v1509_v38 }
 0x103   :  { %2298 = vmatpush3.bf16.msra.mxu1 %v1509_v38  ;;  %v1421_v41 = vpop.permute.xlu0 %1420 }
 0x104   :  { %v1507_v40 = vpop.permute.xlu1 %1506 }
 0x105   :  { %2284 = vmatpush3.bf16.msra.mxu0 %v1425_v34  ;;  %2299 = vmatprep.subr.bf16.mxu1 %v1507_v40 }
 0x106   :  { %2285 = vmatprep.subr.bf16.mxu0 %v1423_v39 }
 0x107   :  { %2300 = vmatpush3.bf16.msra.mxu1 %v1507_v40 }
 0x109   :  { %2286 = vmatpush3.bf16.msra.mxu0 %v1423_v39 }
 0x10a   :  { %2287 = vmatprep.subr.bf16.mxu0 %v1421_v41  ;;  %2302 = vmatmul.mubr.msk.bf16.vlgmr.msra.gmra.mxu1 %vm107_vm0, %v2365_v42 }
 0x10d   :  { %2288 = vmatpush3.bf16.msra.mxu0 %v1421_v41 }
 0x110   :  { %2290 = vmatmul.mubr.msk.bf16.vlgmr.msra.gmra.mxu0 %vm107_vm0, %v2367_v43 }
 0x160   :  { %v2123_v46 = vpop.f32.mrf.mxu0 }
 0x161   :  { %v226_v53 = vadd.f32 %v2135_v44, %v2123_v46 }
 0x162   :  { %v148_v48 = vpop.f32.mrf.mxu0 }
 0x163   :  { %v218_v56 = vadd.f32 %v217_v45, %v148_v48 }
 0x164   :  { %v2124_v50 = vpop.f32.mrf.mxu0 }
 0x165   :  { %v229_v60 = vadd.f32 %v2136_v47, %v2124_v50 }
 0x166   :  { %v151_v52 = vpop.f32.mrf.mxu0 }
 0x167   :  { %v221_v1 = vadd.f32 %v220_v49, %v151_v52 }
 0x16a   :  { %v2159_v51 = vpop.f32.mrf.mxu1 }
 0x16c   :  { %v385_v54 = vpop.f32.mrf.mxu1 }
 0x16e   :  { %v2160_v63 = vpop.f32.mrf.mxu1 }
 0x170   :  { %v2147_v55 = vpop.f32.mrf.mxu0  ;;  %v388_v10 = vpop.f32.mrf.mxu1 }
 0x171   :  { %v316_v57 = vadd.f32 %v2147_v55, %v226_v53 }
 0x172   :  { %v299_v58 = vpop.f32.mrf.mxu0 }
 0x173   :  { %v402_v61 = vadd.f32 %v2159_v51, %v316_v57  ;;  %v314_v62 = vadd.f32 %v299_v58, %v218_v56 }
 0x174   :  { %v2148_v0 = vpop.f32.mrf.mxu0 }
 0x175   :  { %433 = vst.msk [vmem:[%s2960_s5 + $0x10] sm:$0xff] %vm414_vm1, %v402_v61  ;;  %v400_v2 = vadd.f32 %v385_v54, %v314_v62  ;;  %v317_v3 = vadd.f32 %v2148_v0, %v229_v60  ;;  %v412_v4 = vmul.f32 %v2597_v59, %v402_v61 }
 0x176   :  { %v302_v5 = vpop.f32.mrf.mxu0 }
 0x177   :  { %431 = vst.msk [vmem:[%s2960_s5] sm:$0xff] %vm414_vm1, %v400_v2  ;;  %v403_v6 = vadd.f32 %v2160_v63, %v317_v3  ;;  %v315_v7 = vadd.f32 %v302_v5, %v221_v1  ;;  %v421_v8 = vsel %vm414_vm1, %v412_v4, 0.0  ;;  %v410_v9 = vmul.f32 %v2597_v59, %v400_v2 }
 0x178   :  { %422 = vadd.xlane.f32.xlu0 %v421_v8 }
 0x179   :  { %434 = vst.msk [vmem:[%s2960_s5 + $0x18] sm:$0xff] %vm414_vm1, %v403_v6  ;;  %v401_v11 = vadd.f32 %v388_v10, %v315_v7  ;;  %v415_v12 = vsel %vm414_vm1, %v410_v9, 0.0  ;;  %v413_v14 = vmul.f32 %v2597_v59, %v403_v6 }
 0x17a   :  { %v2183_v16 = vpop.f32.mrf.mxu1 }
 0x17b   :  { %432 = vst.msk [vmem:[%s2960_s5 + $0x8] sm:$0xff] %vm414_vm1, %v401_v11  ;;  %v411_v13 = vmul.f32 %v2597_v59, %v401_v11  ;;  %v424_v17 = vsel %vm414_vm1, %v413_v14, 0.0 }
 0x17c   :  { %416 = vadd.xlane.f32.xlu0 %v415_v12  ;;  %v612_v18 = vpop.f32.mrf.mxu1 }
 0x17d   :  { %v418_v15 = vsel %vm414_vm1, %v411_v13, 0.0 }
 0x17e   :  { %419 = vadd.xlane.f32.xlu1 %v418_v15  ;;  %v2184_v20 = vpop.f32.mrf.mxu1 }
 0x180   :  { %425 = vadd.xlane.f32.xlu0 %v424_v17  ;;  %v2171_v19 = vpop.f32.mrf.mxu0  ;;  %v615_v22 = vpop.f32.mrf.mxu1 }
 0x181   :  { %v621_v26 = vadd.f32 %v2183_v16, %v2171_v19 }
 0x182   :  { %v535_v21 = vpop.f32.mrf.mxu0 }
 0x183   :  { %v613_v29 = vadd.f32 %v612_v18, %v535_v21 }
 0x184   :  { %v2172_v23 = vpop.f32.mrf.mxu0 }
 0x185   :  { %v624_v32 = vadd.f32 %v2184_v20, %v2172_v23 }
 0x186   :  { %v538_v25 = vpop.f32.mrf.mxu0 }
 0x187   :  { %v616_v37 = vadd.f32 %v615_v22, %v538_v25 }
 0x18a   :  { %v2207_v24 = vpop.f32.mrf.mxu1 }
 0x18c   :  { %v780_v27 = vpop.f32.mrf.mxu1 }
 0x18e   :  { %v2208_v35 = vpop.f32.mrf.mxu1 }
 0x190   :  { %v2195_v28 = vpop.f32.mrf.mxu0  ;;  %v783_v46 = vpop.f32.mrf.mxu1 }
 0x191   :  { %v711_v30 = vadd.f32 %v2195_v28, %v621_v26 }
 0x192   :  { %v694_v31 = vpop.f32.mrf.mxu0 }
 0x193   :  { %v797_v33 = vadd.f32 %v2207_v24, %v711_v30  ;;  %v709_v34 = vadd.f32 %v694_v31, %v613_v29 }
 0x194   :  { %v2196_v36 = vpop.f32.mrf.mxu0 }
 0x195   :  { %1931 = vst.msk [vmem:[%s2960_s5 + $0x30] sm:$0xff] %vm414_vm1, %v797_v33  ;;  %v795_v38 = vadd.f32 %v780_v27, %v709_v34  ;;  %v712_v39 = vadd.f32 %v2196_v36, %v624_v32  ;;  %v801_v40 = vmul.f32 %v2597_v59, %v797_v33 }
 0x196   :  { %v697_v41 = vpop.f32.mrf.mxu0 }
 0x197   :  { %1929 = vst.msk [vmem:[%s2960_s5 + $0x20] sm:$0xff] %vm414_vm1, %v795_v38  ;;  %v798_v42 = vadd.f32 %v2208_v35, %v712_v39  ;;  %v710_v43 = vadd.f32 %v697_v41, %v616_v37  ;;  %v809_v44 = vsel %vm414_vm1, %v801_v40, 0.0  ;;  %v799_v45 = vmul.f32 %v2597_v59, %v795_v38 }
 0x198   :  { %810 = vadd.xlane.f32.xlu1 %v809_v44 }
 0x199   :  { %1932 = vst.msk [vmem:[%s2960_s5 + $0x38] sm:$0xff] %vm414_vm1, %v798_v42  ;;  %v796_v47 = vadd.f32 %v783_v46, %v710_v43  ;;  %v802_v48 = vmul.f32 %v2597_v59, %v798_v42  ;;  %v803_v49 = vsel %vm414_vm1, %v799_v45, 0.0 }
 0x19a   :  { %v2231_v52 = vpop.f32.mrf.mxu1 }
 0x19b   :  { %1930 = vst.msk [vmem:[%s2960_s5 + $0x28] sm:$0xff] %vm414_vm1, %v796_v47  ;;  %v812_v50 = vsel %vm414_vm1, %v802_v48, 0.0  ;;  %v800_v51 = vmul.f32 %v2597_v59, %v796_v47 }
 0x19c   :  { %804 = vadd.xlane.f32.xlu1 %v803_v49  ;;  %813 = vadd.xlane.f32.xlu0 %v812_v50  ;;  %v1001_v54 = vpop.f32.mrf.mxu1 }
 0x19d   :  { %v806_v53 = vsel %vm414_vm1, %v800_v51, 0.0 }
 0x19e   :  { %v2232_v56 = vpop.f32.mrf.mxu1 }
 0x1a0   :  { %807 = vadd.xlane.f32.xlu0 %v806_v53  ;;  %v2219_v55 = vpop.f32.mrf.mxu0  ;;  %v1004_v58 = vpop.f32.mrf.mxu1 }
 0x1a1   :  { %v1010_v63 = vadd.f32 %v2231_v52, %v2219_v55 }
 0x1a2   :  { %v924_v57 = vpop.f32.mrf.mxu0 }
 0x1a3   :  { %v1002_v2 = vadd.f32 %v1001_v54, %v924_v57 }
 0x1a4   :  { %v2220_v60 = vpop.f32.mrf.mxu0 }
 0x1a5   :  { %v1013_v5 = vadd.f32 %v2232_v56, %v2220_v60 }
 0x1a6   :  { %v927_v62 = vpop.f32.mrf.mxu0 }
 0x1a7   :  { %v1005_v10 = vadd.f32 %v1004_v58, %v927_v62 }
 0x1aa   :  { %v2255_v61 = vpop.f32.mrf.mxu1 }
 0x1ac   :  { %v1169_v0 = vpop.f32.mrf.mxu1 }
 0x1ae   :  { %v2256_v8 = vpop.f32.mrf.mxu1 }
 0x1b0   :  { %v2243_v1 = vpop.f32.mrf.mxu0  ;;  %v1172_v19 = vpop.f32.mrf.mxu1 }
 0x1b1   :  { %v1100_v3 = vadd.f32 %v2243_v1, %v1010_v63 }
 0x1b2   :  { %v1083_v4 = vpop.f32.mrf.mxu0 }
 0x1b3   :  { %v1186_v6 = vadd.f32 %v2255_v61, %v1100_v3  ;;  %v1098_v7 = vadd.f32 %v1083_v4, %v1002_v2 }
 0x1b4   :  { %v2244_v9 = vpop.f32.mrf.mxu0 }
 0x1b5   :  { %1955 = vst.msk [vmem:[%s2960_s5 + $0x50] sm:$0xff] %vm414_vm1, %v1186_v6  ;;  %v1184_v11 = vadd.f32 %v1169_v0, %v1098_v7  ;;  %v1101_v12 = vadd.f32 %v2244_v9, %v1013_v5  ;;  %v1190_v13 = vmul.f32 %v2597_v59, %v1186_v6 }
 0x1b6   :  { %v1086_v14 = vpop.f32.mrf.mxu0 }
 0x1b7   :  { %1953 = vst.msk [vmem:[%s2960_s5 + $0x40] sm:$0xff] %vm414_vm1, %v1184_v11  ;;  %v1187_v15 = vadd.f32 %v2256_v8, %v1101_v12  ;;  %v1099_v16 = vadd.f32 %v1086_v14, %v1005_v10  ;;  %v1198_v17 = vsel %vm414_vm1, %v1190_v13, 0.0  ;;  %v1188_v18 = vmul.f32 %v2597_v59, %v1184_v11 }
 0x1b8   :  { %1199 = vadd.xlane.f32.xlu1 %v1198_v17 }
 0x1b9   :  { %1956 = vst.msk [vmem:[%s2960_s5 + $0x58] sm:$0xff] %vm414_vm1, %v1187_v15  ;;  %v1185_v20 = vadd.f32 %v1172_v19, %v1099_v16  ;;  %v1191_v21 = vmul.f32 %v2597_v59, %v1187_v15  ;;  %v1192_v22 = vsel %vm414_vm1, %v1188_v18, 0.0 }
 0x1ba   :  { %v2279_v25 = vpop.f32.mrf.mxu1 }
 0x1bb   :  { %1954 = vst.msk [vmem:[%s2960_s5 + $0x48] sm:$0xff] %vm414_vm1, %v1185_v20  ;;  %v1201_v23 = vsel %vm414_vm1, %v1191_v21, 0.0  ;;  %v1189_v24 = vmul.f32 %v2597_v59, %v1185_v20 }
 0x1bc   :  { %1193 = vadd.xlane.f32.xlu1 %v1192_v22  ;;  %1202 = vadd.xlane.f32.xlu0 %v1201_v23  ;;  %v1390_v27 = vpop.f32.mrf.mxu1 }
 0x1bd   :  { %v1195_v26 = vsel %vm414_vm1, %v1189_v24, 0.0 }
 0x1be   :  { %v2280_v29 = vpop.f32.mrf.mxu1 }
 0x1c0   :  { %1196 = vadd.xlane.f32.xlu0 %v1195_v26  ;;  %v2267_v28 = vpop.f32.mrf.mxu0  ;;  %v1393_v31 = vpop.f32.mrf.mxu1  ;;  %v2700_v26 = vld [vmem:[%s2960_s5 + $0x10] sm:$0xff] }
 0x1c1   :  { %v1399_v35 = vadd.f32 %v2279_v25, %v2267_v28 }
 0x1c2   :  { %v1313_v30 = vpop.f32.mrf.mxu0 }
 0x1c3   :  { %v1391_v38 = vadd.f32 %v1390_v27, %v1313_v30  ;;  %v2705_v27 = vld [vmem:[%s2960_s5 + $0x30] sm:$0xff] }
 0x1c4   :  { %v2268_v32 = vpop.f32.mrf.mxu0 }
 0x1c5   :  { %v1402_v41 = vadd.f32 %v2280_v29, %v2268_v32 }
 0x1c6   :  { %v1316_v34 = vpop.f32.mrf.mxu0 }
 0x1c7   :  { %v1394_v46 = vadd.f32 %v1393_v31, %v1316_v34  ;;  %v2714_v31 = vld [vmem:[%s2960_s5 + $0x50] sm:$0xff] }
 0x1ca   :  { %v2303_v33 = vpop.f32.mrf.mxu1 }
 0x1cc   :  { %v1558_v36 = vpop.f32.mrf.mxu1 }
 0x1ce   :  { %v2304_v44 = vpop.f32.mrf.mxu1 }
 0x1d0   :  { %v2291_v37 = vpop.f32.mrf.mxu0  ;;  %v1561_v53 = vpop.f32.mrf.mxu1 }
 0x1d1   :  { %v1489_v39 = vadd.f32 %v2291_v37, %v1399_v35 }
 0x1d2   :  { %v1472_v40 = vpop.f32.mrf.mxu0 }
 0x1d3   :  { %v1575_v42 = vadd.f32 %v2303_v33, %v1489_v39  ;;  %v1487_v43 = vadd.f32 %v1472_v40, %v1391_v38  ;;  %v2727_v38 = vld [vmem:[%s2960_s5 + $0x18] sm:$0xff] }
 0x1d4   :  { %v2292_v45 = vpop.f32.mrf.mxu0 }
 0x1d5   :  { %1979 = vst.msk [vmem:[%s2960_s5 + $0x70] sm:$0xff] %vm414_vm1, %v1575_v42  ;;  %v1573_v47 = vadd.f32 %v1558_v36, %v1487_v43  ;;  %v1490_v48 = vadd.f32 %v2292_v45, %v1402_v41  ;;  %v1579_v56 = vmul.f32 %v2597_v59, %v1575_v42  ;;  %v2734_v41 = vld [vmem:[%s2960_s5 + $0x38] sm:$0xff]  ;;  %v2739_v42 = vld [vmem:[%s2960_s5] sm:$0xff] }
 0x1d6   :  { %v1475_v49 = vpop.f32.mrf.mxu0 }
 0x1d7   :  { %1977 = vst.msk [vmem:[%s2960_s5 + $0x60] sm:$0xff] %vm414_vm1, %v1573_v47  ;;  %v1576_v50 = vadd.f32 %v2304_v44, %v1490_v48  ;;  %v1488_v51 = vadd.f32 %v1475_v49, %v1394_v46  ;;  %v1577_v52 = vmul.f32 %v2597_v59, %v1573_v47  ;;  %v1587_v58 = vsel %vm414_vm1, %v1579_v56, 0.0  ;;  %v2751_v47 = vld [vmem:[%s2960_s5 + $0x58] sm:$0xff] }
 0x1d9   :  { %1980 = vst.msk [vmem:[%s2960_s5 + $0x78] sm:$0xff] %vm414_vm1, %v1576_v50  ;;  %v1574_v54 = vadd.f32 %v1561_v53, %v1488_v51  ;;  %v1581_v55 = vsel %vm414_vm1, %v1577_v52, 0.0  ;;  %v1580_v61 = vmul.f32 %v2597_v59, %v1576_v50 }
 0x1da   :  { %1582 = vadd.xlane.f32.xlu1 %v1581_v55  ;;  %v2766_v55 = vld [vmem:[%s2960_s5 + $0x8] sm:$0xff] }
 0x1db   :  { %1978 = vst.msk [vmem:[%s2960_s5 + $0x68] sm:$0xff] %vm414_vm1, %v1574_v54  ;;  %v1578_v57 = vmul.f32 %v2597_v59, %v1574_v54  ;;  %v1590_v62 = vsel %vm414_vm1, %v1580_v61, 0.0  ;;  %v2761_v54 = vld [vmem:[%s2960_s5 + $0x20] sm:$0xff] }
 0x1dd   :  { %v1584_v60 = vsel %vm414_vm1, %v1578_v57, 0.0 }
 0x1de   :  { %1588 = vadd.xlane.f32.xlu1 %v1587_v58  ;;  %1585 = vadd.xlane.f32.xlu0 %v1584_v60 }
 0x1e2   :  { %1591 = vadd.xlane.f32.xlu0 %v1590_v62 }
 0x201   :  { %v423_v63 = vpop.xlane.xlu0 %422 }
 0x205   :  { %v417_v0 = vpop.xlane.xlu0 %416 }
 0x207   :  { %v420_v1 = vpop.xlane.xlu1 %419 }
 0x209   :  { %v426_v2 = vpop.xlane.xlu0 %425 }
 0x221   :  { %v811_v3 = vpop.xlane.xlu1 %810 }
 0x222   :  { %v817_v12 = vadd.f32 %v811_v3, %v423_v63 }
 0x225   :  { %v814_v4 = vpop.xlane.xlu0 %813  ;;  %v805_v5 = vpop.xlane.xlu1 %804 }
 0x226   :  { %v815_v13 = vadd.f32 %v805_v5, %v417_v0  ;;  %v818_v18 = vadd.f32 %v814_v4, %v426_v2 }
 0x229   :  { %v808_v6 = vpop.xlane.xlu0 %807 }
 0x22a   :  { %v816_v20 = vadd.f32 %v808_v6, %v420_v1  ;;  %v2779_v1 = vld [vmem:[%s2960_s5 + $0x40] sm:$0xff]  ;;  %v2788_v6 = vld [vmem:[%s2960_s5 + $0x28] sm:$0xff] }
 0x241   :  { %v1200_v7 = vpop.xlane.xlu1 %1199 }
 0x242   :  { %v1206_v14 = vadd.f32 %v1200_v7, %v817_v12 }
 0x245   :  { %v1203_v8 = vpop.xlane.xlu0 %1202  ;;  %v1194_v9 = vpop.xlane.xlu1 %1193 }
 0x246   :  { %v1204_v15 = vadd.f32 %v1194_v9, %v815_v13  ;;  %v1207_v22 = vadd.f32 %v1203_v8, %v818_v18 }
 0x249   :  { %v1197_v10 = vpop.xlane.xlu0 %1196 }
 0x24a   :  { %v1205_v24 = vadd.f32 %v1197_v10, %v816_v20 }
 0x263   :  { %v1583_v11 = vpop.xlane.xlu1 %1582 }
 0x264   :  { %v1593_v21 = vadd.f32 %v1583_v11, %v1204_v15  ;;  %v2797_v11 = vld [vmem:[%s2960_s5 + $0x60] sm:$0xff] }
 0x266   :  { %v2716_v32 = vmul.f32 0.0078125, %v1593_v21  ;;  %v2815_v21 = vld [vmem:[%s2960_s5 + $0x70] sm:$0xff] }
 0x267   :  { %v1589_v16 = vpop.xlane.xlu1 %1588  ;;  %v1586_v17 = vpop.xlane.xlu0 %1585 }
 0x268   :  { %v1595_v19 = vadd.f32 %v1589_v16, %v1206_v14  ;;  %v1594_v33 = vadd.f32 %v1586_v17, %v1205_v24  ;;  %v1610_v46 = vsub.f32 %v2739_v42, %v2716_v32  ;;  %v1642_v58 = vsub.f32 %v2761_v54, %v2716_v32  ;;  %v2806_v16 = vld [vmem:[%s2960_s5 + $0x48] sm:$0xff] }
 0x269   :  { %v1674_v5 = vsub.f32 %v2779_v1, %v2716_v32  ;;  %v1706_v15 = vsub.f32 %v2797_v11, %v2716_v32 }
 0x26a   :  { %v2695_v23 = vmul.f32 0.0078125, %v1595_v19  ;;  %v2741_v43 = vmul.f32 0.0078125, %v1594_v33  ;;  %v1614_v57 = vmul.f32 %v2597_v59, %v1610_v46  ;;  %v1646_v3 = vmul.f32 %v2597_v59, %v1642_v58 }
 0x26b   :  { %v1592_v25 = vpop.xlane.xlu0 %1591  ;;  %v1678_v14 = vmul.f32 %v2597_v59, %v1674_v5 }
 0x26c   :  { %v1596_v28 = vadd.f32 %v1592_v25, %v1207_v22  ;;  %v1612_v29 = vsub.f32 %v2700_v26, %v2695_v23  ;;  %v1644_v30 = vsub.f32 %v2705_v27, %v2695_v23  ;;  %v1676_v34 = vsub.f32 %v2714_v31, %v2695_v23 }
 0x26d   :  { %v1611_v60 = vsub.f32 %v2766_v55, %v2741_v43  ;;  %v1618_v2 = vmul.f32 %v1614_v57, %v1614_v57  ;;  %v1643_v10 = vsub.f32 %v2788_v6, %v2741_v43  ;;  %v1650_v13 = vmul.f32 %v1646_v3, %v1646_v3 }
 0x26e   :  { %v2720_v35 = vmul.f32 0.0078125, %v1596_v28  ;;  %v1616_v36 = vmul.f32 %v2597_v59, %v1612_v29  ;;  %v1648_v37 = vmul.f32 %v2597_v59, %v1644_v30  ;;  %v1680_v44 = vmul.f32 %v2597_v59, %v1676_v34  ;;  %v2824_v29 = vld [vmem:[%s2960_s5 + $0x68] sm:$0xff] }
 0x26f   :  { %v1615_v4 = vmul.f32 %v2597_v59, %v1611_v60  ;;  %v1622_v12 = vsel %vm414_vm1, %v1618_v2, 0.0  ;;  %v1647_v19 = vmul.f32 %v2597_v59, %v1643_v10  ;;  %v1675_v20 = vsub.f32 %v2806_v16, %v2741_v43 }
 0x270   :  { %v1620_v39 = vmul.f32 %v1616_v36, %v1616_v36  ;;  %v1613_v40 = vsub.f32 %v2727_v38, %v2720_v35  ;;  %v1645_v45 = vsub.f32 %v2734_v41, %v2720_v35  ;;  %v1652_v49 = vmul.f32 %v1648_v37, %v1648_v37 }
 0x271   :  { %v1677_v51 = vsub.f32 %v2751_v47, %v2720_v35  ;;  %v1684_v56 = vmul.f32 %v1680_v44, %v1680_v44  ;;  %v1619_v18 = vmul.f32 %v1615_v4, %v1615_v4  ;;  %v1654_v22 = vsel %vm414_vm1, %v1650_v13, 0.0  ;;  %v2835_v44 = vld [vmem:[%s2960_s5 + $0x78] sm:$0xff] }
 0x272   :  { %v1628_v48 = vsel %vm414_vm1, %v1620_v39, 0.0  ;;  %v1617_v50 = vmul.f32 %v2597_v59, %v1613_v40  ;;  %v1649_v52 = vmul.f32 %v2597_v59, %v1645_v45  ;;  %v1660_v61 = vsel %vm414_vm1, %v1652_v49, 0.0 }
 0x273   :  { %1629 = vadd.xlane.f32.xlu1 %v1628_v48  ;;  %v1681_v0 = vmul.f32 %v2597_v59, %v1677_v51  ;;  %v1692_v7 = vsel %vm414_vm1, %v1684_v56, 0.0  ;;  %v1682_v24 = vmul.f32 %v1678_v14, %v1678_v14  ;;  %v1710_v25 = vmul.f32 %v2597_v59, %v1706_v15 }
 0x274   :  { %v1621_v53 = vmul.f32 %v1617_v50, %v1617_v50  ;;  %v1653_v63 = vmul.f32 %v1649_v52, %v1649_v52  ;;  %v1708_v28 = vsub.f32 %v2815_v21, %v2695_v23  ;;  %v1625_v30 = vsel %vm414_vm1, %v1619_v18, 0.0 }
 0x275   :  { %v1685_v9 = vmul.f32 %v1681_v0, %v1681_v0  ;;  %v1651_v33 = vmul.f32 %v1647_v19, %v1647_v19  ;;  %v1679_v34 = vmul.f32 %v2597_v59, %v1675_v20  ;;  %v1707_v36 = vsub.f32 %v2824_v29, %v2741_v43 }
 0x276   :  { %v1631_v62 = vsel %vm414_vm1, %v1621_v53, 0.0  ;;  %v1663_v8 = vsel %vm414_vm1, %v1653_v63, 0.0  ;;  %v1686_v37 = vsel %vm414_vm1, %v1682_v24, 0.0  ;;  %v1714_v39 = vmul.f32 %v1710_v25, %v1710_v25 }
 0x277   :  { %1661 = vadd.xlane.f32.xlu1 %v1660_v61  ;;  %1632 = vadd.xlane.f32.xlu0 %v1631_v62  ;;  %v1695_v17 = vsel %vm414_vm1, %v1685_v9, 0.0  ;;  %v1712_v40 = vmul.f32 %v2597_v59, %v1708_v28  ;;  %v1657_v45 = vsel %vm414_vm1, %v1651_v33, 0.0  ;;  %v1683_v46 = vmul.f32 %v1679_v34, %v1679_v34 }
 0x278   :  { %v1711_v48 = vmul.f32 %v2597_v59, %v1707_v36  ;;  %v1709_v49 = vsub.f32 %v2835_v44, %v2720_v35  ;;  %v1718_v50 = vsel %vm414_vm1, %v1714_v39, 0.0  ;;  %v2432_v62 = vmov 0  }
 0x279   :  { %v1689_v51 = vsel %vm414_vm1, %v1683_v46, 0.0  ;;  %v1716_v52 = vmul.f32 %v1712_v40, %v1712_v40  ;;  %2318 = vset.pattern.permute.xlu1 %v2432_v62  ;;  %2319 = vset.pattern.permute.xlu0 %v2432_v62 }
 0x27a   :  { %v1715_v53 = vmul.f32 %v1711_v48, %v1711_v48  ;;  %v1713_v56 = vmul.f32 %v2597_v59, %v1709_v49 }
 0x27b   :  { %1693 = vadd.xlane.f32.xlu1 %v1692_v7  ;;  %1664 = vadd.xlane.f32.xlu0 %v1663_v8  ;;  %v1724_v57 = vsel %vm414_vm1, %v1716_v52, 0.0  ;;  %v1734_v52 = vld [vmem:[%s2957_s2] sm:$0xff] }
 0x27c   :  { %v1721_v58 = vsel %vm414_vm1, %v1715_v53, 0.0  ;;  %v1717_v60 = vmul.f32 %v1713_v56, %v1713_v56 }
 0x27e   :  { %v1727_v61 = vsel %vm414_vm1, %v1717_v60, 0.0 }
 0x27f   :  { %1623 = vadd.xlane.f32.xlu1 %v1622_v12  ;;  %1696 = vadd.xlane.f32.xlu0 %v1695_v17 }
 0x283   :  { %1655 = vadd.xlane.f32.xlu1 %v1654_v22  ;;  %1626 = vadd.xlane.f32.xlu0 %v1625_v30 }
 0x287   :  { %1687 = vadd.xlane.f32.xlu1 %v1686_v37  ;;  %1658 = vadd.xlane.f32.xlu0 %v1657_v45 }
 0x28b   :  { %1719 = vadd.xlane.f32.xlu1 %v1718_v50  ;;  %1690 = vadd.xlane.f32.xlu0 %v1689_v51 }
 0x28f   :  { %1725 = vadd.xlane.f32.xlu1 %v1724_v57  ;;  %1722 = vadd.xlane.f32.xlu0 %v1721_v58  ;;  %v1736_v57 = vld [vmem:[%s2957_s2 + $0x10] sm:$0xff]  ;;  %v1735_v58 = vld [vmem:[%s2957_s2 + $0x8] sm:$0xff] }
 0x293   :  { %1728 = vadd.xlane.f32.xlu0 %v1727_v61 }
 0x2fc   :  { %v1630_v63 = vpop.xlane.xlu1 %1629 }
 0x300   :  { %v1662_v0 = vpop.xlane.xlu1 %1661  ;;  %v1633_v2 = vpop.xlane.xlu0 %1632 }
 0x301   :  { %v1668_v17 = vadd.f32 %v1662_v0, %v1630_v63  ;;  %v1737_v0 = vld [vmem:[%s2957_s2 + $0x18] sm:$0xff] }
 0x304   :  { %v1694_v3 = vpop.xlane.xlu1 %1693  ;;  %v1665_v59 = vpop.xlane.xlu0 %1664 }
 0x305   :  { %v1700_v20 = vadd.f32 %v1694_v3, %v1668_v17  ;;  %v1669_v30 = vadd.f32 %v1665_v59, %v1633_v2 }
 0x308   :  { %v1624_v4 = vpop.xlane.xlu1 %1623  ;;  %v1697_v5 = vpop.xlane.xlu0 %1696 }
 0x309   :  { %v1701_v37 = vadd.f32 %v1697_v5, %v1669_v30 }
 0x30c   :  { %v1656_v7 = vpop.xlane.xlu1 %1655  ;;  %v1627_v8 = vpop.xlane.xlu0 %1626 }
 0x30d   :  { %v1666_v12 = vadd.f32 %v1656_v7, %v1624_v4  ;;  %v1756_v4 = vld [vmem:[%s2958_s3 + $0x10] sm:$0xff] }
 0x310   :  { %v1688_v9 = vpop.xlane.xlu1 %1687  ;;  %v1659_v10 = vpop.xlane.xlu0 %1658 }
 0x311   :  { %v1698_v13 = vadd.f32 %v1688_v9, %v1666_v12  ;;  %v1667_v18 = vadd.f32 %v1659_v10, %v1627_v8  ;;  %v1754_v8 = vld [vmem:[%s2958_s3] sm:$0xff] }
 0x314   :  { %v1720_v14 = vpop.xlane.xlu1 %1719  ;;  %v1691_v15 = vpop.xlane.xlu0 %1690 }
 0x315   :  { %v1730_v19 = vadd.f32 %v1720_v14, %v1698_v13  ;;  %v1699_v24 = vadd.f32 %v1691_v15, %v1667_v18 }
 0x317   :  { %v1738_v22 = vmul.f32 0.0078125, %v1730_v19 }
 0x318   :  { %v1726_v25 = vpop.xlane.xlu1 %1725  ;;  %v1723_v28 = vpop.xlane.xlu0 %1722 }
 0x319   :  { %v1742_v33 = vadd.f32 1e-05, %v1738_v22  ;;  %v1732_v34 = vadd.f32 %v1726_v25, %v1700_v20  ;;  %v1731_v36 = vadd.f32 %v1723_v28, %v1699_v24 }
 0x31b   :  { %2368 = vrsqrt.f32 %v1742_v33  ;;  %v1740_v39 = vmul.f32 0.0078125, %v1732_v34  ;;  %v1739_v40 = vmul.f32 0.0078125, %v1731_v36 }
 0x31c   :  { %v1729_v45 = vpop.xlane.xlu0 %1728 }
 0x31d   :  { %v1744_v46 = vadd.f32 1e-05, %v1740_v39  ;;  %v1743_v48 = vadd.f32 1e-05, %v1739_v40  ;;  %v1733_v49 = vadd.f32 %v1729_v45, %v1701_v37 }
 0x31f   :  { %2370 = vrsqrt.f32 %v1744_v46  ;;  %v1741_v50 = vmul.f32 0.0078125, %v1733_v49 }
 0x320   :  { %2372 = vrsqrt.f32 %v1743_v48 }
 0x321   :  { %v1745_v51 = vadd.f32 1e-05, %v1741_v50 }
 0x323   :  { %2374 = vrsqrt.f32 %v1745_v51 }
 0x328   :  { %v2369_v53 = vpop.eup %2368 }
 0x329   :  { %v1750_v56 = vmul.f32 %v2369_v53, %v1734_v52 }
 0x32b   :  { %1768 = vperm.xlu1 %2318, %v1750_v56   ;;  %v1758_v5 = vmul.f32 %v1750_v56, %v2716_v32  ;;  %v1757_v32 = vld [vmem:[%s2958_s3 + $0x18] sm:$0xff] }
 0x32c   :  { %v2371_v60 = vpop.eup %2370 }
 0x32d   :  { %v2373_v61 = vpop.eup %2372  ;;  %v1752_v62 = vmul.f32 %v2371_v60, %v1736_v57  ;;  %v1762_v10 = vsub.f32 %v1754_v8, %v1758_v5 }
 0x32e   :  { %v1751_v63 = vmul.f32 %v2373_v61, %v1735_v58 }
 0x32f   :  { %1778 = vperm.xlu1 %2318, %v1752_v62   ;;  %v1760_v59 = vmul.f32 %v1752_v62, %v2695_v23  ;;  %v1755_v23 = vld [vmem:[%s2958_s3 + $0x8] sm:$0xff] }
 0x330   :  { %v2375_v2 = vpop.eup %2374  ;;  %1773 = vperm.xlu0 %2319, %v1751_v63   ;;  %v1759_v9 = vmul.f32 %v1751_v63, %v2741_v43 }
 0x331   :  { %v1753_v3 = vmul.f32 %v2375_v2, %v1737_v0  ;;  %v1764_v7 = vsub.f32 %v1756_v4, %v1760_v59 }
 0x332   :  { %v1763_v13 = vsub.f32 %v1755_v23, %v1759_v9 }
 0x333   :  { %1783 = vperm.xlu1 %2318, %v1753_v3   ;;  %v1761_v12 = vmul.f32 %v1753_v3, %v2720_v35 }
 0x335   :  { %v1765_v14 = vsub.f32 %v1757_v32, %v1761_v12 }
 0x337   :  { %1802 = vperm.xlu1 %2318, %v1764_v7  }
 0x33b   :  { %1792 = vperm.xlu1 %2318, %v1762_v10  }
 0x33f   :  { %1797 = vperm.xlu1 %2318, %v1763_v13  }
 0x343   :  { %1807 = vperm.xlu1 %2318, %v1765_v14  }
 0x3a6   :  { %v1769_v15 = vpop.permute.xlu1 %1768 }
 0x3a7   :  { %v1786_v33 = vmul.f32 %v1769_v15, %v2739_v42  ;;  %v1826_v34 = vmul.f32 %v2761_v54, %v1769_v15  ;;  %v1846_v36 = vmul.f32 %v2779_v1, %v1769_v15  ;;  %v1866_v37 = vmul.f32 %v2797_v11, %v1769_v15 }
 0x3aa   :  { %v1779_v17 = vpop.permute.xlu1 %1778 }
 0x3ab   :  { %v1788_v43 = vmul.f32 %v1779_v17, %v2700_v26  ;;  %v1828_v19 = vmul.f32 %v2705_v27, %v1779_v17  ;;  %v1848_v20 = vmul.f32 %v2714_v31, %v1779_v17  ;;  %v1868_v22 = vmul.f32 %v2815_v21, %v1779_v17  ;;  %v1774_v26 = vpop.permute.xlu0 %1773 }
 0x3ac   :  { %v1787_v21 = vmul.f32 %v1774_v26, %v2766_v55  ;;  %v1827_v46 = vmul.f32 %v2788_v6, %v1774_v26  ;;  %v1847_v48 = vmul.f32 %v2806_v16, %v1774_v26  ;;  %v1867_v49 = vmul.f32 %v2824_v29, %v1774_v26 }
 0x3ae   :  { %v1784_v18 = vpop.permute.xlu1 %1783 }
 0x3af   :  { %v1789_v57 = vmul.f32 %v1784_v18, %v2727_v38  ;;  %v1829_v58 = vmul.f32 %v2734_v41, %v1784_v18  ;;  %v1849_v60 = vmul.f32 %v2751_v47, %v1784_v18  ;;  %v1869_v61 = vmul.f32 %v2835_v44, %v1784_v18 }
 0x3b2   :  { %v1803_v35 = vpop.permute.xlu1 %1802 }
 0x3b3   :  { %v1812_v24 = vadd.f32 %v1803_v35, %v1788_v43  ;;  %v1832_v25 = vadd.f32 %v1828_v19, %v1803_v35  ;;  %v1852_v28 = vadd.f32 %v1848_v20, %v1803_v35  ;;  %v1872_v30 = vadd.f32 %v1868_v22, %v1803_v35 }
 0x3b5   :  { %v1816_v39 = vmax.f32 %v1812_v24, 0.0  ;;  %v1836_v27 = vmax.f32 %v1832_v25, 0.0  ;;  %v1856_v40 = vmax.f32 %v1852_v28, 0.0  ;;  %v1876_v31 = vmax.f32 %v1872_v30, 0.0 }
 0x3b6   :  { %v1793_v45 = vpop.permute.xlu1 %1792 }
 0x3b7   :  { %1820 = vst.msk [vmem:[%s2960_s5 + $0x10] sm:$0xff] %vm414_vm1, %v1816_v39  ;;  %1999 = vst.msk [vmem:[%s2960_s5 + $0x30] sm:$0xff] %vm414_vm1, %v1836_v27  ;;  %v1810_v42 = vadd.f32 %v1793_v45, %v1786_v33  ;;  %v1830_v54 = vadd.f32 %v1826_v34, %v1793_v45  ;;  %v1850_v1 = vadd.f32 %v1846_v36, %v1793_v45 }
 0x3b8   :  { %2007 = vst.msk [vmem:[%s2960_s5 + $0x50] sm:$0xff] %vm414_vm1, %v1856_v40  ;;  %2015 = vst.msk [vmem:[%s2960_s5 + $0x70] sm:$0xff] %vm414_vm1, %v1876_v31  ;;  %v1870_v11 = vadd.f32 %v1866_v37, %v1793_v45 }
 0x3b9   :  { %v1814_v50 = vmax.f32 %v1810_v42, 0.0  ;;  %v1834_v51 = vmax.f32 %v1830_v54, 0.0  ;;  %v1854_v52 = vmax.f32 %v1850_v1, 0.0 }
 0x3ba   :  { %v1874_v53 = vmax.f32 %v1870_v11, 0.0  ;;  %v1798_v56 = vpop.permute.xlu1 %1797 }
 0x3bb   :  { %1818 = vst.msk [vmem:[%s2960_s5] sm:$0xff] %vm414_vm1, %v1814_v50  ;;  %1997 = vst.msk [vmem:[%s2960_s5 + $0x20] sm:$0xff] %vm414_vm1, %v1834_v51  ;;  %v1811_v55 = vadd.f32 %v1798_v56, %v1787_v21  ;;  %v1831_v6 = vadd.f32 %v1827_v46, %v1798_v56  ;;  %v1851_v16 = vadd.f32 %v1847_v48, %v1798_v56 }
 0x3bc   :  { %2005 = vst.msk [vmem:[%s2960_s5 + $0x40] sm:$0xff] %vm414_vm1, %v1854_v52  ;;  %2013 = vst.msk [vmem:[%s2960_s5 + $0x60] sm:$0xff] %vm414_vm1, %v1874_v53  ;;  %v1871_v29 = vadd.f32 %v1867_v49, %v1798_v56 }
 0x3bd   :  { %v1815_v62 = vmax.f32 %v1811_v55, 0.0  ;;  %v1835_v63 = vmax.f32 %v1831_v6, 0.0  ;;  %v1855_v0 = vmax.f32 %v1851_v16, 0.0 }
 0x3be   :  { %v1875_v2 = vmax.f32 %v1871_v29, 0.0  ;;  %v1808_v3 = vpop.permute.xlu1 %1807 }
 0x3bf   :  { %1819 = vst.msk [vmem:[%s2960_s5 + $0x8] sm:$0xff] %vm414_vm1, %v1815_v62  ;;  %1998 = vst.msk [vmem:[%s2960_s5 + $0x28] sm:$0xff] %vm414_vm1, %v1835_v63  ;;  %v1813_v38 = vadd.f32 %v1808_v3, %v1789_v57  ;;  %v1833_v41 = vadd.f32 %v1829_v58, %v1808_v3  ;;  %v1853_v47 = vadd.f32 %v1849_v60, %v1808_v3 }
 0x3c0   :  { %2006 = vst.msk [vmem:[%s2960_s5 + $0x48] sm:$0xff] %vm414_vm1, %v1855_v0  ;;  %2014 = vst.msk [vmem:[%s2960_s5 + $0x68] sm:$0xff] %vm414_vm1, %v1875_v2  ;;  %v1873_v44 = vadd.f32 %v1869_v61, %v1808_v3 }
 0x3c1   :  { %v1817_v59 = vmax.f32 %v1813_v38, 0.0  ;;  %v1837_v4 = vmax.f32 %v1833_v41, 0.0  ;;  %v1857_v5 = vmax.f32 %v1853_v47, 0.0 }
 0x3c2   :  { %v1877_v7 = vmax.f32 %v1873_v44, 0.0 }
 0x3c3   :  { %1821 = vst.msk [vmem:[%s2960_s5 + $0x18] sm:$0xff] %vm414_vm1, %v1817_v59  ;;  %2000 = vst.msk [vmem:[%s2960_s5 + $0x38] sm:$0xff] %vm414_vm1, %v1837_v4 }
 0x3c4   :  { %2008 = vst.msk [vmem:[%s2960_s5 + $0x58] sm:$0xff] %vm414_vm1, %v1857_v5  ;;  %2016 = vst.msk [vmem:[%s2960_s5 + $0x78] sm:$0xff] %vm414_vm1, %v1877_v7 }
 0x3c5   :  { %1886 = vsyncpa [#allocation3], 1 }
 0x3c6   :  { %1887 = vsyncpa [#allocation5], 1 }

// kernel: wacgan_generator_forward.7
= control target key start
LH: loop header
LB: loop body
LE: loop exit
PB: predicated region body
PF: predicated region fallthrough
CT: control target
= control target key end

     0   :  { %10 = vsyncpa [#allocation3], 0  ;;  %s2235_s0 = inlined_call_operand.vmem [shape: bf16[32,256], index: 0, kind: input, shape index: {}]   ;;  %s2236_s1 = inlined_call_operand.hbm [shape: bf16[4,4,16,32], index: 1, kind: input, shape index: {}]   ;;  %s2237_s2 = inlined_call_operand.vmem [shape: f32[16,1], index: 2, kind: input, shape index: {}]   ;;  %s2238_s3 = inlined_call_operand.vmem [shape: f32[16,1], index: 3, kind: input, shape index: {}]   ;;  %s2239_s4 = inlined_call_operand.hbm [shape: f32[1,200], index: 4, kind: input, shape index: {}]   ;;  %s2240_s5 = inlined_call_operand.vmem [shape: f32[4,16,200], index: 5, kind: output, shape index: {}]  }
   0x1   :  { %11 = vsyncpa [#allocation5], 0  ;;  %s1738_s18 = smov [#allocation2]  }
   0x2   :  { %s19_s19 = sshll.u32 %s1738_s18, 4  ;;  %s20_s19 = int_to_ptr.vmem [resolvable:$true] %s19_s19 }
   0x3   :  { %s1702_s20 = scalar_lea.vmem %s20_s19, 2048  ;;  %p1707_p1 = scmp.lt.s32.totalorder %s20_s19, %s20_s19 }
   0x4   :  { %p1703_p0 = scmp.ne.s32.totalorder %s20_s19, %s1702_s20  ;;  %p1708_p2 = scmp.lt.s32.totalorder %s1702_s20, %s1702_s20 }
   0x6   :  { %p1709_p3 = por %p1708_p2, %p1707_p1 }
   0x8   :  { %p1710_p4 = pnand %p1709_p3, %p1703_p0 }
   0xa   :  { %1713 = shalt.err (!%p1710_p4)
}
   0xb   :  { %s1739_s21 = smov 64   ;;  %s1740_s22 = smov 4  }
   0xc   :  { %25 = dma.hbm_to_vmem [thread:$0]  %s2236_s1, 2048, %s20_s19, [#allocation3], %s1739_s21, %s1739_s21, %s1740_s22  }
   0xd   :  { %s1741_s25 = smov [#allocation4]  }
   0xe   :  { %s36_s26 = sshll.u32 %s1741_s25, 4  ;;  %s37_s26 = int_to_ptr.vmem [resolvable:$true] %s36_s26 }
   0xf   :  { %s1722_s27 = scalar_lea.vmem %s37_s26, 32  ;;  %p1727_p6 = scmp.lt.s32.totalorder %s37_s26, %s37_s26 }
  0x10   :  { %p1723_p5 = scmp.ne.s32.totalorder %s37_s26, %s1722_s27  ;;  %p1728_p7 = scmp.lt.s32.totalorder %s1722_s27, %s1722_s27 }
  0x12   :  { %p1729_p8 = por %p1728_p7, %p1727_p6 }
  0x14   :  { %p1730_p9 = pnand %p1729_p8, %p1723_p5 }
  0x16   :  { %1733 = shalt.err (!%p1730_p9)
}
  0x17   :  { %39 = dma.hbm_to_vmem [thread:$0]  %s2239_s4, 32, %s37_s26, [#allocation5]  }
  0x18   :  { %1734 = dma.done.wait [#allocation3], 2048  }
  0x19   :  { %1735 = vsyncadd [#allocation3], 4294965248 }
  0x1a   :  { %1736 = dma.done.wait [#allocation5], 32  }
  0x1b   :  { %1737 = vsyncadd [#allocation5], 4294967264  ;;  %v1790_v0 = vld [vmem:[%s2235_s0 + $0x10] ss:$8 sps:$4 sm:$0xff]   ;;  %v1795_v1 = vld [vmem:[%s2235_s0] ss:$8 sps:$4 sm:$0xff]  }
  0x1c   :  { %s1742_s8 = smov 127   ;;  %v1802_v2 = vld [vmem:[%s2235_s0 + $0x14] ss:$8 sps:$4 sm:$0xff]   ;;  %v1743_v3 = vmov 0   ;;  %v1810_v4 = vld [vmem:[%s2235_s0 + $0x4] ss:$8 sps:$4 sm:$0xff]  }
  0x1d   :  { %82 = vrot.lane.b32.xlu0 %v1790_v0, %s1742_s8  ;;  %129 = vmatprep.mubr.bf16.mxu0 %v1743_v3  ;;  %vm93_vm0 = vcmask 261120   ;;  %v1675_v5 = vld [vmem:[#allocation2] sm:$0xff]   ;;  %s1744_s0 = smov 118   ;;  %s1745_s12 = smov 117   ;;  %vm86_vm1 = vcmask 1039360   ;;  %v1674_v14 = vld [vmem:[#allocation2 + $0x8] sm:$0xff]  }
  0x1e   :  { %78 = vrot.lane.b32.xlu1 %v1795_v1, %s1742_s8  ;;  %184 = vmatprep.mubr.bf16.mxu1 %v1743_v3  ;;  %s1746_s13 = smov 126   ;;  %s1747_s14 = smov 116   ;;  %vm211_vm2 = vcmask 965632   ;;  %vm284_vm3 = vcmask 957440   ;;  %v1676_v22 = vld [vmem:[#allocation2 + $0x10] sm:$0xff]   ;;  %v1677_v26 = vld [vmem:[#allocation2 + $0x18] sm:$0xff]  }
  0x1f   :  { %164 = vmatprep.subr.bf16.mxu1 %v1802_v2  ;;  %1666 = vset.pattern.permute.xlu1 %v1743_v3  ;;  %s1748_s15 = smov 108   ;;  %s1749_s16 = smov 107   ;;  %vm410_vm4 = vcmask 1031168   ;;  %v1678_v36 = vld [vmem:[#allocation2 + $0x28] sm:$0xff]   ;;  %v1679_v40 = vld [vmem:[#allocation2 + $0x20] sm:$0xff]   ;;  %vm616_vm5 = vcmask 949248  }
  0x20   :  { %165 = vmatpush1.bf16.msra.mxu1 %v1790_v0  ;;  %1667 = vset.pattern.permute.xlu0 %v1743_v3  ;;  %s1750_s17 = smov 106   ;;  %v1680_v50 = vld [vmem:[#allocation2 + $0x30] sm:$0xff]   ;;  %v1681_v54 = vld [vmem:[#allocation2 + $0x38] sm:$0xff]   ;;  %vm864_vm6 = vcmask 883712   ;;  %vm937_vm7 = vcmask 875520   ;;  %vm1257_vm8 = vcmask 867328  }
  0x21   :  { %84 = vrot.lane.b32.xlu0 %v1802_v2, %s1742_s8  ;;  %166 = vmatprep.subr.bf16.mxu1 %v1810_v4  ;;  %vm356_vm9 = vcmask 588800  }
  0x22   :  { %80 = vrot.lane.b32.xlu1 %v1810_v4, %s1742_s8 }
  0x24   :  { %167 = vmatpush1.bf16.msra.mxu1 %v1795_v1 }
  0x25   :  { %207 = vrot.lane.b32.xlu0 %v1790_v0, %s1744_s0 }
  0x26   :  { %209 = vrot.lane.b32.xlu1 %v1802_v2, %s1744_s0 }
  0x27   :  { %1564 = vmatmul.mubr.msk.bf16.vlgmr.msra.gmra.mxu1 %vm93_vm0, %v1675_v5  ;;  %v1683_v5 = vld [vmem:[#allocation2 + $0x40] sm:$0xff]  }
  0x28   :  { %326 = vmatprep.mubr.bf16.mxu1 %v1743_v3 }
  0x29   :  { %280 = vrot.lane.b32.xlu0 %v1790_v0, %s1745_s12 }
  0x2a   :  { %282 = vrot.lane.b32.xlu1 %v1802_v2, %s1745_s12 }
  0x2d   :  { %203 = vrot.lane.b32.xlu0 %v1795_v1, %s1744_s0 }
  0x2e   :  { %205 = vrot.lane.b32.xlu1 %v1810_v4, %s1744_s0 }
  0x31   :  { %276 = vrot.lane.b32.xlu0 %v1795_v1, %s1745_s12 }
  0x32   :  { %278 = vrot.lane.b32.xlu1 %v1810_v4, %s1745_s12 }
  0x35   :  { %406 = vrot.lane.b32.xlu0 %v1790_v0, %s1746_s13 }
  0x36   :  { %408 = vrot.lane.b32.xlu1 %v1802_v2, %s1746_s13 }
  0x39   :  { %472 = vrot.lane.b32.xlu0 %v1790_v0, %s1742_s8 }
  0x3a   :  { %474 = vrot.lane.b32.xlu1 %v1802_v2, %s1742_s8 }
  0x3d   :  { %402 = vrot.lane.b32.xlu0 %v1795_v1, %s1746_s13 }
  0x3e   :  { %404 = vrot.lane.b32.xlu1 %v1810_v4, %s1746_s13 }
  0x41   :  { %468 = vrot.lane.b32.xlu0 %v1795_v1, %s1742_s8 }
  0x42   :  { %470 = vrot.lane.b32.xlu1 %v1810_v4, %s1742_s8 }
  0x45   :  { %540 = vrot.lane.b32.xlu0 %v1790_v0, %s1745_s12 }
  0x46   :  { %542 = vrot.lane.b32.xlu1 %v1802_v2, %s1745_s12 }
  0x49   :  { %612 = vrot.lane.b32.xlu0 %v1790_v0, %s1747_s14 }
  0x4a   :  { %614 = vrot.lane.b32.xlu1 %v1802_v2, %s1747_s14 }
  0x4d   :  { %536 = vrot.lane.b32.xlu0 %v1795_v1, %s1745_s12 }
  0x4e   :  { %538 = vrot.lane.b32.xlu1 %v1810_v4, %s1745_s12 }
  0x51   :  { %608 = vrot.lane.b32.xlu0 %v1795_v1, %s1747_s14 }
  0x52   :  { %610 = vrot.lane.b32.xlu1 %v1810_v4, %s1747_s14 }
  0x55   :  { %727 = vrot.lane.b32.xlu0 %v1790_v0, %s1745_s12 }
  0x56   :  { %729 = vrot.lane.b32.xlu1 %v1802_v2, %s1745_s12 }
  0x59   :  { %792 = vrot.lane.b32.xlu0 %v1790_v0, %s1744_s0 }
  0x5a   :  { %794 = vrot.lane.b32.xlu1 %v1802_v2, %s1744_s0 }
  0x5d   :  { %723 = vrot.lane.b32.xlu0 %v1795_v1, %s1745_s12 }
  0x5e   :  { %725 = vrot.lane.b32.xlu1 %v1810_v4, %s1745_s12 }
  0x61   :  { %788 = vrot.lane.b32.xlu0 %v1795_v1, %s1744_s0 }
  0x62   :  { %790 = vrot.lane.b32.xlu1 %v1810_v4, %s1744_s0 }
  0x65   :  { %860 = vrot.lane.b32.xlu0 %v1790_v0, %s1748_s15 }
  0x66   :  { %862 = vrot.lane.b32.xlu1 %v1802_v2, %s1748_s15 }
  0x69   :  { %933 = vrot.lane.b32.xlu0 %v1790_v0, %s1749_s16 }
  0x6a   :  { %935 = vrot.lane.b32.xlu1 %v1802_v2, %s1749_s16 }
  0x6d   :  { %856 = vrot.lane.b32.xlu0 %v1795_v1, %s1748_s15 }
  0x6e   :  { %858 = vrot.lane.b32.xlu1 %v1810_v4, %s1748_s15 }
  0x71   :  { %929 = vrot.lane.b32.xlu0 %v1795_v1, %s1749_s16 }
  0x72   :  { %931 = vrot.lane.b32.xlu1 %v1810_v4, %s1749_s16 }
  0x75   :  { %1048 = vrot.lane.b32.xlu0 %v1790_v0, %s1747_s14 }
  0x76   :  { %1050 = vrot.lane.b32.xlu1 %v1802_v2, %s1747_s14 }
  0x79   :  { %1113 = vrot.lane.b32.xlu0 %v1790_v0, %s1745_s12 }
  0x7a   :  { %1115 = vrot.lane.b32.xlu1 %v1802_v2, %s1745_s12 }
  0x7d   :  { %1044 = vrot.lane.b32.xlu0 %v1795_v1, %s1747_s14 }
  0x7e   :  { %1046 = vrot.lane.b32.xlu1 %v1810_v4, %s1747_s14 }
  0x81   :  { %1109 = vrot.lane.b32.xlu0 %v1795_v1, %s1745_s12 }
  0x82   :  { %1111 = vrot.lane.b32.xlu1 %v1810_v4, %s1745_s12 }
  0x85   :  { %1181 = vrot.lane.b32.xlu0 %v1790_v0, %s1749_s16 }
  0x86   :  { %1183 = vrot.lane.b32.xlu1 %v1802_v2, %s1749_s16 }
  0x89   :  { %1253 = vrot.lane.b32.xlu0 %v1790_v0, %s1750_s17  ;;  %v1682_v0 = vld [vmem:[#allocation2 + $0x48] sm:$0xff]  }
  0x8a   :  { %1255 = vrot.lane.b32.xlu1 %v1802_v2, %s1750_s17 }
  0x8d   :  { %1177 = vrot.lane.b32.xlu0 %v1795_v1, %s1749_s16 }
  0x8e   :  { %1179 = vrot.lane.b32.xlu1 %v1810_v4, %s1749_s16 }
  0x8f   :  { %v83_v6 = vpop.permute.xlu0 %82 }
  0x90   :  { %v79_v7 = vpop.permute.xlu1 %78 }
  0x91   :  { %1249 = vrot.lane.b32.xlu0 %v1795_v1, %s1750_s17 }
  0x92   :  { %1251 = vrot.lane.b32.xlu1 %v1810_v4, %s1750_s17 }
  0x93   :  { %v85_v8 = vpop.permute.xlu0 %84 }
  0x94   :  { %v81_v9 = vpop.permute.xlu1 %80  ;;  %109 = vmatprep.subr.bf16.mxu0 %v85_v8  ;;  %v88_v10 = vsel %vm86_vm1, %v83_v6, %v85_v8 }
  0x95   :  { %110 = vmatpush1.bf16.msra.mxu0 %v88_v10  ;;  %v87_v13 = vsel %vm86_vm1, %v79_v7, %v81_v9 }
  0x96   :  { %111 = vmatprep.subr.bf16.mxu0 %v81_v9 }
  0x97   :  { %v208_v11 = vpop.permute.xlu0 %207 }
  0x98   :  { %v210_v12 = vpop.permute.xlu1 %209 }
  0x99   :  { %112 = vmatpush1.bf16.msra.mxu0 %v87_v13  ;;  %v213_v16 = vsel %vm211_vm2, %v208_v11, %v210_v12 }
  0x9a   :  { %233 = vmatprep.subr.bf16.mxu0 %v210_v12 }
  0x9b   :  { %v281_v15 = vpop.permute.xlu0 %280 }
  0x9c   :  { %v283_v17 = vpop.permute.xlu1 %282  ;;  %1562 = vmatmul.mubr.msk.bf16.vlgmr.msra.gmra.mxu0 %vm93_vm0, %v1674_v14 }
  0x9d   :  { %v286_v18 = vsel %vm284_vm3, %v281_v15, %v283_v17  ;;  %306 = vmatprep.subr.bf16.mxu1 %v283_v17  ;;  %234 = vmatpush1.bf16.msra.mxu0 %v213_v16  ;;  %v1684_v15 = vld [vmem:[#allocation2 + $0x50] sm:$0xff]  }
  0x9e   :  { %307 = vmatpush1.bf16.msra.mxu1 %v286_v18  ;;  %253 = vmatprep.mubr.bf16.mxu0 %v1743_v3 }
  0x9f   :  { %v204_v19 = vpop.permute.xlu0 %203 }
  0xa0   :  { %v206_v20 = vpop.permute.xlu1 %205 }
  0xa1   :  { %v212_v21 = vsel %vm211_vm2, %v204_v19, %v206_v20  ;;  %235 = vmatprep.subr.bf16.mxu0 %v206_v20  ;;  %v1685_v19 = vld [vmem:[#allocation2 + $0x58] sm:$0xff]  }
  0xa2   :  { %236 = vmatpush1.bf16.msra.mxu0 %v212_v21 }
  0xa3   :  { %v277_v23 = vpop.permute.xlu0 %276 }
  0xa4   :  { %v279_v24 = vpop.permute.xlu1 %278 }
  0xa5   :  { %v285_v25 = vsel %vm284_vm3, %v277_v23, %v279_v24  ;;  %308 = vmatprep.subr.bf16.mxu1 %v279_v24  ;;  %1566 = vmatmul.mubr.msk.bf16.vlgmr.msra.gmra.mxu0 %vm93_vm0, %v1676_v22 }
  0xa6   :  { %309 = vmatpush1.bf16.msra.mxu1 %v285_v25  ;;  %452 = vmatprep.mubr.bf16.mxu0 %v1743_v3 }
  0xa7   :  { %v407_v27 = vpop.permute.xlu0 %406 }
  0xa8   :  { %v409_v28 = vpop.permute.xlu1 %408 }
  0xa9   :  { %v412_v29 = vsel %vm410_vm4, %v407_v27, %v409_v28  ;;  %432 = vmatprep.subr.bf16.mxu0 %v409_v28  ;;  %1568 = vmatmul.mubr.msk.bf16.vlgmr.msra.gmra.mxu1 %vm93_vm0, %v1677_v26 }
  0xaa   :  { %433 = vmatpush1.bf16.msra.mxu0 %v412_v29  ;;  %517 = vmatprep.mubr.bf16.mxu1 %v1743_v3  ;;  %v1686_v29 = vld [vmem:[#allocation2 + $0x68] sm:$0xff]  }
  0xab   :  { %v473_v30 = vpop.permute.xlu0 %472 }
  0xac   :  { %v475_v31 = vpop.permute.xlu1 %474 }
  0xad   :  { %v477_v32 = vsel %vm86_vm1, %v473_v30, %v475_v31  ;;  %497 = vmatprep.subr.bf16.mxu1 %v475_v31 }
  0xae   :  { %498 = vmatpush1.bf16.msra.mxu1 %v477_v32 }
  0xaf   :  { %v403_v33 = vpop.permute.xlu0 %402 }
  0xb0   :  { %v405_v34 = vpop.permute.xlu1 %404 }
  0xb1   :  { %v411_v35 = vsel %vm410_vm4, %v403_v33, %v405_v34  ;;  %434 = vmatprep.subr.bf16.mxu0 %v405_v34  ;;  %v1687_v33 = vld [vmem:[#allocation2 + $0x60] sm:$0xff]  }
  0xb2   :  { %435 = vmatpush1.bf16.msra.mxu0 %v411_v35 }
  0xb3   :  { %v469_v37 = vpop.permute.xlu0 %468 }
  0xb4   :  { %v471_v38 = vpop.permute.xlu1 %470 }
  0xb5   :  { %v476_v39 = vsel %vm86_vm1, %v469_v37, %v471_v38  ;;  %499 = vmatprep.subr.bf16.mxu1 %v471_v38  ;;  %1574 = vmatmul.mubr.msk.bf16.vlgmr.msra.gmra.mxu0 %vm93_vm0, %v1678_v36 }
  0xb6   :  { %500 = vmatpush1.bf16.msra.mxu1 %v476_v39  ;;  %585 = vmatprep.mubr.bf16.mxu0 %v1743_v3 }
  0xb7   :  { %v541_v41 = vpop.permute.xlu0 %540 }
  0xb8   :  { %v543_v42 = vpop.permute.xlu1 %542 }
  0xb9   :  { %v545_v43 = vsel %vm284_vm3, %v541_v41, %v543_v42  ;;  %565 = vmatprep.subr.bf16.mxu0 %v543_v42  ;;  %1576 = vmatmul.mubr.msk.bf16.vlgmr.msra.gmra.mxu1 %vm93_vm0, %v1679_v40 }
  0xba   :  { %566 = vmatpush1.bf16.msra.mxu0 %v545_v43  ;;  %658 = vmatprep.mubr.bf16.mxu1 %v1743_v3  ;;  %v1688_v43 = vld [vmem:[#allocation2 + $0x70] sm:$0xff]  }
  0xbb   :  { %v613_v44 = vpop.permute.xlu0 %612 }
  0xbc   :  { %v615_v45 = vpop.permute.xlu1 %614 }
  0xbd   :  { %v618_v46 = vsel %vm616_vm5, %v613_v44, %v615_v45  ;;  %638 = vmatprep.subr.bf16.mxu1 %v615_v45 }
  0xbe   :  { %639 = vmatpush1.bf16.msra.mxu1 %v618_v46 }
  0xbf   :  { %v537_v47 = vpop.permute.xlu0 %536 }
  0xc0   :  { %v539_v48 = vpop.permute.xlu1 %538 }
  0xc1   :  { %v544_v49 = vsel %vm284_vm3, %v537_v47, %v539_v48  ;;  %567 = vmatprep.subr.bf16.mxu0 %v539_v48  ;;  %v1689_v47 = vld [vmem:[#allocation2 + $0x78] sm:$0xff]  }
  0xc2   :  { %568 = vmatpush1.bf16.msra.mxu0 %v544_v49 }
  0xc3   :  { %v609_v51 = vpop.permute.xlu0 %608 }
  0xc4   :  { %v611_v52 = vpop.permute.xlu1 %610 }
  0xc5   :  { %v617_v53 = vsel %vm616_vm5, %v609_v51, %v611_v52  ;;  %640 = vmatprep.subr.bf16.mxu1 %v611_v52  ;;  %1578 = vmatmul.mubr.msk.bf16.vlgmr.msra.gmra.mxu0 %vm93_vm0, %v1680_v50  ;;  %v342_v50 = vlaneseq }
  0xc6   :  { %641 = vmatpush1.bf16.msra.mxu1 %v617_v53  ;;  %772 = vmatprep.mubr.bf16.mxu0 %v1743_v3 }
  0xc7   :  { %v728_v55 = vpop.permute.xlu0 %727 }
  0xc8   :  { %v730_v56 = vpop.permute.xlu1 %729 }
  0xc9   :  { %v732_v57 = vsel %vm284_vm3, %v728_v55, %v730_v56  ;;  %752 = vmatprep.subr.bf16.mxu0 %v730_v56  ;;  %1580 = vmatmul.mubr.msk.bf16.vlgmr.msra.gmra.mxu1 %vm93_vm0, %v1681_v54  ;;  %v343_v54 = vshrl.u32 %v342_v50, 7 }
  0xca   :  { %753 = vmatpush1.bf16.msra.mxu0 %v732_v57  ;;  %837 = vmatprep.mubr.bf16.mxu1 %v1743_v3 }
  0xcb   :  { %v793_v58 = vpop.permute.xlu0 %792 }
  0xcc   :  { %v795_v59 = vpop.permute.xlu1 %794 }
  0xcd   :  { %v797_v60 = vsel %vm211_vm2, %v793_v58, %v795_v59  ;;  %817 = vmatprep.subr.bf16.mxu1 %v795_v59 }
  0xce   :  { %818 = vmatpush1.bf16.msra.mxu1 %v797_v60  ;;  %v344_v60 = vsub.s32 0, %v343_v54 }
  0xcf   :  { %v724_v61 = vpop.permute.xlu0 %723 }
  0xd0   :  { %v726_v62 = vpop.permute.xlu1 %725 }
  0xd1   :  { %v731_v63 = vsel %vm284_vm3, %v724_v61, %v726_v62  ;;  %754 = vmatprep.subr.bf16.mxu0 %v726_v62 }
  0xd2   :  { %755 = vmatpush1.bf16.msra.mxu0 %v731_v63  ;;  %v47_v63 = vld [vmem:[#allocation4] sm:$0x3] }
  0xd3   :  { %v789_v1 = vpop.permute.xlu0 %788 }
  0xd4   :  { %v791_v2 = vpop.permute.xlu1 %790 }
  0xd5   :  { %v796_v4 = vsel %vm211_vm2, %v789_v1, %v791_v2  ;;  %819 = vmatprep.subr.bf16.mxu1 %v791_v2  ;;  %1590 = vmatmul.mubr.msk.bf16.vlgmr.msra.gmra.mxu0 %vm93_vm0, %v1682_v0  ;;  %v348_v0 = vsub.s32 1, %v343_v54 }
  0xd6   :  { %820 = vmatpush1.bf16.msra.mxu1 %v796_v4  ;;  %906 = vmatprep.mubr.bf16.mxu0 %v1743_v3 }
  0xd7   :  { %v861_v6 = vpop.permute.xlu0 %860 }
  0xd8   :  { %v863_v7 = vpop.permute.xlu1 %862 }
  0xd9   :  { %v866_v8 = vsel %vm864_vm6, %v861_v6, %v863_v7  ;;  %886 = vmatprep.subr.bf16.mxu0 %v863_v7  ;;  %1592 = vmatmul.mubr.msk.bf16.vlgmr.msra.gmra.mxu1 %vm93_vm0, %v1683_v5  ;;  %v1965_v6 = vrot.slane %v47_v63, %v344_v60 }
  0xda   :  { %887 = vmatpush1.bf16.msra.mxu0 %v866_v8  ;;  %979 = vmatprep.mubr.bf16.mxu1 %v1743_v3 }
  0xdb   :  { %v934_v9 = vpop.permute.xlu0 %933 }
  0xdc   :  { %v936_v10 = vpop.permute.xlu1 %935 }
  0xdd   :  { %v939_v11 = vsel %vm937_vm7, %v934_v9, %v936_v10  ;;  %959 = vmatprep.subr.bf16.mxu1 %v936_v10  ;;  %v1969_v10 = vrot.slane %v47_v63, %v348_v0 }
  0xde   :  { %960 = vmatpush1.bf16.msra.mxu1 %v939_v11 }
  0xdf   :  { %v857_v12 = vpop.permute.xlu0 %856 }
  0xe0   :  { %v859_v13 = vpop.permute.xlu1 %858 }
  0xe1   :  { %v865_v14 = vsel %vm864_vm6, %v857_v12, %v859_v13  ;;  %888 = vmatprep.subr.bf16.mxu0 %v859_v13 }
  0xe2   :  { %889 = vmatpush1.bf16.msra.mxu0 %v865_v14 }
  0xe3   :  { %v930_v16 = vpop.permute.xlu0 %929 }
  0xe4   :  { %v932_v17 = vpop.permute.xlu1 %931 }
  0xe5   :  { %v938_v18 = vsel %vm937_vm7, %v930_v16, %v932_v17  ;;  %961 = vmatprep.subr.bf16.mxu1 %v932_v17  ;;  %1594 = vmatmul.mubr.msk.bf16.vlgmr.msra.gmra.mxu0 %vm93_vm0, %v1684_v15 }
  0xe6   :  { %962 = vmatpush1.bf16.msra.mxu1 %v938_v18  ;;  %1093 = vmatprep.mubr.bf16.mxu0 %v1743_v3 }
  0xe7   :  { %v1049_v20 = vpop.permute.xlu0 %1048 }
  0xe8   :  { %v1051_v21 = vpop.permute.xlu1 %1050 }
  0xe9   :  { %v1053_v22 = vsel %vm616_vm5, %v1049_v20, %v1051_v21  ;;  %1596 = vmatmul.mubr.msk.bf16.vlgmr.msra.gmra.mxu1 %vm93_vm0, %v1685_v19  ;;  %1073 = vmatprep.subr.bf16.mxu0 %v1051_v21 }
  0xea   :  { %1074 = vmatpush1.bf16.msra.mxu0 %v1053_v22  ;;  %1158 = vmatprep.mubr.bf16.mxu1 %v1743_v3 }
  0xeb   :  { %v1114_v23 = vpop.permute.xlu0 %1113 }
  0xec   :  { %v1116_v24 = vpop.permute.xlu1 %1115 }
  0xed   :  { %v1118_v25 = vsel %vm284_vm3, %v1114_v23, %v1116_v24  ;;  %1138 = vmatprep.subr.bf16.mxu1 %v1116_v24 }
  0xee   :  { %1139 = vmatpush1.bf16.msra.mxu1 %v1118_v25 }
  0xef   :  { %v1045_v26 = vpop.permute.xlu0 %1044 }
  0xf0   :  { %v1047_v27 = vpop.permute.xlu1 %1046 }
  0xf1   :  { %v1052_v28 = vsel %vm616_vm5, %v1045_v26, %v1047_v27  ;;  %1075 = vmatprep.subr.bf16.mxu0 %v1047_v27 }
  0xf2   :  { %1076 = vmatpush1.bf16.msra.mxu0 %v1052_v28 }
  0xf3   :  { %v1110_v30 = vpop.permute.xlu0 %1109 }
  0xf4   :  { %v1112_v31 = vpop.permute.xlu1 %1111 }
  0xf5   :  { %v1117_v32 = vsel %vm284_vm3, %v1110_v30, %v1112_v31  ;;  %1140 = vmatprep.subr.bf16.mxu1 %v1112_v31  ;;  %1606 = vmatmul.mubr.msk.bf16.vlgmr.msra.gmra.mxu0 %vm93_vm0, %v1686_v29 }
  0xf6   :  { %1141 = vmatpush1.bf16.msra.mxu1 %v1117_v32  ;;  %1226 = vmatprep.mubr.bf16.mxu0 %v1743_v3 }
  0xf7   :  { %v1182_v34 = vpop.permute.xlu0 %1181 }
  0xf8   :  { %v1184_v35 = vpop.permute.xlu1 %1183 }
  0xf9   :  { %v1186_v36 = vsel %vm937_vm7, %v1182_v34, %v1184_v35  ;;  %1206 = vmatprep.subr.bf16.mxu0 %v1184_v35  ;;  %1608 = vmatmul.mubr.msk.bf16.vlgmr.msra.gmra.mxu1 %vm93_vm0, %v1687_v33 }
  0xfa   :  { %1207 = vmatpush1.bf16.msra.mxu0 %v1186_v36  ;;  %1299 = vmatprep.mubr.bf16.mxu1 %v1743_v3  ;;  %v186_v3 = vpop.f32.mrf.mxu1 }
  0xfb   :  { %v1254_v37 = vpop.permute.xlu0 %1253 }
  0xfc   :  { %v1256_v38 = vpop.permute.xlu1 %1255  ;;  %v188_v49 = vpop.f32.mrf.mxu1 }
  0xfd   :  { %v1259_v39 = vsel %vm1257_vm8, %v1254_v37, %v1256_v38  ;;  %1279 = vmatprep.subr.bf16.mxu1 %v1256_v38 }
  0xfe   :  { %1280 = vmatpush1.bf16.msra.mxu1 %v1259_v39  ;;  %v190_v53 = vpop.f32.mrf.mxu1 }
  0xff   :  { %v1178_v40 = vpop.permute.xlu0 %1177 }
 0x100   :  { %v1180_v41 = vpop.permute.xlu1 %1179  ;;  %v192_v58 = vpop.f32.mrf.mxu1 }
 0x101   :  { %v1185_v42 = vsel %vm937_vm7, %v1178_v40, %v1180_v41  ;;  %1208 = vmatprep.subr.bf16.mxu0 %v1180_v41 }
 0x102   :  { %1209 = vmatpush1.bf16.msra.mxu0 %v1185_v42 }
 0x103   :  { %v1250_v44 = vpop.permute.xlu0 %1249 }
 0x104   :  { %v1252_v45 = vpop.permute.xlu1 %1251 }
 0x105   :  { %v1258_v46 = vsel %vm1257_vm8, %v1250_v44, %v1252_v45  ;;  %1610 = vmatmul.mubr.msk.bf16.vlgmr.msra.gmra.mxu0 %vm93_vm0, %v1688_v43  ;;  %1281 = vmatprep.subr.bf16.mxu1 %v1252_v45 }
 0x106   :  { %1282 = vmatpush1.bf16.msra.mxu1 %v1258_v46 }
 0x109   :  { %1612 = vmatmul.mubr.msk.bf16.vlgmr.msra.gmra.mxu1 %vm93_vm0, %v1689_v47 }
 0x15c   :  { %v131_v48 = vpop.f32.mrf.mxu0 }
 0x15d   :  { %v187_v55 = vadd.f32 %v186_v3, %v131_v48 }
 0x15e   :  { %v133_v51 = vpop.f32.mrf.mxu0 }
 0x15f   :  { %v189_v57 = vadd.f32 %v188_v49, %v133_v51 }
 0x160   :  { %v135_v52 = vpop.f32.mrf.mxu0 }
 0x161   :  { %v191_v61 = vadd.f32 %v190_v53, %v135_v52 }
 0x162   :  { %v137_v56 = vpop.f32.mrf.mxu0 }
 0x163   :  { %v193_v2 = vadd.f32 %v192_v58, %v137_v56 }
 0x165   :  { %v255_v59 = vpop.f32.mrf.mxu0 }
 0x166   :  { %v264_v62 = vadd.f32 %v255_v59, %v187_v55 }
 0x167   :  { %v257_v1 = vpop.f32.mrf.mxu0 }
 0x168   :  { %v265_v4 = vadd.f32 %v257_v1, %v189_v57 }
 0x169   :  { %v328_v5 = vpop.f32.mrf.mxu1  ;;  %v259_v7 = vpop.f32.mrf.mxu0 }
 0x16a   :  { %v1967_v8 = vadd.f32 %v328_v5, %v264_v62  ;;  %v266_v9 = vadd.f32 %v259_v7, %v191_v61 }
 0x16b   :  { %v330_v11 = vpop.f32.mrf.mxu1  ;;  %v261_v12 = vpop.f32.mrf.mxu0 }
 0x16c   :  { %v338_v13 = vadd.f32 %v330_v11, %v265_v4  ;;  %v267_v14 = vadd.f32 %v261_v12, %v193_v2  ;;  %v352_v15 = vmul.f32 %v1965_v6, %v1967_v8 }
 0x16d   :  { %v332_v16 = vpop.f32.mrf.mxu1 }
 0x16e   :  { %v353_v17 = vmul.f32 %v1969_v10, %v338_v13  ;;  %368 = vst.msk [vmem:[%s2240_s5 + $0x8] sm:$0xff] %vm356_vm9, %v338_v13  ;;  %v1978_v18 = vadd.f32 %v332_v16, %v266_v9 }
 0x16f   :  { %v334_v19 = vpop.f32.mrf.mxu1 }
 0x170   :  { %v340_v20 = vadd.f32 %v334_v19, %v267_v14  ;;  %v357_v21 = vsel %vm356_vm9, %v353_v17, 0.0  ;;  %v354_v22 = vmul.f32 %v1965_v6, %v1978_v18 }
 0x171   :  { %v358_v23 = vadd.f32 %v357_v21, %v352_v15 }
 0x172   :  { %v355_v24 = vmul.f32 %v1969_v10, %v340_v20  ;;  %370 = vst.msk [vmem:[%s2240_s5 + $0x18] sm:$0xff] %vm356_vm9, %v340_v20 }
 0x173   :  { %359 = vadd.xlane.f32.xlu0 %v358_v23 }
 0x174   :  { %v361_v25 = vsel %vm356_vm9, %v355_v24, 0.0 }
 0x175   :  { %v454_v26 = vpop.f32.mrf.mxu0  ;;  %v362_v27 = vadd.f32 %v361_v25, %v354_v22 }
 0x177   :  { %363 = vadd.xlane.f32.xlu1 %v362_v27  ;;  %v456_v28 = vpop.f32.mrf.mxu0 }
 0x179   :  { %v519_v29 = vpop.f32.mrf.mxu1  ;;  %v458_v30 = vpop.f32.mrf.mxu0 }
 0x17a   :  { %v520_v34 = vadd.f32 %v519_v29, %v454_v26 }
 0x17b   :  { %v521_v31 = vpop.f32.mrf.mxu1  ;;  %v460_v32 = vpop.f32.mrf.mxu0 }
 0x17c   :  { %v522_v35 = vadd.f32 %v521_v31, %v456_v28 }
 0x17d   :  { %v523_v33 = vpop.f32.mrf.mxu1 }
 0x17e   :  { %v524_v38 = vadd.f32 %v523_v33, %v458_v30 }
 0x17f   :  { %v525_v36 = vpop.f32.mrf.mxu1 }
 0x180   :  { %v526_v41 = vadd.f32 %v525_v36, %v460_v32 }
 0x185   :  { %v587_v37 = vpop.f32.mrf.mxu0 }
 0x186   :  { %v596_v39 = vadd.f32 %v587_v37, %v520_v34 }
 0x187   :  { %v589_v40 = vpop.f32.mrf.mxu0 }
 0x188   :  { %v597_v42 = vadd.f32 %v589_v40, %v522_v35 }
 0x189   :  { %v660_v43 = vpop.f32.mrf.mxu1  ;;  %v591_v44 = vpop.f32.mrf.mxu0 }
 0x18a   :  { %v1989_v45 = vadd.f32 %v660_v43, %v596_v39  ;;  %v598_v46 = vadd.f32 %v591_v44, %v524_v38 }
 0x18b   :  { %v662_v47 = vpop.f32.mrf.mxu1  ;;  %v593_v3 = vpop.f32.mrf.mxu0 }
 0x18c   :  { %v670_v48 = vadd.f32 %v662_v47, %v597_v42  ;;  %v599_v49 = vadd.f32 %v593_v3, %v526_v41  ;;  %v673_v50 = vmul.f32 %v1989_v45, %v1965_v6 }
 0x18d   :  { %v664_v51 = vpop.f32.mrf.mxu1 }
 0x18e   :  { %v674_v52 = vmul.f32 %v670_v48, %v1969_v10  ;;  %1582 = vst.msk [vmem:[%s2240_s5 + $0x28] sm:$0xff] %vm356_vm9, %v670_v48  ;;  %v1998_v53 = vadd.f32 %v664_v51, %v598_v46 }
 0x18f   :  { %v666_v54 = vpop.f32.mrf.mxu1 }
 0x190   :  { %v672_v55 = vadd.f32 %v666_v54, %v599_v49  ;;  %v677_v56 = vsel %vm356_vm9, %v674_v52, 0.0  ;;  %v675_v57 = vmul.f32 %v1998_v53, %v1965_v6 }
 0x191   :  { %v678_v58 = vadd.f32 %v677_v56, %v673_v50 }
 0x192   :  { %v676_v59 = vmul.f32 %v672_v55, %v1969_v10  ;;  %1584 = vst.msk [vmem:[%s2240_s5 + $0x38] sm:$0xff] %vm356_vm9, %v672_v55 }
 0x193   :  { %679 = vadd.xlane.f32.xlu0 %v678_v58 }
 0x194   :  { %v681_v60 = vsel %vm356_vm9, %v676_v59, 0.0 }
 0x195   :  { %v682_v61 = vadd.f32 %v681_v60, %v675_v57  ;;  %v774_v62 = vpop.f32.mrf.mxu0 }
 0x197   :  { %683 = vadd.xlane.f32.xlu0 %v682_v61  ;;  %v776_v63 = vpop.f32.mrf.mxu0 }
 0x199   :  { %v839_v0 = vpop.f32.mrf.mxu1  ;;  %v778_v1 = vpop.f32.mrf.mxu0 }
 0x19a   :  { %v840_v7 = vadd.f32 %v839_v0, %v774_v62 }
 0x19b   :  { %v841_v2 = vpop.f32.mrf.mxu1  ;;  %v780_v4 = vpop.f32.mrf.mxu0 }
 0x19c   :  { %v842_v9 = vadd.f32 %v841_v2, %v776_v63 }
 0x19d   :  { %v843_v5 = vpop.f32.mrf.mxu1 }
 0x19e   :  { %v844_v13 = vadd.f32 %v843_v5, %v778_v1 }
 0x19f   :  { %v845_v11 = vpop.f32.mrf.mxu1 }
 0x1a0   :  { %v846_v16 = vadd.f32 %v845_v11, %v780_v4 }
 0x1a5   :  { %v908_v12 = vpop.f32.mrf.mxu0 }
 0x1a6   :  { %v917_v14 = vadd.f32 %v908_v12, %v840_v7 }
 0x1a7   :  { %v910_v15 = vpop.f32.mrf.mxu0 }
 0x1a8   :  { %v918_v17 = vadd.f32 %v910_v15, %v842_v9 }
 0x1a9   :  { %v981_v19 = vpop.f32.mrf.mxu1  ;;  %v912_v20 = vpop.f32.mrf.mxu0 }
 0x1aa   :  { %v2009_v21 = vadd.f32 %v981_v19, %v917_v14  ;;  %v919_v22 = vadd.f32 %v912_v20, %v844_v13 }
 0x1ab   :  { %v983_v23 = vpop.f32.mrf.mxu1  ;;  %v914_v24 = vpop.f32.mrf.mxu0 }
 0x1ac   :  { %v991_v25 = vadd.f32 %v983_v23, %v918_v17  ;;  %v920_v26 = vadd.f32 %v914_v24, %v846_v16  ;;  %v994_v27 = vmul.f32 %v2009_v21, %v1965_v6 }
 0x1ad   :  { %v985_v28 = vpop.f32.mrf.mxu1 }
 0x1ae   :  { %v995_v29 = vmul.f32 %v991_v25, %v1969_v10  ;;  %1598 = vst.msk [vmem:[%s2240_s5 + $0x48] sm:$0xff] %vm356_vm9, %v991_v25  ;;  %v2018_v30 = vadd.f32 %v985_v28, %v919_v22 }
 0x1af   :  { %v987_v31 = vpop.f32.mrf.mxu1 }
 0x1b0   :  { %v993_v32 = vadd.f32 %v987_v31, %v920_v26  ;;  %v998_v33 = vsel %vm356_vm9, %v995_v29, 0.0  ;;  %v996_v34 = vmul.f32 %v2018_v30, %v1965_v6 }
 0x1b1   :  { %v999_v35 = vadd.f32 %v998_v33, %v994_v27  ;;  %v2054_v33 = vld [vmem:[%s2240_s5 + $0x8] sm:$0xff] }
 0x1b2   :  { %v997_v36 = vmul.f32 %v993_v32, %v1969_v10  ;;  %1600 = vst.msk [vmem:[%s2240_s5 + $0x58] sm:$0xff] %vm356_vm9, %v993_v32 }
 0x1b3   :  { %1000 = vadd.xlane.f32.xlu1 %v999_v35 }
 0x1b4   :  { %v1002_v37 = vsel %vm356_vm9, %v997_v36, 0.0 }
 0x1b5   :  { %v1003_v38 = vadd.f32 %v1002_v37, %v996_v34  ;;  %v1095_v39 = vpop.f32.mrf.mxu0  ;;  %v2063_v37 = vld [vmem:[%s2240_s5 + $0x28] sm:$0xff] }
 0x1b7   :  { %1004 = vadd.xlane.f32.xlu0 %v1003_v38  ;;  %v1097_v41 = vpop.f32.mrf.mxu0 }
 0x1b9   :  { %v1160_v40 = vpop.f32.mrf.mxu1  ;;  %v1099_v43 = vpop.f32.mrf.mxu0 }
 0x1ba   :  { %v1161_v3 = vadd.f32 %v1160_v40, %v1095_v39  ;;  %v2070_v39 = vld [vmem:[%s2240_s5 + $0x48] sm:$0xff] }
 0x1bb   :  { %v1162_v42 = vpop.f32.mrf.mxu1  ;;  %v1101_v46 = vpop.f32.mrf.mxu0 }
 0x1bc   :  { %v1163_v50 = vadd.f32 %v1162_v42, %v1097_v41 }
 0x1bd   :  { %v1164_v44 = vpop.f32.mrf.mxu1 }
 0x1be   :  { %v1165_v56 = vadd.f32 %v1164_v44, %v1099_v43 }
 0x1bf   :  { %v1166_v48 = vpop.f32.mrf.mxu1 }
 0x1c0   :  { %v1167_v60 = vadd.f32 %v1166_v48, %v1101_v46 }
 0x1c5   :  { %v1228_v47 = vpop.f32.mrf.mxu0 }
 0x1c6   :  { %v1237_v51 = vadd.f32 %v1228_v47, %v1161_v3 }
 0x1c7   :  { %v1230_v49 = vpop.f32.mrf.mxu0 }
 0x1c8   :  { %v1238_v55 = vadd.f32 %v1230_v49, %v1163_v50 }
 0x1c9   :  { %v1232_v52 = vpop.f32.mrf.mxu0  ;;  %v1301_v54 = vpop.f32.mrf.mxu1 }
 0x1ca   :  { %v2029_v57 = vadd.f32 %v1301_v54, %v1237_v51  ;;  %v1239_v62 = vadd.f32 %v1232_v52, %v1165_v56 }
 0x1cb   :  { %v1234_v58 = vpop.f32.mrf.mxu0  ;;  %v1303_v59 = vpop.f32.mrf.mxu1 }
 0x1cc   :  { %v1311_v61 = vadd.f32 %v1303_v59, %v1238_v55  ;;  %v1240_v0 = vadd.f32 %v1234_v58, %v1167_v60  ;;  %v1314_v2 = vmul.f32 %v2029_v57, %v1965_v6  ;;  %v2096_v55 = vld [vmem:[%s2240_s5 + $0x18] sm:$0xff] }
 0x1cd   :  { %v1305_v63 = vpop.f32.mrf.mxu1 }
 0x1ce   :  { %v1315_v1 = vmul.f32 %v1311_v61, %v1969_v10  ;;  %1614 = vst.msk [vmem:[%s2240_s5 + $0x68] sm:$0xff] %vm356_vm9, %v1311_v61  ;;  %v2038_v4 = vadd.f32 %v1305_v63, %v1239_v62  ;;  %v2107_v63 = vld [vmem:[%s2240_s5 + $0x38] sm:$0xff] }
 0x1cf   :  { %v1307_v5 = vpop.f32.mrf.mxu1 }
 0x1d0   :  { %v1313_v7 = vadd.f32 %v1307_v5, %v1240_v0  ;;  %v1318_v9 = vsel %vm356_vm9, %v1315_v1, 0.0  ;;  %v1316_v13 = vmul.f32 %v2038_v4, %v1965_v6 }
 0x1d1   :  { %v1319_v11 = vadd.f32 %v1318_v9, %v1314_v2 }
 0x1d2   :  { %v1317_v12 = vmul.f32 %v1313_v7, %v1969_v10  ;;  %1616 = vst.msk [vmem:[%s2240_s5 + $0x78] sm:$0xff] %vm356_vm9, %v1313_v7 }
 0x1d3   :  { %1320 = vadd.xlane.f32.xlu1 %v1319_v11 }
 0x1d4   :  { %v1322_v14 = vsel %vm356_vm9, %v1317_v12, 0.0 }
 0x1d5   :  { %v1323_v15 = vadd.f32 %v1322_v14, %v1316_v13  ;;  %v2089_v50 = vld [vmem:[%s2240_s5 + $0x68] sm:$0xff] }
 0x1d7   :  { %1324 = vadd.xlane.f32.xlu0 %v1323_v15 }
 0x1fc   :  { %v360_v16 = vpop.xlane.xlu0 %359 }
 0x200   :  { %v364_v19 = vpop.xlane.xlu1 %363 }
 0x21c   :  { %v680_v17 = vpop.xlane.xlu0 %679 }
 0x21d   :  { %v685_v23 = vadd.f32 %v680_v17, %v360_v16 }
 0x220   :  { %v684_v20 = vpop.xlane.xlu0 %683 }
 0x221   :  { %v686_v27 = vadd.f32 %v684_v20, %v364_v19 }
 0x23c   :  { %v1001_v22 = vpop.xlane.xlu1 %1000 }
 0x23d   :  { %v1006_v24 = vadd.f32 %v1001_v22, %v685_v23  ;;  %v2124_v22 = vld [vmem:[%s2240_s5 + $0x58] sm:$0xff] }
 0x240   :  { %v1005_v25 = vpop.xlane.xlu0 %1004 }
 0x241   :  { %v1007_v29 = vadd.f32 %v1005_v25, %v686_v27 }
 0x25c   :  { %v1321_v26 = vpop.xlane.xlu1 %1320 }
 0x25d   :  { %v1326_v28 = vadd.f32 %v1321_v26, %v1006_v24 }
 0x25f   :  { %v2049_v31 = vmul.f32 0.001953125, %v1326_v28 }
 0x260   :  { %v1325_v32 = vpop.xlane.xlu0 %1324 }
 0x261   :  { %v1327_v34 = vadd.f32 %v1325_v32, %v1007_v29  ;;  %v1339_v35 = vsub.f32 %v1967_v8, %v2049_v31  ;;  %v1340_v36 = vsub.f32 %v2054_v33, %v2049_v31  ;;  %v1365_v38 = vsub.f32 %v1989_v45, %v2049_v31  ;;  %v2135_v32 = vld [vmem:[%s2240_s5 + $0x78] sm:$0xff] }
 0x262   :  { %v1366_v40 = vsub.f32 %v2063_v37, %v2049_v31  ;;  %v1391_v41 = vsub.f32 %v2009_v21, %v2049_v31  ;;  %v1392_v42 = vsub.f32 %v2070_v39, %v2049_v31  ;;  %v1417_v51 = vsub.f32 %v2029_v57, %v2049_v31 }
 0x263   :  { %v2078_v43 = vmul.f32 0.001953125, %v1327_v34  ;;  %v1343_v44 = vmul.f32 %v1339_v35, %v1965_v6  ;;  %v1344_v46 = vmul.f32 %v1340_v36, %v1969_v10  ;;  %v1369_v47 = vmul.f32 %v1365_v38, %v1965_v6 }
 0x264   :  { %v1370_v3 = vmul.f32 %v1366_v40, %v1969_v10  ;;  %v1395_v48 = vmul.f32 %v1391_v41, %v1965_v6  ;;  %v1396_v49 = vmul.f32 %v1392_v42, %v1969_v10  ;;  %v1418_v58 = vsub.f32 %v2089_v50, %v2049_v31 }
 0x265   :  { %v1347_v52 = vmul.f32 %v1343_v44, %v1343_v44  ;;  %v1348_v54 = vmul.f32 %v1344_v46, %v1344_v46  ;;  %v1341_v56 = vsub.f32 %v1978_v18, %v2078_v43  ;;  %v1373_v59 = vmul.f32 %v1369_v47, %v1369_v47 }
 0x266   :  { %v1374_v60 = vmul.f32 %v1370_v3, %v1370_v3  ;;  %v1342_v61 = vsub.f32 %v2096_v55, %v2078_v43  ;;  %v1400_v62 = vmul.f32 %v1396_v49, %v1396_v49  ;;  %v1367_v2 = vsub.f32 %v1998_v53, %v2078_v43 }
 0x267   :  { %v1351_v0 = vsel %vm356_vm9, %v1348_v54, 0.0  ;;  %v1345_v1 = vmul.f32 %v1341_v56, %v1965_v6  ;;  %v1368_v5 = vsub.f32 %v2107_v63, %v2078_v43  ;;  %v1399_v13 = vmul.f32 %v1395_v48, %v1395_v48 }
 0x268   :  { %v1352_v7 = vadd.f32 %v1351_v0, %v1347_v52  ;;  %v1377_v9 = vsel %vm356_vm9, %v1374_v60, 0.0  ;;  %v1346_v11 = vmul.f32 %v1342_v61, %v1969_v10  ;;  %v1403_v14 = vsel %vm356_vm9, %v1400_v62, 0.0 }
 0x269   :  { %v1349_v12 = vmul.f32 %v1345_v1, %v1345_v1  ;;  %v1371_v15 = vmul.f32 %v1367_v2, %v1965_v6  ;;  %v1378_v16 = vadd.f32 %v1377_v9, %v1373_v59  ;;  %v1372_v19 = vmul.f32 %v1368_v5, %v1969_v10 }
 0x26a   :  { %1353 = vadd.xlane.f32.xlu1 %v1352_v7  ;;  %v1350_v17 = vmul.f32 %v1346_v11, %v1346_v11  ;;  %v1422_v20 = vmul.f32 %v1418_v58, %v1969_v10  ;;  %v1421_v24 = vmul.f32 %v1417_v51, %v1965_v6  ;;  %v1393_v25 = vsub.f32 %v2018_v30, %v2078_v43 }
 0x26b   :  { %v1375_v23 = vmul.f32 %v1371_v15, %v1371_v15  ;;  %v1394_v26 = vsub.f32 %v2124_v22, %v2078_v43  ;;  %v1376_v28 = vmul.f32 %v1372_v19, %v1372_v19  ;;  %v1419_v34 = vsub.f32 %v2038_v4, %v2078_v43 }
 0x26c   :  { %v1355_v27 = vsel %vm356_vm9, %v1350_v17, 0.0  ;;  %v1426_v29 = vmul.f32 %v1422_v20, %v1422_v20  ;;  %v1397_v36 = vmul.f32 %v1393_v25, %v1965_v6  ;;  %v1420_v40 = vsub.f32 %v2135_v32, %v2078_v43 }
 0x26d   :  { %v1356_v35 = vadd.f32 %v1355_v27, %v1349_v12  ;;  %v1398_v38 = vmul.f32 %v1394_v26, %v1969_v10  ;;  %v1381_v41 = vsel %vm356_vm9, %v1376_v28, 0.0  ;;  %v1404_v44 = vadd.f32 %v1403_v14, %v1399_v13  ;;  %v1449_v26 = vld [vmem:[%s2238_s3] sm:$0xff]  ;;  %v1440_v28 = vld [vmem:[%s2237_s2 + $0x8] sm:$0xff] }
 0x26e   :  { %1379 = vadd.xlane.f32.xlu1 %v1378_v16  ;;  %v1425_v46 = vmul.f32 %v1421_v24, %v1421_v24  ;;  %v1424_v47 = vmul.f32 %v1420_v40, %v1969_v10  ;;  %v1382_v3 = vadd.f32 %v1381_v41, %v1375_v23  ;;  %v1429_v48 = vsel %vm356_vm9, %v1426_v29, 0.0  ;;  %v1439_v23 = vld [vmem:[%s2237_s2] sm:$0xff] }
 0x26f   :  { %1357 = vadd.xlane.f32.xlu0 %v1356_v35  ;;  %v1402_v42 = vmul.f32 %v1398_v38, %v1398_v38  ;;  %v1401_v49 = vmul.f32 %v1397_v36, %v1397_v36  ;;  %v1423_v51 = vmul.f32 %v1419_v34, %v1965_v6  ;;  %v1450_v36 = vld [vmem:[%s2238_s3 + $0x8] sm:$0xff] }
 0x270   :  { %v1428_v54 = vmul.f32 %v1424_v47, %v1424_v47  ;;  %v1430_v56 = vadd.f32 %v1429_v48, %v1425_v46 }
 0x271   :  { %v1407_v52 = vsel %vm356_vm9, %v1402_v42, 0.0  ;;  %v1427_v59 = vmul.f32 %v1423_v51, %v1423_v51 }
 0x272   :  { %1405 = vadd.xlane.f32.xlu1 %v1404_v44  ;;  %v1408_v58 = vadd.f32 %v1407_v52, %v1401_v49  ;;  %v1433_v60 = vsel %vm356_vm9, %v1428_v54, 0.0 }
 0x273   :  { %1383 = vadd.xlane.f32.xlu0 %v1382_v3  ;;  %v1434_v61 = vadd.f32 %v1433_v60, %v1427_v59 }
 0x276   :  { %1431 = vadd.xlane.f32.xlu1 %v1430_v56 }
 0x277   :  { %1409 = vadd.xlane.f32.xlu0 %v1408_v58 }
 0x27b   :  { %1435 = vadd.xlane.f32.xlu0 %v1434_v61 }
 0x2f3   :  { %v1354_v10 = vpop.xlane.xlu1 %1353 }
 0x2f7   :  { %v1380_v62 = vpop.xlane.xlu1 %1379 }
 0x2f8   :  { %v1358_v0 = vpop.xlane.xlu0 %1357  ;;  %v1385_v2 = vadd.f32 %v1380_v62, %v1354_v10 }
 0x2fb   :  { %v1406_v1 = vpop.xlane.xlu1 %1405 }
 0x2fc   :  { %v1384_v6 = vpop.xlane.xlu0 %1383  ;;  %v1411_v5 = vadd.f32 %v1406_v1, %v1385_v2 }
 0x2fd   :  { %v1386_v12 = vadd.f32 %v1384_v6, %v1358_v0 }
 0x2ff   :  { %v1432_v7 = vpop.xlane.xlu1 %1431 }
 0x300   :  { %v1437_v9 = vadd.f32 %v1432_v7, %v1411_v5  ;;  %v1410_v11 = vpop.xlane.xlu0 %1409 }
 0x301   :  { %v1412_v14 = vadd.f32 %v1410_v11, %v1386_v12 }
 0x302   :  { %v1441_v13 = vmul.f32 0.001953125, %v1437_v9 }
 0x304   :  { %v1443_v15 = vadd.f32 1e-05, %v1441_v13  ;;  %v1436_v16 = vpop.xlane.xlu0 %1435 }
 0x305   :  { %v1438_v17 = vadd.f32 %v1436_v16, %v1412_v14 }
 0x306   :  { %1690 = vrsqrt.f32 %v1443_v15 }
 0x307   :  { %v1442_v19 = vmul.f32 0.001953125, %v1438_v17 }
 0x309   :  { %v1444_v20 = vadd.f32 1e-05, %v1442_v19 }
 0x30b   :  { %1692 = vrsqrt.f32 %v1444_v20 }
 0x313   :  { %v1691_v24 = vpop.eup %1690 }
 0x314   :  { %v1447_v25 = vmul.f32 %v1691_v24, %v1439_v23 }
 0x316   :  { %1457 = vperm.xlu1 %1666, %v1447_v25   ;;  %v1451_v27 = vmul.f32 %v1447_v25, %v2049_v31 }
 0x318   :  { %v1693_v29 = vpop.eup %1692  ;;  %v1453_v34 = vsub.f32 %v1449_v26, %v1451_v27 }
 0x319   :  { %v1448_v35 = vmul.f32 %v1693_v29, %v1440_v28 }
 0x31a   :  { %1471 = vperm.xlu1 %1666, %v1453_v34  }
 0x31b   :  { %1462 = vperm.xlu0 %1667, %v1448_v35   ;;  %v1452_v38 = vmul.f32 %v1448_v35, %v2078_v43 }
 0x31d   :  { %v1454_v40 = vsub.f32 %v1450_v36, %v1452_v38 }
 0x31f   :  { %1476 = vperm.xlu1 %1666, %v1454_v40  }
 0x391   :  { %v1458_v41 = vpop.permute.xlu1 %1457 }
 0x392   :  { %v1465_v31 = vmul.f32 %v1458_v41, %v1967_v8  ;;  %v1466_v42 = vmul.f32 %v1458_v41, %v2054_v33  ;;  %v1495_v44 = vmul.f32 %v1458_v41, %v1989_v45  ;;  %v1496_v46 = vmul.f32 %v2063_v37, %v1458_v41 }
 0x393   :  { %v1515_v47 = vmul.f32 %v1458_v41, %v2009_v21  ;;  %v1516_v3 = vmul.f32 %v2070_v39, %v1458_v41  ;;  %v1535_v48 = vmul.f32 %v1458_v41, %v2029_v57  ;;  %v1536_v49 = vmul.f32 %v2089_v50, %v1458_v41 }
 0x395   :  { %v1472_v43 = vpop.permute.xlu1 %1471 }
 0x396   :  { %v1479_v51 = vadd.f32 %v1472_v43, %v1465_v31  ;;  %v1480_v52 = vadd.f32 %v1472_v43, %v1466_v42  ;;  %v1499_v54 = vadd.f32 %v1495_v44, %v1472_v43  ;;  %v1500_v56 = vadd.f32 %v1496_v46, %v1472_v43  ;;  %v1463_v45 = vpop.permute.xlu0 %1462 }
 0x397   :  { %v1519_v8 = vadd.f32 %v1515_v47, %v1472_v43  ;;  %v1520_v58 = vadd.f32 %v1516_v3, %v1472_v43  ;;  %v1539_v33 = vadd.f32 %v1535_v48, %v1472_v43  ;;  %v1540_v59 = vadd.f32 %v1536_v49, %v1472_v43 }
 0x398   :  { %v1483_v60 = vmax.f32 %v1479_v51, 0.0  ;;  %v1484_v37 = vmax.f32 %v1480_v52, 0.0  ;;  %v1503_v61 = vmax.f32 %v1499_v54, 0.0  ;;  %v1504_v21 = vmax.f32 %v1500_v56, 0.0 }
 0x399   :  { %v1523_v10 = vmax.f32 %v1519_v8, 0.0  ;;  %v1524_v39 = vmax.f32 %v1520_v58, 0.0  ;;  %v1543_v62 = vmax.f32 %v1539_v33, 0.0  ;;  %v1544_v57 = vmax.f32 %v1540_v59, 0.0 }
 0x39a   :  { %1487 = vst [vmem:[%s2240_s5] sm:$0xff] %v1483_v60  ;;  %1488 = vst.msk [vmem:[%s2240_s5 + $0x8] sm:$0xff] %vm356_vm9, %v1484_v37  ;;  %v1467_v50 = vmul.f32 %v1463_v45, %v1978_v18  ;;  %v1468_v0 = vmul.f32 %v1463_v45, %v2096_v55  ;;  %v1497_v1 = vmul.f32 %v1463_v45, %v1998_v53  ;;  %v1477_v6 = vpop.permute.xlu1 %1476 }
 0x39b   :  { %1633 = vst [vmem:[%s2240_s5 + $0x20] sm:$0xff] %v1503_v61  ;;  %1634 = vst.msk [vmem:[%s2240_s5 + $0x28] sm:$0xff] %vm356_vm9, %v1504_v21  ;;  %v1498_v2 = vmul.f32 %v2107_v63, %v1463_v45  ;;  %v1517_v18 = vmul.f32 %v1463_v45, %v2018_v30  ;;  %v1518_v53 = vmul.f32 %v2124_v22, %v1463_v45 }
 0x39c   :  { %1641 = vst [vmem:[%s2240_s5 + $0x40] sm:$0xff] %v1523_v10  ;;  %1642 = vst.msk [vmem:[%s2240_s5 + $0x48] sm:$0xff] %vm356_vm9, %v1524_v39  ;;  %v1537_v55 = vmul.f32 %v1463_v45, %v2038_v4  ;;  %v1538_v63 = vmul.f32 %v2135_v32, %v1463_v45  ;;  %v1481_v5 = vadd.f32 %v1477_v6, %v1467_v50 }
 0x39d   :  { %1649 = vst [vmem:[%s2240_s5 + $0x60] sm:$0xff] %v1543_v62  ;;  %1650 = vst.msk [vmem:[%s2240_s5 + $0x68] sm:$0xff] %vm356_vm9, %v1544_v57  ;;  %v1482_v7 = vadd.f32 %v1477_v6, %v1468_v0  ;;  %v1501_v9 = vadd.f32 %v1497_v1, %v1477_v6  ;;  %v1502_v11 = vadd.f32 %v1498_v2, %v1477_v6 }
 0x39e   :  { %v1521_v12 = vadd.f32 %v1517_v18, %v1477_v6  ;;  %v1522_v13 = vadd.f32 %v1518_v53, %v1477_v6  ;;  %v1541_v14 = vadd.f32 %v1537_v55, %v1477_v6  ;;  %v1542_v15 = vadd.f32 %v1538_v63, %v1477_v6 }
 0x39f   :  { %v1485_v16 = vmax.f32 %v1481_v5, 0.0  ;;  %v1486_v17 = vmax.f32 %v1482_v7, 0.0  ;;  %v1505_v19 = vmax.f32 %v1501_v9, 0.0  ;;  %v1506_v20 = vmax.f32 %v1502_v11, 0.0 }
 0x3a0   :  { %v1525_v23 = vmax.f32 %v1521_v12, 0.0  ;;  %v1526_v30 = vmax.f32 %v1522_v13, 0.0  ;;  %v1545_v24 = vmax.f32 %v1541_v14, 0.0  ;;  %v1546_v22 = vmax.f32 %v1542_v15, 0.0 }
 0x3a1   :  { %1489 = vst [vmem:[%s2240_s5 + $0x10] sm:$0xff] %v1485_v16  ;;  %1490 = vst.msk [vmem:[%s2240_s5 + $0x18] sm:$0xff] %vm356_vm9, %v1486_v17 }
 0x3a2   :  { %1635 = vst [vmem:[%s2240_s5 + $0x30] sm:$0xff] %v1505_v19  ;;  %1636 = vst.msk [vmem:[%s2240_s5 + $0x38] sm:$0xff] %vm356_vm9, %v1506_v20 }
 0x3a3   :  { %1643 = vst [vmem:[%s2240_s5 + $0x50] sm:$0xff] %v1525_v23  ;;  %1644 = vst.msk [vmem:[%s2240_s5 + $0x58] sm:$0xff] %vm356_vm9, %v1526_v30 }
 0x3a4   :  { %1651 = vst [vmem:[%s2240_s5 + $0x70] sm:$0xff] %v1545_v24  ;;  %1652 = vst.msk [vmem:[%s2240_s5 + $0x78] sm:$0xff] %vm356_vm9, %v1546_v22 }
 0x3a5   :  { %1555 = vsyncpa [#allocation3], 1 }
 0x3a6   :  { %1556 = vsyncpa [#allocation5], 1 }

// kernel: wacgan_generator_forward.8
= control target key start
LH: loop header
LB: loop body
LE: loop exit
PB: predicated region body
PF: predicated region fallthrough
CT: control target
= control target key end

     0   :  { %10 = vsyncpa [#allocation3], 0  ;;  %s3994_s0 = inlined_call_operand.vmem [shape: bf16[16,768], index: 0, kind: input, shape index: {}]   ;;  %s3995_s1 = inlined_call_operand.hbm [shape: bf16[4,4,8,16], index: 1, kind: input, shape index: {}]   ;;  %s3996_s2 = inlined_call_operand.vmem [shape: f32[8,1], index: 2, kind: input, shape index: {}]   ;;  %s3997_s3 = inlined_call_operand.vmem [shape: f32[8,1], index: 3, kind: input, shape index: {}]   ;;  %s3998_s4 = inlined_call_operand.hbm [shape: f32[1,648], index: 4, kind: input, shape index: {}]   ;;  %s3999_s5 = inlined_call_operand.vmem [shape: f32[4,8,648], index: 5, kind: output, shape index: {}]  }
   0x1   :  { %11 = vsyncpa [#allocation5], 0  ;;  %s3227_s18 = smov [#allocation2]  }
   0x2   :  { %s19_s19 = sshll.u32 %s3227_s18, 4  ;;  %s20_s19 = int_to_ptr.vmem [resolvable:$true] %s19_s19 }
   0x3   :  { %s3191_s20 = scalar_lea.vmem %s20_s19, 1024  ;;  %p3196_p1 = scmp.lt.s32.totalorder %s20_s19, %s20_s19 }
   0x4   :  { %p3192_p0 = scmp.ne.s32.totalorder %s20_s19, %s3191_s20  ;;  %p3197_p2 = scmp.lt.s32.totalorder %s3191_s20, %s3191_s20 }
   0x6   :  { %p3198_p3 = por %p3197_p2, %p3196_p1 }
   0x8   :  { %p3199_p4 = pnand %p3198_p3, %p3192_p0 }
   0xa   :  { %3202 = shalt.err (!%p3199_p4)
}
   0xb   :  { %s3228_s21 = smov 64   ;;  %s3229_s22 = smov 4  }
   0xc   :  { %25 = dma.hbm_to_vmem [thread:$0]  %s3995_s1, 1024, %s20_s19, [#allocation3], %s3228_s21, %s3228_s21, %s3229_s22  }
   0xd   :  { %s3230_s25 = smov [#allocation4]  }
   0xe   :  { %s36_s26 = sshll.u32 %s3230_s25, 4  ;;  %s37_s26 = int_to_ptr.vmem [resolvable:$true] %s36_s26 }
   0xf   :  { %s3211_s27 = scalar_lea.vmem %s37_s26, 96  ;;  %p3216_p6 = scmp.lt.s32.totalorder %s37_s26, %s37_s26 }
  0x10   :  { %p3212_p5 = scmp.ne.s32.totalorder %s37_s26, %s3211_s27  ;;  %p3217_p7 = scmp.lt.s32.totalorder %s3211_s27, %s3211_s27 }
  0x12   :  { %p3218_p8 = por %p3217_p7, %p3216_p6 }
  0x14   :  { %p3219_p9 = pnand %p3218_p8, %p3212_p5 }
  0x16   :  { %3222 = shalt.err (!%p3219_p9)
}
  0x17   :  { %39 = dma.hbm_to_vmem [thread:$0]  %s3998_s4, 96, %s37_s26, [#allocation5]  }
  0x18   :  { %3223 = dma.done.wait [#allocation3], 1024  }
  0x19   :  { %3224 = vsyncadd [#allocation3], 4294966272 }
  0x1a   :  { %3225 = dma.done.wait [#allocation5], 96  }
  0x1b   :  { %3226 = vsyncadd [#allocation5], 4294967200  ;;  %v3231_v0 = vmov 0   ;;  %v3283_v1 = vld [vmem:[%s3994_s0 + $0x4] ss:$24 sps:$4 sm:$0xff]   ;;  %s3232_s7 = smov 127  }
  0x1c   :  { %141 = vmatprep.mubr.bf16.mxu0 %v3231_v0  ;;  %182 = vmatprep.mubr.bf16.mxu1 %v3231_v0  ;;  %v3288_v2 = vld [vmem:[%s3994_s0] ss:$24 sps:$4 sm:$0xff]   ;;  %v3302_v4 = vld [vmem:[%s3994_s0 + $0xc] ss:$24 sps:$4 sm:$0xff]   ;;  %v3309_v5 = vld [vmem:[%s3994_s0 + $0x10] ss:$24 sps:$4 sm:$0xff]  }
  0x1d   :  { %3170 = vset.pattern.permute.xlu1 %v3231_v0  ;;  %3171 = vset.pattern.permute.xlu0 %v3231_v0  ;;  %v3295_v3 = vld [vmem:[%s3994_s0 + $0x8] ss:$24 sps:$4 sm:$0xff]   ;;  %v3316_v6 = vld [vmem:[%s3994_s0 + $0x14] ss:$24 sps:$4 sm:$0xff]   ;;  %s3233_s16 = smov 110   ;;  %s3234_s0 = smov 109  }
  0x1e   :  { %83 = vrot.lane.b32.xlu0 %v3283_v1, %s3232_s7  ;;  %81 = vrot.lane.b32.xlu1 %v3288_v2, %s3232_s7  ;;  %s3235_s17 = smov 126   ;;  %s3236_s18 = smov 108   ;;  %vm93_vm0 = vcmask 1039360   ;;  %v56_v13 = vld [vmem:[#allocation2 + $0x4] sm:$0xf]  ;;  %vm105_vm1 = vcmask 130048  }
  0x1f   :  { %s3237_s19 = smov 92   ;;  %s3238_s20 = smov 91   ;;  %vm378_vm2 = vcmask 900096   ;;  %v48_v24 = vld [vmem:[#allocation2] sm:$0xf]  ;;  %vm536_vm3 = vcmask 891904  }
  0x20   :  { %v365_v35 = vld [vmem:[#allocation2 + $0x8] sm:$0xf]  ;;  %vm779_vm4 = vcmask 1031168   ;;  %v523_v47 = vld [vmem:[#allocation2 + $0xc] sm:$0xf]  ;;  %s3239_s21 = smov 90  }
  0x21   :  { %v742_v59 = vld [vmem:[#allocation2 + $0x14] sm:$0xf]  ;;  %vm1237_vm5 = vcmask 883712   ;;  %vm1749_vm6 = vcmask 752640   ;;  %vm1907_vm7 = vcmask 744448   ;;  %vm2576_vm8 = vcmask 736256  }
  0x22   :  { %85 = vrot.lane.b32.xlu0 %v3295_v3, %s3232_s7  ;;  %87 = vrot.lane.b32.xlu1 %v3302_v4, %s3232_s7  ;;  %vm721_vm9 = vcmask 64512  }
  0x26   :  { %89 = vrot.lane.b32.xlu0 %v3309_v5, %s3232_s7  ;;  %91 = vrot.lane.b32.xlu1 %v3316_v6, %s3232_s7 }
  0x2a   :  { %368 = vrot.lane.b32.xlu0 %v3283_v1, %s3233_s16  ;;  %370 = vrot.lane.b32.xlu1 %v3295_v3, %s3233_s16 }
  0x2e   :  { %366 = vrot.lane.b32.xlu0 %v3288_v2, %s3233_s16  ;;  %372 = vrot.lane.b32.xlu1 %v3302_v4, %s3233_s16 }
  0x32   :  { %374 = vrot.lane.b32.xlu0 %v3309_v5, %s3233_s16  ;;  %376 = vrot.lane.b32.xlu1 %v3316_v6, %s3233_s16 }
  0x36   :  { %526 = vrot.lane.b32.xlu0 %v3283_v1, %s3234_s0  ;;  %528 = vrot.lane.b32.xlu1 %v3295_v3, %s3234_s0 }
  0x3a   :  { %524 = vrot.lane.b32.xlu0 %v3288_v2, %s3234_s0  ;;  %530 = vrot.lane.b32.xlu1 %v3302_v4, %s3234_s0 }
  0x3e   :  { %532 = vrot.lane.b32.xlu0 %v3309_v5, %s3234_s0  ;;  %534 = vrot.lane.b32.xlu1 %v3316_v6, %s3234_s0 }
  0x42   :  { %769 = vrot.lane.b32.xlu0 %v3283_v1, %s3235_s17  ;;  %771 = vrot.lane.b32.xlu1 %v3295_v3, %s3235_s17 }
  0x46   :  { %767 = vrot.lane.b32.xlu0 %v3288_v2, %s3235_s17  ;;  %773 = vrot.lane.b32.xlu1 %v3302_v4, %s3235_s17 }
  0x4a   :  { %775 = vrot.lane.b32.xlu0 %v3309_v5, %s3235_s17  ;;  %777 = vrot.lane.b32.xlu1 %v3316_v6, %s3235_s17 }
  0x4e   :  { %919 = vrot.lane.b32.xlu0 %v3283_v1, %s3232_s7  ;;  %921 = vrot.lane.b32.xlu1 %v3295_v3, %s3232_s7 }
  0x52   :  { %917 = vrot.lane.b32.xlu0 %v3288_v2, %s3232_s7  ;;  %923 = vrot.lane.b32.xlu1 %v3302_v4, %s3232_s7 }
  0x56   :  { %925 = vrot.lane.b32.xlu0 %v3309_v5, %s3232_s7  ;;  %927 = vrot.lane.b32.xlu1 %v3316_v6, %s3232_s7 }
  0x5a   :  { %1070 = vrot.lane.b32.xlu0 %v3283_v1, %s3234_s0  ;;  %1072 = vrot.lane.b32.xlu1 %v3295_v3, %s3234_s0 }
  0x5e   :  { %1068 = vrot.lane.b32.xlu0 %v3288_v2, %s3234_s0  ;;  %1074 = vrot.lane.b32.xlu1 %v3302_v4, %s3234_s0 }
  0x62   :  { %1076 = vrot.lane.b32.xlu0 %v3309_v5, %s3234_s0  ;;  %1078 = vrot.lane.b32.xlu1 %v3316_v6, %s3234_s0 }
  0x66   :  { %1227 = vrot.lane.b32.xlu0 %v3283_v1, %s3236_s18  ;;  %1229 = vrot.lane.b32.xlu1 %v3295_v3, %s3236_s18 }
  0x6a   :  { %1225 = vrot.lane.b32.xlu0 %v3288_v2, %s3236_s18  ;;  %1231 = vrot.lane.b32.xlu1 %v3302_v4, %s3236_s18 }
  0x6e   :  { %1233 = vrot.lane.b32.xlu0 %v3309_v5, %s3236_s18  ;;  %1235 = vrot.lane.b32.xlu1 %v3316_v6, %s3236_s18 }
  0x72   :  { %1439 = vrot.lane.b32.xlu0 %v3283_v1, %s3234_s0  ;;  %1441 = vrot.lane.b32.xlu1 %v3295_v3, %s3234_s0 }
  0x76   :  { %1437 = vrot.lane.b32.xlu0 %v3288_v2, %s3234_s0  ;;  %1443 = vrot.lane.b32.xlu1 %v3302_v4, %s3234_s0 }
  0x7a   :  { %1445 = vrot.lane.b32.xlu0 %v3309_v5, %s3234_s0  ;;  %1447 = vrot.lane.b32.xlu1 %v3316_v6, %s3234_s0 }
  0x7e   :  { %1588 = vrot.lane.b32.xlu0 %v3283_v1, %s3233_s16  ;;  %1590 = vrot.lane.b32.xlu1 %v3295_v3, %s3233_s16 }
  0x82   :  { %1586 = vrot.lane.b32.xlu0 %v3288_v2, %s3233_s16  ;;  %1592 = vrot.lane.b32.xlu1 %v3302_v4, %s3233_s16 }
  0x86   :  { %1594 = vrot.lane.b32.xlu0 %v3309_v5, %s3233_s16  ;;  %1596 = vrot.lane.b32.xlu1 %v3316_v6, %s3233_s16 }
  0x8a   :  { %1739 = vrot.lane.b32.xlu0 %v3283_v1, %s3237_s19  ;;  %1741 = vrot.lane.b32.xlu1 %v3295_v3, %s3237_s19 }
  0x8e   :  { %1737 = vrot.lane.b32.xlu0 %v3288_v2, %s3237_s19  ;;  %1743 = vrot.lane.b32.xlu1 %v3302_v4, %s3237_s19 }
  0x90   :  { %v84_v7 = vpop.permute.xlu0 %83  ;;  %v82_v8 = vpop.permute.xlu1 %81 }
  0x91   :  { %v94_v12 = vsel %vm93_vm0, %v82_v8, %v84_v7 }
  0x92   :  { %1745 = vrot.lane.b32.xlu0 %v3309_v5, %s3237_s19  ;;  %1747 = vrot.lane.b32.xlu1 %v3316_v6, %s3237_s19 }
  0x94   :  { %v86_v9 = vpop.permute.xlu0 %85  ;;  %v88_v10 = vpop.permute.xlu1 %87 }
  0x95   :  { %v95_v11 = vsel %vm93_vm0, %v84_v7, %v86_v9  ;;  %v96_v18 = vsel %vm93_vm0, %v86_v9, %v88_v10 }
  0x96   :  { %123 = vmatprep.subr.bf16.mxu0 %v95_v11  ;;  %1897 = vrot.lane.b32.xlu0 %v3283_v1, %s3238_s20 }
  0x97   :  { %124 = vmatpush1.bf16.msra.mxu0 %v94_v12  ;;  %1899 = vrot.lane.b32.xlu1 %v3295_v3, %s3238_s20 }
  0x98   :  { %v90_v14 = vpop.permute.xlu0 %89  ;;  %v92_v15 = vpop.permute.xlu1 %91 }
  0x99   :  { %v97_v16 = vsel %vm93_vm0, %v88_v10, %v90_v14  ;;  %v98_v17 = vsel %vm93_vm0, %v90_v14, %v92_v15  ;;  %205 = vmatprep.subr.bf16.mxu0 %v92_v15 }
  0x9a   :  { %3019 = vmatmul.mubr.msk.bf16.vlgmr.msra.gmra.mxu0 %vm105_vm1, %v56_v13  ;;  %164 = vmatprep.subr.bf16.mxu1 %v97_v16 }
  0x9b   :  { %165 = vmatpush1.bf16.msra.mxu1 %v96_v18  ;;  %206 = vmatpush1.bf16.msra.mxu0 %v98_v17 }
  0x9c   :  { %1895 = vrot.lane.b32.xlu0 %v3288_v2, %s3238_s20  ;;  %v369_v19 = vpop.permute.xlu0 %368  ;;  %255 = vmatprep.subr.bf16.mxu1 %v3283_v1  ;;  %v371_v20 = vpop.permute.xlu1 %370 }
  0x9d   :  { %223 = vmatprep.mubr.bf16.mxu0 %v3231_v0  ;;  %1901 = vrot.lane.b32.xlu1 %v3302_v4, %s3238_s20  ;;  %v380_v22 = vsel %vm378_vm2, %v369_v19, %v371_v20 }
  0x9e   :  { %3020 = vmatmul.mubr.msk.bf16.vlgmr.msra.gmra.mxu1 %vm105_vm1, %v56_v13  ;;  %296 = vmatprep.subr.bf16.mxu0 %v3302_v4 }
  0x9f   :  { %256 = vmatpush1.bf16.msra.mxu1 %v3288_v2  ;;  %273 = vmatprep.mubr.bf16.mxu1 %v3231_v0 }
  0xa0   :  { %1903 = vrot.lane.b32.xlu0 %v3309_v5, %s3238_s20  ;;  %v367_v21 = vpop.permute.xlu0 %366  ;;  %337 = vmatprep.subr.bf16.mxu1 %v3316_v6  ;;  %v373_v23 = vpop.permute.xlu1 %372 }
  0xa1   :  { %1905 = vrot.lane.b32.xlu1 %v3316_v6, %s3238_s20  ;;  %v379_v28 = vsel %vm378_vm2, %v367_v21, %v369_v19  ;;  %v381_v31 = vsel %vm378_vm2, %v371_v20, %v373_v23  ;;  %v1067_v20 = vld [vmem:[#allocation2 + $0x18] sm:$0xf] }
  0xa2   :  { %3021 = vmatmul.mubr.msk.bf16.vlgmr.msra.gmra.mxu0 %vm105_vm1, %v56_v13 }
  0xa3   :  { %297 = vmatpush1.bf16.msra.mxu0 %v3295_v3  ;;  %314 = vmatprep.mubr.bf16.mxu0 %v3231_v0 }
  0xa4   :  { %2109 = vrot.lane.b32.xlu0 %v3283_v1, %s3236_s18  ;;  %407 = vmatprep.subr.bf16.mxu0 %v380_v22  ;;  %v375_v25 = vpop.permute.xlu0 %374  ;;  %v377_v26 = vpop.permute.xlu1 %376 }
  0xa5   :  { %v382_v27 = vsel %vm378_vm2, %v373_v23, %v375_v25  ;;  %2111 = vrot.lane.b32.xlu1 %v3295_v3, %s3236_s18  ;;  %v383_v36 = vsel %vm378_vm2, %v375_v25, %v377_v26 }
  0xa6   :  { %3022 = vmatmul.mubr.msk.bf16.vlgmr.msra.gmra.mxu1 %vm105_vm1, %v48_v24 }
  0xa7   :  { %338 = vmatpush1.bf16.msra.mxu1 %v3309_v5  ;;  %355 = vmatprep.mubr.bf16.mxu1 %v3231_v0 }
  0xa8   :  { %2107 = vrot.lane.b32.xlu0 %v3288_v2, %s3236_s18  ;;  %v527_v29 = vpop.permute.xlu0 %526  ;;  %448 = vmatprep.subr.bf16.mxu1 %v382_v27  ;;  %v529_v30 = vpop.permute.xlu1 %528 }
  0xa9   :  { %2113 = vrot.lane.b32.xlu1 %v3302_v4, %s3236_s18  ;;  %v538_v33 = vsel %vm536_vm3, %v527_v29, %v529_v30 }
  0xaa   :  { %3023 = vmatmul.mubr.msk.bf16.vlgmr.msra.gmra.mxu0 %vm105_vm1, %v48_v24 }
  0xab   :  { %408 = vmatpush1.bf16.msra.mxu0 %v379_v28  ;;  %425 = vmatprep.mubr.bf16.mxu0 %v3231_v0 }
  0xac   :  { %2115 = vrot.lane.b32.xlu0 %v3309_v5, %s3236_s18  ;;  %v525_v32 = vpop.permute.xlu0 %524  ;;  %489 = vmatprep.subr.bf16.mxu0 %v377_v26  ;;  %v531_v34 = vpop.permute.xlu1 %530 }
  0xad   :  { %2117 = vrot.lane.b32.xlu1 %v3316_v6, %s3236_s18  ;;  %v537_v40 = vsel %vm536_vm3, %v525_v32, %v527_v29  ;;  %v539_v43 = vsel %vm536_vm3, %v529_v30, %v531_v34  ;;  %v1224_v32 = vld [vmem:[#allocation2 + $0x1c] sm:$0xf] }
  0xae   :  { %3024 = vmatmul.mubr.msk.bf16.vlgmr.msra.gmra.mxu1 %vm105_vm1, %v48_v24 }
  0xaf   :  { %449 = vmatpush1.bf16.msra.mxu1 %v381_v31  ;;  %466 = vmatprep.mubr.bf16.mxu1 %v3231_v0 }
  0xb0   :  { %2258 = vrot.lane.b32.xlu0 %v3283_v1, %s3234_s0  ;;  %565 = vmatprep.subr.bf16.mxu1 %v538_v33  ;;  %v533_v37 = vpop.permute.xlu0 %532  ;;  %v535_v38 = vpop.permute.xlu1 %534 }
  0xb1   :  { %v540_v39 = vsel %vm536_vm3, %v531_v34, %v533_v37  ;;  %2260 = vrot.lane.b32.xlu1 %v3295_v3, %s3234_s0  ;;  %v541_v48 = vsel %vm536_vm3, %v533_v37, %v535_v38 }
  0xb2   :  { %3025 = vmatmul.mubr.msk.bf16.vlgmr.msra.gmra.mxu0 %vm105_vm1, %v365_v35 }
  0xb3   :  { %490 = vmatpush1.bf16.msra.mxu0 %v383_v36  ;;  %507 = vmatprep.mubr.bf16.mxu0 %v3231_v0 }
  0xb4   :  { %2256 = vrot.lane.b32.xlu0 %v3288_v2, %s3234_s0  ;;  %v770_v41 = vpop.permute.xlu0 %769  ;;  %606 = vmatprep.subr.bf16.mxu0 %v540_v39  ;;  %v772_v42 = vpop.permute.xlu1 %771 }
  0xb5   :  { %2262 = vrot.lane.b32.xlu1 %v3302_v4, %s3234_s0  ;;  %v781_v45 = vsel %vm779_vm4, %v770_v41, %v772_v42 }
  0xb6   :  { %3026 = vmatmul.mubr.msk.bf16.vlgmr.msra.gmra.mxu1 %vm105_vm1, %v365_v35 }
  0xb7   :  { %566 = vmatpush1.bf16.msra.mxu1 %v537_v40  ;;  %583 = vmatprep.mubr.bf16.mxu1 %v3231_v0 }
  0xb8   :  { %2264 = vrot.lane.b32.xlu0 %v3309_v5, %s3234_s0  ;;  %v768_v44 = vpop.permute.xlu0 %767  ;;  %647 = vmatprep.subr.bf16.mxu1 %v535_v38  ;;  %v774_v46 = vpop.permute.xlu1 %773 }
  0xb9   :  { %2266 = vrot.lane.b32.xlu1 %v3316_v6, %s3234_s0  ;;  %v780_v52 = vsel %vm779_vm4, %v768_v44, %v770_v41  ;;  %v782_v55 = vsel %vm779_vm4, %v772_v42, %v774_v46  ;;  %v1412_v44 = vld [vmem:[#allocation2 + $0x24] sm:$0xf] }
  0xba   :  { %3027 = vmatmul.mubr.msk.bf16.vlgmr.msra.gmra.mxu0 %vm105_vm1, %v365_v35 }
  0xbb   :  { %607 = vmatpush1.bf16.msra.mxu0 %v539_v43  ;;  %624 = vmatprep.mubr.bf16.mxu0 %v3231_v0 }
  0xbc   :  { %2409 = vrot.lane.b32.xlu0 %v3283_v1, %s3238_s20  ;;  %808 = vmatprep.subr.bf16.mxu0 %v781_v45  ;;  %v776_v49 = vpop.permute.xlu0 %775  ;;  %v778_v50 = vpop.permute.xlu1 %777 }
  0xbd   :  { %v783_v51 = vsel %vm779_vm4, %v774_v46, %v776_v49  ;;  %2411 = vrot.lane.b32.xlu1 %v3295_v3, %s3238_s20  ;;  %v784_v60 = vsel %vm779_vm4, %v776_v49, %v778_v50 }
  0xbe   :  { %3028 = vmatmul.mubr.msk.bf16.vlgmr.msra.gmra.mxu1 %vm105_vm1, %v523_v47 }
  0xbf   :  { %648 = vmatpush1.bf16.msra.mxu1 %v541_v48  ;;  %665 = vmatprep.mubr.bf16.mxu1 %v3231_v0 }
  0xc0   :  { %2407 = vrot.lane.b32.xlu0 %v3288_v2, %s3238_s20  ;;  %v920_v53 = vpop.permute.xlu0 %919  ;;  %849 = vmatprep.subr.bf16.mxu1 %v783_v51  ;;  %v922_v54 = vpop.permute.xlu1 %921 }
  0xc1   :  { %2413 = vrot.lane.b32.xlu1 %v3302_v4, %s3238_s20  ;;  %v930_v57 = vsel %vm93_vm0, %v920_v53, %v922_v54 }
  0xc2   :  { %3029 = vmatmul.mubr.msk.bf16.vlgmr.msra.gmra.mxu0 %vm105_vm1, %v523_v47 }
  0xc3   :  { %809 = vmatpush1.bf16.msra.mxu0 %v780_v52  ;;  %826 = vmatprep.mubr.bf16.mxu0 %v3231_v0 }
  0xc4   :  { %2415 = vrot.lane.b32.xlu0 %v3309_v5, %s3238_s20  ;;  %v918_v56 = vpop.permute.xlu0 %917  ;;  %890 = vmatprep.subr.bf16.mxu0 %v778_v50  ;;  %v924_v58 = vpop.permute.xlu1 %923 }
  0xc5   :  { %2417 = vrot.lane.b32.xlu1 %v3316_v6, %s3238_s20  ;;  %v929_v7 = vsel %vm93_vm0, %v918_v56, %v920_v53  ;;  %v1404_v56 = vld [vmem:[#allocation2 + $0x20] sm:$0xf] }
  0xc6   :  { %3030 = vmatmul.mubr.msk.bf16.vlgmr.msra.gmra.mxu1 %vm105_vm1, %v523_v47 }
  0xc7   :  { %850 = vmatpush1.bf16.msra.mxu1 %v782_v55  ;;  %867 = vmatprep.mubr.bf16.mxu1 %v3231_v0 }
  0xc8   :  { %957 = vmatprep.subr.bf16.mxu1 %v930_v57  ;;  %2566 = vrot.lane.b32.xlu0 %v3283_v1, %s3239_s21  ;;  %v926_v61 = vpop.permute.xlu0 %925  ;;  %v928_v62 = vpop.permute.xlu1 %927  ;;  %v931_v1 = vsel %vm93_vm0, %v922_v54, %v924_v58 }
  0xc9   :  { %v932_v63 = vsel %vm93_vm0, %v924_v58, %v926_v61  ;;  %2568 = vrot.lane.b32.xlu1 %v3295_v3, %s3239_s21 }
  0xca   :  { %3037 = vmatmul.mubr.msk.bf16.vlgmr.msra.gmra.mxu0 %vm105_vm1, %v742_v59 }
  0xcb   :  { %891 = vmatpush1.bf16.msra.mxu0 %v784_v60  ;;  %908 = vmatprep.mubr.bf16.mxu0 %v3231_v0 }
  0xcc   :  { %2564 = vrot.lane.b32.xlu0 %v3288_v2, %s3239_s21  ;;  %v1071_v8 = vpop.permute.xlu0 %1070  ;;  %998 = vmatprep.subr.bf16.mxu0 %v932_v63  ;;  %v1073_v9 = vpop.permute.xlu1 %1072  ;;  %v734_v2 = vld [vmem:[#allocation2 + $0x10] sm:$0xf] }
  0xcd   :  { %2570 = vrot.lane.b32.xlu1 %v3302_v4, %s3239_s21  ;;  %v1081_v10 = vsel %vm536_vm3, %v1071_v8, %v1073_v9  ;;  %v933_v4 = vsel %vm93_vm0, %v926_v61, %v928_v62 }
  0xce   :  { %3038 = vmatmul.mubr.msk.bf16.vlgmr.msra.gmra.mxu1 %vm105_vm1, %v742_v59 }
  0xcf   :  { %958 = vmatpush1.bf16.msra.mxu1 %v929_v7  ;;  %975 = vmatprep.mubr.bf16.mxu1 %v3231_v0 }
  0xd0   :  { %v1069_v3 = vpop.permute.xlu0 %1068  ;;  %2572 = vrot.lane.b32.xlu0 %v3309_v5, %s3239_s21  ;;  %1039 = vmatprep.subr.bf16.mxu1 %v928_v62  ;;  %v1075_v11 = vpop.permute.xlu1 %1074 }
  0xd1   :  { %2574 = vrot.lane.b32.xlu1 %v3316_v6, %s3239_s21  ;;  %v1080_v5 = vsel %vm536_vm3, %v1069_v3, %v1071_v8  ;;  %v1082_v16 = vsel %vm536_vm3, %v1073_v9, %v1075_v11 }
  0xd2   :  { %3039 = vmatmul.mubr.msk.bf16.vlgmr.msra.gmra.mxu0 %vm105_vm1, %v742_v59 }
  0xd3   :  { %999 = vmatpush1.bf16.msra.mxu0 %v931_v1  ;;  %1016 = vmatprep.mubr.bf16.mxu0 %v3231_v0  ;;  %v1736_v1 = vld [vmem:[#allocation2 + $0x28] sm:$0xf] }
  0xd4   :  { %1108 = vmatprep.subr.bf16.mxu0 %v1081_v10  ;;  %v1077_v12 = vpop.permute.xlu0 %1076  ;;  %v1079_v13 = vpop.permute.xlu1 %1078 }
  0xd5   :  { %v1083_v14 = vsel %vm536_vm3, %v1075_v11, %v1077_v12  ;;  %v1084_v21 = vsel %vm536_vm3, %v1077_v12, %v1079_v13 }
  0xd6   :  { %3040 = vmatmul.mubr.msk.bf16.vlgmr.msra.gmra.mxu1 %vm105_vm1, %v734_v2 }
  0xd7   :  { %1040 = vmatpush1.bf16.msra.mxu1 %v933_v4  ;;  %1057 = vmatprep.mubr.bf16.mxu1 %v3231_v0 }
  0xd8   :  { %v1228_v15 = vpop.permute.xlu0 %1227  ;;  %1149 = vmatprep.subr.bf16.mxu1 %v1083_v14  ;;  %v1230_v6 = vpop.permute.xlu1 %1229 }
  0xd9   :  { %v1239_v18 = vsel %vm1237_vm5, %v1228_v15, %v1230_v6 }
  0xda   :  { %3041 = vmatmul.mubr.msk.bf16.vlgmr.msra.gmra.mxu0 %vm105_vm1, %v734_v2 }
  0xdb   :  { %1109 = vmatpush1.bf16.msra.mxu0 %v1080_v5  ;;  %1126 = vmatprep.mubr.bf16.mxu0 %v3231_v0 }
  0xdc   :  { %v1226_v17 = vpop.permute.xlu0 %1225  ;;  %1190 = vmatprep.subr.bf16.mxu0 %v1079_v13  ;;  %v1232_v19 = vpop.permute.xlu1 %1231 }
  0xdd   :  { %v1238_v25 = vsel %vm1237_vm5, %v1226_v17, %v1228_v15  ;;  %v1240_v28 = vsel %vm1237_vm5, %v1230_v6, %v1232_v19 }
  0xde   :  { %3042 = vmatmul.mubr.msk.bf16.vlgmr.msra.gmra.mxu1 %vm105_vm1, %v734_v2 }
  0xdf   :  { %1150 = vmatpush1.bf16.msra.mxu1 %v1082_v16  ;;  %1167 = vmatprep.mubr.bf16.mxu1 %v3231_v0  ;;  %v1894_v16 = vld [vmem:[#allocation2 + $0x2c] sm:$0xf] }
  0xe0   :  { %1266 = vmatprep.subr.bf16.mxu1 %v1239_v18  ;;  %v1234_v22 = vpop.permute.xlu0 %1233  ;;  %v1236_v23 = vpop.permute.xlu1 %1235 }
  0xe1   :  { %v1241_v24 = vsel %vm1237_vm5, %v1232_v19, %v1234_v22  ;;  %v1242_v33 = vsel %vm1237_vm5, %v1234_v22, %v1236_v23 }
  0xe2   :  { %3043 = vmatmul.mubr.msk.bf16.vlgmr.msra.gmra.mxu0 %vm105_vm1, %v1067_v20 }
  0xe3   :  { %1191 = vmatpush1.bf16.msra.mxu0 %v1084_v21  ;;  %1208 = vmatprep.mubr.bf16.mxu0 %v3231_v0 }
  0xe4   :  { %v1440_v26 = vpop.permute.xlu0 %1439  ;;  %1307 = vmatprep.subr.bf16.mxu0 %v1241_v24  ;;  %v1442_v27 = vpop.permute.xlu1 %1441 }
  0xe5   :  { %v1450_v30 = vsel %vm536_vm3, %v1440_v26, %v1442_v27 }
  0xe6   :  { %3044 = vmatmul.mubr.msk.bf16.vlgmr.msra.gmra.mxu1 %vm105_vm1, %v1067_v20 }
  0xe7   :  { %1267 = vmatpush1.bf16.msra.mxu1 %v1238_v25  ;;  %1284 = vmatprep.mubr.bf16.mxu1 %v3231_v0 }
  0xe8   :  { %v1438_v29 = vpop.permute.xlu0 %1437  ;;  %1348 = vmatprep.subr.bf16.mxu1 %v1236_v23  ;;  %v1444_v31 = vpop.permute.xlu1 %1443 }
  0xe9   :  { %v1449_v37 = vsel %vm536_vm3, %v1438_v29, %v1440_v26  ;;  %v1451_v40 = vsel %vm536_vm3, %v1442_v27, %v1444_v31 }
  0xea   :  { %3045 = vmatmul.mubr.msk.bf16.vlgmr.msra.gmra.mxu0 %vm105_vm1, %v1067_v20 }
  0xeb   :  { %1308 = vmatpush1.bf16.msra.mxu0 %v1240_v28  ;;  %1325 = vmatprep.mubr.bf16.mxu0 %v3231_v0  ;;  %v2082_v28 = vld [vmem:[#allocation2 + $0x34] sm:$0xf] }
  0xec   :  { %1477 = vmatprep.subr.bf16.mxu0 %v1450_v30  ;;  %v1446_v34 = vpop.permute.xlu0 %1445  ;;  %v1448_v35 = vpop.permute.xlu1 %1447 }
  0xed   :  { %v1452_v36 = vsel %vm536_vm3, %v1444_v31, %v1446_v34  ;;  %v1453_v45 = vsel %vm536_vm3, %v1446_v34, %v1448_v35 }
  0xee   :  { %3046 = vmatmul.mubr.msk.bf16.vlgmr.msra.gmra.mxu1 %vm105_vm1, %v1224_v32 }
  0xef   :  { %1349 = vmatpush1.bf16.msra.mxu1 %v1242_v33  ;;  %1366 = vmatprep.mubr.bf16.mxu1 %v3231_v0 }
  0xf0   :  { %v1589_v38 = vpop.permute.xlu0 %1588  ;;  %1518 = vmatprep.subr.bf16.mxu1 %v1452_v36  ;;  %v1591_v39 = vpop.permute.xlu1 %1590 }
  0xf1   :  { %v1599_v42 = vsel %vm378_vm2, %v1589_v38, %v1591_v39 }
  0xf2   :  { %3047 = vmatmul.mubr.msk.bf16.vlgmr.msra.gmra.mxu0 %vm105_vm1, %v1224_v32 }
  0xf3   :  { %1478 = vmatpush1.bf16.msra.mxu0 %v1449_v37  ;;  %1495 = vmatprep.mubr.bf16.mxu0 %v3231_v0 }
  0xf4   :  { %v1587_v41 = vpop.permute.xlu0 %1586  ;;  %1559 = vmatprep.subr.bf16.mxu0 %v1448_v35  ;;  %v1593_v43 = vpop.permute.xlu1 %1592 }
  0xf5   :  { %v1598_v49 = vsel %vm378_vm2, %v1587_v41, %v1589_v38  ;;  %v1600_v52 = vsel %vm378_vm2, %v1591_v39, %v1593_v43 }
  0xf6   :  { %3048 = vmatmul.mubr.msk.bf16.vlgmr.msra.gmra.mxu1 %vm105_vm1, %v1224_v32 }
  0xf7   :  { %1519 = vmatpush1.bf16.msra.mxu1 %v1451_v40  ;;  %1536 = vmatprep.mubr.bf16.mxu1 %v3231_v0  ;;  %v2074_v40 = vld [vmem:[#allocation2 + $0x30] sm:$0xf] }
  0xf8   :  { %1626 = vmatprep.subr.bf16.mxu1 %v1599_v42  ;;  %v1595_v46 = vpop.permute.xlu0 %1594  ;;  %v1597_v47 = vpop.permute.xlu1 %1596 }
  0xf9   :  { %v1601_v48 = vsel %vm378_vm2, %v1593_v43, %v1595_v46  ;;  %v1602_v57 = vsel %vm378_vm2, %v1595_v46, %v1597_v47 }
  0xfa   :  { %3061 = vmatmul.mubr.msk.bf16.vlgmr.msra.gmra.mxu0 %vm105_vm1, %v1412_v44 }
  0xfb   :  { %1560 = vmatpush1.bf16.msra.mxu0 %v1453_v45  ;;  %1577 = vmatprep.mubr.bf16.mxu0 %v3231_v0 }
  0xfc   :  { %v1740_v50 = vpop.permute.xlu0 %1739  ;;  %1667 = vmatprep.subr.bf16.mxu0 %v1601_v48  ;;  %v1742_v51 = vpop.permute.xlu1 %1741 }
  0xfd   :  { %v1751_v54 = vsel %vm1749_vm6, %v1740_v50, %v1742_v51 }
  0xfe   :  { %3062 = vmatmul.mubr.msk.bf16.vlgmr.msra.gmra.mxu1 %vm105_vm1, %v1412_v44 }
  0xff   :  { %1627 = vmatpush1.bf16.msra.mxu1 %v1598_v49  ;;  %1644 = vmatprep.mubr.bf16.mxu1 %v3231_v0 }
 0x100   :  { %v1738_v53 = vpop.permute.xlu0 %1737  ;;  %1708 = vmatprep.subr.bf16.mxu1 %v1597_v47  ;;  %v1744_v55 = vpop.permute.xlu1 %1743 }
 0x101   :  { %v1750_v61 = vsel %vm1749_vm6, %v1738_v53, %v1740_v50  ;;  %v1752_v7 = vsel %vm1749_vm6, %v1742_v51, %v1744_v55 }
 0x102   :  { %3063 = vmatmul.mubr.msk.bf16.vlgmr.msra.gmra.mxu0 %vm105_vm1, %v1412_v44 }
 0x103   :  { %1668 = vmatpush1.bf16.msra.mxu0 %v1600_v52  ;;  %1685 = vmatprep.mubr.bf16.mxu0 %v3231_v0  ;;  %v2406_v52 = vld [vmem:[#allocation2 + $0x38] sm:$0xf] }
 0x104   :  { %1778 = vmatprep.subr.bf16.mxu0 %v1751_v54  ;;  %v1746_v58 = vpop.permute.xlu0 %1745  ;;  %v1748_v59 = vpop.permute.xlu1 %1747 }
 0x105   :  { %v1753_v60 = vsel %vm1749_vm6, %v1744_v55, %v1746_v58  ;;  %v1754_v3 = vsel %vm1749_vm6, %v1746_v58, %v1748_v59 }
 0x106   :  { %3064 = vmatmul.mubr.msk.bf16.vlgmr.msra.gmra.mxu1 %vm105_vm1, %v1404_v56 }
 0x107   :  { %1709 = vmatpush1.bf16.msra.mxu1 %v1602_v57  ;;  %1726 = vmatprep.mubr.bf16.mxu1 %v3231_v0 }
 0x108   :  { %v1898_v62 = vpop.permute.xlu0 %1897  ;;  %1819 = vmatprep.subr.bf16.mxu1 %v1753_v60  ;;  %v2563_v60 = vld [vmem:[#allocation2 + $0x3c] sm:$0xf] }
 0x109   :  { %v1900_v63 = vpop.permute.xlu1 %1899 }
 0x10a   :  { %3065 = vmatmul.mubr.msk.bf16.vlgmr.msra.gmra.mxu0 %vm105_vm1, %v1404_v56  ;;  %v1909_v8 = vsel %vm1907_vm7, %v1898_v62, %v1900_v63 }
 0x10b   :  { %1779 = vmatpush1.bf16.msra.mxu0 %v1750_v61  ;;  %1796 = vmatprep.mubr.bf16.mxu0 %v3231_v0 }
 0x10c   :  { %1860 = vmatprep.subr.bf16.mxu0 %v1748_v59 }
 0x10e   :  { %3066 = vmatmul.mubr.msk.bf16.vlgmr.msra.gmra.mxu1 %vm105_vm1, %v1404_v56  ;;  %v1896_v9 = vpop.permute.xlu0 %1895 }
 0x10f   :  { %1820 = vmatpush1.bf16.msra.mxu1 %v1752_v7  ;;  %1837 = vmatprep.mubr.bf16.mxu1 %v3231_v0  ;;  %v1902_v10 = vpop.permute.xlu1 %1901  ;;  %v1908_v4 = vsel %vm1907_vm7, %v1896_v9, %v1898_v62 }
 0x110   :  { %1936 = vmatprep.subr.bf16.mxu1 %v1909_v8  ;;  %v1910_v14 = vsel %vm1907_vm7, %v1900_v63, %v1902_v10 }
 0x112   :  { %3067 = vmatmul.mubr.msk.bf16.vlgmr.msra.gmra.mxu0 %vm105_vm1, %v1736_v1  ;;  %v1904_v11 = vpop.permute.xlu0 %1903 }
 0x113   :  { %1861 = vmatpush1.bf16.msra.mxu0 %v1754_v3  ;;  %1878 = vmatprep.mubr.bf16.mxu0 %v3231_v0  ;;  %v1911_v2 = vsel %vm1907_vm7, %v1902_v10, %v1904_v11  ;;  %v1906_v12 = vpop.permute.xlu1 %1905 }
 0x114   :  { %1977 = vmatprep.subr.bf16.mxu0 %v1911_v2  ;;  %v1912_v17 = vsel %vm1907_vm7, %v1904_v11, %v1906_v12 }
 0x116   :  { %3068 = vmatmul.mubr.msk.bf16.vlgmr.msra.gmra.mxu1 %vm105_vm1, %v1736_v1  ;;  %v2110_v13 = vpop.permute.xlu0 %2109 }
 0x117   :  { %1937 = vmatpush1.bf16.msra.mxu1 %v1908_v4  ;;  %1954 = vmatprep.mubr.bf16.mxu1 %v3231_v0  ;;  %v2112_v5 = vpop.permute.xlu1 %2111 }
 0x118   :  { %2018 = vmatprep.subr.bf16.mxu1 %v1906_v12  ;;  %v2120_v15 = vsel %vm1237_vm5, %v2110_v13, %v2112_v5 }
 0x11a   :  { %3069 = vmatmul.mubr.msk.bf16.vlgmr.msra.gmra.mxu0 %vm105_vm1, %v1736_v1  ;;  %v2108_v6 = vpop.permute.xlu0 %2107 }
 0x11b   :  { %1978 = vmatpush1.bf16.msra.mxu0 %v1910_v14  ;;  %1995 = vmatprep.mubr.bf16.mxu0 %v3231_v0  ;;  %v2114_v18 = vpop.permute.xlu1 %2113  ;;  %v2119_v21 = vsel %vm1237_vm5, %v2108_v6, %v2110_v13 }
 0x11c   :  { %2147 = vmatprep.subr.bf16.mxu0 %v2120_v15  ;;  %v2121_v24 = vsel %vm1237_vm5, %v2112_v5, %v2114_v18 }
 0x11e   :  { %3070 = vmatmul.mubr.msk.bf16.vlgmr.msra.gmra.mxu1 %vm105_vm1, %v1894_v16  ;;  %v2116_v19 = vpop.permute.xlu0 %2115 }
 0x11f   :  { %2019 = vmatpush1.bf16.msra.mxu1 %v1912_v17  ;;  %2036 = vmatprep.mubr.bf16.mxu1 %v3231_v0  ;;  %v2122_v20 = vsel %vm1237_vm5, %v2114_v18, %v2116_v19  ;;  %v2118_v22 = vpop.permute.xlu1 %2117 }
 0x120   :  { %2188 = vmatprep.subr.bf16.mxu1 %v2122_v20  ;;  %v2123_v29 = vsel %vm1237_vm5, %v2116_v19, %v2118_v22 }
 0x122   :  { %3071 = vmatmul.mubr.msk.bf16.vlgmr.msra.gmra.mxu0 %vm105_vm1, %v1894_v16  ;;  %v2259_v23 = vpop.permute.xlu0 %2258 }
 0x123   :  { %2148 = vmatpush1.bf16.msra.mxu0 %v2119_v21  ;;  %2165 = vmatprep.mubr.bf16.mxu0 %v3231_v0  ;;  %v2261_v25 = vpop.permute.xlu1 %2260 }
 0x124   :  { %2229 = vmatprep.subr.bf16.mxu0 %v2118_v22  ;;  %v2269_v26 = vsel %vm536_vm3, %v2259_v23, %v2261_v25  ;;  %v681_v22 = vlaneseq }
 0x126   :  { %3072 = vmatmul.mubr.msk.bf16.vlgmr.msra.gmra.mxu1 %vm105_vm1, %v1894_v16  ;;  %v2257_v27 = vpop.permute.xlu0 %2256 }
 0x127   :  { %2189 = vmatpush1.bf16.msra.mxu1 %v2121_v24  ;;  %2206 = vmatprep.mubr.bf16.mxu1 %v3231_v0  ;;  %v2263_v30 = vpop.permute.xlu1 %2262  ;;  %v2268_v33 = vsel %vm536_vm3, %v2257_v27, %v2259_v23  ;;  %v682_v27 = vshrl.u32 %v681_v22, 7 }
 0x128   :  { %2296 = vmatprep.subr.bf16.mxu1 %v2269_v26  ;;  %v2270_v36 = vsel %vm536_vm3, %v2261_v25, %v2263_v30 }
 0x12a   :  { %3085 = vmatmul.mubr.msk.bf16.vlgmr.msra.gmra.mxu0 %vm105_vm1, %v2082_v28  ;;  %v2265_v31 = vpop.permute.xlu0 %2264 }
 0x12b   :  { %2230 = vmatpush1.bf16.msra.mxu0 %v2123_v29  ;;  %2247 = vmatprep.mubr.bf16.mxu0 %v3231_v0  ;;  %v2271_v32 = vsel %vm536_vm3, %v2263_v30, %v2265_v31  ;;  %v2267_v34 = vpop.permute.xlu1 %2266 }
 0x12c   :  { %2337 = vmatprep.subr.bf16.mxu0 %v2271_v32  ;;  %v2272_v41 = vsel %vm536_vm3, %v2265_v31, %v2267_v34  ;;  %v683_v32 = vsub.s32 0, %v682_v27 }
 0x12e   :  { %3086 = vmatmul.mubr.msk.bf16.vlgmr.msra.gmra.mxu1 %vm105_vm1, %v2082_v28  ;;  %v2410_v35 = vpop.permute.xlu0 %2409 }
 0x12f   :  { %2297 = vmatpush1.bf16.msra.mxu1 %v2268_v33  ;;  %2314 = vmatprep.mubr.bf16.mxu1 %v3231_v0  ;;  %v2412_v37 = vpop.permute.xlu1 %2411 }
 0x130   :  { %2378 = vmatprep.subr.bf16.mxu1 %v2267_v34  ;;  %v2420_v38 = vsel %vm1907_vm7, %v2410_v35, %v2412_v37  ;;  %v47_v34 = vld [vmem:[#allocation4] sm:$0x3f] }
 0x132   :  { %3087 = vmatmul.mubr.msk.bf16.vlgmr.msra.gmra.mxu0 %vm105_vm1, %v2082_v28  ;;  %v2408_v39 = vpop.permute.xlu0 %2407 }
 0x133   :  { %2338 = vmatpush1.bf16.msra.mxu0 %v2270_v36  ;;  %2355 = vmatprep.mubr.bf16.mxu0 %v3231_v0  ;;  %v2414_v42 = vpop.permute.xlu1 %2413  ;;  %v2419_v45 = vsel %vm1907_vm7, %v2408_v39, %v2410_v35  ;;  %v687_v35 = vsub.s32 1, %v682_v27 }
 0x134   :  { %2447 = vmatprep.subr.bf16.mxu0 %v2420_v38  ;;  %v2421_v48 = vsel %vm1907_vm7, %v2412_v37, %v2414_v42 }
 0x136   :  { %3088 = vmatmul.mubr.msk.bf16.vlgmr.msra.gmra.mxu1 %vm105_vm1, %v2074_v40  ;;  %v2416_v43 = vpop.permute.xlu0 %2415 }
 0x137   :  { %2379 = vmatpush1.bf16.msra.mxu1 %v2272_v41  ;;  %2396 = vmatprep.mubr.bf16.mxu1 %v3231_v0  ;;  %v2422_v44 = vsel %vm1907_vm7, %v2414_v42, %v2416_v43  ;;  %v2418_v46 = vpop.permute.xlu1 %2417 }
 0x138   :  { %2488 = vmatprep.subr.bf16.mxu1 %v2422_v44  ;;  %v2423_v53 = vsel %vm1907_vm7, %v2416_v43, %v2418_v46  ;;  %v3647_v43 = vrot.slane %v47_v34, %v683_v32  ;;  %v695_v44 = vsub.s32 3, %v682_v27 }
 0x13a   :  { %3089 = vmatmul.mubr.msk.bf16.vlgmr.msra.gmra.mxu0 %vm105_vm1, %v2074_v40  ;;  %v2567_v47 = vpop.permute.xlu0 %2566 }
 0x13b   :  { %2448 = vmatpush1.bf16.msra.mxu0 %v2419_v45  ;;  %2465 = vmatprep.mubr.bf16.mxu0 %v3231_v0  ;;  %v2569_v49 = vpop.permute.xlu1 %2568 }
 0x13c   :  { %2529 = vmatprep.subr.bf16.mxu0 %v2418_v46  ;;  %v2578_v50 = vsel %vm2576_vm8, %v2567_v47, %v2569_v49 }
 0x13e   :  { %3090 = vmatmul.mubr.msk.bf16.vlgmr.msra.gmra.mxu1 %vm105_vm1, %v2074_v40  ;;  %v2565_v51 = vpop.permute.xlu0 %2564  ;;  %v691_v40 = vsub.s32 2, %v682_v27 }
 0x13f   :  { %2489 = vmatpush1.bf16.msra.mxu1 %v2421_v48  ;;  %2506 = vmatprep.mubr.bf16.mxu1 %v3231_v0  ;;  %v2571_v54 = vpop.permute.xlu1 %2570  ;;  %v2577_v57 = vsel %vm2576_vm8, %v2565_v51, %v2567_v47  ;;  %v3651_v48 = vrot.slane %v47_v34, %v687_v35  ;;  %v699_v51 = vsub.s32 4, %v682_v27 }
 0x140   :  { %2605 = vmatprep.subr.bf16.mxu1 %v2578_v50  ;;  %v2579_v59 = vsel %vm2576_vm8, %v2569_v49, %v2571_v54 }
 0x142   :  { %3091 = vmatmul.mubr.msk.bf16.vlgmr.msra.gmra.mxu0 %vm105_vm1, %v2406_v52  ;;  %v2573_v55 = vpop.permute.xlu0 %2572 }
 0x143   :  { %2530 = vmatpush1.bf16.msra.mxu0 %v2423_v53  ;;  %2547 = vmatprep.mubr.bf16.mxu0 %v3231_v0  ;;  %v2580_v56 = vsel %vm2576_vm8, %v2571_v54, %v2573_v55  ;;  %v2575_v58 = vpop.permute.xlu1 %2574 }
 0x144   :  { %2646 = vmatprep.subr.bf16.mxu0 %v2580_v56  ;;  %v2581_v61 = vsel %vm2576_vm8, %v2573_v55, %v2575_v58  ;;  %v3655_v55 = vrot.slane %v47_v34, %v691_v40 }
 0x146   :  { %3092 = vmatmul.mubr.msk.bf16.vlgmr.msra.gmra.mxu1 %vm105_vm1, %v2406_v52 }
 0x147   :  { %2606 = vmatpush1.bf16.msra.mxu1 %v2577_v57  ;;  %2623 = vmatprep.mubr.bf16.mxu1 %v3231_v0 }
 0x148   :  { %2687 = vmatprep.subr.bf16.mxu1 %v2575_v58 }
 0x14a   :  { %3093 = vmatmul.mubr.msk.bf16.vlgmr.msra.gmra.mxu0 %vm105_vm1, %v2406_v52 }
 0x14b   :  { %2647 = vmatpush1.bf16.msra.mxu0 %v2579_v59  ;;  %2664 = vmatprep.mubr.bf16.mxu0 %v3231_v0  ;;  %v3657_v59 = vrot.slane %v47_v34, %v695_v44 }
 0x14e   :  { %3094 = vmatmul.mubr.msk.bf16.vlgmr.msra.gmra.mxu1 %vm105_vm1, %v2563_v60 }
 0x14f   :  { %2688 = vmatpush1.bf16.msra.mxu1 %v2581_v61  ;;  %2705 = vmatprep.mubr.bf16.mxu1 %v3231_v0 }
 0x152   :  { %3095 = vmatmul.mubr.msk.bf16.vlgmr.msra.gmra.mxu0 %vm105_vm1, %v2563_v60 }
 0x156   :  { %3096 = vmatmul.mubr.msk.bf16.vlgmr.msra.gmra.mxu1 %vm105_vm1, %v2563_v60  ;;  %v703_v60 = vsub.s32 5, %v682_v27 }
 0x15a   :  { %v143_v62 = vpop.f32.mrf.mxu0 }
 0x15c   :  { %v145_v63 = vpop.f32.mrf.mxu0 }
 0x15e   :  { %v147_v7 = vpop.f32.mrf.mxu0  ;;  %v184_v8 = vpop.f32.mrf.mxu1 }
 0x160   :  { %v148_v9 = vpop.f32.mrf.mxu0  ;;  %v186_v1 = vpop.f32.mrf.mxu1 }
 0x162   :  { %v188_v3 = vpop.f32.mrf.mxu1  ;;  %v225_v10 = vpop.f32.mrf.mxu0 }
 0x163   :  { %v3665_v3 = vrot.slane %v47_v34, %v699_v51 }
 0x164   :  { %v189_v11 = vpop.f32.mrf.mxu1  ;;  %v227_v2 = vpop.f32.mrf.mxu0 }
 0x166   :  { %v229_v4 = vpop.f32.mrf.mxu0  ;;  %v275_v12 = vpop.f32.mrf.mxu1 }
 0x167   :  { %v276_v33 = vadd.f32 %v275_v12, %v143_v62 }
 0x168   :  { %v230_v13 = vpop.f32.mrf.mxu0  ;;  %v277_v14 = vpop.f32.mrf.mxu1 }
 0x169   :  { %v278_v38 = vadd.f32 %v277_v14, %v145_v63 }
 0x16a   :  { %v279_v5 = vpop.f32.mrf.mxu1  ;;  %v316_v0 = vpop.f32.mrf.mxu0 }
 0x16b   :  { %v317_v45 = vadd.f32 %v316_v0, %v184_v8  ;;  %v3671_v5 = vrot.slane %v47_v34, %v703_v60 }
 0x16c   :  { %v280_v15 = vpop.f32.mrf.mxu1  ;;  %v318_v6 = vpop.f32.mrf.mxu0 }
 0x16d   :  { %v319_v52 = vadd.f32 %v318_v6, %v186_v1 }
 0x16e   :  { %v320_v16 = vpop.f32.mrf.mxu0  ;;  %v357_v17 = vpop.f32.mrf.mxu1 }
 0x16f   :  { %v358_v56 = vadd.f32 %v357_v17, %v225_v10 }
 0x170   :  { %v321_v18 = vpop.f32.mrf.mxu0  ;;  %v359_v19 = vpop.f32.mrf.mxu1 }
 0x171   :  { %v360_v8 = vadd.f32 %v359_v19, %v227_v2 }
 0x172   :  { %v361_v20 = vpop.f32.mrf.mxu1  ;;  %v427_v21 = vpop.f32.mrf.mxu0 }
 0x173   :  { %v516_v39 = vadd.f32 %v427_v21, %v276_v33 }
 0x174   :  { %v362_v23 = vpop.f32.mrf.mxu1  ;;  %v429_v24 = vpop.f32.mrf.mxu0 }
 0x175   :  { %v517_v46 = vadd.f32 %v429_v24, %v278_v38 }
 0x176   :  { %v431_v25 = vpop.f32.mrf.mxu0  ;;  %v468_v26 = vpop.f32.mrf.mxu1 }
 0x177   :  { %v518_v53 = vadd.f32 %v468_v26, %v317_v45 }
 0x178   :  { %v432_v28 = vpop.f32.mrf.mxu0  ;;  %v470_v29 = vpop.f32.mrf.mxu1 }
 0x179   :  { %v519_v61 = vadd.f32 %v470_v29, %v319_v52 }
 0x17a   :  { %v472_v30 = vpop.f32.mrf.mxu1  ;;  %v509_v31 = vpop.f32.mrf.mxu0 }
 0x17b   :  { %v520_v10 = vadd.f32 %v509_v31, %v358_v56 }
 0x17c   :  { %v473_v36 = vpop.f32.mrf.mxu1  ;;  %v511_v37 = vpop.f32.mrf.mxu0 }
 0x17d   :  { %v521_v0 = vadd.f32 %v511_v37, %v360_v8 }
 0x17e   :  { %v513_v41 = vpop.f32.mrf.mxu0  ;;  %v585_v42 = vpop.f32.mrf.mxu1 }
 0x17f   :  { %v3649_v47 = vadd.f32 %v585_v42, %v516_v39 }
 0x180   :  { %v514_v49 = vpop.f32.mrf.mxu0  ;;  %v587_v50 = vpop.f32.mrf.mxu1 }
 0x181   :  { %v3653_v54 = vadd.f32 %v587_v50, %v517_v46  ;;  %v711_v62 = vmul.f32 %v3647_v43, %v3649_v47 }
 0x182   :  { %v589_v57 = vpop.f32.mrf.mxu1  ;;  %v626_v58 = vpop.f32.mrf.mxu0 }
 0x183   :  { %v712_v63 = vmul.f32 %v3651_v48, %v3653_v54  ;;  %v3663_v7 = vadd.f32 %v626_v58, %v518_v53 }
 0x184   :  { %v590_v9 = vpop.f32.mrf.mxu1  ;;  %v628_v1 = vpop.f32.mrf.mxu0 }
 0x185   :  { %v717_v11 = vadd.f32 %v712_v63, %v711_v62  ;;  %v713_v4 = vmul.f32 %v3655_v55, %v3663_v7  ;;  %v3669_v12 = vadd.f32 %v628_v1, %v519_v61 }
 0x186   :  { %v630_v13 = vpop.f32.mrf.mxu0  ;;  %v667_v14 = vpop.f32.mrf.mxu1 }
 0x187   :  { %v718_v15 = vadd.f32 %v717_v11, %v713_v4  ;;  %v714_v2 = vmul.f32 %v3657_v59, %v3669_v12  ;;  %v3675_v6 = vadd.f32 %v667_v14, %v520_v10 }
 0x188   :  { %v631_v16 = vpop.f32.mrf.mxu0  ;;  %v669_v17 = vpop.f32.mrf.mxu1 }
 0x189   :  { %v719_v18 = vadd.f32 %v718_v15, %v714_v2  ;;  %v715_v19 = vmul.f32 %v3665_v3, %v3675_v6  ;;  %v679_v20 = vadd.f32 %v669_v17, %v521_v0 }
 0x18a   :  { %v671_v21 = vpop.f32.mrf.mxu1  ;;  %v828_v22 = vpop.f32.mrf.mxu0 }
 0x18b   :  { %v716_v23 = vmul.f32 %v3671_v5, %v679_v20  ;;  %732 = vst.msk [vmem:[%s3999_s5 + $0x28] sm:$0xff] %vm721_vm9, %v679_v20  ;;  %v720_v24 = vadd.f32 %v719_v18, %v715_v19 }
 0x18c   :  { %v672_v25 = vpop.f32.mrf.mxu1  ;;  %v830_v26 = vpop.f32.mrf.mxu0 }
 0x18d   :  { %v722_v27 = vsel %vm721_vm9, %v716_v23, 0.0 }
 0x18e   :  { %v832_v28 = vpop.f32.mrf.mxu0  ;;  %v869_v29 = vpop.f32.mrf.mxu1  ;;  %v723_v30 = vadd.f32 %v722_v27, %v720_v24 }
 0x190   :  { %v833_v31 = vpop.f32.mrf.mxu0  ;;  %v871_v32 = vpop.f32.mrf.mxu1  ;;  %724 = vadd.xlane.f32.xlu0 %v723_v30 }
 0x192   :  { %v873_v33 = vpop.f32.mrf.mxu1  ;;  %v910_v34 = vpop.f32.mrf.mxu0 }
 0x194   :  { %v874_v35 = vpop.f32.mrf.mxu1  ;;  %v912_v36 = vpop.f32.mrf.mxu0 }
 0x196   :  { %v914_v37 = vpop.f32.mrf.mxu0  ;;  %v977_v38 = vpop.f32.mrf.mxu1 }
 0x197   :  { %v978_v9 = vadd.f32 %v977_v38, %v828_v22 }
 0x198   :  { %v915_v39 = vpop.f32.mrf.mxu0  ;;  %v979_v40 = vpop.f32.mrf.mxu1 }
 0x199   :  { %v980_v11 = vadd.f32 %v979_v40, %v830_v26 }
 0x19a   :  { %v981_v41 = vpop.f32.mrf.mxu1  ;;  %v1018_v42 = vpop.f32.mrf.mxu0 }
 0x19b   :  { %v1019_v0 = vadd.f32 %v1018_v42, %v869_v29 }
 0x19c   :  { %v982_v44 = vpop.f32.mrf.mxu1  ;;  %v1020_v45 = vpop.f32.mrf.mxu0 }
 0x19d   :  { %v1021_v18 = vadd.f32 %v1020_v45, %v871_v32 }
 0x19e   :  { %v1022_v46 = vpop.f32.mrf.mxu0  ;;  %v1059_v49 = vpop.f32.mrf.mxu1 }
 0x19f   :  { %v1060_v21 = vadd.f32 %v1059_v49, %v910_v34 }
 0x1a0   :  { %v1023_v50 = vpop.f32.mrf.mxu0  ;;  %v1061_v51 = vpop.f32.mrf.mxu1 }
 0x1a1   :  { %v1062_v28 = vadd.f32 %v1061_v51, %v912_v36 }
 0x1a2   :  { %v1063_v52 = vpop.f32.mrf.mxu1  ;;  %v1128_v53 = vpop.f32.mrf.mxu0 }
 0x1a3   :  { %v1217_v4 = vadd.f32 %v1128_v53, %v978_v9 }
 0x1a4   :  { %v1064_v56 = vpop.f32.mrf.mxu1  ;;  %v1130_v57 = vpop.f32.mrf.mxu0 }
 0x1a5   :  { %v1218_v15 = vadd.f32 %v1130_v57, %v980_v11 }
 0x1a6   :  { %v1132_v58 = vpop.f32.mrf.mxu0  ;;  %v1169_v60 = vpop.f32.mrf.mxu1 }
 0x1a7   :  { %v1219_v19 = vadd.f32 %v1169_v60, %v1019_v0 }
 0x1a8   :  { %v1133_v61 = vpop.f32.mrf.mxu0  ;;  %v1171_v62 = vpop.f32.mrf.mxu1 }
 0x1a9   :  { %v1220_v22 = vadd.f32 %v1171_v62, %v1021_v18 }
 0x1aa   :  { %v1173_v63 = vpop.f32.mrf.mxu1  ;;  %v1210_v8 = vpop.f32.mrf.mxu0 }
 0x1ab   :  { %v1221_v31 = vadd.f32 %v1210_v8, %v1060_v21 }
 0x1ac   :  { %v1174_v1 = vpop.f32.mrf.mxu1  ;;  %v1212_v10 = vpop.f32.mrf.mxu0 }
 0x1ad   :  { %v1222_v38 = vadd.f32 %v1212_v10, %v1062_v28 }
 0x1ae   :  { %v1214_v13 = vpop.f32.mrf.mxu0  ;;  %v1286_v14 = vpop.f32.mrf.mxu1 }
 0x1af   :  { %v3685_v2 = vadd.f32 %v1286_v14, %v1217_v4 }
 0x1b0   :  { %v1215_v16 = vpop.f32.mrf.mxu0  ;;  %v1288_v17 = vpop.f32.mrf.mxu1 }
 0x1b1   :  { %v3687_v20 = vadd.f32 %v1288_v17, %v1218_v15  ;;  %v1381_v25 = vmul.f32 %v3685_v2, %v3647_v43 }
 0x1b2   :  { %v1290_v23 = vpop.f32.mrf.mxu1  ;;  %v1327_v24 = vpop.f32.mrf.mxu0 }
 0x1b3   :  { %v1382_v26 = vmul.f32 %v3687_v20, %v3651_v48  ;;  %v3693_v27 = vadd.f32 %v1327_v24, %v1219_v19 }
 0x1b4   :  { %v1291_v29 = vpop.f32.mrf.mxu1  ;;  %v1329_v30 = vpop.f32.mrf.mxu0 }
 0x1b5   :  { %v1387_v32 = vadd.f32 %v1382_v26, %v1381_v25  ;;  %v1383_v33 = vmul.f32 %v3693_v27, %v3655_v55  ;;  %v3697_v34 = vadd.f32 %v1329_v30, %v1220_v22 }
 0x1b6   :  { %v1331_v35 = vpop.f32.mrf.mxu0  ;;  %v1368_v37 = vpop.f32.mrf.mxu1 }
 0x1b7   :  { %v1388_v39 = vadd.f32 %v1387_v32, %v1383_v33  ;;  %v1384_v40 = vmul.f32 %v3697_v34, %v3657_v59  ;;  %v3701_v41 = vadd.f32 %v1368_v37, %v1221_v31 }
 0x1b8   :  { %v1332_v42 = vpop.f32.mrf.mxu0  ;;  %v1370_v36 = vpop.f32.mrf.mxu1 }
 0x1b9   :  { %v1389_v44 = vadd.f32 %v1388_v39, %v1384_v40  ;;  %v1385_v45 = vmul.f32 %v3701_v41, %v3665_v3  ;;  %v1380_v46 = vadd.f32 %v1370_v36, %v1222_v38 }
 0x1ba   :  { %v1372_v49 = vpop.f32.mrf.mxu1  ;;  %v1497_v50 = vpop.f32.mrf.mxu0 }
 0x1bb   :  { %v1386_v51 = vmul.f32 %v1380_v46, %v3671_v5  ;;  %3054 = vst.msk [vmem:[%s3999_s5 + $0x58] sm:$0xff] %vm721_vm9, %v1380_v46  ;;  %v1390_v52 = vadd.f32 %v1389_v44, %v1385_v45 }
 0x1bc   :  { %v1373_v53 = vpop.f32.mrf.mxu1  ;;  %v1499_v56 = vpop.f32.mrf.mxu0 }
 0x1bd   :  { %v1391_v57 = vsel %vm721_vm9, %v1386_v51, 0.0 }
 0x1be   :  { %v1501_v58 = vpop.f32.mrf.mxu0  ;;  %v1538_v60 = vpop.f32.mrf.mxu1  ;;  %v1392_v61 = vadd.f32 %v1391_v57, %v1390_v52 }
 0x1c0   :  { %v1502_v62 = vpop.f32.mrf.mxu0  ;;  %v1540_v63 = vpop.f32.mrf.mxu1  ;;  %1393 = vadd.xlane.f32.xlu1 %v1392_v61 }
 0x1c2   :  { %v1542_v8 = vpop.f32.mrf.mxu1  ;;  %v1579_v9 = vpop.f32.mrf.mxu0 }
 0x1c4   :  { %v1543_v1 = vpop.f32.mrf.mxu1  ;;  %v1581_v10 = vpop.f32.mrf.mxu0 }
 0x1c6   :  { %v1583_v11 = vpop.f32.mrf.mxu0  ;;  %v1646_v4 = vpop.f32.mrf.mxu1 }
 0x1c7   :  { %v1647_v35 = vadd.f32 %v1646_v4, %v1497_v50 }
 0x1c8   :  { %v1584_v13 = vpop.f32.mrf.mxu0  ;;  %v1648_v14 = vpop.f32.mrf.mxu1 }
 0x1c9   :  { %v1649_v39 = vadd.f32 %v1648_v14, %v1499_v56 }
 0x1ca   :  { %v1650_v0 = vpop.f32.mrf.mxu1  ;;  %v1687_v15 = vpop.f32.mrf.mxu0 }
 0x1cb   :  { %v1688_v44 = vadd.f32 %v1687_v15, %v1538_v60 }
 0x1cc   :  { %v1651_v16 = vpop.f32.mrf.mxu1  ;;  %v1689_v17 = vpop.f32.mrf.mxu0 }
 0x1cd   :  { %v1690_v52 = vadd.f32 %v1689_v17, %v1540_v63 }
 0x1ce   :  { %v1691_v18 = vpop.f32.mrf.mxu0  ;;  %v1728_v19 = vpop.f32.mrf.mxu1 }
 0x1cf   :  { %v1729_v58 = vadd.f32 %v1728_v19, %v1579_v9 }
 0x1d0   :  { %v1692_v21 = vpop.f32.mrf.mxu0  ;;  %v1730_v23 = vpop.f32.mrf.mxu1 }
 0x1d1   :  { %v1731_v1 = vadd.f32 %v1730_v23, %v1581_v10 }
 0x1d2   :  { %v1732_v24 = vpop.f32.mrf.mxu1  ;;  %v1798_v22 = vpop.f32.mrf.mxu0 }
 0x1d3   :  { %v1887_v40 = vadd.f32 %v1798_v22, %v1647_v35 }
 0x1d4   :  { %v1733_v25 = vpop.f32.mrf.mxu1  ;;  %v1800_v26 = vpop.f32.mrf.mxu0 }
 0x1d5   :  { %v1888_v45 = vadd.f32 %v1800_v26, %v1649_v39 }
 0x1d6   :  { %v1802_v28 = vpop.f32.mrf.mxu0  ;;  %v1839_v29 = vpop.f32.mrf.mxu1 }
 0x1d7   :  { %v1889_v53 = vadd.f32 %v1839_v29, %v1688_v44 }
 0x1d8   :  { %v1803_v30 = vpop.f32.mrf.mxu0  ;;  %v1841_v31 = vpop.f32.mrf.mxu1 }
 0x1d9   :  { %v1890_v50 = vadd.f32 %v1841_v31, %v1690_v52 }
 0x1da   :  { %v1843_v32 = vpop.f32.mrf.mxu1  ;;  %v1880_v33 = vpop.f32.mrf.mxu0 }
 0x1db   :  { %v1891_v13 = vadd.f32 %v1880_v33, %v1729_v58 }
 0x1dc   :  { %v1844_v37 = vpop.f32.mrf.mxu1  ;;  %v1882_v38 = vpop.f32.mrf.mxu0 }
 0x1dd   :  { %v1892_v16 = vadd.f32 %v1882_v38, %v1731_v1 }
 0x1de   :  { %v1884_v42 = vpop.f32.mrf.mxu0  ;;  %v1956_v36 = vpop.f32.mrf.mxu1 }
 0x1df   :  { %v3711_v46 = vadd.f32 %v1956_v36, %v1887_v40 }
 0x1e0   :  { %v1885_v49 = vpop.f32.mrf.mxu0  ;;  %v1958_v51 = vpop.f32.mrf.mxu1 }
 0x1e1   :  { %v3713_v57 = vadd.f32 %v1958_v51, %v1888_v45  ;;  %v2051_v56 = vmul.f32 %v3711_v46, %v3647_v43 }
 0x1e2   :  { %v1960_v61 = vpop.f32.mrf.mxu1  ;;  %v1997_v62 = vpop.f32.mrf.mxu0 }
 0x1e3   :  { %v2052_v8 = vmul.f32 %v3713_v57, %v3651_v48  ;;  %v3719_v60 = vadd.f32 %v1997_v62, %v1889_v53 }
 0x1e4   :  { %v1961_v11 = vpop.f32.mrf.mxu1  ;;  %v1999_v4 = vpop.f32.mrf.mxu0 }
 0x1e5   :  { %v2057_v63 = vadd.f32 %v2052_v8, %v2051_v56  ;;  %v2053_v14 = vmul.f32 %v3719_v60, %v3655_v55  ;;  %v3723_v9 = vadd.f32 %v1999_v4, %v1890_v50 }
 0x1e6   :  { %v2001_v0 = vpop.f32.mrf.mxu0  ;;  %v2038_v15 = vpop.f32.mrf.mxu1 }
 0x1e7   :  { %v2058_v17 = vadd.f32 %v2057_v63, %v2053_v14  ;;  %v2054_v18 = vmul.f32 %v3723_v9, %v3657_v59  ;;  %v3727_v19 = vadd.f32 %v2038_v15, %v1891_v13 }
 0x1e8   :  { %v2002_v21 = vpop.f32.mrf.mxu0  ;;  %v2040_v10 = vpop.f32.mrf.mxu1 }
 0x1e9   :  { %v2059_v23 = vadd.f32 %v2058_v17, %v2054_v18  ;;  %v2055_v24 = vmul.f32 %v3727_v19, %v3665_v3  ;;  %v2050_v22 = vadd.f32 %v2040_v10, %v1892_v16 }
 0x1ea   :  { %v2042_v25 = vpop.f32.mrf.mxu1  ;;  %v2167_v26 = vpop.f32.mrf.mxu0 }
 0x1eb   :  { %v2056_v28 = vmul.f32 %v2050_v22, %v3671_v5  ;;  %3078 = vst.msk [vmem:[%s3999_s5 + $0x88] sm:$0xff] %vm721_vm9, %v2050_v22  ;;  %v2060_v29 = vadd.f32 %v2059_v23, %v2055_v24 }
 0x1ec   :  { %v2043_v30 = vpop.f32.mrf.mxu1  ;;  %v2169_v31 = vpop.f32.mrf.mxu0 }
 0x1ed   :  { %v2061_v32 = vsel %vm721_vm9, %v2056_v28, 0.0 }
 0x1ee   :  { %v2171_v33 = vpop.f32.mrf.mxu0  ;;  %v2208_v35 = vpop.f32.mrf.mxu1  ;;  %v2062_v37 = vadd.f32 %v2061_v32, %v2060_v29 }
 0x1f0   :  { %v2172_v38 = vpop.f32.mrf.mxu0  ;;  %v2210_v39 = vpop.f32.mrf.mxu1  ;;  %2063 = vadd.xlane.f32.xlu0 %v2062_v37 }
 0x1f2   :  { %v2212_v40 = vpop.f32.mrf.mxu1  ;;  %v2249_v42 = vpop.f32.mrf.mxu0 }
 0x1f4   :  { %v2213_v36 = vpop.f32.mrf.mxu1  ;;  %v2251_v44 = vpop.f32.mrf.mxu0 }
 0x1f6   :  { %v2253_v45 = vpop.f32.mrf.mxu0  ;;  %v2316_v49 = vpop.f32.mrf.mxu1 }
 0x1f7   :  { %v2317_v21 = vadd.f32 %v2316_v49, %v2167_v26 }
 0x1f8   :  { %v2254_v51 = vpop.f32.mrf.mxu0  ;;  %v2318_v52 = vpop.f32.mrf.mxu1 }
 0x1f9   :  { %v2319_v24 = vadd.f32 %v2318_v52, %v2169_v31 }
 0x1fa   :  { %v2320_v53 = vpop.f32.mrf.mxu1  ;;  %v2357_v58 = vpop.f32.mrf.mxu0 }
 0x1fb   :  { %v2358_v29 = vadd.f32 %v2357_v58, %v2208_v35 }
 0x1fc   :  { %v2321_v61 = vpop.f32.mrf.mxu1  ;;  %v2359_v62 = vpop.f32.mrf.mxu0 }
 0x1fd   :  { %v2360_v38 = vadd.f32 %v2359_v62, %v2210_v39 }
 0x1fe   :  { %v2361_v50 = vpop.f32.mrf.mxu0  ;;  %v2398_v56 = vpop.f32.mrf.mxu1 }
 0x1ff   :  { %v2399_v45 = vadd.f32 %v2398_v56, %v2249_v42 }
 0x200   :  { %v2362_v8 = vpop.f32.mrf.mxu0  ;;  %v2400_v1 = vpop.f32.mrf.mxu1 }
 0x201   :  { %v2401_v52 = vadd.f32 %v2400_v1, %v2251_v44 }
 0x202   :  { %v2402_v11 = vpop.f32.mrf.mxu1  ;;  %v2467_v4 = vpop.f32.mrf.mxu0 }
 0x203   :  { %v2556_v22 = vadd.f32 %v2467_v4, %v2317_v21 }
 0x204   :  { %v2403_v13 = vpop.f32.mrf.mxu1  ;;  %v2469_v63 = vpop.f32.mrf.mxu0 }
 0x205   :  { %v2557_v30 = vadd.f32 %v2469_v63, %v2319_v24 }
 0x206   :  { %v2471_v14 = vpop.f32.mrf.mxu0  ;;  %v2508_v0 = vpop.f32.mrf.mxu1 }
 0x207   :  { %v2558_v40 = vadd.f32 %v2508_v0, %v2358_v29 }
 0x208   :  { %v2472_v15 = vpop.f32.mrf.mxu0  ;;  %v2510_v16 = vpop.f32.mrf.mxu1 }
 0x209   :  { %v2559_v26 = vadd.f32 %v2510_v16, %v2360_v38  ;;  %v3768_v38 = vld [vmem:[%s3999_s5 + $0x58] sm:$0xff] }
 0x20a   :  { %v2512_v17 = vpop.f32.mrf.mxu1  ;;  %v2549_v18 = vpop.f32.mrf.mxu0 }
 0x20b   :  { %v2560_v50 = vadd.f32 %v2549_v18, %v2399_v45 }
 0x20c   :  { %v2513_v10 = vpop.f32.mrf.mxu1  ;;  %v2551_v23 = vpop.f32.mrf.mxu0 }
 0x20d   :  { %v2561_v11 = vadd.f32 %v2551_v23, %v2401_v52 }
 0x20e   :  { %v2553_v25 = vpop.f32.mrf.mxu0  ;;  %v2625_v28 = vpop.f32.mrf.mxu1 }
 0x20f   :  { %v3737_v32 = vadd.f32 %v2625_v28, %v2556_v22 }
 0x210   :  { %v2554_v33 = vpop.f32.mrf.mxu0  ;;  %v2627_v37 = vpop.f32.mrf.mxu1 }
 0x211   :  { %v3739_v36 = vadd.f32 %v2627_v37, %v2557_v30  ;;  %v2720_v31 = vmul.f32 %v3737_v32, %v3647_v43 }
 0x212   :  { %v2629_v51 = vpop.f32.mrf.mxu1  ;;  %v2666_v53 = vpop.f32.mrf.mxu0 }
 0x213   :  { %v2721_v49 = vmul.f32 %v3739_v36, %v3651_v48  ;;  %v3745_v35 = vadd.f32 %v2666_v53, %v2558_v40 }
 0x214   :  { %v2630_v58 = vpop.f32.mrf.mxu1  ;;  %v2668_v61 = vpop.f32.mrf.mxu0 }
 0x215   :  { %v2726_v39 = vadd.f32 %v2721_v49, %v2720_v31  ;;  %v2722_v62 = vmul.f32 %v3745_v35, %v3655_v55  ;;  %v3749_v42 = vadd.f32 %v2668_v61, %v2559_v26 }
 0x216   :  { %v2670_v56 = vpop.f32.mrf.mxu0  ;;  %v2707_v8 = vpop.f32.mrf.mxu1 }
 0x217   :  { %v2727_v4 = vadd.f32 %v2726_v39, %v2722_v62  ;;  %v2723_v13 = vmul.f32 %v3749_v42, %v3657_v59  ;;  %v3753_v63 = vadd.f32 %v2707_v8, %v2560_v50 }
 0x218   :  { %v2671_v14 = vpop.f32.mrf.mxu0  ;;  %v2709_v44 = vpop.f32.mrf.mxu1 }
 0x219   :  { %v2728_v1 = vadd.f32 %v2727_v4, %v2723_v13  ;;  %v2724_v0 = vmul.f32 %v3753_v63, %v3665_v3  ;;  %v2719_v15 = vadd.f32 %v2709_v44, %v2561_v11  ;;  %v725_v24 = vpop.xlane.xlu0 %724  ;;  %v3799_v14 = vld [vmem:[%s3999_s5 + $0x28] sm:$0xff] }
 0x21a   :  { %v2711_v16 = vpop.f32.mrf.mxu1 }
 0x21b   :  { %v2725_v17 = vmul.f32 %v2719_v15, %v3671_v5  ;;  %3102 = vst.msk [vmem:[%s3999_s5 + $0xb8] sm:$0xff] %vm721_vm9, %v2719_v15  ;;  %v2729_v18 = vadd.f32 %v2728_v1, %v2724_v0 }
 0x21c   :  { %v2712_v21 = vpop.f32.mrf.mxu1 }
 0x21d   :  { %v2730_v10 = vsel %vm721_vm9, %v2725_v17, 0.0 }
 0x21e   :  { %v2731_v23 = vadd.f32 %v2730_v10, %v2729_v18 }
 0x220   :  { %2732 = vadd.xlane.f32.xlu0 %v2731_v23 }
 0x249   :  { %v1394_v22 = vpop.xlane.xlu1 %1393 }
 0x24a   :  { %v1395_v28 = vadd.f32 %v1394_v22, %v725_v24 }
 0x279   :  { %v2064_v25 = vpop.xlane.xlu0 %2063 }
 0x27a   :  { %v2065_v29 = vadd.f32 %v2064_v25, %v1395_v28 }
 0x2a9   :  { %v2733_v30 = vpop.xlane.xlu0 %2732 }
 0x2aa   :  { %v2734_v33 = vadd.f32 %v2733_v30, %v2065_v29 }
 0x2ac   :  { %v3763_v37 = vmul.f32 0.00048828125, %v2734_v33 }
 0x2ae   :  { %v2782_v40 = vsub.f32 %v3685_v2, %v3763_v37  ;;  %v2783_v45 = vsub.f32 %v3687_v20, %v3763_v37  ;;  %v2784_v51 = vsub.f32 %v3693_v27, %v3763_v37  ;;  %v2785_v53 = vsub.f32 %v3697_v34, %v3763_v37 }
 0x2af   :  { %v2786_v26 = vsub.f32 %v3701_v41, %v3763_v37  ;;  %v2787_v31 = vsub.f32 %v3768_v38, %v3763_v37  ;;  %v2749_v49 = vsub.f32 %v3649_v47, %v3763_v37  ;;  %v2750_v52 = vsub.f32 %v3653_v54, %v3763_v37 }
 0x2b0   :  { %v2788_v58 = vmul.f32 %v2782_v40, %v3647_v43  ;;  %v2789_v61 = vmul.f32 %v2783_v45, %v3651_v48  ;;  %v2790_v50 = vmul.f32 %v2784_v51, %v3655_v55  ;;  %v2791_v39 = vmul.f32 %v2785_v53, %v3657_v59  ;;  %v3817_v51 = vld [vmem:[%s3999_s5 + $0xb8] sm:$0xff] }
 0x2b1   :  { %v2792_v62 = vmul.f32 %v2786_v26, %v3665_v3  ;;  %v2793_v56 = vmul.f32 %v2787_v31, %v3671_v5  ;;  %v2751_v8 = vsub.f32 %v3663_v7, %v3763_v37  ;;  %v2752_v11 = vsub.f32 %v3669_v12, %v3763_v37 }
 0x2b2   :  { %v2794_v4 = vmul.f32 %v2788_v58, %v2788_v58  ;;  %v2795_v13 = vmul.f32 %v2789_v61, %v2789_v61  ;;  %v2796_v44 = vmul.f32 %v2790_v50, %v2790_v50  ;;  %v2753_v0 = vsub.f32 %v3675_v6, %v3763_v37 }
 0x2b3   :  { %v2799_v1 = vmul.f32 %v2793_v56, %v2793_v56  ;;  %v2754_v15 = vsub.f32 %v3799_v14, %v3763_v37  ;;  %v2755_v17 = vmul.f32 %v2749_v49, %v3647_v43  ;;  %v2756_v18 = vmul.f32 %v2750_v52, %v3651_v48 }
 0x2b4   :  { %v2800_v16 = vadd.f32 %v2795_v13, %v2794_v4  ;;  %v2757_v21 = vmul.f32 %v2751_v8, %v3655_v55  ;;  %v2797_v10 = vmul.f32 %v2791_v39, %v2791_v39  ;;  %v2798_v23 = vmul.f32 %v2792_v62, %v2792_v62 }
 0x2b5   :  { %v2758_v24 = vmul.f32 %v2752_v11, %v3657_v59  ;;  %v2804_v25 = vsel %vm721_vm9, %v2799_v1, 0.0  ;;  %v2761_v28 = vmul.f32 %v2755_v17, %v2755_v17  ;;  %v2762_v29 = vmul.f32 %v2756_v18, %v2756_v18 }
 0x2b6   :  { %v2801_v22 = vadd.f32 %v2800_v16, %v2796_v44  ;;  %v2759_v30 = vmul.f32 %v2753_v0, %v3665_v3  ;;  %v2760_v33 = vmul.f32 %v2754_v15, %v3671_v5  ;;  %v2763_v40 = vmul.f32 %v2757_v21, %v2757_v21 }
 0x2b7   :  { %v2848_v45 = vsub.f32 %v3737_v32, %v3763_v37  ;;  %v2767_v26 = vadd.f32 %v2762_v29, %v2761_v28  ;;  %v2849_v31 = vsub.f32 %v3739_v36, %v3763_v37  ;;  %v2850_v49 = vsub.f32 %v3745_v35, %v3763_v37 }
 0x2b8   :  { %v2802_v53 = vadd.f32 %v2801_v22, %v2797_v10  ;;  %v2764_v52 = vmul.f32 %v2758_v24, %v2758_v24  ;;  %v2851_v58 = vsub.f32 %v3749_v42, %v3763_v37  ;;  %v2852_v61 = vsub.f32 %v3753_v63, %v3763_v37 }
 0x2b9   :  { %v2853_v50 = vsub.f32 %v3817_v51, %v3763_v37  ;;  %v2768_v62 = vadd.f32 %v2767_v26, %v2763_v40  ;;  %v2854_v56 = vmul.f32 %v2848_v45, %v3647_v43  ;;  %v2855_v8 = vmul.f32 %v2849_v31, %v3651_v48 }
 0x2ba   :  { %v2803_v39 = vadd.f32 %v2802_v53, %v2798_v23  ;;  %v2765_v11 = vmul.f32 %v2759_v30, %v2759_v30  ;;  %v2766_v4 = vmul.f32 %v2760_v33, %v2760_v33  ;;  %v2856_v13 = vmul.f32 %v2850_v49, %v3655_v55 }
 0x2bb   :  { %v2857_v44 = vmul.f32 %v2851_v58, %v3657_v59  ;;  %v2769_v0 = vadd.f32 %v2768_v62, %v2764_v52  ;;  %v2860_v15 = vmul.f32 %v2854_v56, %v2854_v56  ;;  %v2861_v16 = vmul.f32 %v2855_v8, %v2855_v8 }
 0x2bc   :  { %v2805_v1 = vadd.f32 %v2804_v25, %v2803_v39  ;;  %v2858_v17 = vmul.f32 %v2852_v61, %v3665_v3  ;;  %v2859_v18 = vmul.f32 %v2853_v50, %v3671_v5  ;;  %v2862_v21 = vmul.f32 %v2856_v13, %v2856_v13  ;;  %v3842_v25 = vld [vmem:[%s3999_s5 + $0x88] sm:$0xff] }
 0x2bd   :  { %v2770_v10 = vadd.f32 %v2769_v0, %v2765_v11  ;;  %v2866_v23 = vadd.f32 %v2861_v16, %v2860_v15  ;;  %v2815_v24 = vsub.f32 %v3711_v46, %v3763_v37  ;;  %v2816_v22 = vsub.f32 %v3713_v57, %v3763_v37 }
 0x2be   :  { %2806 = vadd.xlane.f32.xlu0 %v2805_v1  ;;  %v2771_v28 = vsel %vm721_vm9, %v2766_v4, 0.0  ;;  %v2863_v29 = vmul.f32 %v2857_v44, %v2857_v44  ;;  %v2817_v30 = vsub.f32 %v3719_v60, %v3763_v37  ;;  %v2818_v33 = vsub.f32 %v3723_v9, %v3763_v37 }
 0x2bf   :  { %v2772_v40 = vadd.f32 %v2771_v28, %v2770_v10  ;;  %v2867_v45 = vadd.f32 %v2866_v23, %v2862_v21  ;;  %v2820_v53 = vsub.f32 %v3842_v25, %v3763_v37  ;;  %v2821_v26 = vmul.f32 %v2815_v24, %v3647_v43 }
 0x2c0   :  { %v2865_v31 = vmul.f32 %v2859_v18, %v2859_v18  ;;  %v2819_v49 = vsub.f32 %v3727_v19, %v3763_v37  ;;  %v2822_v52 = vmul.f32 %v2816_v22, %v3651_v48  ;;  %v2823_v58 = vmul.f32 %v2817_v30, %v3655_v55  ;;  %v2875_v30 = vld [vmem:[%s3996_s2] sm:$0xff] }
 0x2c1   :  { %2773 = vadd.xlane.f32.xlu1 %v2772_v40  ;;  %v2864_v61 = vmul.f32 %v2858_v17, %v2858_v17  ;;  %v2868_v50 = vadd.f32 %v2867_v45, %v2863_v29  ;;  %v2827_v39 = vmul.f32 %v2821_v26, %v2821_v26  ;;  %v2824_v62 = vmul.f32 %v2818_v33, %v3657_v59  ;;  %v2880_v45 = vld [vmem:[%s3997_s3] sm:$0xff] }
 0x2c2   :  { %v2828_v56 = vmul.f32 %v2822_v52, %v2822_v52  ;;  %v2826_v11 = vmul.f32 %v2820_v53, %v3671_v5  ;;  %v2870_v43 = vsel %vm721_vm9, %v2865_v31, 0.0  ;;  %v2825_v4 = vmul.f32 %v2819_v49, %v3665_v3 }
 0x2c3   :  { %v2869_v8 = vadd.f32 %v2868_v50, %v2864_v61  ;;  %v2829_v13 = vmul.f32 %v2823_v58, %v2823_v58  ;;  %v2830_v48 = vmul.f32 %v2824_v62, %v2824_v62 }
 0x2c4   :  { %v2833_v44 = vadd.f32 %v2828_v56, %v2827_v39  ;;  %v2832_v55 = vmul.f32 %v2826_v11, %v2826_v11  ;;  %v2831_v15 = vmul.f32 %v2825_v4, %v2825_v4 }
 0x2c5   :  { %v2871_v1 = vadd.f32 %v2870_v43, %v2869_v8 }
 0x2c6   :  { %v2834_v0 = vadd.f32 %v2833_v44, %v2829_v13  ;;  %v2837_v59 = vsel %vm721_vm9, %v2832_v55, 0.0 }
 0x2c7   :  { %2872 = vadd.xlane.f32.xlu0 %v2871_v1 }
 0x2c8   :  { %v2835_v16 = vadd.f32 %v2834_v0, %v2830_v48 }
 0x2ca   :  { %v2836_v17 = vadd.f32 %v2835_v16, %v2831_v15 }
 0x2cc   :  { %v2838_v18 = vadd.f32 %v2837_v59, %v2836_v17 }
 0x2ce   :  { %2839 = vadd.xlane.f32.xlu1 %v2838_v18 }
 0x347   :  { %v2807_v5 = vpop.xlane.xlu0 %2806 }
 0x34a   :  { %v2774_v21 = vpop.xlane.xlu1 %2773 }
 0x34b   :  { %v2808_v10 = vadd.f32 %v2807_v5, %v2774_v21 }
 0x350   :  { %v2873_v3 = vpop.xlane.xlu0 %2872 }
 0x357   :  { %v2840_v23 = vpop.xlane.xlu1 %2839 }
 0x358   :  { %v2841_v24 = vadd.f32 %v2840_v23, %v2808_v10 }
 0x35a   :  { %v2874_v22 = vadd.f32 %v2873_v3, %v2841_v24 }
 0x35c   :  { %v2876_v28 = vmul.f32 0.00048828125, %v2874_v22 }
 0x35e   :  { %v2877_v29 = vadd.f32 1e-05, %v2876_v28 }
 0x360   :  { %3181 = vrsqrt.f32 %v2877_v29 }
 0x36d   :  { %v3182_v33 = vpop.eup %3181 }
 0x36e   :  { %v2879_v40 = vmul.f32 %v3182_v33, %v2875_v30 }
 0x370   :  { %2885 = vperm.xlu1 %3170, %v2879_v40   ;;  %v2881_v53 = vmul.f32 %v2879_v40, %v3763_v37 }
 0x372   :  { %v2882_v26 = vsub.f32 %v2880_v45, %v2881_v53 }
 0x374   :  { %2896 = vperm.xlu0 %3171, %v2882_v26  }
 0x3eb   :  { %v2886_v31 = vpop.permute.xlu1 %2885 }
 0x3ec   :  { %v2888_v49 = vmul.f32 %v2886_v31, %v3649_v47  ;;  %v2889_v52 = vmul.f32 %v2886_v31, %v3653_v54  ;;  %v2890_v58 = vmul.f32 %v2886_v31, %v3663_v7  ;;  %v2891_v61 = vmul.f32 %v2886_v31, %v3669_v12 }
 0x3ed   :  { %v2892_v50 = vmul.f32 %v2886_v31, %v3675_v6  ;;  %v2893_v39 = vmul.f32 %v2886_v31, %v3799_v14  ;;  %v2923_v62 = vmul.f32 %v2886_v31, %v3685_v2  ;;  %v2924_v56 = vmul.f32 %v2886_v31, %v3687_v20 }
 0x3ee   :  { %v2925_v37 = vmul.f32 %v2886_v31, %v3693_v27  ;;  %v2926_v8 = vmul.f32 %v2886_v31, %v3697_v34  ;;  %v2927_v47 = vmul.f32 %v2886_v31, %v3701_v41  ;;  %v2928_v54 = vmul.f32 %v3768_v38, %v2886_v31 }
 0x3ef   :  { %v2953_v7 = vmul.f32 %v2886_v31, %v3711_v46  ;;  %v2954_v12 = vmul.f32 %v2886_v31, %v3713_v57  ;;  %v2955_v6 = vmul.f32 %v2886_v31, %v3719_v60  ;;  %v2956_v14 = vmul.f32 %v2886_v31, %v3723_v9  ;;  %v3884_v11 = vpop.permute.xlu0 %2896 }
 0x3f0   :  { %v2957_v2 = vmul.f32 %v2886_v31, %v3727_v19  ;;  %v2958_v20 = vmul.f32 %v3842_v25, %v2886_v31  ;;  %v2983_v27 = vmul.f32 %v2886_v31, %v3737_v32  ;;  %v2984_v34 = vmul.f32 %v2886_v31, %v3739_v36 }
 0x3f1   :  { %v2985_v41 = vmul.f32 %v2886_v31, %v3745_v35  ;;  %v2986_v46 = vmul.f32 %v2886_v31, %v3749_v42  ;;  %v2987_v57 = vmul.f32 %v2886_v31, %v3753_v63  ;;  %v2988_v60 = vmul.f32 %v3817_v51, %v2886_v31 }
 0x3f2   :  { %v2899_v9 = vadd.f32 %v3884_v11, %v2888_v49  ;;  %v2900_v38 = vadd.f32 %v3884_v11, %v2889_v52  ;;  %v2901_v19 = vadd.f32 %v3884_v11, %v2890_v58  ;;  %v2902_v25 = vadd.f32 %v3884_v11, %v2891_v61 }
 0x3f3   :  { %v2903_v32 = vadd.f32 %v3884_v11, %v2892_v50  ;;  %v2904_v36 = vadd.f32 %v3884_v11, %v2893_v39  ;;  %v2929_v35 = vadd.f32 %v2923_v62, %v3884_v11  ;;  %v2930_v42 = vadd.f32 %v2924_v56, %v3884_v11 }
 0x3f4   :  { %v2905_v43 = vmax.f32 %v2899_v9, 0.0  ;;  %v2906_v63 = vmax.f32 %v2900_v38, 0.0  ;;  %v2907_v4 = vmax.f32 %v2901_v19, 0.0  ;;  %v2908_v51 = vmax.f32 %v2902_v25, 0.0 }
 0x3f5   :  { %v2909_v13 = vmax.f32 %v2903_v32, 0.0  ;;  %v2910_v44 = vmax.f32 %v2904_v36, 0.0  ;;  %v2931_v1 = vadd.f32 %v2925_v37, %v3884_v11  ;;  %v2932_v48 = vadd.f32 %v2926_v8, %v3884_v11 }
 0x3f6   :  { %2911 = vst [vmem:[%s3999_s5] sm:$0xff] %v2905_v43  ;;  %2912 = vst [vmem:[%s3999_s5 + $0x8] sm:$0xff] %v2906_v63  ;;  %v2933_v0 = vadd.f32 %v2927_v47, %v3884_v11  ;;  %v2934_v55 = vadd.f32 %v2928_v54, %v3884_v11  ;;  %v2935_v15 = vmax.f32 %v2929_v35, 0.0  ;;  %v2936_v16 = vmax.f32 %v2930_v42, 0.0 }
 0x3f7   :  { %2913 = vst [vmem:[%s3999_s5 + $0x10] sm:$0xff] %v2907_v4  ;;  %2914 = vst [vmem:[%s3999_s5 + $0x18] sm:$0xff] %v2908_v51  ;;  %v2937_v17 = vmax.f32 %v2931_v1, 0.0  ;;  %v2938_v59 = vmax.f32 %v2932_v48, 0.0  ;;  %v2959_v18 = vadd.f32 %v2953_v7, %v3884_v11  ;;  %v2960_v21 = vadd.f32 %v2954_v12, %v3884_v11 }
 0x3f8   :  { %2915 = vst [vmem:[%s3999_s5 + $0x20] sm:$0xff] %v2909_v13  ;;  %2916 = vst.msk [vmem:[%s3999_s5 + $0x28] sm:$0xff] %vm721_vm9, %v2910_v44  ;;  %v2939_v5 = vmax.f32 %v2933_v0, 0.0  ;;  %v2940_v10 = vmax.f32 %v2934_v55, 0.0  ;;  %v2961_v23 = vadd.f32 %v2955_v6, %v3884_v11  ;;  %v2962_v24 = vadd.f32 %v2956_v14, %v3884_v11 }
 0x3f9   :  { %3127 = vst [vmem:[%s3999_s5 + $0x30] sm:$0xff] %v2935_v15  ;;  %3128 = vst [vmem:[%s3999_s5 + $0x38] sm:$0xff] %v2936_v16  ;;  %v2963_v3 = vadd.f32 %v2957_v2, %v3884_v11  ;;  %v2964_v22 = vadd.f32 %v2958_v20, %v3884_v11  ;;  %v2965_v28 = vmax.f32 %v2959_v18, 0.0  ;;  %v2966_v29 = vmax.f32 %v2960_v21, 0.0 }
 0x3fa   :  { %3129 = vst [vmem:[%s3999_s5 + $0x40] sm:$0xff] %v2937_v17  ;;  %3130 = vst [vmem:[%s3999_s5 + $0x48] sm:$0xff] %v2938_v59  ;;  %v2967_v30 = vmax.f32 %v2961_v23, 0.0  ;;  %v2968_v33 = vmax.f32 %v2962_v24, 0.0  ;;  %v2989_v40 = vadd.f32 %v2983_v27, %v3884_v11  ;;  %v2990_v45 = vadd.f32 %v2984_v34, %v3884_v11 }
 0x3fb   :  { %3131 = vst [vmem:[%s3999_s5 + $0x50] sm:$0xff] %v2939_v5  ;;  %3132 = vst.msk [vmem:[%s3999_s5 + $0x58] sm:$0xff] %vm721_vm9, %v2940_v10  ;;  %v2969_v53 = vmax.f32 %v2963_v3, 0.0  ;;  %v2970_v26 = vmax.f32 %v2964_v22, 0.0  ;;  %v2991_v31 = vadd.f32 %v2985_v41, %v3884_v11  ;;  %v2992_v49 = vadd.f32 %v2986_v46, %v3884_v11 }
 0x3fc   :  { %3139 = vst [vmem:[%s3999_s5 + $0x60] sm:$0xff] %v2965_v28  ;;  %3140 = vst [vmem:[%s3999_s5 + $0x68] sm:$0xff] %v2966_v29  ;;  %v2993_v52 = vadd.f32 %v2987_v57, %v3884_v11  ;;  %v2994_v58 = vadd.f32 %v2988_v60, %v3884_v11  ;;  %v2995_v61 = vmax.f32 %v2989_v40, 0.0  ;;  %v2996_v50 = vmax.f32 %v2990_v45, 0.0 }
 0x3fd   :  { %3141 = vst [vmem:[%s3999_s5 + $0x70] sm:$0xff] %v2967_v30  ;;  %3142 = vst [vmem:[%s3999_s5 + $0x78] sm:$0xff] %v2968_v33  ;;  %v2997_v39 = vmax.f32 %v2991_v31, 0.0  ;;  %v2998_v62 = vmax.f32 %v2992_v49, 0.0 }
 0x3fe   :  { %3143 = vst [vmem:[%s3999_s5 + $0x80] sm:$0xff] %v2969_v53  ;;  %3144 = vst.msk [vmem:[%s3999_s5 + $0x88] sm:$0xff] %vm721_vm9, %v2970_v26  ;;  %v2999_v56 = vmax.f32 %v2993_v52, 0.0  ;;  %v3000_v37 = vmax.f32 %v2994_v58, 0.0 }
 0x3ff   :  { %3151 = vst [vmem:[%s3999_s5 + $0x90] sm:$0xff] %v2995_v61  ;;  %3152 = vst [vmem:[%s3999_s5 + $0x98] sm:$0xff] %v2996_v50 }
 0x400   :  { %3153 = vst [vmem:[%s3999_s5 + $0xa0] sm:$0xff] %v2997_v39  ;;  %3154 = vst [vmem:[%s3999_s5 + $0xa8] sm:$0xff] %v2998_v62 }
 0x401   :  { %3155 = vst [vmem:[%s3999_s5 + $0xb0] sm:$0xff] %v2999_v56  ;;  %3156 = vst.msk [vmem:[%s3999_s5 + $0xb8] sm:$0xff] %vm721_vm9, %v3000_v37 }
 0x402   :  { %3011 = vsyncpa [#allocation3], 1 }
 0x403   :  { %3012 = vsyncpa [#allocation5], 1 }

// kernel: wacgan_generator_forward.9
= control target key start
LH: loop header
LB: loop body
LE: loop exit
PB: predicated region body
PF: predicated region fallthrough
CT: control target
= control target key end

     0   :  { %v13555_v2 = vmov 0   ;;  %s9825_s13 = smov 127   ;;  %s9826_s30 = smov 94   ;;  %vm111_vm0 = vcmask 1039360   ;;  %vm134_vm1 = vcmask 1043456   ;;  %vm130_vm2 = vcmask 64512   ;;  %s13550_s0 = inlined_call_operand.vmem [shape: bf16[8,2432], index: 0, kind: input, shape index: {}]   ;;  %s13551_s1 = inlined_call_operand.vmem [shape: bf16[4,4,3,8], index: 1, kind: input, shape index: {}]   ;;  %s13552_s2 = inlined_call_operand.vmem [shape: f32[4,3,2312], index: 2, kind: output, shape index: {}]  }
   0x1   :  { %v14_v0 = vld [vmem:[%s13550_s0 + $0x8] sm:$0xff]  ;;  %v13_v1 = vld [vmem:[%s13550_s0] sm:$0xff]  ;;  %224 = vmatprep.mubr.bf16.mxu0 %v13555_v2  ;;  %265 = vmatprep.mubr.bf16.mxu1 %v13555_v2  ;;  %v15_v7 = vld [vmem:[%s13550_s0 + $0x10] sm:$0xff]  ;;  %s9827_s3 = smov 93   ;;  %s9828_s4 = smov 126   ;;  %vm9830_vm3 = vmmov 0  }
   0x2   :  { %v9858_v3 = vcombine.low %v14_v0, %v14_v0  ;;  %v9860_v4 = vcombine.low %v13_v1, %v13_v1  ;;  %v9866_v5 = vcombine.high %v14_v0, %v14_v0  ;;  %v9868_v6 = vcombine.high %v13_v1, %v13_v1  ;;  %v16_v10 = vld [vmem:[%s13550_s0 + $0x18] sm:$0xff]  ;;  %v17_v13 = vld [vmem:[%s13550_s0 + $0x20] sm:$0xff]  ;;  %v18_v16 = vld [vmem:[%s13550_s0 + $0x28] sm:$0xff]  ;;  %s9832_s15 = smov 60   ;;  %s9833_s17 = smov 59  }
   0x3   :  { %v9877_v8 = vcombine.high %v15_v7, %v15_v7  ;;  %v9879_v9 = vcombine.low %v15_v7, %v15_v7  ;;  %v9888_v11 = vcombine.high %v16_v10, %v16_v10  ;;  %v9890_v12 = vcombine.low %v16_v10, %v16_v10  ;;  %v19_v19 = vld [vmem:[%s13550_s0 + $0x30] sm:$0xff]  ;;  %v20_v22 = vld [vmem:[%s13550_s0 + $0x38] sm:$0xff]  ;;  %v21_v25 = vld [vmem:[%s13550_s0 + $0x40] sm:$0xff] }
   0x4   :  { %77 = vrot.lane.b32.xlu1 %v9858_v3, %s9825_s13  ;;  %73 = vrot.lane.b32.xlu0 %v9860_v4, %s9825_s13  ;;  %v9899_v14 = vcombine.high %v17_v13, %v17_v13  ;;  %v9901_v15 = vcombine.low %v17_v13, %v17_v13  ;;  %v9910_v17 = vcombine.high %v18_v16, %v18_v16  ;;  %v9954_v28 = vld [vmem:[%s13550_s0 + $0x48] ss:$0 sps:$4 sm:$0xff]   ;;  %v10049_v36 = vld [vmem:[%s13551_s1 + $0x2] sm:$0x3]  ;;  %vm1110_vm4 = vcmask 769024  }
   0x5   :  { %v9912_v18 = vcombine.low %v18_v16, %v18_v16  ;;  %v9921_v20 = vcombine.high %v19_v19, %v19_v19  ;;  %v9923_v21 = vcombine.low %v19_v19, %v19_v19  ;;  %v9932_v23 = vcombine.high %v20_v22, %v20_v22  ;;  %v10123_v19 = vld [vmem:[%s13550_s0 + $0x48] ss:$0 sps:$4 sm:$0xff]  }
   0x6   :  { %v9934_v24 = vcombine.low %v20_v22, %v20_v22  ;;  %v9943_v26 = vcombine.high %v21_v25, %v21_v25  ;;  %v9945_v27 = vcombine.low %v21_v25, %v21_v25  ;;  %vm1657_vm5 = vcmask 760832  }
   0x7   :  { %vm2330_vm6 = vcmask 1031168   ;;  %vm3929_vm7 = vcmask 752640   ;;  %vm2228_vm8 = vcmask 59392   ;;  %vm5654_vm9 = vcmask 490496  }
   0x8   :  { %79 = vrot.lane.b32.xlu1 %v9866_v5, %s9825_s13  ;;  %75 = vrot.lane.b32.xlu0 %v9868_v6, %s9825_s13  ;;  %vm6201_vm10 = vcmask 482304   ;;  %vm8472_vm11 = vcmask 474112  }
   0xc   :  { %83 = vrot.lane.b32.xlu1 %v9877_v8, %s9825_s13  ;;  %81 = vrot.lane.b32.xlu0 %v9879_v9, %s9825_s13 }
  0x10   :  { %87 = vrot.lane.b32.xlu1 %v9888_v11, %s9825_s13  ;;  %85 = vrot.lane.b32.xlu0 %v9890_v12, %s9825_s13 }
  0x14   :  { %91 = vrot.lane.b32.xlu1 %v9899_v14, %s9825_s13  ;;  %89 = vrot.lane.b32.xlu0 %v9901_v15, %s9825_s13 }
  0x18   :  { %95 = vrot.lane.b32.xlu1 %v9910_v17, %s9825_s13  ;;  %93 = vrot.lane.b32.xlu0 %v9912_v18, %s9825_s13 }
  0x1c   :  { %99 = vrot.lane.b32.xlu1 %v9921_v20, %s9825_s13  ;;  %97 = vrot.lane.b32.xlu0 %v9923_v21, %s9825_s13 }
  0x20   :  { %103 = vrot.lane.b32.xlu1 %v9932_v23, %s9825_s13  ;;  %101 = vrot.lane.b32.xlu0 %v9934_v24, %s9825_s13 }
  0x24   :  { %107 = vrot.lane.b32.xlu1 %v9943_v26, %s9825_s13  ;;  %105 = vrot.lane.b32.xlu0 %v9945_v27, %s9825_s13 }
  0x28   :  { %109 = vrot.lane.b32.xlu0 %v9954_v28, %s9825_s13  ;;  %1072 = vrot.lane.b32.xlu1 %v9860_v4, %s9826_s30 }
  0x2c   :  { %1076 = vrot.lane.b32.xlu1 %v9858_v3, %s9826_s30  ;;  %1074 = vrot.lane.b32.xlu0 %v9868_v6, %s9826_s30 }
  0x30   :  { %1080 = vrot.lane.b32.xlu1 %v9879_v9, %s9826_s30  ;;  %1078 = vrot.lane.b32.xlu0 %v9866_v5, %s9826_s30 }
  0x34   :  { %1084 = vrot.lane.b32.xlu1 %v9890_v12, %s9826_s30  ;;  %1082 = vrot.lane.b32.xlu0 %v9877_v8, %s9826_s30 }
  0x38   :  { %1088 = vrot.lane.b32.xlu1 %v9901_v15, %s9826_s30  ;;  %1086 = vrot.lane.b32.xlu0 %v9888_v11, %s9826_s30 }
  0x3c   :  { %1092 = vrot.lane.b32.xlu1 %v9912_v18, %s9826_s30  ;;  %1090 = vrot.lane.b32.xlu0 %v9899_v14, %s9826_s30 }
  0x40   :  { %1096 = vrot.lane.b32.xlu1 %v9923_v21, %s9826_s30  ;;  %1094 = vrot.lane.b32.xlu0 %v9910_v17, %s9826_s30 }
  0x44   :  { %1100 = vrot.lane.b32.xlu1 %v9934_v24, %s9826_s30  ;;  %1098 = vrot.lane.b32.xlu0 %v9921_v20, %s9826_s30 }
  0x48   :  { %1104 = vrot.lane.b32.xlu1 %v9945_v27, %s9826_s30  ;;  %1102 = vrot.lane.b32.xlu0 %v9932_v23, %s9826_s30 }
  0x4c   :  { %1108 = vrot.lane.b32.xlu1 %v9954_v28, %s9826_s30  ;;  %1106 = vrot.lane.b32.xlu0 %v9943_v26, %s9826_s30 }
  0x50   :  { %1619 = vrot.lane.b32.xlu0 %v9860_v4, %s9827_s3  ;;  %1621 = vrot.lane.b32.xlu1 %v9868_v6, %s9827_s3 }
  0x54   :  { %1623 = vrot.lane.b32.xlu0 %v9858_v3, %s9827_s3  ;;  %1625 = vrot.lane.b32.xlu1 %v9866_v5, %s9827_s3 }
  0x58   :  { %1627 = vrot.lane.b32.xlu0 %v9879_v9, %s9827_s3  ;;  %1629 = vrot.lane.b32.xlu1 %v9877_v8, %s9827_s3 }
  0x5c   :  { %1631 = vrot.lane.b32.xlu0 %v9890_v12, %s9827_s3  ;;  %1633 = vrot.lane.b32.xlu1 %v9888_v11, %s9827_s3 }
  0x60   :  { %1635 = vrot.lane.b32.xlu0 %v9901_v15, %s9827_s3  ;;  %1637 = vrot.lane.b32.xlu1 %v9899_v14, %s9827_s3 }
  0x64   :  { %1639 = vrot.lane.b32.xlu0 %v9912_v18, %s9827_s3  ;;  %1641 = vrot.lane.b32.xlu1 %v9910_v17, %s9827_s3 }
  0x68   :  { %1643 = vrot.lane.b32.xlu0 %v9923_v21, %s9827_s3  ;;  %1645 = vrot.lane.b32.xlu1 %v9921_v20, %s9827_s3 }
  0x6c   :  { %1647 = vrot.lane.b32.xlu0 %v9934_v24, %s9827_s3  ;;  %1649 = vrot.lane.b32.xlu1 %v9932_v23, %s9827_s3 }
  0x70   :  { %1651 = vrot.lane.b32.xlu0 %v9945_v27, %s9827_s3  ;;  %1653 = vrot.lane.b32.xlu1 %v9943_v26, %s9827_s3 }
  0x74   :  { %1655 = vrot.lane.b32.xlu0 %v9954_v28, %s9827_s3  ;;  %2292 = vrot.lane.b32.xlu1 %v9860_v4, %s9828_s4 }
  0x76   :  { %v78_v29 = vpop.permute.xlu1 %77  ;;  %v74_v30 = vpop.permute.xlu0 %73 }
  0x78   :  { %2296 = vrot.lane.b32.xlu1 %v9858_v3, %s9828_s4  ;;  %2294 = vrot.lane.b32.xlu0 %v9868_v6, %s9828_s4 }
  0x7a   :  { %v80_v31 = vpop.permute.xlu1 %79  ;;  %v76_v32 = vpop.permute.xlu0 %75 }
  0x7b   :  { %v113_v33 = vsel %vm111_vm0, %v76_v32, %v78_v29  ;;  %v112_v34 = vsel %vm111_vm0, %v74_v30, %v76_v32  ;;  %v114_v37 = vsel %vm111_vm0, %v78_v29, %v80_v31 }
  0x7c   :  { %9069 = vmatprep.subr.msk.bf16.mxu0 %vm134_vm1, %v113_v33  ;;  %v136_v35 = vsel %vm134_vm1, %v112_v34, 0  ;;  %2300 = vrot.lane.b32.xlu1 %v9879_v9, %s9828_s4  ;;  %v142_v41 = vsel %vm134_vm1, %v114_v37, 0  ;;  %v605_v37 = vsel %vm134_vm1, %v9860_v4, 0 }
  0x7d   :  { %207 = vmatpush1.bf16.msra.mxu0 %v136_v35  ;;  %2298 = vrot.lane.b32.xlu0 %v9866_v5, %s9828_s4 }
  0x7e   :  { %v84_v38 = vpop.permute.xlu1 %83  ;;  %v82_v39 = vpop.permute.xlu0 %81 }
  0x7f   :  { %v115_v40 = vsel %vm111_vm0, %v80_v31, %v82_v39  ;;  %v116_v42 = vsel %vm111_vm0, %v82_v39, %v84_v38  ;;  %v13553_v31 = vmov 0.0  }
  0x80   :  { %9070 = vmatmul.mubr.msk.bf16.vlgmr.msra.gmra.mxu0 %vm130_vm2, %v10049_v36  ;;  %9071 = vmatprep.subr.msk.bf16.mxu1 %vm134_vm1, %v115_v40  ;;  %v148_v46 = vsel %vm134_vm1, %v116_v42, 0  ;;  %v611_v40 = vsel %vm134_vm1, %v9858_v3, 0 }
  0x81   :  { %248 = vmatpush1.bf16.msra.mxu1 %v142_v41  ;;  %306 = vmatprep.mubr.bf16.mxu0 %v13555_v2 }
  0x82   :  { %v88_v43 = vpop.permute.xlu1 %87  ;;  %v86_v44 = vpop.permute.xlu0 %85  ;;  %2304 = vrot.lane.b32.xlu1 %v9890_v12, %s9828_s4  ;;  %2302 = vrot.lane.b32.xlu0 %v9877_v8, %s9828_s4 }
  0x83   :  { %v117_v45 = vsel %vm111_vm0, %v84_v38, %v86_v44  ;;  %v118_v47 = vsel %vm111_vm0, %v86_v44, %v88_v43  ;;  %v617_v44 = vsel %vm134_vm1, %v9879_v9, 0 }
  0x84   :  { %9072 = vmatmul.mubr.msk.bf16.vlgmr.msra.gmra.mxu1 %vm130_vm2, %v10049_v36  ;;  %9073 = vmatprep.subr.msk.bf16.mxu0 %vm134_vm1, %v117_v45  ;;  %v154_v51 = vsel %vm134_vm1, %v118_v47, 0 }
  0x85   :  { %289 = vmatpush1.bf16.msra.mxu0 %v148_v46  ;;  %347 = vmatprep.mubr.bf16.mxu1 %v13555_v2  ;;  %v623_v46 = vsel %vm134_vm1, %v9890_v12, 0 }
  0x86   :  { %v92_v48 = vpop.permute.xlu1 %91  ;;  %v90_v49 = vpop.permute.xlu0 %89  ;;  %2308 = vrot.lane.b32.xlu1 %v9901_v15, %s9828_s4  ;;  %2306 = vrot.lane.b32.xlu0 %v9888_v11, %s9828_s4 }
  0x87   :  { %v119_v50 = vsel %vm111_vm0, %v88_v43, %v90_v49  ;;  %v120_v52 = vsel %vm111_vm0, %v90_v49, %v92_v48  ;;  %v10181_v43 = vld [vmem:[%s13551_s1] sm:$0x3]  ;;  %v629_v49 = vsel %vm134_vm1, %v9901_v15, 0 }
  0x88   :  { %9074 = vmatmul.mubr.msk.bf16.vlgmr.msra.gmra.mxu0 %vm130_vm2, %v10049_v36  ;;  %9075 = vmatprep.subr.msk.bf16.mxu1 %vm134_vm1, %v119_v50  ;;  %v160_v56 = vsel %vm134_vm1, %v120_v52, 0  ;;  %v635_v52 = vsel %vm134_vm1, %v9912_v18, 0 }
  0x89   :  { %330 = vmatpush1.bf16.msra.mxu1 %v154_v51  ;;  %388 = vmatprep.mubr.bf16.mxu0 %v13555_v2 }
  0x8a   :  { %v96_v53 = vpop.permute.xlu1 %95  ;;  %v94_v54 = vpop.permute.xlu0 %93  ;;  %2312 = vrot.lane.b32.xlu1 %v9912_v18, %s9828_s4  ;;  %2310 = vrot.lane.b32.xlu0 %v9899_v14, %s9828_s4 }
  0x8b   :  { %v121_v55 = vsel %vm111_vm0, %v92_v48, %v94_v54  ;;  %v122_v57 = vsel %vm111_vm0, %v94_v54, %v96_v53 }
  0x8c   :  { %9076 = vmatmul.mubr.msk.bf16.vlgmr.msra.gmra.mxu1 %vm130_vm2, %v10049_v36  ;;  %9077 = vmatprep.subr.msk.bf16.mxu0 %vm134_vm1, %v121_v55  ;;  %v166_v61 = vsel %vm134_vm1, %v122_v57, 0  ;;  %v641_v55 = vsel %vm134_vm1, %v9923_v21, 0 }
  0x8d   :  { %371 = vmatpush1.bf16.msra.mxu0 %v160_v56  ;;  %429 = vmatprep.mubr.bf16.mxu1 %v13555_v2 }
  0x8e   :  { %v100_v58 = vpop.permute.xlu1 %99  ;;  %v98_v59 = vpop.permute.xlu0 %97  ;;  %2316 = vrot.lane.b32.xlu1 %v9923_v21, %s9828_s4  ;;  %2314 = vrot.lane.b32.xlu0 %v9910_v17, %s9828_s4 }
  0x8f   :  { %v123_v60 = vsel %vm111_vm0, %v96_v53, %v98_v59  ;;  %v124_v62 = vsel %vm111_vm0, %v98_v59, %v100_v58 }
  0x90   :  { %9078 = vmatmul.mubr.msk.bf16.vlgmr.msra.gmra.mxu0 %vm130_vm2, %v10049_v36  ;;  %9079 = vmatprep.subr.msk.bf16.mxu1 %vm134_vm1, %v123_v60  ;;  %v172_v7 = vsel %vm134_vm1, %v124_v62, 0 }
  0x91   :  { %412 = vmatpush1.bf16.msra.mxu1 %v166_v61  ;;  %470 = vmatprep.mubr.bf16.mxu0 %v13555_v2  ;;  %v653_v61 = vsel %vm134_vm1, %v9945_v27, 0 }
  0x92   :  { %v104_v63 = vpop.permute.xlu1 %103  ;;  %v102_v0 = vpop.permute.xlu0 %101  ;;  %2320 = vrot.lane.b32.xlu1 %v9934_v24, %s9828_s4  ;;  %2318 = vrot.lane.b32.xlu0 %v9921_v20, %s9828_s4 }
  0x93   :  { %v125_v1 = vsel %vm111_vm0, %v100_v58, %v102_v0  ;;  %v126_v10 = vsel %vm111_vm0, %v102_v0, %v104_v63  ;;  %v647_v58 = vsel %vm134_vm1, %v9934_v24, 0 }
  0x94   :  { %9080 = vmatmul.mubr.msk.bf16.vlgmr.msra.gmra.mxu1 %vm130_vm2, %v10049_v36  ;;  %9081 = vmatprep.subr.msk.bf16.mxu0 %vm134_vm1, %v125_v1  ;;  %v178_v25 = vsel %vm134_vm1, %v126_v10, 0  ;;  %v659_v1 = vsel %vm134_vm1, %v9954_v28, 0 }
  0x95   :  { %453 = vmatpush1.bf16.msra.mxu0 %v172_v7  ;;  %511 = vmatprep.mubr.bf16.mxu1 %v13555_v2 }
  0x96   :  { %v108_v13 = vpop.permute.xlu1 %107  ;;  %v106_v16 = vpop.permute.xlu0 %105  ;;  %2324 = vrot.lane.b32.xlu1 %v9945_v27, %s9828_s4  ;;  %2322 = vrot.lane.b32.xlu0 %v9932_v23, %s9828_s4 }
  0x97   :  { %v127_v22 = vsel %vm111_vm0, %v104_v63, %v106_v16  ;;  %v128_v29 = vsel %vm111_vm0, %v106_v16, %v108_v13 }
  0x98   :  { %9082 = vmatmul.mubr.msk.bf16.vlgmr.msra.gmra.mxu0 %vm130_vm2, %v10049_v36  ;;  %9083 = vmatprep.subr.msk.bf16.mxu1 %vm134_vm1, %v127_v22  ;;  %v184_v35 = vsel %vm134_vm1, %v128_v29, 0 }
  0x99   :  { %494 = vmatpush1.bf16.msra.mxu1 %v178_v25  ;;  %552 = vmatprep.mubr.bf16.mxu0 %v13555_v2 }
  0x9a   :  { %v110_v30 = vpop.permute.xlu0 %109  ;;  %9506 = vmatprep.subr.bf16.mxu1 %v13553_v31  ;;  %v10133_v32 = vpop.permute.xlu1 %1072  ;;  %2328 = vrot.lane.b32.xlu1 %v10123_v19, %s9828_s4 }
  0x9b   :  { %v129_v33 = vsel %vm111_vm0, %v108_v13, %v110_v30  ;;  %v190_v34 = vsel %vm134_vm1, %v110_v30, 0  ;;  %2326 = vrot.lane.b32.xlu0 %v9943_v26, %s9828_s4 }
  0x9c   :  { %9084 = vmatmul.mubr.msk.bf16.vlgmr.msra.gmra.mxu1 %vm130_vm2, %v10049_v36  ;;  %9085 = vmatprep.subr.msk.bf16.mxu0 %vm134_vm1, %v129_v33 }
  0x9d   :  { %535 = vmatpush1.bf16.msra.mxu0 %v184_v35  ;;  %9507 = vmatpush3.bf16.msra.mxu1 %v190_v34 }
  0x9e   :  { %9508 = vmatprep.mubr.msk.bf16.mxu1 %vm9830_vm3, %v13553_v31  ;;  %9088 = vmatprep.subr.msk.bf16.mxu0 %vm134_vm1, %v9868_v6  ;;  %v10151_v38 = vpop.permute.xlu1 %1076  ;;  %v10153_v39 = vpop.permute.xlu0 %1074 }
  0x9f   :  { %9090 = vmatprep.subr.msk.bf16.mxu1 %vm134_vm1, %v9866_v5  ;;  %2818 = vrot.lane.b32.xlu0 %v9860_v4, %s9825_s13  ;;  %v1112_v0 = vsel %vm1110_vm4, %v10153_v39, %v10151_v38  ;;  %v1111_v13 = vsel %vm1110_vm4, %v10133_v32, %v10153_v39 }
  0xa0   :  { %9086 = vmatmul.mubr.msk.bf16.vlgmr.msra.gmra.mxu0 %vm130_vm2, %v10049_v36  ;;  %2820 = vrot.lane.b32.xlu1 %v9868_v6, %s9825_s13  ;;  %v1133_v28 = vsel %vm134_vm1, %v1111_v13, 0 }
  0xa1   :  { %676 = vmatpush1.bf16.msra.mxu0 %v605_v37  ;;  %693 = vmatprep.mubr.bf16.mxu0 %v13555_v2 }
  0xa2   :  { %9092 = vmatprep.subr.msk.bf16.mxu0 %vm134_vm1, %v9877_v8  ;;  %v10168_v41 = vpop.permute.xlu1 %1080  ;;  %v10170_v42 = vpop.permute.xlu0 %1078 }
  0xa3   :  { %2822 = vrot.lane.b32.xlu0 %v9858_v3, %s9825_s13  ;;  %v1114_v16 = vsel %vm1110_vm4, %v10170_v42, %v10168_v41  ;;  %v1113_v29 = vsel %vm1110_vm4, %v10151_v38, %v10170_v42  ;;  %v10352_v38 = vld [vmem:[%s13551_s1 + $0x4] sm:$0x3] }
  0xa4   :  { %9509 = vmatmul.mubr.msk.bf16.vlgmr.msra.gmra.mxu1 %vm130_vm2, %v10049_v36  ;;  %2824 = vrot.lane.b32.xlu1 %v9866_v5, %s9825_s13  ;;  %v1139_v32 = vsel %vm134_vm1, %v1113_v29, 0 }
  0xa5   :  { %717 = vmatpush1.bf16.msra.mxu1 %v611_v40  ;;  %734 = vmatprep.mubr.bf16.mxu1 %v13555_v2 }
  0xa6   :  { %9094 = vmatprep.subr.msk.bf16.mxu1 %vm134_vm1, %v9888_v11  ;;  %v10188_v45 = vpop.permute.xlu1 %1084  ;;  %v10190_v36 = vpop.permute.xlu0 %1082 }
  0xa7   :  { %2826 = vrot.lane.b32.xlu0 %v9879_v9, %s9825_s13  ;;  %v1116_v30 = vsel %vm1110_vm4, %v10190_v36, %v10188_v45  ;;  %v1115_v35 = vsel %vm1110_vm4, %v10168_v41, %v10190_v36 }
  0xa8   :  { %9089 = vmatmul.mubr.msk.bf16.vlgmr.msra.gmra.mxu0 %vm130_vm2, %v10181_v43  ;;  %2828 = vrot.lane.b32.xlu1 %v9877_v8, %s9825_s13  ;;  %v1145_v39 = vsel %vm134_vm1, %v1115_v35, 0 }
  0xa9   :  { %758 = vmatpush1.bf16.msra.mxu0 %v617_v44  ;;  %775 = vmatprep.mubr.bf16.mxu0 %v13555_v2 }
  0xaa   :  { %9096 = vmatprep.subr.msk.bf16.mxu0 %vm134_vm1, %v9899_v14  ;;  %v10203_v47 = vpop.permute.xlu1 %1088  ;;  %v10205_v48 = vpop.permute.xlu0 %1086 }
  0xab   :  { %2830 = vrot.lane.b32.xlu0 %v9890_v12, %s9825_s13  ;;  %v1118_v37 = vsel %vm1110_vm4, %v10205_v48, %v10203_v47  ;;  %v1117_v42 = vsel %vm1110_vm4, %v10188_v45, %v10205_v48 }
  0xac   :  { %9091 = vmatmul.mubr.msk.bf16.vlgmr.msra.gmra.mxu1 %vm130_vm2, %v10181_v43  ;;  %2832 = vrot.lane.b32.xlu1 %v9888_v11, %s9825_s13  ;;  %v1151_v44 = vsel %vm134_vm1, %v1117_v42, 0 }
  0xad   :  { %799 = vmatpush1.bf16.msra.mxu1 %v623_v46  ;;  %816 = vmatprep.mubr.bf16.mxu1 %v13555_v2 }
  0xae   :  { %9098 = vmatprep.subr.msk.bf16.mxu1 %vm134_vm1, %v9910_v17  ;;  %v10218_v50 = vpop.permute.xlu1 %1092  ;;  %v10220_v51 = vpop.permute.xlu0 %1090 }
  0xaf   :  { %2834 = vrot.lane.b32.xlu0 %v9901_v15, %s9825_s13  ;;  %v1119_v46 = vsel %vm1110_vm4, %v10203_v47, %v10220_v51 }
  0xb0   :  { %9093 = vmatmul.mubr.msk.bf16.vlgmr.msra.gmra.mxu0 %vm130_vm2, %v10181_v43  ;;  %2836 = vrot.lane.b32.xlu1 %v9899_v14, %s9825_s13 }
  0xb1   :  { %840 = vmatpush1.bf16.msra.mxu0 %v629_v49  ;;  %857 = vmatprep.mubr.bf16.mxu0 %v13555_v2  ;;  %v1157_v49 = vsel %vm134_vm1, %v1119_v46, 0 }
  0xb2   :  { %9100 = vmatprep.subr.msk.bf16.mxu0 %vm134_vm1, %v9921_v20  ;;  %v10233_v53 = vpop.permute.xlu1 %1096  ;;  %v10235_v54 = vpop.permute.xlu0 %1094 }
  0xb3   :  { %2838 = vrot.lane.b32.xlu0 %v9912_v18, %s9825_s13  ;;  %v1122_v48 = vsel %vm1110_vm4, %v10235_v54, %v10233_v53 }
  0xb4   :  { %9095 = vmatmul.mubr.msk.bf16.vlgmr.msra.gmra.mxu1 %vm130_vm2, %v10181_v43  ;;  %2840 = vrot.lane.b32.xlu1 %v9910_v17, %s9825_s13 }
  0xb5   :  { %881 = vmatpush1.bf16.msra.mxu1 %v635_v52  ;;  %898 = vmatprep.mubr.bf16.mxu1 %v13555_v2  ;;  %v1121_v52 = vsel %vm1110_vm4, %v10218_v50, %v10235_v54 }
  0xb6   :  { %9102 = vmatprep.subr.msk.bf16.mxu1 %vm134_vm1, %v9932_v23  ;;  %v10248_v56 = vpop.permute.xlu1 %1100  ;;  %v10250_v57 = vpop.permute.xlu0 %1098 }
  0xb7   :  { %2842 = vrot.lane.b32.xlu0 %v9923_v21, %s9825_s13 }
  0xb8   :  { %9097 = vmatmul.mubr.msk.bf16.vlgmr.msra.gmra.mxu0 %vm130_vm2, %v10181_v43  ;;  %2844 = vrot.lane.b32.xlu1 %v9921_v20, %s9825_s13 }
  0xb9   :  { %922 = vmatpush1.bf16.msra.mxu0 %v641_v55  ;;  %939 = vmatprep.mubr.bf16.mxu0 %v13555_v2  ;;  %v1124_v55 = vsel %vm1110_vm4, %v10250_v57, %v10248_v56 }
  0xba   :  { %9104 = vmatprep.subr.msk.bf16.mxu0 %vm134_vm1, %v9943_v26  ;;  %v10263_v59 = vpop.permute.xlu1 %1104  ;;  %v10265_v60 = vpop.permute.xlu0 %1102 }
  0xbb   :  { %2846 = vrot.lane.b32.xlu0 %v9934_v24, %s9825_s13  ;;  %v1125_v13 = vsel %vm1110_vm4, %v10248_v56, %v10265_v60 }
  0xbc   :  { %9099 = vmatmul.mubr.msk.bf16.vlgmr.msra.gmra.mxu1 %vm130_vm2, %v10181_v43  ;;  %2848 = vrot.lane.b32.xlu1 %v9932_v23, %s9825_s13 }
  0xbd   :  { %963 = vmatpush1.bf16.msra.mxu1 %v647_v58  ;;  %980 = vmatprep.mubr.bf16.mxu1 %v13555_v2  ;;  %v1163_v58 = vsel %vm134_vm1, %v1121_v52, 0 }
  0xbe   :  { %9512 = vmatprep.subr.bf16.mxu1 %v13553_v31  ;;  %v10277_v62 = vpop.permute.xlu1 %1108  ;;  %v10279_v63 = vpop.permute.xlu0 %1106 }
  0xbf   :  { %2850 = vrot.lane.b32.xlu0 %v9945_v27, %s9825_s13  ;;  %v1127_v29 = vsel %vm1110_vm4, %v10263_v59, %v10279_v63  ;;  %v1187_v35 = vsel %vm134_vm1, %v10277_v62, 0 }
  0xc0   :  { %9101 = vmatmul.mubr.msk.bf16.vlgmr.msra.gmra.mxu0 %vm130_vm2, %v10181_v43  ;;  %2852 = vrot.lane.b32.xlu1 %v9943_v26, %s9825_s13 }
  0xc1   :  { %1004 = vmatpush1.bf16.msra.mxu0 %v653_v61  ;;  %1021 = vmatprep.mubr.bf16.mxu0 %v13555_v2  ;;  %v1123_v61 = vsel %vm1110_vm4, %v10233_v53, %v10250_v57 }
  0xc2   :  { %9108 = vmatprep.subr.msk.bf16.mxu0 %vm134_vm1, %v1112_v0  ;;  %v10294_v7 = vpop.permute.xlu0 %1619  ;;  %v10296_v10 = vpop.permute.xlu1 %1621  ;;  %v1126_v0 = vsel %vm1110_vm4, %v10265_v60, %v10263_v59 }
  0xc3   :  { %2854 = vrot.lane.b32.xlu0 %v10123_v19, %s9825_s13  ;;  %v1658_v42 = vsel %vm1657_vm5, %v10294_v7, %v10296_v10  ;;  %s9831_s13 = smov 92  }
  0xc4   :  { %9103 = vmatmul.mubr.msk.bf16.vlgmr.msra.gmra.mxu1 %vm130_vm2, %v10181_v43  ;;  %3345 = vrot.lane.b32.xlu1 %v9860_v4, %s9827_s3 }
  0xc5   :  { %9513 = vmatpush3.bf16.msra.mxu1 %v659_v1  ;;  %9514 = vmatprep.mubr.msk.bf16.mxu1 %vm9830_vm3, %v13553_v31  ;;  %v1169_v1 = vsel %vm134_vm1, %v1123_v61, 0 }
  0xc6   :  { %9110 = vmatprep.subr.msk.bf16.mxu1 %vm134_vm1, %v1114_v16  ;;  %v10314_v22 = vpop.permute.xlu0 %1623  ;;  %v10316_v25 = vpop.permute.xlu1 %1625  ;;  %v1128_v16 = vsel %vm1110_vm4, %v10279_v63, %v10277_v62  ;;  %v1680_v62 = vsel %vm134_vm1, %v1658_v42, 0 }
  0xc7   :  { %3347 = vrot.lane.b32.xlu0 %v9868_v6, %s9827_s3  ;;  %v1659_v63 = vsel %vm1657_vm5, %v10296_v10, %v10314_v22 }
  0xc8   :  { %9105 = vmatmul.mubr.msk.bf16.vlgmr.msra.gmra.mxu0 %vm130_vm2, %v10181_v43  ;;  %3349 = vrot.lane.b32.xlu1 %v9858_v3, %s9827_s3 }
  0xc9   :  { %1204 = vmatpush1.bf16.msra.mxu0 %v1133_v28  ;;  %1221 = vmatprep.mubr.bf16.mxu0 %v13555_v2  ;;  %v1175_v28 = vsel %vm134_vm1, %v1125_v13, 0 }
  0xca   :  { %9112 = vmatprep.subr.msk.bf16.mxu0 %vm134_vm1, %v1116_v30  ;;  %v10333_v33 = vpop.permute.xlu0 %1627  ;;  %v10335_v34 = vpop.permute.xlu1 %1629  ;;  %v1181_v30 = vsel %vm134_vm1, %v1127_v29, 0 }
  0xcb   :  { %3351 = vrot.lane.b32.xlu0 %v9866_v5, %s9827_s3 }
  0xcc   :  { %9515 = vmatmul.mubr.msk.bf16.vlgmr.msra.gmra.mxu1 %vm130_vm2, %v10181_v43  ;;  %3353 = vrot.lane.b32.xlu1 %v9879_v9, %s9827_s3  ;;  %v1120_v43 = vsel %vm1110_vm4, %v10220_v51, %v10218_v50 }
  0xcd   :  { %1245 = vmatpush1.bf16.msra.mxu1 %v1139_v32  ;;  %1262 = vmatprep.mubr.bf16.mxu1 %v13555_v2 }
  0xce   :  { %9114 = vmatprep.subr.msk.bf16.mxu1 %vm134_vm1, %v1118_v37  ;;  %v10357_v40 = vpop.permute.xlu0 %1631  ;;  %v10359_v41 = vpop.permute.xlu1 %1633 }
  0xcf   :  { %3355 = vrot.lane.b32.xlu0 %v9877_v8, %s9827_s3  ;;  %v1663_v10 = vsel %vm1657_vm5, %v10335_v34, %v10357_v40 }
  0xd0   :  { %9109 = vmatmul.mubr.msk.bf16.vlgmr.msra.gmra.mxu0 %vm130_vm2, %v10352_v38  ;;  %3357 = vrot.lane.b32.xlu1 %v9890_v12, %s9827_s3 }
  0xd1   :  { %1286 = vmatpush1.bf16.msra.mxu0 %v1145_v39  ;;  %1303 = vmatprep.mubr.bf16.mxu0 %v13555_v2 }
  0xd2   :  { %9116 = vmatprep.subr.msk.bf16.mxu0 %vm134_vm1, %v1120_v43  ;;  %v10376_v45 = vpop.permute.xlu0 %1635  ;;  %v10378_v36 = vpop.permute.xlu1 %1637  ;;  %v1661_v43 = vsel %vm1657_vm5, %v10316_v25, %v10333_v33 }
  0xd3   :  { %3359 = vrot.lane.b32.xlu0 %v9888_v11, %s9827_s3 }
  0xd4   :  { %9111 = vmatmul.mubr.msk.bf16.vlgmr.msra.gmra.mxu1 %vm130_vm2, %v10352_v38  ;;  %3361 = vrot.lane.b32.xlu1 %v9901_v15, %s9827_s3 }
  0xd5   :  { %1327 = vmatpush1.bf16.msra.mxu1 %v1151_v44  ;;  %1344 = vmatprep.mubr.bf16.mxu1 %v13555_v2 }
  0xd6   :  { %9118 = vmatprep.subr.msk.bf16.mxu1 %vm134_vm1, %v1122_v48  ;;  %v10395_v47 = vpop.permute.xlu0 %1639  ;;  %v10397_v51 = vpop.permute.xlu1 %1641 }
  0xd7   :  { %3363 = vrot.lane.b32.xlu0 %v9899_v14, %s9827_s3 }
  0xd8   :  { %9113 = vmatmul.mubr.msk.bf16.vlgmr.msra.gmra.mxu0 %vm130_vm2, %v10352_v38  ;;  %3365 = vrot.lane.b32.xlu1 %v9912_v18, %s9827_s3 }
  0xd9   :  { %1368 = vmatpush1.bf16.msra.mxu0 %v1157_v49  ;;  %1385 = vmatprep.mubr.bf16.mxu0 %v13555_v2 }
  0xda   :  { %9120 = vmatprep.subr.msk.bf16.mxu0 %vm134_vm1, %v1124_v55  ;;  %v10414_v50 = vpop.permute.xlu0 %1643  ;;  %v10416_v54 = vpop.permute.xlu1 %1645 }
  0xdb   :  { %3367 = vrot.lane.b32.xlu0 %v9910_v17, %s9827_s3 }
  0xdc   :  { %9115 = vmatmul.mubr.msk.bf16.vlgmr.msra.gmra.mxu1 %vm130_vm2, %v10352_v38  ;;  %3369 = vrot.lane.b32.xlu1 %v9923_v21, %s9827_s3 }
  0xdd   :  { %1409 = vmatpush1.bf16.msra.mxu1 %v1163_v58  ;;  %1426 = vmatprep.mubr.bf16.mxu1 %v13555_v2 }
  0xde   :  { %9122 = vmatprep.subr.msk.bf16.mxu1 %vm134_vm1, %v1126_v0  ;;  %v10433_v53 = vpop.permute.xlu0 %1647  ;;  %v10435_v57 = vpop.permute.xlu1 %1649 }
  0xdf   :  { %3371 = vrot.lane.b32.xlu0 %v9921_v20, %s9827_s3 }
  0xe0   :  { %9117 = vmatmul.mubr.msk.bf16.vlgmr.msra.gmra.mxu0 %vm130_vm2, %v10352_v38  ;;  %3373 = vrot.lane.b32.xlu1 %v9934_v24, %s9827_s3 }
  0xe1   :  { %1450 = vmatpush1.bf16.msra.mxu0 %v1169_v1  ;;  %1467 = vmatprep.mubr.bf16.mxu0 %v13555_v2  ;;  %v4505_v1 = vld [vmem:[%s13550_s0 + $0x8] sm:$0xff] }
  0xe2   :  { %9124 = vmatprep.subr.msk.bf16.mxu0 %vm134_vm1, %v1128_v16  ;;  %v10452_v56 = vpop.permute.xlu0 %1651  ;;  %v10454_v60 = vpop.permute.xlu1 %1653  ;;  %v10678_v13 = vcombine.low %v4505_v1, %v4505_v1 }
  0xe3   :  { %3375 = vrot.lane.b32.xlu0 %v9932_v23, %s9827_s3 }
  0xe4   :  { %9119 = vmatmul.mubr.msk.bf16.vlgmr.msra.gmra.mxu1 %vm130_vm2, %v10352_v38  ;;  %3377 = vrot.lane.b32.xlu1 %v9945_v27, %s9827_s3 }
  0xe5   :  { %1491 = vmatpush1.bf16.msra.mxu1 %v1175_v28  ;;  %1508 = vmatprep.mubr.bf16.mxu1 %v13555_v2  ;;  %v4506_v28 = vld [vmem:[%s13550_s0 + $0x10] sm:$0xff] }
  0xe6   :  { %9518 = vmatprep.subr.bf16.mxu1 %v13553_v31  ;;  %v10468_v32 = vpop.permute.xlu0 %1655  ;;  %v10470_v59 = vpop.permute.xlu1 %2292 }
  0xe7   :  { %3379 = vrot.lane.b32.xlu0 %v9943_v26, %s9827_s3  ;;  %v1675_v58 = vsel %vm1657_vm5, %v10454_v60, %v10468_v32 }
  0xe8   :  { %9121 = vmatmul.mubr.msk.bf16.vlgmr.msra.gmra.mxu0 %vm130_vm2, %v10352_v38  ;;  %3381 = vrot.lane.b32.xlu1 %v10123_v19, %s9827_s3 }
  0xe9   :  { %1532 = vmatpush1.bf16.msra.mxu0 %v1181_v30  ;;  %1549 = vmatprep.mubr.bf16.mxu0 %v13555_v2  ;;  %v10699_v30 = vcombine.high %v4505_v1, %v4505_v1 }
  0xea   :  { %9128 = vmatprep.subr.msk.bf16.mxu0 %vm134_vm1, %v1659_v63  ;;  %v10485_v37 = vpop.permute.xlu1 %2296  ;;  %v10487_v39 = vpop.permute.xlu0 %2294  ;;  %v4507_v63 = vld [vmem:[%s13550_s0 + $0x18] sm:$0xff] }
  0xeb   :  { %3891 = vrot.lane.b32.xlu0 %v9860_v4, %s9831_s13  ;;  %v1660_v4 = vsel %vm1657_vm5, %v10314_v22, %v10316_v25  ;;  %v1662_v22 = vsel %vm1657_vm5, %v10333_v33, %v10335_v34  ;;  %v10543_v33 = vld [vmem:[%s13551_s1 + $0x6] sm:$0x3]  ;;  %v1664_v34 = vsel %vm1657_vm5, %v10357_v40, %v10359_v41 }
  0xec   :  { %9123 = vmatmul.mubr.msk.bf16.vlgmr.msra.gmra.mxu1 %vm130_vm2, %v10352_v38  ;;  %3893 = vrot.lane.b32.xlu1 %v9868_v6, %s9831_s13  ;;  %v1686_v6 = vsel %vm134_vm1, %v1660_v4, 0  ;;  %v1698_v40 = vsel %vm134_vm1, %v1664_v34, 0  ;;  %v10732_v4 = vcombine.low %v4507_v63, %v4507_v63 }
  0xed   :  { %9519 = vmatpush3.bf16.msra.mxu1 %v1187_v35  ;;  %9520 = vmatprep.mubr.msk.bf16.mxu1 %vm9830_vm3, %v13553_v31 }
  0xee   :  { %9130 = vmatprep.subr.msk.bf16.mxu1 %vm134_vm1, %v1661_v43  ;;  %v10505_v7 = vpop.permute.xlu1 %2300  ;;  %13595 = vst [vmem:[#allocation3_spill] sm:$0xff] %v10732_v4 }
  0xef   :  { %v10513_v44 = vpop.permute.xlu0 %2298  ;;  %3895 = vrot.lane.b32.xlu0 %v9858_v3, %s9831_s13  ;;  %v1665_v3 = vsel %vm1657_vm5, %v10359_v41, %v10376_v45  ;;  %v1669_v41 = vsel %vm1657_vm5, %v10397_v51, %v10414_v50 }
  0xf0   :  { %9125 = vmatmul.mubr.msk.bf16.vlgmr.msra.gmra.mxu0 %vm130_vm2, %v10352_v38  ;;  %3897 = vrot.lane.b32.xlu1 %v9866_v5, %s9831_s13  ;;  %v2334_v29 = vsel %vm2330_vm6, %v10513_v44, %v10505_v7  ;;  %v2333_v42 = vsel %vm2330_vm6, %v10485_v37, %v10513_v44 }
  0xf1   :  { %1751 = vmatpush1.bf16.msra.mxu0 %v1680_v62  ;;  %1768 = vmatprep.mubr.bf16.mxu0 %v13555_v2  ;;  %v10726_v62 = vcombine.high %v4506_v28, %v4506_v28  ;;  %v2359_v44 = vsel %vm134_vm1, %v2333_v42, 0 }
  0xf2   :  { %9132 = vmatprep.subr.msk.bf16.mxu0 %vm134_vm1, %v1663_v10  ;;  %v4508_v10 = vld [vmem:[%s13550_s0 + $0x20] sm:$0xff] }
  0xf3   :  { %3899 = vrot.lane.b32.xlu0 %v9879_v9, %s9831_s13  ;;  %v1692_v9 = vsel %vm134_vm1, %v1662_v22, 0  ;;  %v10758_v34 = vcombine.low %v4508_v10, %v4508_v10 }
  0xf4   :  { %9521 = vmatmul.mubr.msk.bf16.vlgmr.msra.gmra.mxu1 %vm130_vm2, %v10352_v38  ;;  %v10534_v5 = vpop.permute.xlu1 %2304  ;;  %v10536_v25 = vpop.permute.xlu0 %2302  ;;  %3901 = vrot.lane.b32.xlu1 %v9877_v8, %s9831_s13  ;;  %v1667_v8 = vsel %vm1657_vm5, %v10378_v36, %v10395_v47 }
  0xf5   :  { %1792 = vmatpush1.bf16.msra.mxu1 %v1686_v6  ;;  %1809 = vmatprep.mubr.bf16.mxu1 %v13555_v2  ;;  %v2336_v43 = vsel %vm2330_vm6, %v10536_v25, %v10534_v5  ;;  %v2335_v22 = vsel %vm2330_vm6, %v10505_v7, %v10536_v25  ;;  %v10763_v7 = vld [vmem:[%s13551_s1 + $0xa] sm:$0x3] }
  0xf6   :  { %9134 = vmatprep.subr.msk.bf16.mxu1 %vm134_vm1, %v1665_v3 }
  0xf7   :  { %3903 = vrot.lane.b32.xlu0 %v9890_v12, %s9831_s13  ;;  %v1666_v12 = vsel %vm1657_vm5, %v10376_v45, %v10378_v36  ;;  %v1671_v36 = vsel %vm1657_vm5, %v10416_v54, %v10433_v53 }
  0xf8   :  { %9129 = vmatmul.mubr.msk.bf16.vlgmr.msra.gmra.mxu0 %vm130_vm2, %v10543_v33  ;;  %v10558_v38 = vpop.permute.xlu1 %2308  ;;  %v10560_v46 = vpop.permute.xlu0 %2306  ;;  %3905 = vrot.lane.b32.xlu1 %v9888_v11, %s9831_s13  ;;  %v1704_v45 = vsel %vm134_vm1, %v1666_v12, 0 }
  0xf9   :  { %1833 = vmatpush1.bf16.msra.mxu0 %v1692_v9  ;;  %1850 = vmatprep.mubr.bf16.mxu0 %v13555_v2  ;;  %v2338_v3 = vsel %vm2330_vm6, %v10560_v46, %v10558_v38  ;;  %v10752_v9 = vcombine.high %v4507_v63, %v4507_v63  ;;  %v2337_v12 = vsel %vm2330_vm6, %v10534_v5, %v10560_v46  ;;  %v4510_v46 = vld [vmem:[%s13550_s0 + $0x30] sm:$0xff] }
  0xfa   :  { %9136 = vmatprep.subr.msk.bf16.mxu0 %vm134_vm1, %v1667_v8  ;;  %v4509_v8 = vld [vmem:[%s13550_s0 + $0x28] sm:$0xff]  ;;  %v10835_v1 = vcombine.high %v4510_v46, %v4510_v46 }
  0xfb   :  { %3907 = vrot.lane.b32.xlu0 %v9901_v15, %s9831_s13  ;;  %v1668_v15 = vsel %vm1657_vm5, %v10395_v47, %v10397_v51  ;;  %v1673_v51 = vsel %vm1657_vm5, %v10435_v57, %v10452_v56 }
  0xfc   :  { %9131 = vmatmul.mubr.msk.bf16.vlgmr.msra.gmra.mxu1 %vm130_vm2, %v10543_v33  ;;  %v10577_v11 = vpop.permute.xlu1 %2312  ;;  %v10579_v48 = vpop.permute.xlu0 %2310  ;;  %3909 = vrot.lane.b32.xlu1 %v9899_v14, %s9831_s13  ;;  %v1710_v47 = vsel %vm134_vm1, %v1668_v15, 0  ;;  %v10789_v15 = vcombine.low %v4509_v8, %v4509_v8 }
  0xfd   :  { %1874 = vmatpush1.bf16.msra.mxu1 %v1698_v40  ;;  %1891 = vmatprep.mubr.bf16.mxu1 %v13555_v2 }
  0xfe   :  { %9138 = vmatprep.subr.msk.bf16.mxu1 %vm134_vm1, %v1669_v41  ;;  %v2340_v41 = vsel %vm2330_vm6, %v10579_v48, %v10577_v11 }
  0xff   :  { %3911 = vrot.lane.b32.xlu0 %v9912_v18, %s9831_s13  ;;  %v1670_v18 = vsel %vm1657_vm5, %v10414_v50, %v10416_v54  ;;  %v4504_v54 = vld [vmem:[%s13550_s0] sm:$0xff] }
 0x100   :  { %9133 = vmatmul.mubr.msk.bf16.vlgmr.msra.gmra.mxu0 %vm130_vm2, %v10543_v33  ;;  %v10596_v14 = vpop.permute.xlu1 %2316  ;;  %v10598_v49 = vpop.permute.xlu0 %2314  ;;  %3913 = vrot.lane.b32.xlu1 %v9910_v17, %s9831_s13  ;;  %v1716_v55 = vsel %vm134_vm1, %v1670_v18, 0  ;;  %v2339_v18 = vsel %vm2330_vm6, %v10558_v38, %v10579_v48  ;;  %v4511_v48 = vld [vmem:[%s13550_s0 + $0x38] sm:$0xff] }
 0x101   :  { %1915 = vmatpush1.bf16.msra.mxu0 %v1704_v45  ;;  %1932 = vmatprep.mubr.bf16.mxu0 %v13555_v2  ;;  %v10783_v45 = vcombine.high %v4508_v10, %v4508_v10 }
 0x102   :  { %9140 = vmatprep.subr.msk.bf16.mxu0 %vm134_vm1, %v1671_v36  ;;  %v2371_v36 = vsel %vm134_vm1, %v2337_v12, 0 }
 0x103   :  { %3915 = vrot.lane.b32.xlu0 %v9923_v21, %s9831_s13  ;;  %v1672_v21 = vsel %vm1657_vm5, %v10433_v53, %v10435_v57  ;;  %v10672_v57 = vcombine.high %v4504_v54, %v4504_v54 }
 0x104   :  { %9135 = vmatmul.mubr.msk.bf16.vlgmr.msra.gmra.mxu1 %vm130_vm2, %v10543_v33  ;;  %v10615_v17 = vpop.permute.xlu1 %2320  ;;  %v10617_v52 = vpop.permute.xlu0 %2318  ;;  %3917 = vrot.lane.b32.xlu1 %v9921_v20, %s9831_s13  ;;  %v1722_v61 = vsel %vm134_vm1, %v1672_v21, 0  ;;  %v10815_v21 = vcombine.low %v4510_v46, %v4510_v46 }
 0x105   :  { %1956 = vmatpush1.bf16.msra.mxu1 %v1710_v47  ;;  %1973 = vmatprep.mubr.bf16.mxu1 %v13555_v2 }
 0x106   :  { %9142 = vmatprep.subr.msk.bf16.mxu1 %vm134_vm1, %v1673_v51  ;;  %v2342_v51 = vsel %vm2330_vm6, %v10598_v49, %v10596_v14 }
 0x107   :  { %3919 = vrot.lane.b32.xlu0 %v9934_v24, %s9831_s13  ;;  %v1674_v24 = vsel %vm1657_vm5, %v10452_v56, %v10454_v60  ;;  %v2331_v60 = vsel %vm2330_vm6, %v10470_v59, %v10487_v39 }
 0x108   :  { %9137 = vmatmul.mubr.msk.bf16.vlgmr.msra.gmra.mxu0 %vm130_vm2, %v10543_v33  ;;  %v10634_v20 = vpop.permute.xlu1 %2324  ;;  %v10636_v50 = vpop.permute.xlu0 %2322  ;;  %3921 = vrot.lane.b32.xlu1 %v9932_v23, %s9831_s13  ;;  %v10655_v23 = vcombine.low %v4504_v54, %v4504_v54  ;;  %v2353_v35 = vsel %vm134_vm1, %v2331_v60, 0 }
 0x109   :  { %1997 = vmatpush1.bf16.msra.mxu0 %v1716_v55  ;;  %2014 = vmatprep.mubr.bf16.mxu0 %v13555_v2  ;;  %v10809_v55 = vcombine.high %v4509_v8, %v4509_v8  ;;  %v2346_v60 = vsel %vm2330_vm6, %v10636_v50, %v10634_v20  ;;  %v2345_v42 = vsel %vm2330_vm6, %v10615_v17, %v10636_v50 }
 0x10a   :  { %9144 = vmatprep.subr.msk.bf16.mxu0 %vm134_vm1, %v1675_v58  ;;  %v2377_v58 = vsel %vm134_vm1, %v2339_v18, 0  ;;  %v2395_v50 = vsel %vm134_vm1, %v2345_v42, 0 }
 0x10b   :  { %3923 = vrot.lane.b32.xlu0 %v9945_v27, %s9831_s13  ;;  %v1728_v27 = vsel %vm134_vm1, %v1674_v24, 0  ;;  %v2344_v24 = vsel %vm2330_vm6, %v10617_v52, %v10615_v17 }
 0x10c   :  { %9139 = vmatmul.mubr.msk.bf16.vlgmr.msra.gmra.mxu1 %vm130_vm2, %v10543_v33  ;;  %3925 = vrot.lane.b32.xlu1 %v9943_v26, %s9831_s13  ;;  %v10665_v53 = vpop.permute.xlu1 %2328  ;;  %v2332_v26 = vsel %vm2330_vm6, %v10487_v39, %v10485_v37 }
 0x10d   :  { %2038 = vmatpush1.bf16.msra.mxu1 %v1722_v61  ;;  %2055 = vmatprep.mubr.bf16.mxu1 %v13555_v2  ;;  %v10658_v0 = vpop.permute.xlu0 %2326  ;;  %v2341_v61 = vsel %vm2330_vm6, %v10577_v11, %v10598_v49  ;;  %v4512_v49 = vld [vmem:[%s13550_s0 + $0x40] sm:$0xff] }
 0x10e   :  { %9524 = vmatprep.subr.bf16.mxu1 %v13553_v31  ;;  %v10867_v63 = vcombine.low %v4512_v49, %v4512_v49  ;;  %v10884_v10 = vcombine.high %v4512_v49, %v4512_v49 }
 0x10f   :  { %3927 = vrot.lane.b32.xlu0 %v10123_v19, %s9831_s13  ;;  %v1734_v19 = vsel %vm134_vm1, %v10468_v32, 0  ;;  %v10705_v32 = vcombine.low %v4506_v28, %v4506_v28 }
 0x110   :  { %9141 = vmatmul.mubr.msk.bf16.vlgmr.msra.gmra.mxu0 %vm130_vm2, %v10543_v33  ;;  %4564 = vrot.lane.b32.xlu1 %v10655_v23, %s9827_s3 }
 0x111   :  { %2079 = vmatpush1.bf16.msra.mxu0 %v1728_v27  ;;  %2096 = vmatprep.mubr.bf16.mxu0 %v13555_v2  ;;  %v10681_v16 = vpop.permute.xlu0 %2818  ;;  %13594 = vst [vmem:[#allocation2_spill] sm:$0xff] %v10705_v32  ;;  %v10841_v27 = vcombine.low %v4511_v48, %v4511_v48 }
 0x112   :  { %9168 = vmatprep.subr.msk.bf16.mxu0 %vm134_vm1, %v2332_v26  ;;  %v10689_v56 = vpop.permute.xlu1 %2820  ;;  %v2383_v26 = vsel %vm134_vm1, %v2341_v61, 0 }
 0x113   :  { %4566 = vrot.lane.b32.xlu0 %v10672_v57, %s9827_s3 }
 0x114   :  { %9143 = vmatmul.mubr.msk.bf16.vlgmr.msra.gmra.mxu1 %vm130_vm2, %v10543_v33  ;;  %4568 = vrot.lane.b32.xlu1 %v10678_v13, %s9827_s3 }
 0x115   :  { %9525 = vmatpush3.bf16.msra.mxu1 %v1734_v19  ;;  %9526 = vmatprep.mubr.msk.bf16.mxu1 %vm9830_vm3, %v13553_v31  ;;  %v10709_v59 = vpop.permute.xlu0 %2822  ;;  %v2343_v19 = vsel %vm2330_vm6, %v10596_v14, %v10617_v52 }
 0x116   :  { %9170 = vmatprep.subr.msk.bf16.mxu1 %vm134_vm1, %v2334_v29  ;;  %v10716_v39 = vpop.permute.xlu1 %2824  ;;  %v10861_v29 = vcombine.high %v4511_v48, %v4511_v48  ;;  %v2389_v52 = vsel %vm134_vm1, %v2343_v19, 0 }
 0x117   :  { %4570 = vrot.lane.b32.xlu0 %v10699_v30, %s9827_s3 }
 0x118   :  { %9145 = vmatmul.mubr.msk.bf16.vlgmr.msra.gmra.mxu0 %vm130_vm2, %v10543_v33  ;;  %4572 = vrot.lane.b32.xlu1 %v10705_v32, %s9827_s3 }
 0x119   :  { %2424 = vmatpush1.bf16.msra.mxu0 %v2353_v35  ;;  %2441 = vmatprep.mubr.bf16.mxu0 %v13555_v2  ;;  %v10735_v37 = vpop.permute.xlu0 %2826 }
 0x11a   :  { %9172 = vmatprep.subr.msk.bf16.mxu0 %vm134_vm1, %v2336_v43  ;;  %v10742_v6 = vpop.permute.xlu1 %2828  ;;  %v2348_v43 = vsel %vm2330_vm6, %v10658_v0, %v10665_v53  ;;  %v2859_v18 = vsel %vm111_vm0, %v10716_v39, %v10735_v37 }
 0x11b   :  { %4574 = vrot.lane.b32.xlu0 %v10726_v62, %s9827_s3  ;;  %v2860_v49 = vsel %vm111_vm0, %v10735_v37, %v10742_v6  ;;  %v10995_v37 = vld [vmem:[%s13551_s1 + $0x8] sm:$0x3] }
 0x11c   :  { %9527 = vmatmul.mubr.msk.bf16.vlgmr.msra.gmra.mxu1 %vm130_vm2, %v10543_v33  ;;  %4576 = vrot.lane.b32.xlu1 %v10732_v4, %s9827_s3  ;;  %v2365_v33 = vsel %vm134_vm1, %v2335_v22, 0 }
 0x11d   :  { %2465 = vmatpush1.bf16.msra.mxu1 %v2359_v44  ;;  %2482 = vmatprep.mubr.bf16.mxu1 %v13555_v2  ;;  %v10766_v25 = vpop.permute.xlu0 %2830  ;;  %v10893_v44 = vld [vmem:[%s13550_s0 + $0x48] ss:$0 sps:$4 sm:$0xff]  }
 0x11e   :  { %9174 = vmatprep.subr.msk.bf16.mxu1 %vm134_vm1, %v2338_v3  ;;  %v10773_v40 = vpop.permute.xlu1 %2832  ;;  %v2347_v3 = vsel %vm2330_vm6, %v10634_v20, %v10658_v0  ;;  %v2857_v20 = vsel %vm111_vm0, %v10689_v56, %v10709_v59  ;;  %v2861_v48 = vsel %vm111_vm0, %v10742_v6, %v10766_v25 }
 0x11f   :  { %4578 = vrot.lane.b32.xlu0 %v10752_v9, %s9827_s3 }
 0x120   :  { %9169 = vmatmul.mubr.msk.bf16.vlgmr.msra.gmra.mxu0 %vm130_vm2, %v10763_v7  ;;  %4580 = vrot.lane.b32.xlu1 %v10758_v34, %s9827_s3 }
 0x121   :  { %2506 = vmatpush1.bf16.msra.mxu0 %v2365_v33  ;;  %2523 = vmatprep.mubr.bf16.mxu0 %v13555_v2  ;;  %v10792_v5 = vpop.permute.xlu0 %2834  ;;  %v2401_v33 = vsel %vm134_vm1, %v2347_v3, 0 }
 0x122   :  { %9176 = vmatprep.subr.msk.bf16.mxu0 %vm134_vm1, %v2340_v41  ;;  %v10799_v47 = vpop.permute.xlu1 %2836  ;;  %v2407_v41 = vsel %vm134_vm1, %v10665_v53, 0 }
 0x123   :  { %4582 = vrot.lane.b32.xlu0 %v10783_v45, %s9827_s3 }
 0x124   :  { %9171 = vmatmul.mubr.msk.bf16.vlgmr.msra.gmra.mxu1 %vm130_vm2, %v10763_v7  ;;  %4584 = vrot.lane.b32.xlu1 %v10789_v15, %s9827_s3 }
 0x125   :  { %2547 = vmatpush1.bf16.msra.mxu1 %v2371_v36  ;;  %2564 = vmatprep.mubr.bf16.mxu1 %v13555_v2  ;;  %v10818_v38 = vpop.permute.xlu0 %2838  ;;  %v2856_v36 = vsel %vm111_vm0, %v10681_v16, %v10689_v56 }
 0x126   :  { %9178 = vmatprep.subr.msk.bf16.mxu1 %vm134_vm1, %v2342_v51  ;;  %v10825_v54 = vpop.permute.xlu1 %2840  ;;  %v2878_v16 = vsel %vm134_vm1, %v2856_v36, 0  ;;  %v2858_v51 = vsel %vm111_vm0, %v10709_v59, %v10716_v39 }
 0x127   :  { %4586 = vrot.lane.b32.xlu0 %v10809_v55, %s9827_s3  ;;  %v2884_v39 = vsel %vm134_vm1, %v2858_v51, 0 }
 0x128   :  { %9173 = vmatmul.mubr.msk.bf16.vlgmr.msra.gmra.mxu0 %vm130_vm2, %v10763_v7  ;;  %4588 = vrot.lane.b32.xlu1 %v10815_v21, %s9827_s3 }
 0x129   :  { %2588 = vmatpush1.bf16.msra.mxu0 %v2377_v58  ;;  %2605 = vmatprep.mubr.bf16.mxu0 %v13555_v2  ;;  %v10844_v11 = vpop.permute.xlu0 %2842 }
 0x12a   :  { %9180 = vmatprep.subr.msk.bf16.mxu0 %vm134_vm1, %v2344_v24  ;;  %v10851_v28 = vpop.permute.xlu1 %2844 }
 0x12b   :  { %4590 = vrot.lane.b32.xlu0 %v10835_v1, %s9827_s3 }
 0x12c   :  { %9175 = vmatmul.mubr.msk.bf16.vlgmr.msra.gmra.mxu1 %vm130_vm2, %v10763_v7  ;;  %4592 = vrot.lane.b32.xlu1 %v10841_v27, %s9827_s3 }
 0x12d   :  { %2629 = vmatpush1.bf16.msra.mxu1 %v2383_v26  ;;  %2646 = vmatprep.mubr.bf16.mxu1 %v13555_v2  ;;  %v10870_v14 = vpop.permute.xlu0 %2846  ;;  %v2863_v26 = vsel %vm111_vm0, %v10773_v40, %v10792_v5 }
 0x12e   :  { %9182 = vmatprep.subr.msk.bf16.mxu1 %vm134_vm1, %v2346_v60  ;;  %v10874_v35 = vpop.permute.xlu1 %2848 }
 0x12f   :  { %4594 = vrot.lane.b32.xlu0 %v10861_v29, %s9827_s3 }
 0x130   :  { %9177 = vmatmul.mubr.msk.bf16.vlgmr.msra.gmra.mxu0 %vm130_vm2, %v10763_v7  ;;  %4596 = vrot.lane.b32.xlu1 %v10867_v63, %s9827_s3 }
 0x131   :  { %2670 = vmatpush1.bf16.msra.mxu0 %v2389_v52  ;;  %2687 = vmatprep.mubr.bf16.mxu0 %v13555_v2  ;;  %v10896_v17 = vpop.permute.xlu0 %2850 }
 0x132   :  { %9184 = vmatprep.subr.msk.bf16.mxu0 %vm134_vm1, %v2348_v43  ;;  %v10900_v22 = vpop.permute.xlu1 %2852  ;;  %v2890_v43 = vsel %vm134_vm1, %v2860_v49, 0 }
 0x133   :  { %4598 = vrot.lane.b32.xlu0 %v10884_v10, %s9827_s3 }
 0x134   :  { %9179 = vmatmul.mubr.msk.bf16.vlgmr.msra.gmra.mxu1 %vm130_vm2, %v10763_v7  ;;  %4600 = vrot.lane.b32.xlu1 %v10893_v44, %s9827_s3 }
 0x135   :  { %2711 = vmatpush1.bf16.msra.mxu1 %v2395_v50  ;;  %2728 = vmatprep.mubr.bf16.mxu1 %v13555_v2  ;;  %v10912_v8 = vpop.permute.xlu0 %2854  ;;  %v2865_v50 = vsel %vm111_vm0, %v10799_v47, %v10818_v38 }
 0x136   :  { %9530 = vmatprep.subr.bf16.mxu1 %v13553_v31  ;;  %v10916_v12 = vpop.permute.xlu1 %3345 }
 0x137   :  { %5089 = vrot.lane.b32.xlu0 %v10655_v23, %s9826_s30 }
 0x138   :  { %9181 = vmatmul.mubr.msk.bf16.vlgmr.msra.gmra.mxu0 %vm130_vm2, %v10763_v7  ;;  %5091 = vrot.lane.b32.xlu1 %v10672_v57, %s9826_s30 }
 0x139   :  { %2752 = vmatpush1.bf16.msra.mxu0 %v2401_v33  ;;  %2769 = vmatprep.mubr.bf16.mxu0 %v13555_v2  ;;  %v10928_v0 = vpop.permute.xlu0 %3347 }
 0x13a   :  { %9187 = vmatprep.subr.msk.bf16.mxu0 %vm134_vm1, %v2857_v20  ;;  %v10933_v46 = vpop.permute.xlu1 %3349 }
 0x13b   :  { %5093 = vrot.lane.b32.xlu0 %v10678_v13, %s9826_s30 }
 0x13c   :  { %9183 = vmatmul.mubr.msk.bf16.vlgmr.msra.gmra.mxu1 %vm130_vm2, %v10763_v7  ;;  %5095 = vrot.lane.b32.xlu1 %v10699_v30, %s9826_s30 }
 0x13d   :  { %9531 = vmatpush3.bf16.msra.mxu1 %v2407_v41  ;;  %9532 = vmatprep.mubr.msk.bf16.mxu1 %vm9830_vm3, %v13553_v31  ;;  %v10949_v53 = vpop.permute.xlu0 %3351 }
 0x13e   :  { %9189 = vmatprep.subr.msk.bf16.mxu1 %vm134_vm1, %v2859_v18  ;;  %v10953_v56 = vpop.permute.xlu1 %3353  ;;  %v2864_v18 = vsel %vm111_vm0, %v10792_v5, %v10799_v47 }
 0x13f   :  { %5097 = vrot.lane.b32.xlu0 %v10705_v32, %s9826_s30 }
 0x140   :  { %v10963_v58 = vpop.f32.mrf.mxu0  ;;  %9185 = vmatmul.mubr.msk.bf16.vlgmr.msra.gmra.mxu0 %vm130_vm2, %v10763_v7  ;;  %5099 = vrot.lane.b32.xlu1 %v10726_v62, %s9826_s30 }
 0x141   :  { %2949 = vmatpush1.bf16.msra.mxu0 %v2878_v16  ;;  %2966 = vmatprep.mubr.bf16.mxu0 %v13555_v2  ;;  %v10970_v61 = vpop.permute.xlu0 %3355  ;;  %v2867_v16 = vsel %vm111_vm0, %v10825_v54, %v10844_v11 }
 0x142   :  { %v10972_v59 = vpop.f32.mrf.mxu0  ;;  %9191 = vmatprep.subr.msk.bf16.mxu0 %vm134_vm1, %v2861_v48  ;;  %v10976_v24 = vpop.permute.xlu1 %3357 }
 0x143   :  { %5101 = vrot.lane.b32.xlu0 %v10732_v4, %s9826_s30 }
 0x144   :  { %v230_v19 = vpop.f32.mrf.mxu0  ;;  %v10986_v60 = vpop.f32.mrf.mxu1  ;;  %9533 = vmatmul.mubr.msk.bf16.vlgmr.msra.gmra.mxu1 %vm130_vm2, %v10763_v7  ;;  %5103 = vrot.lane.b32.xlu1 %v10752_v9, %s9826_s30  ;;  %v2862_v7 = vsel %vm111_vm0, %v10766_v25, %v10773_v40 }
 0x145   :  { %2990 = vmatpush1.bf16.msra.mxu1 %v2884_v39  ;;  %3007 = vmatprep.mubr.bf16.mxu1 %v13555_v2  ;;  %v10998_v6 = vpop.permute.xlu0 %3359  ;;  %v2896_v36 = vsel %vm134_vm1, %v2862_v7, 0  ;;  %v2866_v19 = vsel %vm111_vm0, %v10818_v38, %v10825_v54 }
 0x146   :  { %v231_v52 = vpop.f32.mrf.mxu0  ;;  %v11000_v42 = vpop.f32.mrf.mxu1  ;;  %9193 = vmatprep.subr.msk.bf16.mxu1 %vm134_vm1, %v2863_v26  ;;  %v2902_v26 = vsel %vm134_vm1, %v2864_v18, 0  ;;  %v2871_v18 = vsel %vm111_vm0, %v10874_v35, %v10896_v17 }
 0x147   :  { %v11010_v3 = vpop.permute.xlu1 %3361  ;;  %5105 = vrot.lane.b32.xlu0 %v10758_v34, %s9826_s30  ;;  %v2869_v52 = vsel %vm111_vm0, %v10851_v28, %v10870_v14 }
 0x148   :  { %v271_v33 = vpop.f32.mrf.mxu1  ;;  %v11014_v20 = vpop.f32.mrf.mxu0  ;;  %9188 = vmatmul.mubr.msk.bf16.vlgmr.msra.gmra.mxu0 %vm130_vm2, %v10995_v37  ;;  %5107 = vrot.lane.b32.xlu1 %v10783_v45, %s9826_s30 }
 0x149   :  { %3031 = vmatpush1.bf16.msra.mxu0 %v2890_v43  ;;  %3048 = vmatprep.mubr.bf16.mxu0 %v13555_v2  ;;  %v11021_v25 = vpop.permute.xlu0 %3363 }
 0x14a   :  { %v272_v40 = vpop.f32.mrf.mxu1  ;;  %v11023_v41 = vpop.f32.mrf.mxu0  ;;  %9195 = vmatprep.subr.msk.bf16.mxu0 %vm134_vm1, %v2865_v50 }
 0x14b   :  { %v11033_v51 = vpop.permute.xlu1 %3365  ;;  %5109 = vrot.lane.b32.xlu0 %v10789_v15, %s9826_s30  ;;  %v2908_v40 = vsel %vm134_vm1, %v2866_v19, 0 }
 0x14c   :  { %v312_v48 = vpop.f32.mrf.mxu0  ;;  %v11037_v39 = vpop.f32.mrf.mxu1  ;;  %9190 = vmatmul.mubr.msk.bf16.vlgmr.msra.gmra.mxu1 %vm130_vm2, %v10995_v37  ;;  %5111 = vrot.lane.b32.xlu1 %v10809_v55, %s9826_s30 }
 0x14d   :  { %3072 = vmatpush1.bf16.msra.mxu1 %v2896_v36  ;;  %3089 = vmatprep.mubr.bf16.mxu1 %v13555_v2  ;;  %v11044_v5 = vpop.permute.xlu0 %3367  ;;  %v2868_v36 = vsel %vm111_vm0, %v10844_v11, %v10851_v28 }
 0x14e   :  { %v313_v47 = vpop.f32.mrf.mxu0  ;;  %v11046_v49 = vpop.f32.mrf.mxu1  ;;  %9197 = vmatprep.subr.msk.bf16.mxu1 %vm134_vm1, %v2867_v16  ;;  %v2914_v19 = vsel %vm134_vm1, %v2868_v36, 0 }
 0x14f   :  { %v11056_v43 = vpop.permute.xlu1 %3369  ;;  %5113 = vrot.lane.b32.xlu0 %v10815_v21, %s9826_s30 }
 0x150   :  { %v353_v7 = vpop.f32.mrf.mxu1  ;;  %v11060_v50 = vpop.f32.mrf.mxu0  ;;  %9192 = vmatmul.mubr.msk.bf16.vlgmr.msra.gmra.mxu0 %vm130_vm2, %v10995_v37  ;;  %5115 = vrot.lane.b32.xlu1 %v10835_v1, %s9826_s30 }
 0x151   :  { %3113 = vmatpush1.bf16.msra.mxu0 %v2902_v26  ;;  %3130 = vmatprep.mubr.bf16.mxu0 %v13555_v2  ;;  %v11067_v38 = vpop.permute.xlu0 %3371  ;;  %v2873_v7 = vsel %vm111_vm0, %v10900_v22, %v10912_v8 }
 0x152   :  { %v354_v54 = vpop.f32.mrf.mxu1  ;;  %v11069_v33 = vpop.f32.mrf.mxu0  ;;  %9199 = vmatprep.subr.msk.bf16.mxu0 %vm134_vm1, %v2869_v52  ;;  %v2870_v52 = vsel %vm111_vm0, %v10870_v14, %v10874_v35 }
 0x153   :  { %v11079_v16 = vpop.permute.xlu1 %3373  ;;  %5117 = vrot.lane.b32.xlu0 %v10841_v27, %s9826_s30 }
 0x154   :  { %v394_v48 = vpop.f32.mrf.mxu0  ;;  %v11083_v47 = vpop.f32.mrf.mxu1  ;;  %9194 = vmatmul.mubr.msk.bf16.vlgmr.msra.gmra.mxu1 %vm130_vm2, %v10995_v37  ;;  %5119 = vrot.lane.b32.xlu1 %v10861_v29, %s9826_s30 }
 0x155   :  { %3154 = vmatpush1.bf16.msra.mxu1 %v2908_v40  ;;  %3171 = vmatprep.mubr.bf16.mxu1 %v13555_v2  ;;  %v11090_v11 = vpop.permute.xlu0 %3375 }
 0x156   :  { %v395_v28 = vpop.f32.mrf.mxu0  ;;  %v11092_v26 = vpop.f32.mrf.mxu1  ;;  %9201 = vmatprep.subr.msk.bf16.mxu1 %vm134_vm1, %v2871_v18  ;;  %v2920_v18 = vsel %vm134_vm1, %v2870_v52, 0 }
 0x157   :  { %v11102_v54 = vpop.permute.xlu1 %3377  ;;  %5121 = vrot.lane.b32.xlu0 %v10867_v63, %s9826_s30  ;;  %v2872_v28 = vsel %vm111_vm0, %v10896_v17, %v10900_v22 }
 0x158   :  { %v435_v40 = vpop.f32.mrf.mxu1  ;;  %v11106_v48 = vpop.f32.mrf.mxu0  ;;  %9196 = vmatmul.mubr.msk.bf16.vlgmr.msra.gmra.mxu0 %vm130_vm2, %v10995_v37  ;;  %5123 = vrot.lane.b32.xlu1 %v10884_v10, %s9826_s30 }
 0x159   :  { %3195 = vmatpush1.bf16.msra.mxu0 %v2914_v19  ;;  %3212 = vmatprep.mubr.bf16.mxu0 %v13555_v2  ;;  %v11113_v14 = vpop.permute.xlu0 %3379 }
 0x15a   :  { %v436_v35 = vpop.f32.mrf.mxu1  ;;  %v11115_v36 = vpop.f32.mrf.mxu0  ;;  %9203 = vmatprep.subr.msk.bf16.mxu0 %vm134_vm1, %v2873_v7  ;;  %v2926_v7 = vsel %vm134_vm1, %v2872_v28, 0  ;;  %v13602_v28 = vmov 0  }
 0x15b   :  { %v11122_v40 = vpop.permute.xlu1 %3381  ;;  %5125 = vrot.lane.b32.xlu0 %v10893_v44, %s9826_s30  ;;  %v13599_v35 = vmov 0.0  }
 0x15c   :  { %v476_v19 = vpop.f32.mrf.mxu0  ;;  %v11126_v31 = vpop.f32.mrf.mxu1  ;;  %9198 = vmatmul.mubr.msk.bf16.vlgmr.msra.gmra.mxu1 %vm130_vm2, %v10995_v37  ;;  %5616 = vrot.lane.b32.xlu1 %v10655_v23, %s9832_s15 }
 0x15d   :  { %13596 = vst [vmem:[#allocation4_spill] sm:$0xff] %v11126_v31  ;;  %3236 = vmatpush1.bf16.msra.mxu1 %v2920_v18  ;;  %3253 = vmatprep.mubr.bf16.mxu1 %v13555_v2  ;;  %v11133_v52 = vpop.permute.xlu0 %3891  ;;  %v3384_v19 = vsel %vm1657_vm5, %v10928_v0, %v10933_v46 }
 0x15e   :  { %13597 = vst [vmem:[#allocation5_spill] sm:$0xff] %v11133_v52  ;;  %v477_v17 = vpop.f32.mrf.mxu0  ;;  %v11135_v22 = vpop.f32.mrf.mxu1  ;;  %9536 = vmatprep.subr.bf16.mxu1 %v13599_v35 }
 0x15f   :  { %13598 = vst [vmem:[#allocation6_spill] sm:$0xff] %v11135_v22  ;;  %v11142_v31 = vpop.permute.xlu1 %3893  ;;  %5618 = vrot.lane.b32.xlu0 %v10672_v57, %s9832_s15 }
 0x160   :  { %13600 = vst [vmem:[#allocation7_spill] sm:$0xff] %v11142_v31  ;;  %v517_v18 = vpop.f32.mrf.mxu1  ;;  %v11146_v2 = vpop.f32.mrf.mxu0  ;;  %9200 = vmatmul.mubr.msk.bf16.vlgmr.msra.gmra.mxu0 %vm130_vm2, %v10995_v37  ;;  %5620 = vrot.lane.b32.xlu1 %v10678_v13, %s9832_s15  ;;  %v2932_v31 = vsel %vm134_vm1, %v10912_v8, 0 }
 0x161   :  { %13601 = vst [vmem:[#allocation8_spill] sm:$0xff] %v11146_v2  ;;  %3277 = vmatpush1.bf16.msra.mxu0 %v2926_v7  ;;  %3294 = vmatprep.mubr.bf16.mxu0 %v13602_v28  ;;  %v11153_v17 = vpop.permute.xlu0 %3895  ;;  %v3383_v18 = vsel %vm1657_vm5, %v10916_v12, %v10928_v0  ;;  %v3386_v7 = vsel %vm1657_vm5, %v10949_v53, %v10953_v56 }
 0x162   :  { %v518_v52 = vpop.f32.mrf.mxu1  ;;  %v11155_v22 = vpop.f32.mrf.mxu0  ;;  %9207 = vmatprep.subr.msk.bf16.mxu0 %vm134_vm1, %v3384_v19  ;;  %v3405_v19 = vsel %vm134_vm1, %v3383_v18, 0 }
 0x163   :  { %13603 = vst [vmem:[#allocation9_spill] sm:$0xff] %v11155_v22  ;;  %v11166_v2 = vpop.permute.xlu1 %3897  ;;  %5622 = vrot.lane.b32.xlu0 %v10699_v30, %s9832_s15 }
 0x164   :  { %v558_v52 = vpop.f32.mrf.mxu0  ;;  %v11170_v22 = vpop.f32.mrf.mxu1  ;;  %9202 = vmatmul.mubr.msk.bf16.vlgmr.msra.gmra.mxu1 %vm130_vm2, %v10995_v37  ;;  %5624 = vrot.lane.b32.xlu1 %v10705_v32, %s9832_s15 }
 0x165   :  { %13604 = vst [vmem:[#allocation10_spill] sm:$0xff] %v11170_v22  ;;  %9537 = vmatpush3.bf16.msra.mxu1 %v2932_v31  ;;  %9538 = vmatprep.mubr.msk.bf16.mxu1 %vm9830_vm3, %v13599_v35  ;;  %v11178_v8 = vpop.permute.xlu0 %3899  ;;  %v3385_v52 = vsel %vm1657_vm5, %v10933_v46, %v10949_v53  ;;  %v3388_v22 = vsel %vm1657_vm5, %v10970_v61, %v10976_v24 }
 0x166   :  { %v559_v12 = vpop.f32.mrf.mxu0  ;;  %v9510_v0 = vpop.f32.mrf.mxu1  ;;  %9209 = vmatprep.subr.msk.bf16.mxu1 %vm134_vm1, %v3386_v7 }
 0x167   :  { %v11188_v31 = vpop.permute.xlu1 %3901  ;;  %5626 = vrot.lane.b32.xlu0 %v10726_v62, %s9832_s15  ;;  %v3411_v0 = vsel %vm134_vm1, %v3385_v52, 0 }
 0x168   :  { %v598_v32 = vpop.f32.mrf.mxu1  ;;  %v695_v12 = vpop.f32.mrf.mxu0  ;;  %9204 = vmatmul.mubr.msk.bf16.vlgmr.msra.gmra.mxu0 %vm130_vm2, %v10995_v37  ;;  %5628 = vrot.lane.b32.xlu1 %v10732_v4, %s9832_s15  ;;  %v3387_v4 = vsel %vm1657_vm5, %v10953_v56, %v10970_v61  ;;  %v11227_v56 = vld [vmem:[%s13551_s1 + $0xc] sm:$0x3] }
 0x169   :  { %v11197_v18 = vadd.f32 %v695_v12, %v10963_v58  ;;  %3476 = vmatpush1.bf16.msra.mxu0 %v3405_v19  ;;  %3493 = vmatprep.mubr.bf16.mxu0 %v13602_v28  ;;  %v11200_v46 = vpop.permute.xlu0 %3903  ;;  %v3390_v58 = vsel %vm1657_vm5, %v10998_v6, %v11010_v3 }
 0x16a   :  { %v9511_v53 = vpop.f32.mrf.mxu1  ;;  %v697_v7 = vpop.f32.mrf.mxu0  ;;  %9211 = vmatprep.subr.msk.bf16.mxu0 %vm134_vm1, %v3388_v22 }
 0x16b   :  { %v11205_v32 = vadd.f32 %v697_v7, %v10972_v59  ;;  %v11213_v19 = vpop.permute.xlu1 %3905  ;;  %5630 = vrot.lane.b32.xlu0 %v10752_v9, %s9832_s15 }
 0x16c   :  { %v736_v12 = vpop.f32.mrf.mxu1  ;;  %v699_v52 = vpop.f32.mrf.mxu0  ;;  %9539 = vmatmul.mubr.msk.bf16.vlgmr.msra.gmra.mxu1 %vm130_vm2, %v10995_v37  ;;  %5632 = vrot.lane.b32.xlu1 %v10758_v34, %s9832_s15  ;;  %v3417_v37 = vsel %vm134_vm1, %v3387_v4, 0 }
 0x16d   :  { %v11222_v59 = vadd.f32 %v736_v12, %v10986_v60  ;;  %3517 = vmatpush1.bf16.msra.mxu1 %v3411_v0  ;;  %3534 = vmatprep.mubr.bf16.mxu1 %v13602_v28  ;;  %v11230_v61 = vpop.permute.xlu0 %3907  ;;  %v3389_v60 = vsel %vm1657_vm5, %v10976_v24, %v10998_v6  ;;  %v3392_v0 = vsel %vm1657_vm5, %v11021_v25, %v11033_v51 }
 0x16e   :  { %v738_v22 = vpop.f32.mrf.mxu1  ;;  %v700_v53 = vpop.f32.mrf.mxu0  ;;  %9213 = vmatprep.subr.msk.bf16.mxu1 %vm134_vm1, %v3390_v58 }
 0x16f   :  { %v11235_v7 = vadd.f32 %v738_v22, %v11000_v42  ;;  %v11243_v12 = vpop.permute.xlu1 %3909  ;;  %5634 = vrot.lane.b32.xlu0 %v10783_v45, %s9832_s15  ;;  %v3423_v22 = vsel %vm134_vm1, %v3389_v60, 0 }
 0x170   :  { %v740_v52 = vpop.f32.mrf.mxu1  ;;  %v777_v4 = vpop.f32.mrf.mxu0  ;;  %9208 = vmatmul.mubr.msk.bf16.vlgmr.msra.gmra.mxu0 %vm130_vm2, %v11227_v56  ;;  %5636 = vrot.lane.b32.xlu1 %v10789_v15, %s9832_s15 }
 0x171   :  { %v11252_v42 = vadd.f32 %v777_v4, %v11014_v20  ;;  %3558 = vmatpush1.bf16.msra.mxu0 %v3417_v37  ;;  %3575 = vmatprep.mubr.bf16.mxu0 %v13602_v28  ;;  %v11255_v24 = vpop.permute.xlu0 %3911  ;;  %v3391_v52 = vsel %vm1657_vm5, %v11010_v3, %v11021_v25  ;;  %v3394_v20 = vsel %vm1657_vm5, %v11044_v5, %v11056_v43 }
 0x172   :  { %v741_v6 = vpop.f32.mrf.mxu1  ;;  %v779_v58 = vpop.f32.mrf.mxu0  ;;  %9215 = vmatprep.subr.msk.bf16.mxu0 %vm134_vm1, %v3392_v0 }
 0x173   :  { %v11260_v53 = vadd.f32 %v779_v58, %v11023_v41  ;;  %v11268_v37 = vpop.permute.xlu1 %3913  ;;  %5638 = vrot.lane.b32.xlu0 %v10809_v55, %s9832_s15  ;;  %v3429_v6 = vsel %vm134_vm1, %v3391_v52, 0 }
 0x174   :  { %v818_v4 = vpop.f32.mrf.mxu1  ;;  %v781_v60 = vpop.f32.mrf.mxu0  ;;  %9210 = vmatmul.mubr.msk.bf16.vlgmr.msra.gmra.mxu1 %vm130_vm2, %v11227_v56  ;;  %5640 = vrot.lane.b32.xlu1 %v10815_v21, %s9832_s15 }
 0x175   :  { %v11277_v41 = vadd.f32 %v818_v4, %v11037_v39  ;;  %3599 = vmatpush1.bf16.msra.mxu1 %v3423_v22  ;;  %3616 = vmatprep.mubr.bf16.mxu1 %v13602_v28  ;;  %v11280_v3 = vpop.permute.xlu0 %3915  ;;  %v3393_v60 = vsel %vm1657_vm5, %v11033_v51, %v11044_v5  ;;  %v3396_v39 = vsel %vm1657_vm5, %v11067_v38, %v11079_v16 }
 0x176   :  { %v820_v25 = vpop.f32.mrf.mxu1  ;;  %v782_v0 = vpop.f32.mrf.mxu0  ;;  %9217 = vmatprep.subr.msk.bf16.mxu1 %vm134_vm1, %v3394_v20 }
 0x177   :  { %v11285_v58 = vadd.f32 %v820_v25, %v11046_v49  ;;  %v11293_v22 = vpop.permute.xlu1 %3917  ;;  %5642 = vrot.lane.b32.xlu0 %v10835_v1, %s9832_s15  ;;  %v3435_v25 = vsel %vm134_vm1, %v3393_v60, 0 }
 0x178   :  { %v822_v4 = vpop.f32.mrf.mxu1  ;;  %v859_v52 = vpop.f32.mrf.mxu0  ;;  %9212 = vmatmul.mubr.msk.bf16.vlgmr.msra.gmra.mxu0 %vm130_vm2, %v11227_v56  ;;  %5644 = vrot.lane.b32.xlu1 %v10841_v27, %s9832_s15 }
 0x179   :  { %v11302_v49 = vadd.f32 %v859_v52, %v11060_v50  ;;  %3640 = vmatpush1.bf16.msra.mxu0 %v3429_v6  ;;  %3657 = vmatprep.mubr.bf16.mxu0 %v13602_v28  ;;  %v11305_v51 = vpop.permute.xlu0 %3919  ;;  %v3395_v4 = vsel %vm1657_vm5, %v11056_v43, %v11067_v38  ;;  %v3398_v50 = vsel %vm1657_vm5, %v11090_v11, %v11102_v54 }
 0x17a   :  { %v823_v5 = vpop.f32.mrf.mxu1  ;;  %v861_v20 = vpop.f32.mrf.mxu0  ;;  %9219 = vmatprep.subr.msk.bf16.mxu0 %vm134_vm1, %v3396_v39 }
 0x17b   :  { %v11310_v0 = vadd.f32 %v861_v20, %v11069_v33  ;;  %v11318_v6 = vpop.permute.xlu1 %3921  ;;  %5646 = vrot.lane.b32.xlu0 %v10861_v29, %s9832_s15  ;;  %v3441_v5 = vsel %vm134_vm1, %v3395_v4, 0 }
 0x17c   :  { %v900_v52 = vpop.f32.mrf.mxu1  ;;  %v863_v60 = vpop.f32.mrf.mxu0  ;;  %9214 = vmatmul.mubr.msk.bf16.vlgmr.msra.gmra.mxu1 %vm130_vm2, %v11227_v56  ;;  %5648 = vrot.lane.b32.xlu1 %v10867_v63, %s9832_s15 }
 0x17d   :  { %v11327_v33 = vadd.f32 %v900_v52, %v11083_v47  ;;  %3681 = vmatpush1.bf16.msra.mxu1 %v3435_v25  ;;  %3698 = vmatprep.mubr.bf16.mxu1 %v13602_v28  ;;  %v11330_v43 = vpop.permute.xlu0 %3923  ;;  %v3397_v60 = vsel %vm1657_vm5, %v11079_v16, %v11090_v11  ;;  %v3400_v47 = vsel %vm1657_vm5, %v11113_v14, %v11122_v40 }
 0x17e   :  { %v902_v38 = vpop.f32.mrf.mxu1  ;;  %v864_v39 = vpop.f32.mrf.mxu0  ;;  %9221 = vmatprep.subr.msk.bf16.mxu1 %vm134_vm1, %v3398_v50 }
 0x17f   :  { %v11335_v20 = vadd.f32 %v902_v38, %v11092_v26  ;;  %v11343_v25 = vpop.permute.xlu1 %3925  ;;  %5650 = vrot.lane.b32.xlu0 %v10884_v10, %s9832_s15  ;;  %v3447_v38 = vsel %vm134_vm1, %v3397_v60, 0 }
 0x180   :  { %v904_v52 = vpop.f32.mrf.mxu1  ;;  %v941_v4 = vpop.f32.mrf.mxu0  ;;  %9216 = vmatmul.mubr.msk.bf16.vlgmr.msra.gmra.mxu0 %vm130_vm2, %v11227_v56  ;;  %5652 = vrot.lane.b32.xlu1 %v10893_v44, %s9832_s15 }
 0x181   :  { %v11352_v26 = vadd.f32 %v941_v4, %v11106_v48  ;;  %3722 = vmatpush1.bf16.msra.mxu0 %v3441_v5  ;;  %3739 = vmatprep.mubr.bf16.mxu0 %v13602_v28  ;;  %v11355_v16 = vpop.permute.xlu0 %3927  ;;  %v3399_v52 = vsel %vm1657_vm5, %v11102_v54, %v11113_v14 }
 0x182   :  { %v905_v11 = vpop.f32.mrf.mxu1  ;;  %v943_v50 = vpop.f32.mrf.mxu0  ;;  %9223 = vmatprep.subr.msk.bf16.mxu0 %vm134_vm1, %v3400_v47 }
 0x183   :  { %v11360_v39 = vadd.f32 %v943_v50, %v11115_v36  ;;  %v11365_v48 = vpop.permute.xlu1 %4564  ;;  %6163 = vrot.lane.b32.xlu0 %v10655_v23, %s9833_s17  ;;  %v13606_v36 = vld [vmem:[#allocation4_spill] sm:$0xff]  ;;  %v3453_v23 = vsel %vm134_vm1, %v3399_v52, 0  ;;  %v13608_v11 = vld [vmem:[#allocation6_spill] sm:$0xff] }
 0x184   :  { %v982_v5 = vpop.f32.mrf.mxu1  ;;  %v945_v4 = vpop.f32.mrf.mxu0  ;;  %9218 = vmatmul.mubr.msk.bf16.vlgmr.msra.gmra.mxu1 %vm130_vm2, %v11227_v56  ;;  %6165 = vrot.lane.b32.xlu1 %v10672_v57, %s9833_s17  ;;  %v13611_v52 = vld [vmem:[#allocation8_spill] sm:$0xff] }
 0x185   :  { %13605 = vst [vmem:[#allocation11_spill] sm:$0xff] %v11360_v39  ;;  %v11374_v60 = vadd.f32 %v982_v5, %v13606_v36  ;;  %3763 = vmatpush1.bf16.msra.mxu1 %v3447_v38  ;;  %3780 = vmatprep.mubr.bf16.mxu1 %v13602_v28  ;;  %v11377_v54 = vpop.permute.xlu0 %4566  ;;  %v13610_v4 = vld [vmem:[#allocation7_spill] sm:$0xff] }
 0x186   :  { %v984_v14 = vpop.f32.mrf.mxu1  ;;  %v946_v47 = vpop.f32.mrf.mxu0  ;;  %9542 = vmatprep.subr.bf16.mxu1 %v13599_v35  ;;  %v3931_v57 = vsel %vm3929_vm7, %v13610_v4, %v11153_v17 }
 0x187   :  { %13607 = vst [vmem:[#allocation4_spill] sm:$0xff] %v11374_v60  ;;  %v11382_v50 = vadd.f32 %v984_v14, %v13608_v11  ;;  %v11387_v5 = vpop.permute.xlu1 %4568  ;;  %6167 = vrot.lane.b32.xlu0 %v10678_v13, %s9833_s17  ;;  %v3459_v13 = vsel %vm134_vm1, %v11122_v40, 0 }
 0x188   :  { %v986_v38 = vpop.f32.mrf.mxu1  ;;  %v1023_v36 = vpop.f32.mrf.mxu0  ;;  %9220 = vmatmul.mubr.msk.bf16.vlgmr.msra.gmra.mxu0 %vm130_vm2, %v11227_v56  ;;  %6169 = vrot.lane.b32.xlu1 %v10699_v30, %s9833_s17  ;;  %v13615_v30 = vld [vmem:[#allocation5_spill] sm:$0xff] }
 0x189   :  { %13609 = vst [vmem:[#allocation6_spill] sm:$0xff] %v11382_v50  ;;  %v11396_v14 = vadd.f32 %v1023_v36, %v13611_v52  ;;  %3804 = vmatpush1.bf16.msra.mxu0 %v3453_v23  ;;  %3821 = vmatprep.mubr.bf16.mxu0 %v13602_v28  ;;  %v11399_v47 = vpop.permute.xlu0 %4570  ;;  %v13613_v38 = vld [vmem:[#allocation9_spill] sm:$0xff]  ;;  %v3930_v36 = vsel %vm3929_vm7, %v13615_v30, %v13610_v4 }
 0x18a   :  { %v987_v11 = vpop.f32.mrf.mxu1  ;;  %v1025_v50 = vpop.f32.mrf.mxu0  ;;  %9227 = vmatprep.subr.msk.bf16.mxu0 %vm134_vm1, %v3931_v57  ;;  %v3933_v23 = vsel %vm3929_vm7, %v11166_v2, %v11178_v8 }
 0x18b   :  { %13612 = vst [vmem:[#allocation7_spill] sm:$0xff] %v11396_v14  ;;  %v11405_v60 = vadd.f32 %v1025_v50, %v13613_v38  ;;  %v11413_v52 = vpop.permute.xlu1 %4572  ;;  %v13616_v11 = vld [vmem:[#allocation2_spill] sm:$0xff] }
 0x18c   :  { %6171 = vrot.lane.b32.xlu0 %v13616_v11, %s9833_s17  ;;  %v1064_v14 = vpop.f32.mrf.mxu1  ;;  %v1027_v40 = vpop.f32.mrf.mxu0  ;;  %9222 = vmatmul.mubr.msk.bf16.vlgmr.msra.gmra.mxu1 %vm130_vm2, %v11227_v56  ;;  %v13617_v50 = vld [vmem:[#allocation10_spill] sm:$0xff]  ;;  %v3952_v11 = vsel %vm134_vm1, %v3930_v36, 0 }
 0x18d   :  { %13614 = vst [vmem:[#allocation8_spill] sm:$0xff] %v11405_v60  ;;  %6173 = vrot.lane.b32.xlu1 %v10726_v62, %s9833_s17  ;;  %v11422_v57 = vadd.f32 %v1064_v14, %v13617_v50  ;;  %9543 = vmatpush3.bf16.msra.mxu1 %v3459_v13  ;;  %v11426_v4 = vpop.permute.xlu0 %4574  ;;  %v3932_v40 = vsel %vm3929_vm7, %v11153_v17, %v11166_v2  ;;  %v13619_v13 = vld [vmem:[#allocation3_spill] sm:$0xff] }
 0x18e   :  { %9544 = vmatprep.mubr.msk.bf16.mxu1 %vm9830_vm3, %v13599_v35  ;;  %v9516_v38 = vpop.f32.mrf.mxu1  ;;  %v1028_v30 = vpop.f32.mrf.mxu0  ;;  %9229 = vmatprep.subr.msk.bf16.mxu1 %vm134_vm1, %v3933_v23  ;;  %v3935_v62 = vsel %vm3929_vm7, %v11188_v31, %v11200_v46  ;;  %v3958_v23 = vsel %vm134_vm1, %v3932_v40, 0 }
 0x18f   :  { %13618 = vst [vmem:[#allocation9_spill] sm:$0xff] %v11422_v57  ;;  %v11436_v14 = vpop.permute.xlu1 %4576  ;;  %v3934_v30 = vsel %vm3929_vm7, %v11178_v8, %v11188_v31  ;;  %v11472_v8 = vld [vmem:[%s13551_s1 + $0xe] sm:$0x3] }
 0x190   :  { %6175 = vrot.lane.b32.xlu0 %v13619_v13, %s9833_s17  ;;  %v1067_v50 = vpop.f32.mrf.mxu1  ;;  %v11440_v38 = vpop.f32.mrf.mxu0  ;;  %9224 = vmatmul.mubr.msk.bf16.vlgmr.msra.gmra.mxu0 %vm130_vm2, %v11227_v56 }
 0x191   :  { %6177 = vrot.lane.b32.xlu1 %v10752_v9, %s9833_s17  ;;  %4023 = vmatpush1.bf16.msra.mxu0 %v3952_v11  ;;  %v11447_v2 = vpop.permute.xlu0 %4578  ;;  %v3937_v9 = vsel %vm3929_vm7, %v11213_v19, %v11230_v61 }
 0x192   :  { %4040 = vmatprep.mubr.bf16.mxu0 %v13602_v28  ;;  %v9517_v17 = vpop.f32.mrf.mxu1  ;;  %v11449_v36 = vpop.f32.mrf.mxu0  ;;  %9231 = vmatprep.subr.msk.bf16.mxu0 %vm134_vm1, %v3935_v62  ;;  %v3964_v62 = vsel %vm134_vm1, %v3934_v30, 0 }
 0x193   :  { %v11459_v11 = vpop.permute.xlu1 %4580 }
 0x194   :  { %6179 = vrot.lane.b32.xlu0 %v10758_v34, %s9833_s17  ;;  %v11463_v13 = vpop.f32.mrf.mxu1  ;;  %v1227_v50 = vpop.f32.mrf.mxu0  ;;  %9545 = vmatmul.mubr.msk.bf16.vlgmr.msra.gmra.mxu1 %vm130_vm2, %v11227_v56  ;;  %v3939_v56 = vsel %vm3929_vm7, %v11243_v12, %v11255_v24 }
 0x195   :  { %6181 = vrot.lane.b32.xlu1 %v10783_v45, %s9833_s17  ;;  %4064 = vmatpush1.bf16.msra.mxu1 %v3958_v23  ;;  %v11475_v31 = vpop.permute.xlu0 %4582  ;;  %v3936_v45 = vsel %vm3929_vm7, %v11200_v46, %v11213_v19 }
 0x196   :  { %4081 = vmatprep.mubr.bf16.mxu1 %v13602_v28  ;;  %v11477_v34 = vpop.f32.mrf.mxu1  ;;  %v1228_v40 = vpop.f32.mrf.mxu0  ;;  %9233 = vmatprep.subr.msk.bf16.mxu1 %vm134_vm1, %v3937_v9  ;;  %v3970_v9 = vsel %vm134_vm1, %v3936_v45, 0 }
 0x197   :  { %v11487_v17 = vpop.permute.xlu1 %4584 }
 0x198   :  { %6183 = vrot.lane.b32.xlu0 %v10789_v15, %s9833_s17  ;;  %v1268_v23 = vpop.f32.mrf.mxu1  ;;  %v11491_v50 = vpop.f32.mrf.mxu0  ;;  %9228 = vmatmul.mubr.msk.bf16.vlgmr.msra.gmra.mxu0 %vm130_vm2, %v11472_v8  ;;  %v3938_v15 = vsel %vm3929_vm7, %v11230_v61, %v11243_v12 }
 0x199   :  { %6185 = vrot.lane.b32.xlu1 %v10809_v55, %s9833_s17  ;;  %4105 = vmatpush1.bf16.msra.mxu0 %v3964_v62  ;;  %v11498_v46 = vpop.permute.xlu0 %4586  ;;  %v3941_v55 = vsel %vm3929_vm7, %v11268_v37, %v11280_v3 }
 0x19a   :  { %4122 = vmatprep.mubr.bf16.mxu0 %v13602_v28  ;;  %v1269_v19 = vpop.f32.mrf.mxu1  ;;  %v11500_v30 = vpop.f32.mrf.mxu0  ;;  %9235 = vmatprep.subr.msk.bf16.mxu0 %vm134_vm1, %v3939_v56  ;;  %v3976_v56 = vsel %vm134_vm1, %v3938_v15, 0 }
 0x19b   :  { %v11510_v40 = vpop.permute.xlu1 %4588 }
 0x19c   :  { %6187 = vrot.lane.b32.xlu0 %v10815_v21, %s9833_s17  ;;  %v11514_v62 = vpop.f32.mrf.mxu1  ;;  %v1309_v23 = vpop.f32.mrf.mxu0  ;;  %9230 = vmatmul.mubr.msk.bf16.vlgmr.msra.gmra.mxu1 %vm130_vm2, %v11472_v8  ;;  %v3940_v21 = vsel %vm3929_vm7, %v11255_v24, %v11268_v37  ;;  %v6776_v37 = vld [vmem:[%s13550_s0] sm:$0xff] }
 0x19d   :  { %6189 = vrot.lane.b32.xlu1 %v10835_v1, %s9833_s17  ;;  %4146 = vmatpush1.bf16.msra.mxu1 %v3970_v9  ;;  %v11521_v61 = vpop.permute.xlu0 %4590  ;;  %v3943_v1 = vsel %vm3929_vm7, %v11293_v22, %v11305_v51  ;;  %v11591_v60 = vcombine.high %v6776_v37, %v6776_v37 }
 0x19e   :  { %4163 = vmatprep.mubr.bf16.mxu1 %v13602_v28  ;;  %v11523_v12 = vpop.f32.mrf.mxu1  ;;  %v1310_v45 = vpop.f32.mrf.mxu0  ;;  %9237 = vmatprep.subr.msk.bf16.mxu1 %vm134_vm1, %v3941_v55  ;;  %v3982_v55 = vsel %vm134_vm1, %v3940_v21, 0  ;;  %v11569_v21 = vcombine.low %v6776_v37, %v6776_v37 }
 0x19f   :  { %v11533_v19 = vpop.permute.xlu1 %4592  ;;  %v3945_v45 = vsel %vm3929_vm7, %v11318_v6, %v11330_v43 }
 0x1a0   :  { %6191 = vrot.lane.b32.xlu0 %v10841_v27, %s9833_s17  ;;  %v1350_v9 = vpop.f32.mrf.mxu1  ;;  %v11537_v23 = vpop.f32.mrf.mxu0  ;;  %9232 = vmatmul.mubr.msk.bf16.vlgmr.msra.gmra.mxu0 %vm130_vm2, %v11472_v8  ;;  %13620 = vst [vmem:[#allocation5_spill] sm:$0xff] %v11569_v21 }
 0x1a1   :  { %6193 = vrot.lane.b32.xlu1 %v10861_v29, %s9833_s17  ;;  %4187 = vmatpush1.bf16.msra.mxu0 %v3976_v56  ;;  %v11544_v24 = vpop.permute.xlu0 %4594  ;;  %v3942_v29 = vsel %vm3929_vm7, %v11280_v3, %v11293_v22 }
 0x1a2   :  { %4204 = vmatprep.mubr.bf16.mxu0 %v13602_v28  ;;  %v1351_v15 = vpop.f32.mrf.mxu1  ;;  %v11549_v27 = vpop.f32.mrf.mxu0  ;;  %9239 = vmatprep.subr.msk.bf16.mxu0 %vm134_vm1, %v3943_v1 }
 0x1a3   :  { %v11559_v56 = vpop.permute.xlu1 %4596 }
 0x1a4   :  { %6195 = vrot.lane.b32.xlu0 %v10867_v63, %s9833_s17  ;;  %v11563_v9 = vpop.f32.mrf.mxu1  ;;  %v1391_v15 = vpop.f32.mrf.mxu0  ;;  %9234 = vmatmul.mubr.msk.bf16.vlgmr.msra.gmra.mxu1 %vm130_vm2, %v11472_v8  ;;  %v6777_v63 = vld [vmem:[%s13550_s0 + $0x8] sm:$0xff] }
 0x1a5   :  { %6197 = vrot.lane.b32.xlu1 %v10884_v10, %s9833_s17  ;;  %4228 = vmatpush1.bf16.msra.mxu1 %v3982_v55  ;;  %v11572_v3 = vpop.permute.xlu0 %4598  ;;  %v3988_v15 = vsel %vm134_vm1, %v3942_v29, 0  ;;  %v3944_v10 = vsel %vm3929_vm7, %v11305_v51, %v11318_v6  ;;  %v3947_v55 = vsel %vm3929_vm7, %v11343_v25, %v11355_v16  ;;  %v11599_v51 = vcombine.low %v6777_v63, %v6777_v63 }
 0x1a6   :  { %4245 = vmatprep.mubr.bf16.mxu1 %v13602_v28  ;;  %v11577_v22 = vpop.f32.mrf.mxu1  ;;  %v1392_v1 = vpop.f32.mrf.mxu0  ;;  %9241 = vmatprep.subr.msk.bf16.mxu1 %vm134_vm1, %v3945_v45  ;;  %v3994_v45 = vsel %vm134_vm1, %v3944_v10, 0 }
 0x1a7   :  { %v11587_v57 = vpop.permute.xlu1 %4600  ;;  %13621 = vst [vmem:[#allocation2_spill] sm:$0xff] %v11599_v51 }
 0x1a8   :  { %6199 = vrot.lane.b32.xlu0 %v10893_v44, %s9833_s17  ;;  %v1432_v1 = vpop.f32.mrf.mxu1  ;;  %v11593_v39 = vpop.f32.mrf.mxu0  ;;  %9236 = vmatmul.mubr.msk.bf16.vlgmr.msra.gmra.mxu0 %vm130_vm2, %v11472_v8  ;;  %v6778_v44 = vld [vmem:[%s13550_s0 + $0x10] sm:$0xff] }
 0x1a9   :  { %6836 = vrot.lane.b32.xlu1 %v11569_v21, %s9831_s13  ;;  %4269 = vmatpush1.bf16.msra.mxu0 %v3988_v15  ;;  %v11602_v6 = vpop.permute.xlu0 %5089  ;;  %v3946_v1 = vsel %vm3929_vm7, %v11330_v43, %v11343_v25  ;;  %v11626_v10 = vcombine.low %v6778_v44, %v6778_v44  ;;  %v6779_v25 = vld [vmem:[%s13550_s0 + $0x18] sm:$0xff] }
 0x1aa   :  { %4286 = vmatprep.mubr.bf16.mxu0 %v13602_v28  ;;  %13622 = vst [vmem:[#allocation10_spill] sm:$0xff] %v11602_v6  ;;  %v1433_v37 = vpop.f32.mrf.mxu1  ;;  %v11607_v29 = vpop.f32.mrf.mxu0  ;;  %9243 = vmatprep.subr.msk.bf16.mxu0 %vm134_vm1, %v3947_v55  ;;  %v11618_v6 = vcombine.high %v6777_v63, %v6777_v63 }
 0x1ab   :  { %v11614_v15 = vpop.permute.xlu1 %5091  ;;  %13625 = vst [vmem:[#allocation13_spill] sm:$0xff] %v11626_v10 }
 0x1ac   :  { %13623 = vst [vmem:[#allocation3_spill] sm:$0xff] %v11614_v15  ;;  %6838 = vrot.lane.b32.xlu0 %v11591_v60, %s9831_s13  ;;  %v11620_v21 = vpop.f32.mrf.mxu1  ;;  %v1473_v37 = vpop.f32.mrf.mxu0  ;;  %9238 = vmatmul.mubr.msk.bf16.vlgmr.msra.gmra.mxu1 %vm130_vm2, %v11472_v8  ;;  %v4603_v15 = vsel %vm1657_vm5, %v11377_v54, %v11387_v5 }
 0x1ad   :  { %13624 = vst [vmem:[#allocation12_spill] sm:$0xff] %v11620_v21  ;;  %6840 = vrot.lane.b32.xlu1 %v11599_v51, %s9831_s13  ;;  %4310 = vmatpush1.bf16.msra.mxu1 %v3994_v45  ;;  %v11629_v43 = vpop.permute.xlu0 %5093  ;;  %v4000_v37 = vsel %vm134_vm1, %v3946_v1, 0  ;;  %v11653_v1 = vcombine.low %v6779_v25, %v6779_v25 }
 0x1ae   :  { %4327 = vmatprep.mubr.bf16.mxu1 %v13602_v28  ;;  %13626 = vst [vmem:[#allocation14_spill] sm:$0xff] %v11629_v43  ;;  %v11634_v63 = vpop.f32.mrf.mxu1  ;;  %v1474_v55 = vpop.f32.mrf.mxu0  ;;  %9548 = vmatprep.subr.bf16.mxu1 %v13599_v35  ;;  %v11645_v43 = vcombine.high %v6778_v44, %v6778_v44  ;;  %v6780_v44 = vld [vmem:[%s13550_s0 + $0x20] sm:$0xff] }
 0x1af   :  { %v11641_v45 = vpop.permute.xlu1 %5095  ;;  %13629 = vst [vmem:[#allocation17_spill] sm:$0xff] %v11653_v1 }
 0x1b0   :  { %13627 = vst [vmem:[#allocation15_spill] sm:$0xff] %v11641_v45  ;;  %6842 = vrot.lane.b32.xlu0 %v11618_v6, %s9831_s13  ;;  %v1514_v51 = vpop.f32.mrf.mxu1  ;;  %v11647_v21 = vpop.f32.mrf.mxu0  ;;  %9240 = vmatmul.mubr.msk.bf16.vlgmr.msra.gmra.mxu0 %vm130_vm2, %v11472_v8 }
 0x1b1   :  { %13628 = vst [vmem:[#allocation16_spill] sm:$0xff] %v11647_v21  ;;  %6844 = vrot.lane.b32.xlu1 %v11626_v10, %s9831_s13  ;;  %4351 = vmatpush1.bf16.msra.mxu0 %v4000_v37  ;;  %v11656_v55 = vpop.permute.xlu0 %5097  ;;  %v4006_v21 = vsel %vm134_vm1, %v11355_v16, 0  ;;  %v4602_v37 = vsel %vm1657_vm5, %v11365_v48, %v11377_v54  ;;  %v11684_v48 = vcombine.low %v6780_v44, %v6780_v44 }
 0x1b2   :  { %4368 = vmatprep.mubr.bf16.mxu0 %v13602_v28  ;;  %13630 = vst [vmem:[#allocation18_spill] sm:$0xff] %v11656_v55  ;;  %v1515_v51 = vpop.f32.mrf.mxu1  ;;  %v11661_v45 = vpop.f32.mrf.mxu0  ;;  %9277 = vmatprep.subr.msk.bf16.mxu0 %vm134_vm1, %v4603_v15  ;;  %v4605_v55 = vsel %vm1657_vm5, %v11399_v47, %v11413_v52  ;;  %v6781_v15 = vld [vmem:[%s13550_s0 + $0x28] sm:$0xff] }
 0x1b3   :  { %13631 = vst [vmem:[#allocation19_spill] sm:$0xff] %v11661_v45  ;;  %v11672_v10 = vpop.permute.xlu1 %5099  ;;  %v11676_v51 = vcombine.high %v6779_v25, %v6779_v25  ;;  %13634 = vst [vmem:[#allocation22_spill] sm:$0xff] %v11684_v48 }
 0x1b4   :  { %13632 = vst [vmem:[#allocation20_spill] sm:$0xff] %v11672_v10  ;;  %6846 = vrot.lane.b32.xlu0 %v11645_v43, %s9831_s13  ;;  %v11678_v45 = vpop.f32.mrf.mxu1  ;;  %v1555_v16 = vpop.f32.mrf.mxu0  ;;  %9242 = vmatmul.mubr.msk.bf16.vlgmr.msra.gmra.mxu1 %vm130_vm2, %v11472_v8  ;;  %v4624_v10 = vsel %vm134_vm1, %v4602_v37, 0 }
 0x1b5   :  { %13633 = vst [vmem:[#allocation21_spill] sm:$0xff] %v11678_v45  ;;  %6848 = vrot.lane.b32.xlu1 %v11653_v1, %s9831_s13  ;;  %9549 = vmatpush3.bf16.msra.mxu1 %v4006_v21  ;;  %v11688_v54 = vpop.permute.xlu0 %5101  ;;  %v1598_v1 = vadd.f32 %v11440_v38, %v11197_v18  ;;  %v4604_v21 = vsel %vm1657_vm5, %v11387_v5, %v11399_v47 }
 0x1b6   :  { %9550 = vmatprep.mubr.msk.bf16.mxu1 %vm9830_vm3, %v13599_v35  ;;  %13635 = vst [vmem:[#allocation23_spill] sm:$0xff] %v11688_v54  ;;  %v9522_v25 = vpop.f32.mrf.mxu1  ;;  %v1556_v16 = vpop.f32.mrf.mxu0  ;;  %9279 = vmatprep.subr.msk.bf16.mxu1 %vm134_vm1, %v4605_v55  ;;  %v4607_v54 = vsel %vm1657_vm5, %v11426_v4, %v11436_v14  ;;  %v11713_v18 = vcombine.low %v6781_v15, %v6781_v15 }
 0x1b7   :  { %v11703_v45 = vpop.permute.xlu1 %5103  ;;  %v11707_v25 = vcombine.high %v6780_v44, %v6780_v44  ;;  %v1599_v5 = vadd.f32 %v11449_v36, %v11205_v32  ;;  %v6782_v44 = vld [vmem:[%s13550_s0 + $0x30] sm:$0xff]  ;;  %v1600_v32 = vadd.f32 %v11463_v13, %v11222_v59 }
 0x1b8   :  { %13636 = vst [vmem:[#allocation24_spill] sm:$0xff] %v11703_v45  ;;  %6850 = vrot.lane.b32.xlu0 %v11676_v51, %s9831_s13  ;;  %v1595_v37 = vpop.f32.mrf.mxu1  ;;  %v1770_v55 = vpop.f32.mrf.mxu0  ;;  %9244 = vmatmul.mubr.msk.bf16.vlgmr.msra.gmra.mxu0 %vm130_vm2, %v11472_v8  ;;  %v4630_v45 = vsel %vm134_vm1, %v4604_v21, 0  ;;  %v11743_v59 = vcombine.low %v6782_v44, %v6782_v44  ;;  %v11750_v13 = vld [vmem:[%s13551_s1 + $0x12] sm:$0x3] }
 0x1b9   :  { %6852 = vrot.lane.b32.xlu1 %v11684_v48, %s9831_s13  ;;  %v2145_v47 = vadd.f32 %v1770_v55, %v1598_v1  ;;  %4695 = vmatpush1.bf16.msra.mxu0 %v4624_v10  ;;  %v11718_v38 = vpop.permute.xlu0 %5105  ;;  %v11725_v48 = vcombine.high %v6781_v15, %v6781_v15  ;;  %v4606_v10 = vsel %vm1657_vm5, %v11413_v52, %v11426_v4 }
 0x1ba   :  { %4712 = vmatprep.mubr.bf16.mxu0 %v13602_v28  ;;  %v9523_v16 = vpop.f32.mrf.mxu1  ;;  %v1772_v37 = vpop.f32.mrf.mxu0  ;;  %9281 = vmatprep.subr.msk.bf16.mxu0 %vm134_vm1, %v4607_v54  ;;  %v4609_v1 = vsel %vm1657_vm5, %v11447_v2, %v11459_v11  ;;  %v1601_v52 = vadd.f32 %v11477_v34, %v11235_v7  ;;  %v4636_v7 = vsel %vm134_vm1, %v4606_v10, 0  ;;  %v11760_v34 = vcombine.high %v6782_v44, %v6782_v44 }
 0x1bb   :  { %v2146_v36 = vadd.f32 %v1772_v37, %v1599_v5  ;;  %v11735_v55 = vpop.permute.xlu1 %5107  ;;  %9671 = vtanh.f32 %v2145_v47  ;;  %v4608_v37 = vsel %vm1657_vm5, %v11436_v14, %v11447_v2  ;;  %v1603_v14 = vadd.f32 %v11500_v30, %v11260_v53 }
 0x1bc   :  { %6854 = vrot.lane.b32.xlu0 %v11707_v25, %s9831_s13  ;;  %v1811_v54 = vpop.f32.mrf.mxu1  ;;  %v1774_v15 = vpop.f32.mrf.mxu0  ;;  %9551 = vmatmul.mubr.msk.bf16.vlgmr.msra.gmra.mxu1 %vm130_vm2, %v11472_v8  ;;  %v6783_v8 = vld [vmem:[%s13550_s0 + $0x38] sm:$0xff]  ;;  %v1604_v53 = vadd.f32 %v11514_v62, %v11277_v41 }
 0x1bd   :  { %6856 = vrot.lane.b32.xlu1 %v11713_v18, %s9831_s13  ;;  %9673 = vtanh.f32 %v2146_v36  ;;  %v2147_v4 = vadd.f32 %v1811_v54, %v1600_v32  ;;  %4736 = vmatpush1.bf16.msra.mxu1 %v4630_v45  ;;  %v11753_v21 = vpop.permute.xlu0 %5109  ;;  %v1602_v45 = vadd.f32 %v11491_v50, %v11252_v42  ;;  %v4611_v32 = vsel %vm1657_vm5, %v11475_v31, %v11487_v17 }
 0x1be   :  { %4753 = vmatprep.mubr.bf16.mxu1 %v13602_v28  ;;  %v1813_v5 = vpop.f32.mrf.mxu1  ;;  %v1775_v47 = vpop.f32.mrf.mxu0  ;;  %9283 = vmatprep.subr.msk.bf16.mxu1 %vm134_vm1, %v4609_v1  ;;  %v11778_v42 = vcombine.low %v6783_v8, %v6783_v8  ;;  %v6784_v1 = vld [vmem:[%s13550_s0 + $0x40] sm:$0xff] }
 0x1bf   :  { %v2148_v16 = vadd.f32 %v1813_v5, %v1601_v52  ;;  %v11770_v36 = vpop.permute.xlu1 %5111  ;;  %9675 = vtanh.f32 %v2147_v4  ;;  %v4642_v52 = vsel %vm134_vm1, %v4608_v37, 0  ;;  %v11790_v4 = vcombine.high %v6783_v8, %v6783_v8 }
 0x1c0   :  { %6858 = vrot.lane.b32.xlu0 %v11725_v48, %s9831_s13  ;;  %v1815_v44 = vpop.f32.mrf.mxu1  ;;  %v1852_v10 = vpop.f32.mrf.mxu0  ;;  %9278 = vmatmul.mubr.msk.bf16.vlgmr.msra.gmra.mxu0 %vm130_vm2, %v11750_v13  ;;  %v4610_v5 = vsel %vm1657_vm5, %v11459_v11, %v11475_v31  ;;  %v4613_v47 = vsel %vm1657_vm5, %v11498_v46, %v11510_v40  ;;  %v11808_v41 = vcombine.low %v6784_v1, %v6784_v1 }
 0x1c1   :  { %6860 = vrot.lane.b32.xlu1 %v11743_v59, %s9831_s13  ;;  %9677 = vtanh.f32 %v2148_v16  ;;  %v2149_v2 = vadd.f32 %v1852_v10, %v1602_v45  ;;  %4777 = vmatpush1.bf16.msra.mxu0 %v4636_v7  ;;  %v11783_v50 = vpop.permute.xlu0 %5113  ;;  %v1605_v11 = vadd.f32 %v11523_v12, %v11285_v58  ;;  %v11817_v44 = vcombine.high %v6784_v1, %v6784_v1 }
 0x1c2   :  { %4794 = vmatprep.mubr.bf16.mxu0 %v13602_v28  ;;  %v1816_v54 = vpop.f32.mrf.mxu1  ;;  %v1854_v15 = vpop.f32.mrf.mxu0  ;;  %9285 = vmatprep.subr.msk.bf16.mxu0 %vm134_vm1, %v4611_v32  ;;  %v4648_v32 = vsel %vm134_vm1, %v4610_v5, 0  ;;  %v1606_v10 = vadd.f32 %v11537_v23, %v11302_v49  ;;  %v4612_v58 = vsel %vm1657_vm5, %v11487_v17, %v11498_v46  ;;  %v4615_v12 = vsel %vm1657_vm5, %v11521_v61, %v11533_v19  ;;  %v11838_v49 = vld [vmem:[%s13550_s0 + $0x48] ss:$0 sps:$4 sm:$0xff]  }
 0x1c3   :  { %v2150_v30 = vadd.f32 %v1854_v15, %v1603_v14  ;;  %v11800_v7 = vpop.permute.xlu1 %5115  ;;  %9679 = vtanh.f32 %v2149_v2  ;;  %v1607_v46 = vadd.f32 %v11549_v27, %v11310_v0  ;;  %v4654_v5 = vsel %vm134_vm1, %v4612_v58, 0 }
 0x1c4   :  { %6862 = vrot.lane.b32.xlu0 %v11760_v34, %s9831_s13  ;;  %v1893_v8 = vpop.f32.mrf.mxu1  ;;  %v1856_v45 = vpop.f32.mrf.mxu0  ;;  %9280 = vmatmul.mubr.msk.bf16.vlgmr.msra.gmra.mxu1 %vm130_vm2, %v11750_v13  ;;  %v1608_v0 = vadd.f32 %v11563_v9, %v11327_v33 }
 0x1c5   :  { %6864 = vrot.lane.b32.xlu1 %v11778_v42, %s9831_s13  ;;  %9681 = vtanh.f32 %v2150_v30  ;;  %v2151_v31 = vadd.f32 %v1893_v8, %v1604_v53  ;;  %4818 = vmatpush1.bf16.msra.mxu1 %v4642_v52  ;;  %v11813_v62 = vpop.permute.xlu0 %5117  ;;  %v4617_v45 = vsel %vm1657_vm5, %v11544_v24, %v11559_v56 }
 0x1c6   :  { %4835 = vmatprep.mubr.bf16.mxu1 %v13602_v28  ;;  %v1895_v16 = vpop.f32.mrf.mxu1  ;;  %v1857_v37 = vpop.f32.mrf.mxu0  ;;  %9287 = vmatprep.subr.msk.bf16.mxu1 %vm134_vm1, %v4613_v47  ;;  %v4614_v47 = vsel %vm1657_vm5, %v11510_v40, %v11521_v61  ;;  %v1609_v40 = vadd.f32 %v11577_v22, %v11335_v20  ;;  %v4616_v20 = vsel %vm1657_vm5, %v11533_v19, %v11544_v24 }
 0x1c7   :  { %v2152_v14 = vadd.f32 %v1895_v16, %v1605_v11  ;;  %v11827_v2 = vpop.permute.xlu1 %5119  ;;  %9683 = vtanh.f32 %v2151_v31  ;;  %v1610_v22 = vadd.f32 %v11593_v39, %v11352_v26  ;;  %v13638_v39 = vld [vmem:[#allocation11_spill] sm:$0xff] }
 0x1c8   :  { %6866 = vrot.lane.b32.xlu0 %v11790_v4, %s9831_s13  ;;  %v1897_v1 = vpop.f32.mrf.mxu1  ;;  %v1934_v54 = vpop.f32.mrf.mxu0  ;;  %9282 = vmatmul.mubr.msk.bf16.vlgmr.msra.gmra.mxu0 %vm130_vm2, %v11750_v13  ;;  %v1611_v19 = vadd.f32 %v11607_v29, %v13638_v39  ;;  %v13640_v29 = vld [vmem:[#allocation12_spill] sm:$0xff]  ;;  %v13646_v39 = vld [vmem:[#allocation3_spill] sm:$0xff] }
 0x1c9   :  { %6868 = vrot.lane.b32.xlu1 %v11808_v41, %s9831_s13  ;;  %v9672_v17 = vpop.eup %9671  ;;  %9685 = vtanh.f32 %v2152_v14  ;;  %v2153_v23 = vadd.f32 %v1934_v54, %v1606_v10  ;;  %4859 = vmatpush1.bf16.msra.mxu0 %v4648_v32  ;;  %v11843_v15 = vpop.permute.xlu0 %5121  ;;  %v4660_v14 = vsel %vm134_vm1, %v4614_v47, 0  ;;  %v4619_v1 = vsel %vm1657_vm5, %v11572_v3, %v11587_v57 }
 0x1ca   :  { %4876 = vmatprep.mubr.bf16.mxu0 %v13602_v28  ;;  %v9674_v52 = vpop.eup %9673  ;;  %v1898_v53 = vpop.f32.mrf.mxu1  ;;  %9289 = vmatprep.subr.msk.bf16.mxu0 %vm134_vm1, %v4615_v12  ;;  %v4666_v47 = vsel %vm134_vm1, %v4616_v20, 0 }
 0x1cb   :  { %v1936_v30 = vpop.f32.mrf.mxu0  ;;  %v2201_v27 = vcombine.low %v9672_v17, %v9674_v52  ;;  %v11855_v11 = vpop.permute.xlu1 %5123  ;;  %9687 = vtanh.f32 %v2153_v23  ;;  %v13637_v17 = vld [vmem:[#allocation5_spill] sm:$0xff] }
 0x1cc   :  { %v2154_v8 = vadd.f32 %v1936_v30, %v1607_v46  ;;  %6870 = vrot.lane.b32.xlu0 %v11817_v44, %s9831_s13  ;;  %v1975_v31 = vpop.f32.mrf.mxu1  ;;  %9284 = vmatmul.mubr.msk.bf16.vlgmr.msra.gmra.mxu1 %vm130_vm2, %v11750_v13  ;;  %v9676_v33 = vpop.eup %9675 }
 0x1cd   :  { %v1938_v16 = vpop.f32.mrf.mxu0  ;;  %6872 = vrot.lane.b32.xlu1 %v11838_v49, %s9831_s13  ;;  %2219 = vst [vmem:[%s13552_s2] sm:$0x77] %v2201_v27  ;;  %v2155_v61 = vadd.f32 %v1975_v31, %v1608_v0  ;;  %4900 = vmatpush1.bf16.msra.mxu1 %v4654_v5  ;;  %v11869_v9 = vpop.permute.xlu0 %5125  ;;  %v13639_v0 = vld [vmem:[#allocation4_spill] sm:$0xff]  ;;  %v4618_v31 = vsel %vm1657_vm5, %v11559_v56, %v11572_v3 }
 0x1ce   :  { %9689 = vtanh.f32 %v2154_v8  ;;  %4917 = vmatprep.mubr.bf16.mxu1 %v13602_v28  ;;  %v9678_v37 = vpop.eup %9677  ;;  %v1977_v32 = vpop.f32.mrf.mxu1  ;;  %9291 = vmatprep.subr.msk.bf16.mxu1 %vm134_vm1, %v4617_v45  ;;  %v1612_v27 = vadd.f32 %v13640_v29, %v13639_v0  ;;  %v13648_v0 = vld [vmem:[#allocation8_spill] sm:$0xff]  ;;  %v13649_v29 = vld [vmem:[#allocation19_spill] sm:$0xff] }
 0x1cf   :  { %v1939_v10 = vpop.f32.mrf.mxu0  ;;  %v2202_v58 = vcombine.low %v9676_v33, %v9678_v37  ;;  %v2156_v12 = vadd.f32 %v1977_v32, %v1609_v40  ;;  %v11881_v54 = vpop.permute.xlu1 %5616  ;;  %9691 = vtanh.f32 %v2155_v61  ;;  %v13641_v33 = vld [vmem:[#allocation2_spill] sm:$0xff] }
 0x1d0   :  { %7361 = vrot.lane.b32.xlu0 %v13637_v17, %s9827_s3  ;;  %v1979_v46 = vpop.f32.mrf.mxu1  ;;  %9286 = vmatmul.mubr.msk.bf16.vlgmr.msra.gmra.mxu0 %vm130_vm2, %v11750_v13  ;;  %v9680_v26 = vpop.eup %9679  ;;  %v13642_v32 = vld [vmem:[#allocation6_spill] sm:$0xff] }
 0x1d1   :  { %v2016_v23 = vpop.f32.mrf.mxu0  ;;  %7363 = vrot.lane.b32.xlu1 %v11591_v60, %s9827_s3  ;;  %2220 = vst [vmem:[%s13552_s2 + $0x8] sm:$0x77] %v2202_v58  ;;  %9693 = vtanh.f32 %v2156_v12  ;;  %4941 = vmatpush1.bf16.msra.mxu0 %v4660_v14  ;;  %v11895_v52 = vpop.permute.xlu0 %5618  ;;  %v1613_v10 = vadd.f32 %v11634_v63, %v13642_v32  ;;  %v4672_v58 = vsel %vm134_vm1, %v4618_v31, 0  ;;  %v13643_v12 = vld [vmem:[#allocation7_spill] sm:$0xff]  ;;  %v13644_v63 = vld [vmem:[#allocation16_spill] sm:$0xff]  ;;  %v13650_v32 = vld [vmem:[#allocation10_spill] sm:$0xff] }
 0x1d2   :  { %v2157_v24 = vadd.f32 %v2016_v23, %v1610_v22  ;;  %4958 = vmatprep.mubr.bf16.mxu0 %v13602_v28  ;;  %v9682_v53 = vpop.eup %9681  ;;  %v1980_v30 = vpop.f32.mrf.mxu1  ;;  %9293 = vmatprep.subr.msk.bf16.mxu0 %vm134_vm1, %v4619_v1  ;;  %v1614_v1 = vadd.f32 %v13644_v63, %v13643_v12  ;;  %v13653_v12 = vld [vmem:[#allocation18_spill] sm:$0xff]  ;;  %v13654_v63 = vld [vmem:[#allocation15_spill] sm:$0xff] }
 0x1d3   :  { %v2018_v5 = vpop.f32.mrf.mxu0  ;;  %v2203_v8 = vcombine.low %v9680_v26, %v9682_v53  ;;  %v11904_v16 = vpop.permute.xlu1 %5620  ;;  %v13645_v26 = vld [vmem:[#allocation14_spill] sm:$0xff]  ;;  %v13647_v53 = vld [vmem:[#allocation13_spill] sm:$0xff] }
 0x1d4   :  { %v2158_v45 = vadd.f32 %v2018_v5, %v1611_v19  ;;  %7365 = vrot.lane.b32.xlu0 %v13641_v33, %s9827_s3  ;;  %9695 = vtanh.f32 %v2157_v24  ;;  %v2057_v40 = vpop.f32.mrf.mxu1  ;;  %9288 = vmatmul.mubr.msk.bf16.vlgmr.msra.gmra.mxu1 %vm130_vm2, %v11750_v13  ;;  %v9684_v37 = vpop.eup %9683  ;;  %v5128_v19 = vsel %vm1110_vm4, %v13646_v39, %v13645_v26 }
 0x1d5   :  { %v2020_v61 = vpop.f32.mrf.mxu0  ;;  %7367 = vrot.lane.b32.xlu1 %v11618_v6, %s9827_s3  ;;  %2221 = vst [vmem:[%s13552_s2 + $0x10] sm:$0x77] %v2203_v8  ;;  %v2159_v56 = vadd.f32 %v2057_v40, %v1612_v27  ;;  %4982 = vmatpush1.bf16.msra.mxu1 %v4666_v47  ;;  %v11918_v3 = vpop.permute.xlu0 %5622  ;;  %v1615_v27 = vadd.f32 %v13649_v29, %v13648_v0 }
 0x1d6   :  { %9697 = vtanh.f32 %v2158_v45  ;;  %4999 = vmatprep.mubr.bf16.mxu1 %v13602_v28  ;;  %v9686_v14 = vpop.eup %9685  ;;  %v2059_v20 = vpop.f32.mrf.mxu1  ;;  %9554 = vmatprep.subr.bf16.mxu1 %v13599_v35 }
 0x1d7   :  { %v2021_v22 = vpop.f32.mrf.mxu0  ;;  %v2204_v46 = vcombine.low %v9684_v37, %v9686_v14  ;;  %v2160_v23 = vadd.f32 %v2059_v20, %v1613_v10  ;;  %v11927_v24 = vpop.permute.xlu1 %5624  ;;  %9699 = vtanh.f32 %v2159_v56  ;;  %v4678_v37 = vsel %vm134_vm1, %v11587_v57, 0  ;;  %v13651_v56 = vld [vmem:[#allocation9_spill] sm:$0xff] }
 0x1d8   :  { %7369 = vrot.lane.b32.xlu0 %v13647_v53, %s9827_s3  ;;  %v2061_v30 = vpop.f32.mrf.mxu1  ;;  %9290 = vmatmul.mubr.msk.bf16.vlgmr.msra.gmra.mxu0 %vm130_vm2, %v11750_v13  ;;  %v9688_v47 = vpop.eup %9687  ;;  %v5127_v10 = vsel %vm1110_vm4, %v13650_v32, %v13646_v39  ;;  %v13652_v14 = vld [vmem:[#allocation21_spill] sm:$0xff] }
 0x1d9   :  { %v2098_v5 = vpop.f32.mrf.mxu0  ;;  %7371 = vrot.lane.b32.xlu1 %v11645_v43, %s9827_s3  ;;  %2222 = vst [vmem:[%s13552_s2 + $0x18] sm:$0x77] %v2204_v46  ;;  %9701 = vtanh.f32 %v2160_v23  ;;  %5023 = vmatpush1.bf16.msra.mxu0 %v4672_v58  ;;  %v11941_v45 = vpop.permute.xlu0 %5626  ;;  %v1616_v20 = vadd.f32 %v13652_v14, %v13651_v56  ;;  %v13655_v23 = vld [vmem:[#allocation17_spill] sm:$0xff]  ;;  %v13658_v56 = vld [vmem:[#allocation22_spill] sm:$0xff] }
 0x1da   :  { %v2161_v8 = vadd.f32 %v2098_v5, %v1614_v1  ;;  %5040 = vmatprep.mubr.bf16.mxu0 %v13602_v28  ;;  %v2062_v40 = vpop.f32.mrf.mxu1  ;;  %9296 = vmatprep.subr.msk.bf16.mxu0 %vm134_vm1, %v5128_v19  ;;  %v5130_v1 = vsel %vm1110_vm4, %v13654_v63, %v13653_v12 }
 0x1db   :  { %v9690_v31 = vpop.eup %9689  ;;  %v2100_v61 = vpop.f32.mrf.mxu0  ;;  %v13656_v40 = vld [vmem:[#allocation23_spill] sm:$0xff] }
 0x1dc   :  { %v2205_v22 = vcombine.low %v9688_v47, %v9690_v31  ;;  %v2162_v58 = vadd.f32 %v2100_v61, %v1615_v27  ;;  %v11954_v46 = vpop.permute.xlu1 %5628  ;;  %7373 = vrot.lane.b32.xlu0 %v13655_v23, %s9827_s3  ;;  %9703 = vtanh.f32 %v2161_v8  ;;  %v2139_v57 = vpop.f32.mrf.mxu1  ;;  %9292 = vmatmul.mubr.msk.bf16.vlgmr.msra.gmra.mxu1 %vm130_vm2, %v11750_v13  ;;  %v5149_v27 = vsel %vm134_vm1, %v5127_v10, 0  ;;  %v13657_v61 = vld [vmem:[#allocation20_spill] sm:$0xff] }
 0x1dd   :  { %v2102_v30 = vpop.f32.mrf.mxu0  ;;  %7375 = vrot.lane.b32.xlu1 %v11676_v51, %s9827_s3  ;;  %v9692_v39 = vpop.eup %9691  ;;  %v2163_v19 = vadd.f32 %v2139_v57, %v1616_v20  ;;  %9555 = vmatpush3.bf16.msra.mxu1 %v4678_v37  ;;  %v5129_v31 = vsel %vm1110_vm4, %v13645_v26, %v13654_v63  ;;  %v5132_v37 = vsel %vm1110_vm4, %v13657_v61, %v13656_v40 }
 0x1de   :  { %2223 = vst [vmem:[%s13552_s2 + $0x20] sm:$0x77] %v2205_v22  ;;  %9705 = vtanh.f32 %v2162_v58  ;;  %9556 = vmatprep.mubr.msk.bf16.mxu1 %vm9830_vm3, %v13599_v35  ;;  %v11967_v5 = vpop.permute.xlu0 %5630  ;;  %v9694_v47 = vpop.eup %9693  ;;  %9298 = vmatprep.subr.msk.bf16.mxu1 %vm134_vm1, %v5130_v1  ;;  %v5155_v1 = vsel %vm134_vm1, %v5129_v31, 0  ;;  %v5131_v30 = vsel %vm1110_vm4, %v13653_v12, %v13657_v61  ;;  %v12019_v12 = vld [vmem:[%s13551_s1 + $0x10] sm:$0x3] }
 0x1df   :  { %v9528_v0 = vpop.f32.mrf.mxu1  ;;  %v2103_v29 = vpop.f32.mrf.mxu0  ;;  %v2206_v8 = vcombine.low %v9692_v39, %v9694_v47  ;;  %9707 = vtanh.f32 %v2163_v19  ;;  %v13659_v39 = vld [vmem:[#allocation24_spill] sm:$0xff] }
 0x1e0   :  { %v11977_v32 = vpop.permute.xlu1 %5632  ;;  %7377 = vrot.lane.b32.xlu0 %v13658_v56, %s9827_s3  ;;  %9294 = vmatmul.mubr.msk.bf16.vlgmr.msra.gmra.mxu0 %vm130_vm2, %v11750_v13  ;;  %v5134_v19 = vsel %vm1110_vm4, %v13659_v39, %v11718_v38 }
 0x1e1   :  { %v2142_v14 = vpop.f32.mrf.mxu1  ;;  %v11981_v20 = vpop.f32.mrf.mxu0  ;;  %7379 = vrot.lane.b32.xlu1 %v11707_v25, %s9827_s3  ;;  %2224 = vst [vmem:[%s13552_s2 + $0x28] sm:$0x77] %v2206_v8  ;;  %5220 = vmatpush1.bf16.msra.mxu0 %v5149_v27 }
 0x1e2   :  { %v9696_v10 = vpop.eup %9695  ;;  %5237 = vmatprep.mubr.bf16.mxu0 %v13602_v28  ;;  %v11991_v26 = vpop.permute.xlu0 %5634  ;;  %9300 = vmatprep.subr.msk.bf16.mxu0 %vm134_vm1, %v5132_v37  ;;  %v5161_v37 = vsel %vm134_vm1, %v5131_v30, 0 }
 0x1e3   :  { %v9698_v22 = vpop.eup %9697  ;;  %v9529_v58 = vpop.f32.mrf.mxu1 }
 0x1e4   :  { %v11993_v63 = vpop.f32.mrf.mxu0  ;;  %v2207_v57 = vcombine.low %v9696_v10, %v9698_v22  ;;  %v12003_v47 = vpop.permute.xlu1 %5636  ;;  %7381 = vrot.lane.b32.xlu0 %v11713_v18, %s9827_s3  ;;  %9557 = vmatmul.mubr.msk.bf16.vlgmr.msra.gmra.mxu1 %vm130_vm2, %v11750_v13  ;;  %v5133_v10 = vsel %vm1110_vm4, %v13656_v40, %v13659_v39  ;;  %v5136_v22 = vsel %vm1110_vm4, %v11735_v55, %v11753_v21 }
 0x1e5   :  { %v12007_v0 = vpop.f32.mrf.mxu1  ;;  %7383 = vrot.lane.b32.xlu1 %v11725_v48, %s9827_s3  ;;  %v9700_v27 = vpop.eup %9699  ;;  %5261 = vmatpush1.bf16.msra.mxu1 %v5155_v1 }
 0x1e6   :  { %v2447_v29 = vpop.f32.mrf.mxu0  ;;  %2225 = vst [vmem:[%s13552_s2 + $0x30] sm:$0x77] %v2207_v57  ;;  %5278 = vmatprep.mubr.bf16.mxu1 %v13602_v28  ;;  %v12022_v8 = vpop.permute.xlu0 %5638  ;;  %9302 = vmatprep.subr.msk.bf16.mxu1 %vm134_vm1, %v5134_v19 }
 0x1e7   :  { %v9702_v31 = vpop.eup %9701  ;;  %v12024_v13 = vpop.f32.mrf.mxu1 }
 0x1e8   :  { %v2448_v61 = vpop.f32.mrf.mxu0  ;;  %v2208_v14 = vcombine.low %v9700_v27, %v9702_v31  ;;  %v12034_v58 = vpop.permute.xlu1 %5640  ;;  %7385 = vrot.lane.b32.xlu0 %v11743_v59, %s9827_s3  ;;  %9297 = vmatmul.mubr.msk.bf16.vlgmr.msra.gmra.mxu0 %vm130_vm2, %v12019_v12  ;;  %v5167_v27 = vsel %vm134_vm1, %v5133_v10, 0 }
 0x1e9   :  { %v2488_v1 = vpop.f32.mrf.mxu1  ;;  %7387 = vrot.lane.b32.xlu1 %v11760_v34, %s9827_s3  ;;  %v9704_v30 = vpop.eup %9703  ;;  %5302 = vmatpush1.bf16.msra.mxu0 %v5161_v37  ;;  %v5135_v61 = vsel %vm1110_vm4, %v11718_v38, %v11735_v55  ;;  %v5138_v37 = vsel %vm1110_vm4, %v11770_v36, %v11783_v50 }
 0x1ea   :  { %v12038_v57 = vpop.f32.mrf.mxu0  ;;  %2226 = vst [vmem:[%s13552_s2 + $0x38] sm:$0x77] %v2208_v14  ;;  %5319 = vmatprep.mubr.bf16.mxu0 %v13602_v28  ;;  %v12048_v40 = vpop.permute.xlu0 %5642  ;;  %9304 = vmatprep.subr.msk.bf16.mxu0 %vm134_vm1, %v5136_v22 }
 0x1eb   :  { %v9706_v39 = vpop.eup %9705  ;;  %v2489_v19 = vpop.f32.mrf.mxu1 }
 0x1ec   :  { %v12050_v29 = vpop.f32.mrf.mxu0  ;;  %v2209_v31 = vcombine.low %v9704_v30, %v9706_v39  ;;  %v12060_v14 = vpop.permute.xlu1 %5644  ;;  %7389 = vrot.lane.b32.xlu0 %v11778_v42, %s9827_s3  ;;  %9299 = vmatmul.mubr.msk.bf16.vlgmr.msra.gmra.mxu1 %vm130_vm2, %v12019_v12  ;;  %v5173_v30 = vsel %vm134_vm1, %v5135_v61, 0  ;;  %v5137_v39 = vsel %vm1110_vm4, %v11753_v21, %v11770_v36 }
 0x1ed   :  { %v9708_v1 = vpop.eup %9707  ;;  %v12064_v19 = vpop.f32.mrf.mxu1  ;;  %7391 = vrot.lane.b32.xlu1 %v11790_v4, %s9827_s3  ;;  %5343 = vmatpush1.bf16.msra.mxu1 %v5167_v27 }
 0x1ee   :  { %v2529_v10 = vpop.f32.mrf.mxu0  ;;  %2227 = vst [vmem:[%s13552_s2 + $0x40] sm:$0x77] %v2209_v31  ;;  %2229 = vst.msk [vmem:[%s13552_s2 + $0x48] sm:$0x7] %vm2228_vm8, %v9708_v1  ;;  %5360 = vmatprep.mubr.bf16.mxu1 %v13602_v28  ;;  %v12078_v38 = vpop.permute.xlu0 %5646  ;;  %9306 = vmatprep.subr.msk.bf16.mxu1 %vm134_vm1, %v5138_v37  ;;  %v5140_v31 = vsel %vm1110_vm4, %v11800_v7, %v11813_v62  ;;  %v5179_v37 = vsel %vm134_vm1, %v5137_v39, 0 }
 0x1ef   :  { %v12080_v55 = vpop.f32.mrf.mxu1 }
 0x1f0   :  { %v2530_v22 = vpop.f32.mrf.mxu0  ;;  %v12090_v27 = vpop.permute.xlu1 %5648  ;;  %7393 = vrot.lane.b32.xlu0 %v11808_v41, %s9827_s3  ;;  %9301 = vmatmul.mubr.msk.bf16.vlgmr.msra.gmra.mxu0 %vm130_vm2, %v12019_v12 }
 0x1f1   :  { %v2570_v1 = vpop.f32.mrf.mxu1  ;;  %7395 = vrot.lane.b32.xlu1 %v11817_v44, %s9827_s3  ;;  %5384 = vmatpush1.bf16.msra.mxu0 %v5173_v30  ;;  %v5139_v22 = vsel %vm1110_vm4, %v11783_v50, %v11800_v7 }
 0x1f2   :  { %v12094_v10 = vpop.f32.mrf.mxu0  ;;  %5401 = vmatprep.mubr.bf16.mxu0 %v13602_v28  ;;  %v12101_v21 = vpop.permute.xlu0 %5650  ;;  %9308 = vmatprep.subr.msk.bf16.mxu0 %vm134_vm1, %v5140_v31  ;;  %v5142_v1 = vsel %vm1110_vm4, %v11827_v2, %v11843_v15  ;;  %v5185_v31 = vsel %vm134_vm1, %v5139_v22, 0 }
 0x1f3   :  { %13660 = vst [vmem:[#allocation5_spill] sm:$0xff] %v12101_v21  ;;  %v2571_v36 = vpop.f32.mrf.mxu1 }
 0x1f4   :  { %v12103_v61 = vpop.f32.mrf.mxu0  ;;  %v12113_v30 = vpop.permute.xlu1 %5652  ;;  %7397 = vrot.lane.b32.xlu0 %v11838_v49, %s9827_s3  ;;  %9303 = vmatmul.mubr.msk.bf16.vlgmr.msra.gmra.mxu1 %vm130_vm2, %v12019_v12 }
 0x1f5   :  { %13661 = vst [vmem:[#allocation11_spill] sm:$0xff] %v12113_v30  ;;  %v12117_v36 = vpop.f32.mrf.mxu1  ;;  %7888 = vrot.lane.b32.xlu1 %v13637_v17, %s9833_s17  ;;  %5425 = vmatpush1.bf16.msra.mxu1 %v5179_v37  ;;  %v5144_v30 = vsel %vm1110_vm4, %v11855_v11, %v11869_v9 }
 0x1f6   :  { %v2611_v21 = vpop.f32.mrf.mxu0  ;;  %5442 = vmatprep.mubr.bf16.mxu1 %v13602_v28  ;;  %v12124_v50 = vpop.permute.xlu0 %6163  ;;  %9310 = vmatprep.subr.msk.bf16.mxu1 %vm134_vm1, %v5142_v1 }
 0x1f7   :  { %13662 = vst [vmem:[#allocation4_spill] sm:$0xff] %v12124_v50  ;;  %v12126_v7 = vpop.f32.mrf.mxu1  ;;  %v5141_v21 = vsel %vm1110_vm4, %v11813_v62, %v11827_v2 }
 0x1f8   :  { %13663 = vst [vmem:[#allocation12_spill] sm:$0xff] %v12126_v7  ;;  %v2612_v39 = vpop.f32.mrf.mxu0  ;;  %v12136_v37 = vpop.permute.xlu1 %6165  ;;  %7890 = vrot.lane.b32.xlu0 %v11591_v60, %s9833_s17  ;;  %9305 = vmatmul.mubr.msk.bf16.vlgmr.msra.gmra.mxu0 %vm130_vm2, %v12019_v12  ;;  %v5191_v1 = vsel %vm134_vm1, %v5141_v21, 0 }
 0x1f9   :  { %13664 = vst [vmem:[#allocation2_spill] sm:$0xff] %v12136_v37  ;;  %v2652_v50 = vpop.f32.mrf.mxu1  ;;  %7892 = vrot.lane.b32.xlu1 %v13641_v33, %s9833_s17  ;;  %5466 = vmatpush1.bf16.msra.mxu0 %v5185_v31 }
 0x1fa   :  { %v12140_v7 = vpop.f32.mrf.mxu0  ;;  %5483 = vmatprep.mubr.bf16.mxu0 %v13602_v28  ;;  %v12147_v62 = vpop.permute.xlu0 %6167  ;;  %9312 = vmatprep.subr.msk.bf16.mxu0 %vm134_vm1, %v5144_v30  ;;  %v5143_v50 = vsel %vm1110_vm4, %v11843_v15, %v11855_v11 }
 0x1fb   :  { %v2653_v2 = vpop.f32.mrf.mxu1  ;;  %v5197_v21 = vsel %vm134_vm1, %v5143_v50, 0 }
 0x1fc   :  { %v12149_v22 = vpop.f32.mrf.mxu0  ;;  %v12156_v39 = vpop.permute.xlu1 %6169  ;;  %7894 = vrot.lane.b32.xlu0 %v11618_v6, %s9833_s17  ;;  %9307 = vmatmul.mubr.msk.bf16.vlgmr.msra.gmra.mxu1 %vm130_vm2, %v12019_v12 }
 0x1fd   :  { %13665 = vst [vmem:[#allocation6_spill] sm:$0xff] %v12156_v39  ;;  %v12160_v31 = vpop.f32.mrf.mxu1  ;;  %7896 = vrot.lane.b32.xlu1 %v13647_v53, %s9833_s17  ;;  %5507 = vmatpush1.bf16.msra.mxu1 %v5191_v1 }
 0x1fe   :  { %v2693_v37 = vpop.f32.mrf.mxu0  ;;  %5524 = vmatprep.mubr.bf16.mxu1 %v13602_v28  ;;  %v12167_v30 = vpop.permute.xlu0 %6171  ;;  %9560 = vmatprep.subr.bf16.mxu1 %v13599_v35 }
 0x1ff   :  { %13666 = vst [vmem:[#allocation7_spill] sm:$0xff] %v12167_v30  ;;  %v12169_v15 = vpop.f32.mrf.mxu1  ;;  %v5656_v37 = vsel %vm5654_vm9, %v11895_v52, %v11904_v16 }
 0x200   :  { %v2694_v11 = vpop.f32.mrf.mxu0  ;;  %v12176_v2 = vpop.permute.xlu1 %6173  ;;  %7898 = vrot.lane.b32.xlu0 %v11645_v43, %s9833_s17  ;;  %9309 = vmatmul.mubr.msk.bf16.vlgmr.msra.gmra.mxu0 %vm130_vm2, %v12019_v12 }
 0x201   :  { %13667 = vst [vmem:[#allocation16_spill] sm:$0xff] %v12176_v2  ;;  %v2734_v1 = vpop.f32.mrf.mxu1  ;;  %7900 = vrot.lane.b32.xlu1 %v13655_v23, %s9833_s17  ;;  %5548 = vmatpush1.bf16.msra.mxu0 %v5197_v21  ;;  %v5203_v2 = vsel %vm134_vm1, %v11869_v9, 0  ;;  %v5658_v21 = vsel %vm5654_vm9, %v11918_v3, %v11927_v24 }
 0x202   :  { %v12180_v39 = vpop.f32.mrf.mxu0  ;;  %5565 = vmatprep.mubr.bf16.mxu0 %v13602_v28  ;;  %v12187_v50 = vpop.permute.xlu0 %6175  ;;  %9316 = vmatprep.subr.msk.bf16.mxu0 %vm134_vm1, %v5656_v37  ;;  %v5655_v1 = vsel %vm5654_vm9, %v11881_v54, %v11895_v52 }
 0x203   :  { %13668 = vst [vmem:[#allocation14_spill] sm:$0xff] %v12180_v39  ;;  %13669 = vst [vmem:[#allocation3_spill] sm:$0xff] %v12187_v50  ;;  %v2735_v11 = vpop.f32.mrf.mxu1  ;;  %v5677_v37 = vsel %vm134_vm1, %v5655_v1, 0 }
 0x204   :  { %v12189_v30 = vpop.f32.mrf.mxu0  ;;  %v12200_v39 = vpop.permute.xlu1 %6177  ;;  %7902 = vrot.lane.b32.xlu0 %v11676_v51, %s9833_s17  ;;  %9311 = vmatmul.mubr.msk.bf16.vlgmr.msra.gmra.mxu1 %vm130_vm2, %v12019_v12 }
 0x205   :  { %13670 = vst [vmem:[#allocation13_spill] sm:$0xff] %v12200_v39  ;;  %v12204_v11 = vpop.f32.mrf.mxu1  ;;  %7904 = vrot.lane.b32.xlu1 %v13658_v56, %s9833_s17  ;;  %9561 = vmatpush3.bf16.msra.mxu1 %v5203_v2  ;;  %v5660_v39 = vsel %vm5654_vm9, %v11941_v45, %v11954_v46 }
 0x206   :  { %v2775_v50 = vpop.f32.mrf.mxu0  ;;  %9562 = vmatprep.mubr.msk.bf16.mxu1 %vm9830_vm3, %v13599_v35  ;;  %v12212_v9 = vpop.permute.xlu0 %6179  ;;  %9318 = vmatprep.subr.msk.bf16.mxu1 %vm134_vm1, %v5658_v21 }
 0x207   :  { %13671 = vst [vmem:[#allocation8_spill] sm:$0xff] %v12212_v9  ;;  %v9534_v54 = vpop.f32.mrf.mxu1  ;;  %v5657_v50 = vsel %vm5654_vm9, %v11904_v16, %v11918_v3 }
 0x208   :  { %v2776_v52 = vpop.f32.mrf.mxu0  ;;  %v12222_v2 = vpop.permute.xlu1 %6181  ;;  %7906 = vrot.lane.b32.xlu0 %v11707_v25, %s9833_s17  ;;  %9313 = vmatmul.mubr.msk.bf16.vlgmr.msra.gmra.mxu0 %vm130_vm2, %v12019_v12 }
 0x209   :  { %13672 = vst [vmem:[#allocation19_spill] sm:$0xff] %v12222_v2  ;;  %v2815_v9 = vpop.f32.mrf.mxu1  ;;  %7908 = vrot.lane.b32.xlu1 %v11713_v18, %s9833_s17  ;;  %5748 = vmatpush1.bf16.msra.mxu0 %v5677_v37  ;;  %v5683_v52 = vsel %vm134_vm1, %v5657_v50, 0  ;;  %v5659_v2 = vsel %vm5654_vm9, %v11927_v24, %v11941_v45  ;;  %v12261_v24 = vld [vmem:[%s13551_s1 + $0x14] sm:$0x3] }
 0x20a   :  { %v2968_v54 = vpop.f32.mrf.mxu0  ;;  %5765 = vmatprep.mubr.bf16.mxu0 %v13602_v28  ;;  %v12234_v16 = vpop.permute.xlu0 %6183  ;;  %9320 = vmatprep.subr.msk.bf16.mxu0 %vm134_vm1, %v5660_v39 }
 0x20b   :  { %v12231_v1 = vadd.f32 %v2968_v54, %v11981_v20  ;;  %v9535_v3 = vpop.f32.mrf.mxu1  ;;  %v5662_v20 = vsel %vm5654_vm9, %v11967_v5, %v11977_v32 }
 0x20c   :  { %v2970_v21 = vpop.f32.mrf.mxu0  ;;  %v12247_v37 = vpop.permute.xlu1 %6185  ;;  %7910 = vrot.lane.b32.xlu0 %v11725_v48, %s9833_s17  ;;  %9563 = vmatmul.mubr.msk.bf16.vlgmr.msra.gmra.mxu1 %vm130_vm2, %v12019_v12  ;;  %v5689_v12 = vsel %vm134_vm1, %v5659_v2, 0 }
 0x20d   :  { %v12239_v9 = vadd.f32 %v2970_v21, %v11993_v63  ;;  %v3009_v54 = vpop.f32.mrf.mxu1  ;;  %7912 = vrot.lane.b32.xlu1 %v11743_v59, %s9833_s17  ;;  %5789 = vmatpush1.bf16.msra.mxu1 %v5683_v52  ;;  %v5664_v52 = vsel %vm5654_vm9, %v11991_v26, %v12003_v47 }
 0x20e   :  { %v2972_v50 = vpop.f32.mrf.mxu0  ;;  %v12256_v63 = vadd.f32 %v3009_v54, %v12007_v0  ;;  %5806 = vmatprep.mubr.bf16.mxu1 %v13602_v28  ;;  %v12264_v45 = vpop.permute.xlu0 %6187  ;;  %9322 = vmatprep.subr.msk.bf16.mxu1 %vm134_vm1, %v5662_v20  ;;  %v5661_v0 = vsel %vm5654_vm9, %v11954_v46, %v11967_v5 }
 0x20f   :  { %v3011_v39 = vpop.f32.mrf.mxu1 }
 0x210   :  { %v2973_v3 = vpop.f32.mrf.mxu0  ;;  %v12269_v21 = vadd.f32 %v3011_v39, %v12024_v13  ;;  %v12277_v54 = vpop.permute.xlu1 %6189  ;;  %7914 = vrot.lane.b32.xlu0 %v11760_v34, %s9833_s17  ;;  %9317 = vmatmul.mubr.msk.bf16.vlgmr.msra.gmra.mxu0 %vm130_vm2, %v12261_v24  ;;  %v5695_v39 = vsel %vm134_vm1, %v5661_v0, 0 }
 0x211   :  { %v3013_v50 = vpop.f32.mrf.mxu1  ;;  %7916 = vrot.lane.b32.xlu1 %v11778_v42, %s9833_s17  ;;  %5830 = vmatpush1.bf16.msra.mxu0 %v5689_v12 }
 0x212   :  { %v3050_v2 = vpop.f32.mrf.mxu0  ;;  %5847 = vmatprep.mubr.bf16.mxu0 %v13602_v28  ;;  %v12289_v46 = vpop.permute.xlu0 %6191  ;;  %9324 = vmatprep.subr.msk.bf16.mxu0 %vm134_vm1, %v5664_v52  ;;  %v5663_v50 = vsel %vm5654_vm9, %v11977_v32, %v11991_v26 }
 0x213   :  { %v12286_v13 = vadd.f32 %v3050_v2, %v12038_v57  ;;  %v3014_v5 = vpop.f32.mrf.mxu1  ;;  %v5666_v57 = vsel %vm5654_vm9, %v12022_v8, %v12034_v58 }
 0x214   :  { %v3052_v20 = vpop.f32.mrf.mxu0  ;;  %v12302_v12 = vpop.permute.xlu1 %6193  ;;  %7918 = vrot.lane.b32.xlu0 %v11790_v4, %s9833_s17  ;;  %9319 = vmatmul.mubr.msk.bf16.vlgmr.msra.gmra.mxu1 %vm130_vm2, %v12261_v24  ;;  %v5701_v5 = vsel %vm134_vm1, %v5663_v50, 0 }
 0x215   :  { %v12294_v3 = vadd.f32 %v3052_v20, %v12050_v29  ;;  %v3091_v2 = vpop.f32.mrf.mxu1  ;;  %7920 = vrot.lane.b32.xlu1 %v11808_v41, %s9833_s17  ;;  %5871 = vmatpush1.bf16.msra.mxu1 %v5695_v39 }
 0x216   :  { %v3054_v0 = vpop.f32.mrf.mxu0  ;;  %v12311_v29 = vadd.f32 %v3091_v2, %v12064_v19  ;;  %5888 = vmatprep.mubr.bf16.mxu1 %v13602_v28  ;;  %v12314_v32 = vpop.permute.xlu0 %6195  ;;  %9326 = vmatprep.subr.msk.bf16.mxu1 %vm134_vm1, %v5666_v57  ;;  %v5668_v19 = vsel %vm5654_vm9, %v12048_v40, %v12060_v14 }
 0x217   :  { %v3093_v26 = vpop.f32.mrf.mxu1  ;;  %v5665_v0 = vsel %vm5654_vm9, %v12003_v47, %v12022_v8 }
 0x218   :  { %v3055_v52 = vpop.f32.mrf.mxu0  ;;  %v12319_v20 = vadd.f32 %v3093_v26, %v12080_v55  ;;  %v12327_v39 = vpop.permute.xlu1 %6197  ;;  %7922 = vrot.lane.b32.xlu0 %v11817_v44, %s9833_s17  ;;  %9321 = vmatmul.mubr.msk.bf16.vlgmr.msra.gmra.mxu0 %vm130_vm2, %v12261_v24  ;;  %v5707_v26 = vsel %vm134_vm1, %v5665_v0, 0 }
 0x219   :  { %v3095_v2 = vpop.f32.mrf.mxu1  ;;  %7924 = vrot.lane.b32.xlu1 %v11838_v49, %s9833_s17  ;;  %5912 = vmatpush1.bf16.msra.mxu0 %v5701_v5  ;;  %v5667_v49 = vsel %vm5654_vm9, %v12034_v58, %v12048_v40  ;;  %s9834_s17 = smov 58  }
 0x21a   :  { %v3132_v50 = vpop.f32.mrf.mxu0  ;;  %5929 = vmatprep.mubr.bf16.mxu0 %v13602_v28  ;;  %v12339_v47 = vpop.permute.xlu0 %6199  ;;  %9328 = vmatprep.subr.msk.bf16.mxu0 %vm134_vm1, %v5668_v19 }
 0x21b   :  { %v12336_v55 = vadd.f32 %v3132_v50, %v12094_v10  ;;  %v3096_v8 = vpop.f32.mrf.mxu1  ;;  %v5670_v10 = vsel %vm5654_vm9, %v12078_v38, %v12090_v27  ;;  %v13673_v50 = vld [vmem:[#allocation12_spill] sm:$0xff] }
 0x21c   :  { %v3134_v57 = vpop.f32.mrf.mxu0  ;;  %v12352_v5 = vpop.permute.xlu1 %6836  ;;  %8434 = vrot.lane.b32.xlu0 %v13637_v17, %s9834_s17  ;;  %9323 = vmatmul.mubr.msk.bf16.vlgmr.msra.gmra.mxu1 %vm130_vm2, %v12261_v24  ;;  %v5713_v17 = vsel %vm134_vm1, %v5667_v49, 0 }
 0x21d   :  { %v12344_v52 = vadd.f32 %v3134_v57, %v12103_v61  ;;  %v3173_v0 = vpop.f32.mrf.mxu1  ;;  %8436 = vrot.lane.b32.xlu1 %v11591_v60, %s9834_s17  ;;  %5953 = vmatpush1.bf16.msra.mxu1 %v5707_v26  ;;  %v5669_v60 = vsel %vm5654_vm9, %v12060_v14, %v12078_v38  ;;  %v13675_v57 = vld [vmem:[#allocation5_spill] sm:$0xff] }
 0x21e   :  { %v3136_v2 = vpop.f32.mrf.mxu0  ;;  %v12361_v58 = vadd.f32 %v3173_v0, %v12117_v36  ;;  %5970 = vmatprep.mubr.bf16.mxu1 %v13602_v28  ;;  %v12364_v40 = vpop.permute.xlu0 %6838  ;;  %9330 = vmatprep.subr.msk.bf16.mxu1 %vm134_vm1, %v5670_v10  ;;  %v13674_v36 = vld [vmem:[#allocation11_spill] sm:$0xff] }
 0x21f   :  { %v3175_v61 = vpop.f32.mrf.mxu1  ;;  %v5672_v26 = vsel %vm5654_vm9, %v13675_v57, %v13674_v36 }
 0x220   :  { %v3137_v19 = vpop.f32.mrf.mxu0  ;;  %v12369_v8 = vadd.f32 %v3175_v61, %v13673_v50  ;;  %v12377_v0 = vpop.permute.xlu1 %6840  ;;  %8438 = vrot.lane.b32.xlu0 %v13641_v33, %s9834_s17  ;;  %9325 = vmatmul.mubr.msk.bf16.vlgmr.msra.gmra.mxu0 %vm130_vm2, %v12261_v24  ;;  %v5719_v33 = vsel %vm134_vm1, %v5669_v60, 0 }
 0x221   :  { %v3177_v2 = vpop.f32.mrf.mxu1  ;;  %8440 = vrot.lane.b32.xlu1 %v11618_v6, %s9834_s17  ;;  %5994 = vmatpush1.bf16.msra.mxu0 %v5713_v17  ;;  %v5671_v6 = vsel %vm5654_vm9, %v12090_v27, %v13675_v57 }
 0x222   :  { %v3214_v49 = vpop.f32.mrf.mxu0  ;;  %6011 = vmatprep.mubr.bf16.mxu0 %v13602_v28  ;;  %v12389_v14 = vpop.permute.xlu0 %6842  ;;  %9332 = vmatprep.subr.msk.bf16.mxu0 %vm134_vm1, %v5672_v26  ;;  %v13676_v2 = vld [vmem:[#allocation2_spill] sm:$0xff] }
 0x223   :  { %v12386_v10 = vadd.f32 %v3214_v49, %v12140_v7  ;;  %v3178_v38 = vpop.f32.mrf.mxu1 }
 0x224   :  { %v3216_v61 = vpop.f32.mrf.mxu0  ;;  %v12399_v7 = vpop.permute.xlu1 %6844  ;;  %8442 = vrot.lane.b32.xlu0 %v13647_v53, %s9834_s17  ;;  %9327 = vmatmul.mubr.msk.bf16.vlgmr.msra.gmra.mxu1 %vm130_vm2, %v12261_v24  ;;  %v5725_v53 = vsel %vm134_vm1, %v5671_v6, 0  ;;  %v5731_v6 = vsel %vm134_vm1, %v13674_v36, 0 }
 0x225   :  { %v12394_v19 = vadd.f32 %v3216_v61, %v12149_v22  ;;  %v3255_v17 = vpop.f32.mrf.mxu1  ;;  %8444 = vrot.lane.b32.xlu1 %v11645_v43, %s9834_s17  ;;  %6035 = vmatpush1.bf16.msra.mxu1 %v5719_v33  ;;  %v6203_v43 = vsel %vm6201_vm10, %v13676_v2, %v12147_v62  ;;  %v13677_v61 = vld [vmem:[#allocation14_spill] sm:$0xff] }
 0x226   :  { %v3218_v50 = vpop.f32.mrf.mxu0  ;;  %v12408_v22 = vadd.f32 %v3255_v17, %v12160_v31  ;;  %6052 = vmatprep.mubr.bf16.mxu1 %v13602_v28  ;;  %v12411_v27 = vpop.permute.xlu0 %6846  ;;  %9566 = vmatprep.subr.bf16.mxu1 %v13599_v35 }
 0x227   :  { %v3257_v60 = vpop.f32.mrf.mxu1 }
 0x228   :  { %v3219_v57 = vpop.f32.mrf.mxu0  ;;  %v12416_v26 = vadd.f32 %v3257_v60, %v12169_v15  ;;  %v12421_v31 = vpop.permute.xlu1 %6848  ;;  %8446 = vrot.lane.b32.xlu0 %v13655_v23, %s9834_s17  ;;  %9329 = vmatmul.mubr.msk.bf16.vlgmr.msra.gmra.mxu0 %vm130_vm2, %v12261_v24 }
 0x229   :  { %v3259_v49 = vpop.f32.mrf.mxu1  ;;  %8448 = vrot.lane.b32.xlu1 %v11676_v51, %s9834_s17  ;;  %6076 = vmatpush1.bf16.msra.mxu0 %v5725_v53  ;;  %v13680_v51 = vld [vmem:[#allocation4_spill] sm:$0xff]  ;;  %v13681_v57 = vld [vmem:[#allocation7_spill] sm:$0xff]  ;;  %v13682_v53 = vld [vmem:[#allocation6_spill] sm:$0xff] }
 0x22a   :  { %v3296_v38 = vpop.f32.mrf.mxu0  ;;  %6093 = vmatprep.mubr.bf16.mxu0 %v13602_v28  ;;  %v12433_v33 = vpop.permute.xlu0 %6850  ;;  %9336 = vmatprep.subr.msk.bf16.mxu0 %vm134_vm1, %v6203_v43  ;;  %v6202_v60 = vsel %vm6201_vm10, %v13680_v51, %v13676_v2  ;;  %v6205_v49 = vsel %vm6201_vm10, %v13682_v53, %v13681_v57  ;;  %v13685_v51 = vld [vmem:[#allocation16_spill] sm:$0xff] }
 0x22b   :  { %v12430_v15 = vadd.f32 %v3296_v38, %v13677_v61  ;;  %v3260_v23 = vpop.f32.mrf.mxu1  ;;  %v6224_v43 = vsel %vm134_vm1, %v6202_v60, 0 }
 0x22c   :  { %v3298_v17 = vpop.f32.mrf.mxu0  ;;  %v12447_v38 = vpop.permute.xlu1 %6852  ;;  %8450 = vrot.lane.b32.xlu0 %v13658_v56, %s9834_s17  ;;  %9331 = vmatmul.mubr.msk.bf16.vlgmr.msra.gmra.mxu1 %vm130_vm2, %v12261_v24 }
 0x22d   :  { %13678 = vst [vmem:[#allocation10_spill] sm:$0xff] %v12430_v15  ;;  %v12439_v50 = vadd.f32 %v3298_v17, %v12189_v30  ;;  %v3337_v36 = vpop.f32.mrf.mxu1  ;;  %8452 = vrot.lane.b32.xlu1 %v11707_v25, %s9834_s17  ;;  %9567 = vmatpush3.bf16.msra.mxu1 %v5731_v6  ;;  %v6204_v17 = vsel %vm6201_vm10, %v12147_v62, %v13682_v53  ;;  %v13684_v25 = vld [vmem:[#allocation3_spill] sm:$0xff] }
 0x22e   :  { %v3300_v61 = vpop.f32.mrf.mxu0  ;;  %v12456_v30 = vadd.f32 %v3337_v36, %v12204_v11  ;;  %9568 = vmatprep.mubr.msk.bf16.mxu1 %vm9830_vm3, %v13599_v35  ;;  %v12460_v2 = vpop.permute.xlu0 %6854  ;;  %9338 = vmatprep.subr.msk.bf16.mxu1 %vm134_vm1, %v6205_v49  ;;  %v6207_v11 = vsel %vm6201_vm10, %v13685_v51, %v13684_v25  ;;  %v6230_v60 = vsel %vm134_vm1, %v6204_v17, 0 }
 0x22f   :  { %13679 = vst [vmem:[#allocation9_spill] sm:$0xff] %v12439_v50  ;;  %v9540_v56 = vpop.f32.mrf.mxu1 }
 0x230   :  { %13683 = vst [vmem:[#allocation21_spill] sm:$0xff] %v12456_v30  ;;  %v3301_v23 = vpop.f32.mrf.mxu0  ;;  %v12470_v6 = vpop.permute.xlu1 %6856  ;;  %8454 = vrot.lane.b32.xlu0 %v11713_v18, %s9834_s17  ;;  %9333 = vmatmul.mubr.msk.bf16.vlgmr.msra.gmra.mxu0 %vm130_vm2, %v12261_v24  ;;  %v6206_v18 = vsel %vm6201_vm10, %v13681_v57, %v13685_v51  ;;  %v13686_v56 = vld [vmem:[#allocation8_spill] sm:$0xff] }
 0x231   :  { %v3340_v36 = vpop.f32.mrf.mxu1  ;;  %8456 = vrot.lane.b32.xlu1 %v11725_v48, %s9834_s17  ;;  %6295 = vmatpush1.bf16.msra.mxu0 %v6224_v43  ;;  %v13687_v23 = vld [vmem:[#allocation13_spill] sm:$0xff]  ;;  %v12506_v57 = vld [vmem:[%s13551_s1 + $0x16] sm:$0x3] }
 0x232   :  { %v12474_v61 = vpop.f32.mrf.mxu0  ;;  %6312 = vmatprep.mubr.bf16.mxu0 %v13602_v28  ;;  %v12481_v62 = vpop.permute.xlu0 %6858  ;;  %9340 = vmatprep.subr.msk.bf16.mxu0 %vm134_vm1, %v6207_v11  ;;  %v6209_v48 = vsel %vm6201_vm10, %v13687_v23, %v13686_v56 }
 0x233   :  { %v9541_v53 = vpop.f32.mrf.mxu1 }
 0x234   :  { %v12484_v49 = vpop.f32.mrf.mxu0  ;;  %v12493_v43 = vpop.permute.xlu1 %6860  ;;  %8458 = vrot.lane.b32.xlu0 %v11743_v59, %s9834_s17  ;;  %9569 = vmatmul.mubr.msk.bf16.vlgmr.msra.gmra.mxu1 %vm130_vm2, %v12261_v24  ;;  %v6236_v59 = vsel %vm134_vm1, %v6206_v18, 0  ;;  %v13688_v24 = vld [vmem:[#allocation19_spill] sm:$0xff] }
 0x235   :  { %v12497_v36 = vpop.f32.mrf.mxu1  ;;  %8460 = vrot.lane.b32.xlu1 %v11760_v34, %s9834_s17  ;;  %6336 = vmatpush1.bf16.msra.mxu1 %v6230_v60  ;;  %v6208_v34 = vsel %vm6201_vm10, %v13684_v25, %v13687_v23  ;;  %v6211_v60 = vsel %vm6201_vm10, %v13688_v24, %v12234_v16 }
 0x236   :  { %v3499_v17 = vpop.f32.mrf.mxu0  ;;  %6353 = vmatprep.mubr.bf16.mxu1 %v13602_v28  ;;  %v12509_v51 = vpop.permute.xlu0 %6862  ;;  %9342 = vmatprep.subr.msk.bf16.mxu1 %vm134_vm1, %v6209_v48  ;;  %v6242_v23 = vsel %vm134_vm1, %v6208_v34, 0 }
 0x237   :  { %v12512_v11 = vpop.f32.mrf.mxu1 }
 0x238   :  { %v3500_v53 = vpop.f32.mrf.mxu0  ;;  %v12521_v17 = vpop.permute.xlu1 %6864  ;;  %8462 = vrot.lane.b32.xlu0 %v11778_v42, %s9834_s17  ;;  %9337 = vmatmul.mubr.msk.bf16.vlgmr.msra.gmra.mxu0 %vm130_vm2, %v12506_v57  ;;  %v6210_v42 = vsel %vm6201_vm10, %v13686_v56, %v13688_v24 }
 0x239   :  { %v3540_v30 = vpop.f32.mrf.mxu1  ;;  %8464 = vrot.lane.b32.xlu1 %v11790_v4, %s9834_s17  ;;  %6377 = vmatpush1.bf16.msra.mxu0 %v6236_v59  ;;  %v6213_v4 = vsel %vm6201_vm10, %v12247_v37, %v12264_v45  ;;  %v6248_v24 = vsel %vm134_vm1, %v6210_v42, 0 }
 0x23a   :  { %v12525_v18 = vpop.f32.mrf.mxu0  ;;  %6394 = vmatprep.mubr.bf16.mxu0 %v13602_v28  ;;  %v12532_v25 = vpop.permute.xlu0 %6866  ;;  %9344 = vmatprep.subr.msk.bf16.mxu0 %vm134_vm1, %v6211_v60 }
 0x23b   :  { %v3541_v48 = vpop.f32.mrf.mxu1 }
 0x23c   :  { %v12535_v53 = vpop.f32.mrf.mxu0  ;;  %v12544_v30 = vpop.permute.xlu1 %6868  ;;  %8466 = vrot.lane.b32.xlu0 %v11808_v41, %s9834_s17  ;;  %9339 = vmatmul.mubr.msk.bf16.vlgmr.msra.gmra.mxu1 %vm130_vm2, %v12506_v57  ;;  %v6212_v41 = vsel %vm6201_vm10, %v12234_v16, %v12247_v37 }
 0x23d   :  { %v12548_v59 = vpop.f32.mrf.mxu1  ;;  %8468 = vrot.lane.b32.xlu1 %v11817_v44, %s9834_s17  ;;  %6418 = vmatpush1.bf16.msra.mxu1 %v6242_v23  ;;  %v6215_v44 = vsel %vm6201_vm10, %v12277_v54, %v12289_v46  ;;  %v6254_v37 = vsel %vm134_vm1, %v6212_v41, 0 }
 0x23e   :  { %v3581_v34 = vpop.f32.mrf.mxu0  ;;  %6435 = vmatprep.mubr.bf16.mxu1 %v13602_v28  ;;  %v12555_v56 = vpop.permute.xlu0 %6870  ;;  %9346 = vmatprep.subr.msk.bf16.mxu1 %vm134_vm1, %v6213_v4 }
 0x23f   :  { %v12558_v60 = vpop.f32.mrf.mxu1  ;;  %v9823_v34 = vld [vmem:[%s13550_s0 + $0x48] ss:$0 sps:$4 sm:$0xff]  }
 0x240   :  { %v3582_v48 = vpop.f32.mrf.mxu0  ;;  %v12567_v23 = vpop.permute.xlu1 %6872  ;;  %8470 = vrot.lane.b32.xlu0 %v9823_v34, %s9834_s17  ;;  %9341 = vmatmul.mubr.msk.bf16.vlgmr.msra.gmra.mxu0 %vm130_vm2, %v12506_v57  ;;  %v6214_v34 = vsel %vm6201_vm10, %v12264_v45, %v12277_v54 }
 0x241   :  { %v3622_v42 = vpop.f32.mrf.mxu1  ;;  %6459 = vmatpush1.bf16.msra.mxu0 %v6248_v24  ;;  %6476 = vmatprep.mubr.bf16.mxu0 %v13602_v28 }
 0x242   :  { %v12573_v48 = vpop.f32.mrf.mxu0  ;;  %v12578_v16 = vpop.permute.xlu0 %7361  ;;  %9348 = vmatprep.subr.msk.bf16.mxu0 %vm134_vm1, %v6215_v44  ;;  %v6217_v42 = vsel %vm6201_vm10, %v12302_v12, %v12314_v32  ;;  %v6260_v44 = vsel %vm134_vm1, %v6214_v34, 0 }
 0x243   :  { %13689 = vst [vmem:[#allocation18_spill] sm:$0xff] %v12578_v16  ;;  %v3623_v4 = vpop.f32.mrf.mxu1 }
 0x244   :  { %v12581_v50 = vpop.f32.mrf.mxu0  ;;  %v12590_v24 = vpop.permute.xlu1 %7363  ;;  %9343 = vmatmul.mubr.msk.bf16.vlgmr.msra.gmra.mxu1 %vm130_vm2, %v12506_v57  ;;  %v6216_v4 = vsel %vm6201_vm10, %v12289_v46, %v12302_v12 }
 0x245   :  { %13690 = vst [vmem:[#allocation15_spill] sm:$0xff] %v12590_v24  ;;  %v12592_v15 = vpop.f32.mrf.mxu1  ;;  %6500 = vmatpush1.bf16.msra.mxu1 %v6254_v37  ;;  %6517 = vmatprep.mubr.bf16.mxu1 %v13602_v28 }
 0x246   :  { %v3663_v16 = vpop.f32.mrf.mxu0  ;;  %v12597_v41 = vpop.permute.xlu0 %7365  ;;  %9350 = vmatprep.subr.msk.bf16.mxu1 %vm134_vm1, %v6217_v42 }
 0x247   :  { %13691 = vst [vmem:[#allocation17_spill] sm:$0xff] %v12597_v41  ;;  %v12600_v45 = vpop.f32.mrf.mxu1  ;;  %v6219_v16 = vsel %vm6201_vm10, %v12327_v39, %v12339_v47 }
 0x248   :  { %v3664_v54 = vpop.f32.mrf.mxu0  ;;  %9345 = vmatmul.mubr.msk.bf16.vlgmr.msra.gmra.mxu0 %vm130_vm2, %v12506_v57  ;;  %v12614_v34 = vpop.permute.xlu1 %7367 }
 0x249   :  { %v3704_v37 = vpop.f32.mrf.mxu1  ;;  %6541 = vmatpush1.bf16.msra.mxu0 %v6260_v44  ;;  %6558 = vmatprep.mubr.bf16.mxu0 %v13602_v28  ;;  %13692 = vst [vmem:[#allocation23_spill] sm:$0xff] %v12614_v34  ;;  %v6266_v54 = vsel %vm134_vm1, %v6216_v4, 0 }
 0x24a   :  { %v12609_v24 = vpop.f32.mrf.mxu0  ;;  %v12616_v42 = vpop.permute.xlu0 %7369  ;;  %9352 = vmatprep.subr.msk.bf16.mxu0 %vm134_vm1, %v6219_v16  ;;  %v6218_v37 = vsel %vm6201_vm10, %v12314_v32, %v12327_v39  ;;  %v6875_v32 = vsel %vm3929_vm7, %v12364_v40, %v12377_v0 }
 0x24b   :  { %13693 = vst [vmem:[#allocation20_spill] sm:$0xff] %v12616_v42  ;;  %v3705_v46 = vpop.f32.mrf.mxu1  ;;  %v6272_v4 = vsel %vm134_vm1, %v6218_v37, 0 }
 0x24c   :  { %v12619_v12 = vpop.f32.mrf.mxu0  ;;  %9347 = vmatmul.mubr.msk.bf16.vlgmr.msra.gmra.mxu1 %vm130_vm2, %v12506_v57  ;;  %v12637_v39 = vpop.permute.xlu1 %7371 }
 0x24d   :  { %v12625_v41 = vpop.f32.mrf.mxu1  ;;  %6582 = vmatpush1.bf16.msra.mxu1 %v6266_v54  ;;  %6599 = vmatprep.mubr.bf16.mxu1 %v13602_v28  ;;  %13694 = vst [vmem:[#allocation22_spill] sm:$0xff] %v12637_v39  ;;  %v6877_v39 = vsel %vm3929_vm7, %v12389_v14, %v12399_v7 }
 0x24e   :  { %v3745_v44 = vpop.f32.mrf.mxu0  ;;  %9572 = vmatprep.subr.bf16.mxu1 %v13599_v35  ;;  %v12639_v16 = vpop.permute.xlu0 %7373 }
 0x24f   :  { %v12631_v46 = vpop.f32.mrf.mxu1  ;;  %13695 = vst [vmem:[#allocation24_spill] sm:$0xff] %v12639_v16 }
 0x250   :  { %v3746_v34 = vpop.f32.mrf.mxu0  ;;  %9349 = vmatmul.mubr.msk.bf16.vlgmr.msra.gmra.mxu0 %vm130_vm2, %v12506_v57 }
 0x251   :  { %v3786_v44 = vpop.f32.mrf.mxu1  ;;  %6623 = vmatpush1.bf16.msra.mxu0 %v6272_v4  ;;  %6640 = vmatprep.mubr.bf16.mxu0 %v13602_v28  ;;  %v6278_v34 = vsel %vm134_vm1, %v12339_v47, 0  ;;  %v12663_v47 = vpop.permute.xlu1 %7375 }
 0x252   :  { %v12641_v42 = vpop.f32.mrf.mxu0  ;;  %9386 = vmatprep.subr.msk.bf16.mxu0 %vm134_vm1, %v6875_v32  ;;  %v6874_v44 = vsel %vm3929_vm7, %v12352_v5, %v12364_v40  ;;  %13698 = vst [vmem:[#allocation5_spill] sm:$0xff] %v12663_v47  ;;  %v12665_v32 = vpop.permute.xlu0 %7377 }
 0x253   :  { %v3787_v54 = vpop.f32.mrf.mxu1  ;;  %v6896_v5 = vsel %vm134_vm1, %v6874_v44, 0  ;;  %v3871_v44 = vadd.f32 %v12484_v49, %v12239_v9  ;;  %v6881_v9 = vsel %vm3929_vm7, %v12433_v33, %v12447_v38 }
 0x254   :  { %v12648_v37 = vpop.f32.mrf.mxu0  ;;  %9351 = vmatmul.mubr.msk.bf16.vlgmr.msra.gmra.mxu1 %vm130_vm2, %v12506_v57 }
 0x255   :  { %13696 = vst [vmem:[#allocation12_spill] sm:$0xff] %v12648_v37  ;;  %v12657_v16 = vpop.f32.mrf.mxu1  ;;  %9573 = vmatpush3.bf16.msra.mxu1 %v6278_v34  ;;  %9574 = vmatprep.mubr.msk.bf16.mxu1 %vm9830_vm3, %v13599_v35  ;;  %v6876_v34 = vsel %vm3929_vm7, %v12377_v0, %v12389_v14  ;;  %v3872_v14 = vadd.f32 %v12497_v36, %v12256_v63  ;;  %v12692_v49 = vpop.permute.xlu1 %7379 }
 0x256   :  { %13697 = vst [vmem:[#allocation11_spill] sm:$0xff] %v12657_v16  ;;  %v3827_v4 = vpop.f32.mrf.mxu0  ;;  %9388 = vmatprep.subr.msk.bf16.mxu1 %vm134_vm1, %v6877_v39  ;;  %v6879_v16 = vsel %vm3929_vm7, %v12411_v27, %v12421_v31  ;;  %v3873_v63 = vadd.f32 %v12512_v11, %v12269_v21  ;;  %v6880_v11 = vsel %vm3929_vm7, %v12421_v31, %v12433_v33 }
 0x257   :  { %v9546_v54 = vpop.f32.mrf.mxu1  ;;  %v3870_v4 = vadd.f32 %v12474_v61, %v12231_v1  ;;  %v6902_v61 = vsel %vm134_vm1, %v6876_v34, 0  ;;  %v6883_v34 = vsel %vm3929_vm7, %v12460_v2, %v12470_v6 }
 0x258   :  { %v3828_v40 = vpop.f32.mrf.mxu0  ;;  %9353 = vmatmul.mubr.msk.bf16.vlgmr.msra.gmra.mxu0 %vm130_vm2, %v12506_v57  ;;  %v6878_v54 = vsel %vm3929_vm7, %v12399_v7, %v12411_v27  ;;  %v12703_v7 = vld [vmem:[%s13551_s1 + $0x1a] sm:$0x3] }
 0x259   :  { %v3867_v47 = vpop.f32.mrf.mxu1  ;;  %6967 = vmatpush1.bf16.msra.mxu0 %v6896_v5  ;;  %6984 = vmatprep.mubr.bf16.mxu0 %v13602_v28 }
 0x25a   :  { %v4042_v37 = vpop.f32.mrf.mxu0  ;;  %9390 = vmatprep.subr.msk.bf16.mxu0 %vm134_vm1, %v6879_v16  ;;  %v6908_v16 = vsel %vm134_vm1, %v6878_v54, 0 }
 0x25b   :  { %v4417_v39 = vadd.f32 %v4042_v37, %v3870_v4  ;;  %v9547_v1 = vpop.f32.mrf.mxu1  ;;  %v12694_v37 = vpop.permute.xlu0 %7381 }
 0x25c   :  { %v4044_v0 = vpop.f32.mrf.mxu0  ;;  %9575 = vmatmul.mubr.msk.bf16.vlgmr.msra.gmra.mxu1 %vm130_vm2, %v12506_v57  ;;  %v3874_v57 = vadd.f32 %v12525_v18, %v12286_v13  ;;  %v3875_v1 = vadd.f32 %v12535_v53, %v12294_v3  ;;  %v12721_v18 = vpop.permute.xlu1 %7383  ;;  %v6882_v3 = vsel %vm3929_vm7, %v12447_v38, %v12460_v2  ;;  %v6885_v53 = vsel %vm3929_vm7, %v12481_v62, %v12493_v43 }
 0x25d   :  { %v4418_v47 = vadd.f32 %v4044_v0, %v3871_v44  ;;  %9709 = vtanh.f32 %v4417_v39  ;;  %v4083_v5 = vpop.f32.mrf.mxu1  ;;  %7008 = vmatpush1.bf16.msra.mxu1 %v6902_v61  ;;  %7025 = vmatprep.mubr.bf16.mxu1 %v13602_v28  ;;  %v6914_v61 = vsel %vm134_vm1, %v6880_v11, 0  ;;  %v6920_v38 = vsel %vm134_vm1, %v6882_v3, 0 }
 0x25e   :  { %v4046_v40 = vpop.f32.mrf.mxu0  ;;  %v4419_v36 = vadd.f32 %v4083_v5, %v3872_v14  ;;  %9392 = vmatprep.subr.msk.bf16.mxu1 %vm134_vm1, %v6881_v9  ;;  %v3876_v14 = vadd.f32 %v12548_v59, %v12311_v29  ;;  %v3877_v5 = vadd.f32 %v12558_v60, %v12319_v20  ;;  %v6887_v20 = vsel %vm3929_vm7, %v12509_v51, %v12521_v17 }
 0x25f   :  { %9711 = vtanh.f32 %v4418_v47  ;;  %v4085_v27 = vpop.f32.mrf.mxu1  ;;  %v12723_v31 = vpop.permute.xlu0 %7385  ;;  %v3878_v40 = vadd.f32 %v12573_v48, %v12336_v55  ;;  %v3879_v48 = vadd.f32 %v12581_v50, %v12344_v52 }
 0x260   :  { %v4047_v4 = vpop.f32.mrf.mxu0  ;;  %v4420_v21 = vadd.f32 %v4085_v27, %v3873_v63  ;;  %9713 = vtanh.f32 %v4419_v36  ;;  %9387 = vmatmul.mubr.msk.bf16.vlgmr.msra.gmra.mxu0 %vm130_vm2, %v12703_v7  ;;  %v6884_v36 = vsel %vm3929_vm7, %v12470_v6, %v12481_v62  ;;  %v12750_v60 = vpop.permute.xlu1 %7387 }
 0x261   :  { %v4087_v44 = vpop.f32.mrf.mxu1  ;;  %7049 = vmatpush1.bf16.msra.mxu0 %v6908_v16  ;;  %7066 = vmatprep.mubr.bf16.mxu0 %v13602_v28 }
 0x262   :  { %v4124_v39 = vpop.f32.mrf.mxu0  ;;  %9715 = vtanh.f32 %v4420_v21  ;;  %9394 = vmatprep.subr.msk.bf16.mxu0 %vm134_vm1, %v6883_v34  ;;  %v6926_v21 = vsel %vm134_vm1, %v6884_v36, 0  ;;  %v6886_v34 = vsel %vm3929_vm7, %v12493_v43, %v12509_v51  ;;  %v3880_v44 = vadd.f32 %v12592_v15, %v12361_v58 }
 0x263   :  { %v4421_v13 = vadd.f32 %v4124_v39, %v3874_v57  ;;  %v4088_v33 = vpop.f32.mrf.mxu1  ;;  %v12752_v27 = vpop.permute.xlu0 %7389  ;;  %v6889_v39 = vsel %vm3929_vm7, %v12532_v25, %v12544_v30  ;;  %v3881_v43 = vadd.f32 %v12600_v45, %v12369_v8  ;;  %v6888_v8 = vsel %vm3929_vm7, %v12521_v17, %v12532_v25 }
 0x264   :  { %v4126_v0 = vpop.f32.mrf.mxu0  ;;  %9389 = vmatmul.mubr.msk.bf16.vlgmr.msra.gmra.mxu1 %vm130_vm2, %v12703_v7  ;;  %v12777_v15 = vpop.permute.xlu1 %7391  ;;  %v3882_v45 = vadd.f32 %v12609_v24, %v12386_v10  ;;  %v3883_v17 = vadd.f32 %v12619_v12, %v12394_v19 }
 0x265   :  { %v4422_v47 = vadd.f32 %v4126_v0, %v3875_v1  ;;  %9717 = vtanh.f32 %v4421_v13  ;;  %v4165_v54 = vpop.f32.mrf.mxu1  ;;  %7090 = vmatpush1.bf16.msra.mxu1 %v6914_v61  ;;  %7107 = vmatprep.mubr.bf16.mxu1 %v13602_v28 }
 0x266   :  { %v4128_v9 = vpop.f32.mrf.mxu0  ;;  %v4423_v29 = vadd.f32 %v4165_v54, %v3876_v14  ;;  %9396 = vmatprep.subr.msk.bf16.mxu1 %vm134_vm1, %v6885_v53  ;;  %v6932_v14 = vsel %vm134_vm1, %v6886_v34, 0  ;;  %v6891_v54 = vsel %vm3929_vm7, %v12555_v56, %v12567_v23 }
 0x267   :  { %9719 = vtanh.f32 %v4422_v47  ;;  %v4167_v59 = vpop.f32.mrf.mxu1  ;;  %v12779_v51 = vpop.permute.xlu0 %7393 }
 0x268   :  { %v4129_v2 = vpop.f32.mrf.mxu0  ;;  %v4424_v63 = vadd.f32 %v4167_v59, %v3877_v5  ;;  %9721 = vtanh.f32 %v4423_v29  ;;  %9391 = vmatmul.mubr.msk.bf16.vlgmr.msra.gmra.mxu0 %vm130_vm2, %v12703_v7  ;;  %v6938_v59 = vsel %vm134_vm1, %v6888_v8, 0  ;;  %v13705_v8 = vld [vmem:[#allocation21_spill] sm:$0xff] }
 0x269   :  { %v4169_v16 = vpop.f32.mrf.mxu1  ;;  %7131 = vmatpush1.bf16.msra.mxu0 %v6920_v38  ;;  %7148 = vmatprep.mubr.bf16.mxu0 %v13602_v28  ;;  %v3884_v2 = vadd.f32 %v12625_v41, %v12408_v22  ;;  %v3885_v22 = vadd.f32 %v12631_v46, %v12416_v26 }
 0x26a   :  { %v4206_v4 = vpop.f32.mrf.mxu0  ;;  %v9710_v55 = vpop.eup %9709  ;;  %9723 = vtanh.f32 %v4424_v63  ;;  %9398 = vmatprep.subr.msk.bf16.mxu0 %vm134_vm1, %v6887_v20 }
 0x26b   :  { %v4425_v6 = vadd.f32 %v4206_v4, %v3878_v40  ;;  %v4170_v57 = vpop.f32.mrf.mxu1  ;;  %v6890_v40 = vsel %vm3929_vm7, %v12544_v30, %v12555_v56  ;;  %v12806_v63 = vpop.permute.xlu1 %7395 }
 0x26c   :  { %v9712_v62 = vpop.eup %9711  ;;  %v4208_v11 = vpop.f32.mrf.mxu0  ;;  %9393 = vmatmul.mubr.msk.bf16.vlgmr.msra.gmra.mxu1 %vm130_vm2, %v12703_v7  ;;  %v13700_v57 = vld [vmem:[#allocation17_spill] sm:$0xff] }
 0x26d   :  { %v4473_v52 = vcombine.low %v9710_v55, %v9712_v62  ;;  %v4426_v50 = vadd.f32 %v4208_v11, %v3879_v48  ;;  %9725 = vtanh.f32 %v4425_v6  ;;  %v4247_v1 = vpop.f32.mrf.mxu1  ;;  %v9714_v33 = vpop.eup %9713  ;;  %7172 = vmatpush1.bf16.msra.mxu1 %v6926_v21  ;;  %7189 = vmatprep.mubr.bf16.mxu1 %v13602_v28  ;;  %v6944_v55 = vsel %vm134_vm1, %v6890_v40, 0  ;;  %v13699_v6 = vld [vmem:[#allocation10_spill] sm:$0xff]  ;;  %v13701_v21 = vld [vmem:[#allocation15_spill] sm:$0xff] }
 0x26e   :  { %v4210_v13 = vpop.f32.mrf.mxu0  ;;  %v4427_v58 = vadd.f32 %v4247_v1, %v3880_v44  ;;  %9400 = vmatprep.subr.msk.bf16.mxu1 %vm134_vm1, %v6889_v39  ;;  %v12808_v36 = vpop.permute.xlu0 %7397  ;;  %v3886_v62 = vadd.f32 %v12641_v42, %v13699_v6  ;;  %v7400_v11 = vsel %vm1657_vm5, %v13701_v21, %v13700_v57  ;;  %v13702_v39 = vld [vmem:[#allocation9_spill] sm:$0xff]  ;;  %v13703_v1 = vld [vmem:[#allocation12_spill] sm:$0xff] }
 0x26f   :  { %9246 = vst [vmem:[%s13552_s2 + $0x4c] sm:$0x77] %v4473_v52  ;;  %9727 = vtanh.f32 %v4426_v50  ;;  %v9716_v61 = vpop.eup %9715  ;;  %v4249_v0 = vpop.f32.mrf.mxu1  ;;  %v3887_v13 = vadd.f32 %v13703_v1, %v13702_v39  ;;  %v12897_v39 = vld [vmem:[%s13551_s1 + $0x18] sm:$0x3] }
 0x270   :  { %v4211_v47 = vpop.f32.mrf.mxu0  ;;  %v4474_v3 = vcombine.low %v9714_v33, %v9716_v61  ;;  %v4428_v53 = vadd.f32 %v4249_v0, %v3881_v43  ;;  %9729 = vtanh.f32 %v4427_v58  ;;  %9395 = vmatmul.mubr.msk.bf16.vlgmr.msra.gmra.mxu0 %vm130_vm2, %v12703_v7  ;;  %v12835_v33 = vpop.permute.xlu1 %7888  ;;  %v6950_v58 = vsel %vm134_vm1, %v12567_v23, 0 }
 0x271   :  { %v4251_v9 = vpop.f32.mrf.mxu1  ;;  %7213 = vmatpush1.bf16.msra.mxu0 %v6932_v14  ;;  %7230 = vmatprep.mubr.bf16.mxu0 %v13602_v28  ;;  %v13704_v14 = vld [vmem:[#allocation18_spill] sm:$0xff] }
 0x272   :  { %v4288_v5 = vpop.f32.mrf.mxu0  ;;  %v9718_v29 = vpop.eup %9717  ;;  %9247 = vst [vmem:[%s13552_s2 + $0x54] sm:$0x77] %v4474_v3  ;;  %9731 = vtanh.f32 %v4428_v53  ;;  %9402 = vmatprep.subr.msk.bf16.mxu0 %vm134_vm1, %v6891_v54  ;;  %v7399_v47 = vsel %vm1657_vm5, %v13704_v14, %v13701_v21  ;;  %v13707_v9 = vld [vmem:[#allocation20_spill] sm:$0xff] }
 0x273   :  { %v4429_v10 = vadd.f32 %v4288_v5, %v3882_v45  ;;  %v4252_v24 = vpop.f32.mrf.mxu1  ;;  %v12825_v34 = vpop.permute.xlu0 %7890  ;;  %v13706_v45 = vld [vmem:[#allocation11_spill] sm:$0xff] }
 0x274   :  { %v9720_v25 = vpop.eup %9719  ;;  %v4290_v38 = vpop.f32.mrf.mxu0  ;;  %9397 = vmatmul.mubr.msk.bf16.vlgmr.msra.gmra.mxu1 %vm130_vm2, %v12703_v7  ;;  %v3888_v3 = vadd.f32 %v13706_v45, %v13705_v8  ;;  %v13708_v5 = vld [vmem:[#allocation23_spill] sm:$0xff] }
 0x275   :  { %v4475_v19 = vcombine.low %v9718_v29, %v9720_v25  ;;  %v4430_v12 = vadd.f32 %v4290_v38, %v3883_v17  ;;  %9733 = vtanh.f32 %v4429_v10  ;;  %v4329_v20 = vpop.f32.mrf.mxu1  ;;  %v9722_v4 = vpop.eup %9721  ;;  %7254 = vmatpush1.bf16.msra.mxu1 %v6938_v59  ;;  %7271 = vmatprep.mubr.bf16.mxu1 %v13602_v28  ;;  %v7402_v29 = vsel %vm1657_vm5, %v13708_v5, %v13707_v9 }
 0x276   :  { %v4292_v16 = vpop.f32.mrf.mxu0  ;;  %v4431_v30 = vadd.f32 %v4329_v20, %v3884_v2  ;;  %9578 = vmatprep.subr.bf16.mxu1 %v13599_v35  ;;  %v7421_v38 = vsel %vm134_vm1, %v7399_v47, 0  ;;  %v7401_v40 = vsel %vm1657_vm5, %v13700_v57, %v13708_v5  ;;  %v13709_v20 = vld [vmem:[#allocation24_spill] sm:$0xff]  ;;  %v13711_v57 = vld [vmem:[#allocation5_spill] sm:$0xff] }
 0x277   :  { %9248 = vst [vmem:[%s13552_s2 + $0x5c] sm:$0x77] %v4475_v19  ;;  %9735 = vtanh.f32 %v4430_v12  ;;  %v9724_v56 = vpop.eup %9723  ;;  %v4331_v41 = vpop.f32.mrf.mxu1  ;;  %v13710_v16 = vld [vmem:[#allocation22_spill] sm:$0xff]  ;;  %v7406_v21 = vsel %vm1657_vm5, %v13711_v57, %v12665_v32 }
 0x278   :  { %v4293_v48 = vpop.f32.mrf.mxu0  ;;  %v4476_v26 = vcombine.low %v9722_v4, %v9724_v56  ;;  %v4432_v46 = vadd.f32 %v4331_v41, %v3885_v22  ;;  %9737 = vtanh.f32 %v4431_v30  ;;  %9399 = vmatmul.mubr.msk.bf16.vlgmr.msra.gmra.mxu0 %vm130_vm2, %v12703_v7  ;;  %v12855_v24 = vpop.permute.xlu0 %7894  ;;  %v7404_v4 = vsel %vm1657_vm5, %v13710_v16, %v13709_v20 }
 0x279   :  { %v4333_v44 = vpop.f32.mrf.mxu1  ;;  %7295 = vmatpush1.bf16.msra.mxu0 %v6944_v55  ;;  %7312 = vmatprep.mubr.bf16.mxu0 %v13602_v28  ;;  %v12865_v22 = vpop.permute.xlu1 %7892  ;;  %v7427_v48 = vsel %vm134_vm1, %v7401_v40, 0 }
 0x27a   :  { %v4370_v52 = vpop.f32.mrf.mxu0  ;;  %v9726_v50 = vpop.eup %9725  ;;  %9249 = vst [vmem:[%s13552_s2 + $0x64] sm:$0x77] %v4476_v26  ;;  %9739 = vtanh.f32 %v4432_v46  ;;  %9405 = vmatprep.subr.msk.bf16.mxu0 %vm134_vm1, %v7400_v11  ;;  %v7403_v46 = vsel %vm1657_vm5, %v13707_v9, %v13710_v16 }
 0x27b   :  { %v4433_v42 = vadd.f32 %v4370_v52, %v3886_v62  ;;  %v4334_v61 = vpop.f32.mrf.mxu1 }
 0x27c   :  { %v9728_v43 = vpop.eup %9727  ;;  %v4372_v0 = vpop.f32.mrf.mxu0  ;;  %9401 = vmatmul.mubr.msk.bf16.vlgmr.msra.gmra.mxu1 %vm130_vm2, %v12703_v7  ;;  %v7405_v61 = vsel %vm1657_vm5, %v13709_v20, %v13711_v57  ;;  %v7416_v57 = vsel %vm1657_vm5, %v12806_v63, %v12808_v36 }
 0x27d   :  { %v4477_v53 = vcombine.low %v9726_v50, %v9728_v43  ;;  %v4434_v54 = vadd.f32 %v4372_v0, %v3887_v13  ;;  %9741 = vtanh.f32 %v4433_v42  ;;  %v4411_v17 = vpop.f32.mrf.mxu1  ;;  %v9730_v10 = vpop.eup %9729  ;;  %9579 = vmatpush3.bf16.msra.mxu1 %v6950_v58  ;;  %9580 = vmatprep.mubr.msk.bf16.mxu1 %vm9830_vm3, %v13599_v35  ;;  %v7433_v42 = vsel %vm134_vm1, %v7403_v46, 0 }
 0x27e   :  { %v4374_v23 = vpop.f32.mrf.mxu0  ;;  %v4435_v25 = vadd.f32 %v4411_v17, %v3888_v3  ;;  %9407 = vmatprep.subr.msk.bf16.mxu1 %vm134_vm1, %v7402_v29  ;;  %v12885_v11 = vpop.permute.xlu0 %7898  ;;  %v7408_v0 = vsel %vm1657_vm5, %v12692_v49, %v12694_v37  ;;  %v7407_v29 = vsel %vm1657_vm5, %v12665_v32, %v12692_v49  ;;  %v7410_v17 = vsel %vm1657_vm5, %v12721_v18, %v12723_v31 }
 0x27f   :  { %9250 = vst [vmem:[%s13552_s2 + $0x6c] sm:$0x77] %v4477_v53  ;;  %9743 = vtanh.f32 %v4434_v54  ;;  %v9732_v59 = vpop.eup %9731  ;;  %v9552_v2 = vpop.f32.mrf.mxu1  ;;  %v7439_v53 = vsel %vm134_vm1, %v7405_v61, 0  ;;  %v7445_v32 = vsel %vm134_vm1, %v7407_v29, 0 }
 0x280   :  { %v4375_v19 = vpop.f32.mrf.mxu0  ;;  %v4478_v12 = vcombine.low %v9730_v10, %v9732_v59  ;;  %9745 = vtanh.f32 %v4435_v25  ;;  %9403 = vmatmul.mubr.msk.bf16.vlgmr.msra.gmra.mxu0 %vm130_vm2, %v12703_v7  ;;  %v12900_v1 = vpop.permute.xlu1 %7896  ;;  %v7409_v2 = vsel %vm1657_vm5, %v12694_v37, %v12721_v18 }
 0x281   :  { %v4414_v30 = vpop.f32.mrf.mxu1  ;;  %7492 = vmatpush1.bf16.msra.mxu0 %v7421_v38  ;;  %7509 = vmatprep.mubr.bf16.mxu0 %v13602_v28  ;;  %v7412_v19 = vsel %vm1657_vm5, %v12750_v60, %v12752_v27 }
 0x282   :  { %v12867_v56 = vpop.f32.mrf.mxu0  ;;  %v9734_v41 = vpop.eup %9733  ;;  %9251 = vst [vmem:[%s13552_s2 + $0x74] sm:$0x77] %v4478_v12  ;;  %9409 = vmatprep.subr.msk.bf16.mxu0 %vm134_vm1, %v7404_v4  ;;  %v7451_v4 = vsel %vm134_vm1, %v7409_v2, 0  ;;  %v7411_v30 = vsel %vm1657_vm5, %v12723_v31, %v12750_v60  ;;  %v7413_v60 = vsel %vm1657_vm5, %v12752_v27, %v12777_v15  ;;  %v7415_v27 = vsel %vm1657_vm5, %v12779_v51, %v12806_v63 }
 0x283   :  { %v9553_v6 = vpop.f32.mrf.mxu1  ;;  %v12920_v45 = vpop.permute.xlu0 %7902 }
 0x284   :  { %v9736_v55 = vpop.eup %9735  ;;  %v12876_v62 = vpop.f32.mrf.mxu0  ;;  %9581 = vmatmul.mubr.msk.bf16.vlgmr.msra.gmra.mxu1 %vm130_vm2, %v12703_v7 }
 0x285   :  { %v4479_v26 = vcombine.low %v9734_v41, %v9736_v55  ;;  %v12887_v52 = vpop.f32.mrf.mxu1  ;;  %v9738_v50 = vpop.eup %9737  ;;  %7533 = vmatpush1.bf16.msra.mxu1 %v7427_v48  ;;  %7550 = vmatprep.mubr.bf16.mxu1 %v13602_v28  ;;  %v7414_v41 = vsel %vm1657_vm5, %v12777_v15, %v12779_v51  ;;  %v7927_v51 = vsel %vm6201_vm10, %v12825_v34, %v12865_v22 }
 0x286   :  { %v4718_v44 = vpop.f32.mrf.mxu0  ;;  %9411 = vmatprep.subr.msk.bf16.mxu1 %vm134_vm1, %v7406_v21  ;;  %v12932_v23 = vpop.permute.xlu1 %7900 }
 0x287   :  { %9252 = vst [vmem:[%s13552_s2 + $0x7c] sm:$0x77] %v4479_v26  ;;  %v9740_v13 = vpop.eup %9739  ;;  %v12903_v43 = vpop.f32.mrf.mxu1  ;;  %v7457_v26 = vsel %vm134_vm1, %v7411_v30, 0 }
 0x288   :  { %v4719_v7 = vpop.f32.mrf.mxu0  ;;  %v4480_v58 = vcombine.low %v9738_v50, %v9740_v13  ;;  %9406 = vmatmul.mubr.msk.bf16.vlgmr.msra.gmra.mxu0 %vm130_vm2, %v12897_v39  ;;  %v12956_v12 = vpop.permute.xlu0 %7906  ;;  %v7463_v13 = vsel %vm134_vm1, %v7413_v60, 0  ;;  %v7930_v60 = vsel %vm6201_vm10, %v12900_v1, %v12885_v11 }
 0x289   :  { %v4759_v14 = vpop.f32.mrf.mxu1  ;;  %7574 = vmatpush1.bf16.msra.mxu0 %v7433_v42  ;;  %7591 = vmatprep.mubr.bf16.mxu0 %v13602_v28 }
 0x28a   :  { %v12912_v47 = vpop.f32.mrf.mxu0  ;;  %v9742_v8 = vpop.eup %9741  ;;  %9253 = vst [vmem:[%s13552_s2 + $0x84] sm:$0x77] %v4480_v58  ;;  %9413 = vmatprep.subr.msk.bf16.mxu0 %vm134_vm1, %v7408_v0  ;;  %v7469_v14 = vsel %vm134_vm1, %v7415_v27, 0 }
 0x28b   :  { %v4760_v54 = vpop.f32.mrf.mxu1  ;;  %v12963_v16 = vpop.permute.xlu1 %7904 }
 0x28c   :  { %v9744_v3 = vpop.eup %9743  ;;  %v12923_v9 = vpop.f32.mrf.mxu0  ;;  %9408 = vmatmul.mubr.msk.bf16.vlgmr.msra.gmra.mxu1 %vm130_vm2, %v12897_v39 }
 0x28d   :  { %v4481_v5 = vcombine.low %v9742_v8, %v9744_v3  ;;  %v9746_v10 = vpop.eup %9745  ;;  %v12934_v59 = vpop.f32.mrf.mxu1  ;;  %7615 = vmatpush1.bf16.msra.mxu1 %v7439_v53  ;;  %7632 = vmatprep.mubr.bf16.mxu1 %v13602_v28 }
 0x28e   :  { %v4800_v25 = vpop.f32.mrf.mxu0  ;;  %9255 = vst.msk [vmem:[%s13552_s2 + $0x94] sm:$0x7] %vm2228_vm8, %v9746_v10  ;;  %9415 = vmatprep.subr.msk.bf16.mxu1 %vm134_vm1, %v7410_v17  ;;  %v12980_v6 = vpop.permute.xlu0 %7910  ;;  %v7926_v10 = vsel %vm6201_vm10, %v12835_v33, %v12825_v34  ;;  %v7928_v33 = vsel %vm6201_vm10, %v12865_v22, %v12855_v24 }
 0x28f   :  { %9254 = vst [vmem:[%s13552_s2 + $0x8c] sm:$0x77] %v4481_v5  ;;  %v12947_v49 = vpop.f32.mrf.mxu1  ;;  %v12992_v21 = vpop.permute.xlu1 %7908  ;;  %v7475_v5 = vsel %vm134_vm1, %v12808_v36, 0  ;;  %v7929_v25 = vsel %vm6201_vm10, %v12855_v24, %v12900_v1  ;;  %v7954_v22 = vsel %vm134_vm1, %v7928_v33, 0 }
 0x290   :  { %v4801_v38 = vpop.f32.mrf.mxu0  ;;  %9410 = vmatmul.mubr.msk.bf16.vlgmr.msra.gmra.mxu0 %vm130_vm2, %v12897_v39  ;;  %v7936_v33 = vsel %vm6201_vm10, %v12992_v21, %v12980_v6 }
 0x291   :  { %v4841_v40 = vpop.f32.mrf.mxu1  ;;  %7656 = vmatpush1.bf16.msra.mxu0 %v7445_v32  ;;  %7673 = vmatprep.mubr.bf16.mxu0 %v13602_v28 }
 0x292   :  { %v12958_v20 = vpop.f32.mrf.mxu0  ;;  %9417 = vmatprep.subr.msk.bf16.mxu0 %vm134_vm1, %v7412_v19  ;;  %v13006_v15 = vpop.permute.xlu0 %7914  ;;  %v7948_v19 = vsel %vm134_vm1, %v7926_v10, 0  ;;  %v7931_v40 = vsel %vm6201_vm10, %v12885_v11, %v12932_v23 }
 0x293   :  { %v4842_v37 = vpop.f32.mrf.mxu1  ;;  %v13013_v0 = vpop.permute.xlu1 %7912 }
 0x294   :  { %v12966_v18 = vpop.f32.mrf.mxu0  ;;  %9412 = vmatmul.mubr.msk.bf16.vlgmr.msra.gmra.mxu1 %vm130_vm2, %v12897_v39 }
 0x295   :  { %v12975_v48 = vpop.f32.mrf.mxu1  ;;  %7697 = vmatpush1.bf16.msra.mxu1 %v7451_v4  ;;  %7714 = vmatprep.mubr.bf16.mxu1 %v13602_v28 }
 0x296   :  { %v4882_v55 = vpop.f32.mrf.mxu0  ;;  %9419 = vmatprep.subr.msk.bf16.mxu1 %vm134_vm1, %v7414_v41  ;;  %v13027_v54 = vpop.permute.xlu0 %7918 }
 0x297   :  { %v12983_v46 = vpop.f32.mrf.mxu1  ;;  %v13040_v32 = vpop.permute.xlu1 %7916 }
 0x298   :  { %v4883_v31 = vpop.f32.mrf.mxu0  ;;  %9414 = vmatmul.mubr.msk.bf16.vlgmr.msra.gmra.mxu0 %vm130_vm2, %v12897_v39 }
 0x299   :  { %v4923_v44 = vpop.f32.mrf.mxu1  ;;  %7738 = vmatpush1.bf16.msra.mxu0 %v7457_v26  ;;  %7755 = vmatprep.mubr.bf16.mxu0 %v13602_v28 }
 0x29a   :  { %v12994_v50 = vpop.f32.mrf.mxu0  ;;  %9421 = vmatprep.subr.msk.bf16.mxu0 %vm134_vm1, %v7416_v57  ;;  %v13056_v4 = vpop.permute.xlu0 %7922 }
 0x29b   :  { %v4924_v42 = vpop.f32.mrf.mxu1  ;;  %v13064_v55 = vpop.permute.xlu1 %7920 }
 0x29c   :  { %v13000_v7 = vpop.f32.mrf.mxu0  ;;  %9416 = vmatmul.mubr.msk.bf16.vlgmr.msra.gmra.mxu1 %vm130_vm2, %v12897_v39  ;;  %v7960_v42 = vsel %vm134_vm1, %v7930_v60, 0  ;;  %v7941_v60 = vsel %vm6201_vm10, %v13027_v54, %v13064_v55 }
 0x29d   :  { %v13008_v61 = vpop.f32.mrf.mxu1  ;;  %7779 = vmatpush1.bf16.msra.mxu1 %v7463_v13  ;;  %7796 = vmatprep.mubr.bf16.mxu1 %v13602_v28 }
 0x29e   :  { %v4964_v58 = vpop.f32.mrf.mxu0  ;;  %9584 = vmatprep.subr.bf16.mxu1 %v13599_v35  ;;  %v13088_v11 = vpop.permute.xlu0 %8434 }
 0x29f   :  { %v13016_v8 = vpop.f32.mrf.mxu1  ;;  %v7935_v58 = vsel %vm6201_vm10, %v12956_v12, %v12992_v21  ;;  %v7978_v21 = vsel %vm134_vm1, %v7936_v33, 0 }
 0x2a0   :  { %v4965_v3 = vpop.f32.mrf.mxu0  ;;  %9418 = vmatmul.mubr.msk.bf16.vlgmr.msra.gmra.mxu0 %vm130_vm2, %v12897_v39 }
 0x2a1   :  { %v5005_v63 = vpop.f32.mrf.mxu1  ;;  %7820 = vmatpush1.bf16.msra.mxu0 %v7469_v14  ;;  %7837 = vmatprep.mubr.bf16.mxu0 %v13602_v28  ;;  %v13101_v14 = vpop.permute.xlu1 %7924 }
 0x2a2   :  { %v13022_v53 = vpop.f32.mrf.mxu0  ;;  %9425 = vmatprep.subr.msk.bf16.mxu0 %vm134_vm1, %v7927_v51  ;;  %v8002_v33 = vsel %vm134_vm1, %v13101_v14, 0 }
 0x2a3   :  { %v5006_v29 = vpop.f32.mrf.mxu1 }
 0x2a4   :  { %v13031_v17 = vpop.f32.mrf.mxu0  ;;  %9420 = vmatmul.mubr.msk.bf16.vlgmr.msra.gmra.mxu1 %vm130_vm2, %v12897_v39  ;;  %v7934_v29 = vsel %vm6201_vm10, %v12963_v16, %v12956_v12 }
 0x2a5   :  { %v13042_v2 = vpop.f32.mrf.mxu1  ;;  %9585 = vmatpush3.bf16.msra.mxu1 %v7475_v5  ;;  %9586 = vmatprep.mubr.msk.bf16.mxu1 %vm9830_vm3, %v13599_v35  ;;  %v13120_v10 = vpop.permute.xlu1 %8436 }
 0x2a6   :  { %v5046_v38 = vpop.f32.mrf.mxu0  ;;  %9427 = vmatprep.subr.msk.bf16.mxu1 %vm134_vm1, %v7929_v25  ;;  %v13122_v25 = vpop.permute.xlu0 %8438 }
 0x2a7   :  { %v9558_v36 = vpop.f32.mrf.mxu1 }
 0x2a8   :  { %v5047_v34 = vpop.f32.mrf.mxu0  ;;  %9422 = vmatmul.mubr.msk.bf16.vlgmr.msra.gmra.mxu0 %vm130_vm2, %v12897_v39 }
 0x2a9   :  { %v5086_v37 = vpop.f32.mrf.mxu1  ;;  %8019 = vmatpush1.bf16.msra.mxu0 %v7948_v19  ;;  %8036 = vmatprep.mubr.bf16.mxu0 %v13602_v28 }
 0x2aa   :  { %v5239_v30 = vpop.f32.mrf.mxu0  ;;  %9429 = vmatprep.subr.msk.bf16.mxu0 %vm134_vm1, %v7931_v40 }
 0x2ab   :  { %v13061_v41 = vadd.f32 %v5239_v30, %v12867_v56  ;;  %v9559_v24 = vpop.f32.mrf.mxu1  ;;  %v7933_v56 = vsel %vm6201_vm10, %v12920_v45, %v12963_v16  ;;  %v7972_v16 = vsel %vm134_vm1, %v7934_v29, 0 }
 0x2ac   :  { %v5241_v26 = vpop.f32.mrf.mxu0  ;;  %9587 = vmatmul.mubr.msk.bf16.vlgmr.msra.gmra.mxu1 %vm130_vm2, %v12897_v39  ;;  %v13149_v24 = vpop.permute.xlu0 %8442 }
 0x2ad   :  { %v13069_v31 = vadd.f32 %v5241_v26, %v12876_v62  ;;  %v5280_v44 = vpop.f32.mrf.mxu1  ;;  %8060 = vmatpush1.bf16.msra.mxu1 %v7954_v22  ;;  %v13085_v62 = vld [vmem:[%s13551_s1 + $0x1c] sm:$0x3]  ;;  %8077 = vmatprep.mubr.bf16.mxu1 %v13602_v28 }
 0x2ae   :  { %v5243_v57 = vpop.f32.mrf.mxu0  ;;  %v13080_v13 = vadd.f32 %v5280_v44, %v12887_v52  ;;  %9431 = vmatprep.subr.msk.bf16.mxu1 %vm134_vm1, %v7933_v56  ;;  %v7932_v52 = vsel %vm6201_vm10, %v12932_v23, %v12920_v45 }
 0x2af   :  { %v5282_v1 = vpop.f32.mrf.mxu1  ;;  %v7966_v45 = vsel %vm134_vm1, %v7932_v52, 0 }
 0x2b0   :  { %v5244_v27 = vpop.f32.mrf.mxu0  ;;  %v13093_v39 = vadd.f32 %v5282_v1, %v12903_v43  ;;  %9426 = vmatmul.mubr.msk.bf16.vlgmr.msra.gmra.mxu0 %vm130_vm2, %v13085_v62  ;;  %v13181_v52 = vpop.permute.xlu0 %8446 }
 0x2b1   :  { %v5284_v3 = vpop.f32.mrf.mxu1  ;;  %8101 = vmatpush1.bf16.msra.mxu0 %v7960_v42  ;;  %8118 = vmatprep.mubr.bf16.mxu0 %v13602_v28 }
 0x2b2   :  { %v5321_v51 = vpop.f32.mrf.mxu0  ;;  %9433 = vmatprep.subr.msk.bf16.mxu0 %vm134_vm1, %v7935_v58 }
 0x2b3   :  { %v13106_v63 = vadd.f32 %v5321_v51, %v12912_v47  ;;  %v5285_v43 = vpop.f32.mrf.mxu1  ;;  %v7937_v47 = vsel %vm6201_vm10, %v12980_v6, %v13013_v0 }
 0x2b4   :  { %v5323_v23 = vpop.f32.mrf.mxu0  ;;  %9428 = vmatmul.mubr.msk.bf16.vlgmr.msra.gmra.mxu1 %vm130_vm2, %v13085_v62 }
 0x2b5   :  { %v13112_v5 = vadd.f32 %v5323_v23, %v12923_v9  ;;  %v5362_v36 = vpop.f32.mrf.mxu1  ;;  %8142 = vmatpush1.bf16.msra.mxu1 %v7966_v45  ;;  %8159 = vmatprep.mubr.bf16.mxu1 %v13602_v28  ;;  %v7942_v45 = vsel %vm6201_vm10, %v13064_v55, %v13056_v4 }
 0x2b6   :  { %v5325_v38 = vpop.f32.mrf.mxu0  ;;  %v13127_v9 = vadd.f32 %v5362_v36, %v12934_v59  ;;  %9435 = vmatprep.subr.msk.bf16.mxu1 %vm134_vm1, %v7937_v47  ;;  %v7939_v59 = vsel %vm6201_vm10, %v13006_v15, %v13040_v32  ;;  %v7996_v36 = vsel %vm134_vm1, %v7942_v45, 0 }
 0x2b7   :  { %v5364_v12 = vpop.f32.mrf.mxu1  ;;  %v13203_v38 = vpop.permute.xlu0 %8450 }
 0x2b8   :  { %v5326_v19 = vpop.f32.mrf.mxu0  ;;  %v13133_v34 = vadd.f32 %v5364_v12, %v12947_v49  ;;  %9430 = vmatmul.mubr.msk.bf16.vlgmr.msra.gmra.mxu0 %vm130_vm2, %v13085_v62  ;;  %v13147_v49 = vpop.permute.xlu1 %8440 }
 0x2b9   :  { %v5366_v40 = vpop.f32.mrf.mxu1  ;;  %8183 = vmatpush1.bf16.msra.mxu0 %v7972_v16  ;;  %8200 = vmatprep.mubr.bf16.mxu0 %v13602_v28 }
 0x2ba   :  { %v5403_v37 = vpop.f32.mrf.mxu0  ;;  %9437 = vmatprep.subr.msk.bf16.mxu0 %vm134_vm1, %v7939_v59 }
 0x2bb   :  { %v13144_v30 = vadd.f32 %v5403_v37, %v12958_v20  ;;  %v5367_v6 = vpop.f32.mrf.mxu1  ;;  %v7938_v20 = vsel %vm6201_vm10, %v13013_v0, %v13006_v15  ;;  %v7940_v0 = vsel %vm6201_vm10, %v13040_v32, %v13027_v54  ;;  %v8473_v37 = vsel %vm8472_vm11, %v13088_v11, %v13120_v10 }
 0x2bc   :  { %v5405_v22 = vpop.f32.mrf.mxu0  ;;  %9432 = vmatmul.mubr.msk.bf16.vlgmr.msra.gmra.mxu1 %vm130_vm2, %v13085_v62  ;;  %v7984_v1 = vsel %vm134_vm1, %v7938_v20, 0  ;;  %v13179_v27 = vpop.permute.xlu1 %8444  ;;  %v7990_v32 = vsel %vm134_vm1, %v7940_v0, 0 }
 0x2bd   :  { %v13154_v26 = vadd.f32 %v5405_v22, %v12966_v18  ;;  %v5444_v57 = vpop.f32.mrf.mxu1  ;;  %8224 = vmatpush1.bf16.msra.mxu1 %v7978_v21  ;;  %8241 = vmatprep.mubr.bf16.mxu1 %v13602_v28  ;;  %v13231_v21 = vpop.permute.xlu0 %8454 }
 0x2be   :  { %v5407_v56 = vpop.f32.mrf.mxu0  ;;  %v13165_v44 = vadd.f32 %v5444_v57, %v12975_v48  ;;  %9439 = vmatprep.subr.msk.bf16.mxu1 %vm134_vm1, %v7941_v60  ;;  %v7943_v48 = vsel %vm6201_vm10, %v13056_v4, %v13101_v14  ;;  %v8475_v60 = vsel %vm8472_vm11, %v13122_v25, %v13147_v49 }
 0x2bf   :  { %v5446_v18 = vpop.f32.mrf.mxu1  ;;  %v8478_v56 = vsel %vm8472_vm11, %v13179_v27, %v13181_v52 }
 0x2c0   :  { %v5408_v42 = vpop.f32.mrf.mxu0  ;;  %v13171_v15 = vadd.f32 %v5446_v18, %v12983_v46  ;;  %9434 = vmatmul.mubr.msk.bf16.vlgmr.msra.gmra.mxu0 %vm130_vm2, %v13085_v62  ;;  %v8449_v47 = vpop.permute.xlu1 %8448 }
 0x2c1   :  { %v5448_v58 = vpop.f32.mrf.mxu1  ;;  %8265 = vmatpush1.bf16.msra.mxu0 %v7984_v1  ;;  %8282 = vmatprep.mubr.bf16.mxu0 %v13602_v28  ;;  %v8459_v1 = vpop.permute.xlu0 %8458  ;;  %v8501_v42 = vsel %vm134_vm1, %v8475_v60, 0 }
 0x2c2   :  { %v5485_v3 = vpop.f32.mrf.mxu0  ;;  %9441 = vmatprep.subr.msk.bf16.mxu0 %vm134_vm1, %v7943_v48 }
 0x2c3   :  { %v13186_v46 = vadd.f32 %v5485_v3, %v12994_v50  ;;  %v5449_v54 = vpop.f32.mrf.mxu1 }
 0x2c4   :  { %v5487_v51 = vpop.f32.mrf.mxu0  ;;  %9436 = vmatmul.mubr.msk.bf16.vlgmr.msra.gmra.mxu1 %vm130_vm2, %v13085_v62  ;;  %v8453_v6 = vpop.permute.xlu1 %8452  ;;  %v13269_v54 = vld [vmem:[%s13551_s1 + $0x1e] sm:$0x3] }
 0x2c5   :  { %v13192_v43 = vadd.f32 %v5487_v51, %v13000_v7  ;;  %v5526_v29 = vpop.f32.mrf.mxu1  ;;  %8306 = vmatpush1.bf16.msra.mxu1 %v7990_v32  ;;  %8323 = vmatprep.mubr.bf16.mxu1 %v13602_v28  ;;  %v8479_v51 = vsel %vm8472_vm11, %v13181_v52, %v8449_v47  ;;  %v8481_v52 = vsel %vm8472_vm11, %v13203_v38, %v8453_v6 }
 0x2c6   :  { %v5489_v23 = vpop.f32.mrf.mxu0  ;;  %v13200_v50 = vadd.f32 %v5526_v29, %v13008_v61  ;;  %9590 = vmatprep.subr.bf16.mxu1 %v13599_v35  ;;  %v8474_v61 = vsel %vm8472_vm11, %v13120_v10, %v13122_v25  ;;  %v8477_v25 = vsel %vm8472_vm11, %v13149_v24, %v13179_v27 }
 0x2c7   :  { %v5528_v7 = vpop.f32.mrf.mxu1  ;;  %v8507_v32 = vsel %vm134_vm1, %v8477_v25, 0  ;;  %v8463_v23 = vpop.permute.xlu0 %8462 }
 0x2c8   :  { %v5490_v12 = vpop.f32.mrf.mxu0  ;;  %v13208_v4 = vadd.f32 %v5528_v7, %v13016_v8  ;;  %9438 = vmatmul.mubr.msk.bf16.vlgmr.msra.gmra.mxu0 %vm130_vm2, %v13085_v62  ;;  %v8457_v18 = vpop.permute.xlu1 %8456 }
 0x2c9   :  { %v5530_v55 = vpop.f32.mrf.mxu1  ;;  %8347 = vmatpush1.bf16.msra.mxu0 %v7996_v36  ;;  %8364 = vmatprep.mubr.bf16.mxu0 %v13602_v28  ;;  %v8513_v36 = vsel %vm134_vm1, %v8479_v51, 0 }
 0x2ca   :  { %v5567_v16 = vpop.f32.mrf.mxu0  ;;  %9445 = vmatprep.subr.msk.bf16.mxu0 %vm134_vm1, %v8474_v61 }
 0x2cb   :  { %v13216_v19 = vadd.f32 %v5567_v16, %v13022_v53  ;;  %v5531_v8 = vpop.f32.mrf.mxu1  ;;  %v8476_v53 = vsel %vm8472_vm11, %v13147_v49, %v13149_v24  ;;  %v8480_v49 = vsel %vm8472_vm11, %v8449_v47, %v13203_v38  ;;  %v8484_v47 = vsel %vm8472_vm11, %v8457_v18, %v8459_v1 }
 0x2cc   :  { %v5569_v59 = vpop.f32.mrf.mxu0  ;;  %9440 = vmatmul.mubr.msk.bf16.vlgmr.msra.gmra.mxu1 %vm130_vm2, %v13085_v62  ;;  %v8461_v45 = vpop.permute.xlu1 %8460  ;;  %v8483_v38 = vsel %vm8472_vm11, %v13231_v21, %v8457_v18 }
 0x2cd   :  { %v13223_v40 = vadd.f32 %v5569_v59, %v13031_v17  ;;  %v5608_v14 = vpop.f32.mrf.mxu1  ;;  %9591 = vmatpush3.bf16.msra.mxu1 %v8002_v33  ;;  %9592 = vmatprep.mubr.msk.bf16.mxu1 %vm9830_vm3, %v13599_v35  ;;  %v8495_v17 = vsel %vm134_vm1, %v8473_v37, 0  ;;  %v8467_v8 = vpop.permute.xlu0 %8466  ;;  %v8519_v59 = vsel %vm134_vm1, %v8481_v52, 0 }
 0x2ce   :  { %v5571_v22 = vpop.f32.mrf.mxu0  ;;  %v13236_v20 = vadd.f32 %v5608_v14, %v13042_v2  ;;  %9447 = vmatprep.subr.msk.bf16.mxu1 %vm134_vm1, %v8476_v53 }
 0x2cf   :  { %v9564_v11 = vpop.f32.mrf.mxu1 }
 0x2d0   :  { %v5572_v10 = vpop.f32.mrf.mxu0  ;;  %9442 = vmatmul.mubr.msk.bf16.vlgmr.msra.gmra.mxu0 %vm130_vm2, %v13085_v62  ;;  %v8465_v33 = vpop.permute.xlu1 %8464 }
 0x2d1   :  { %v5611_v2 = vpop.f32.mrf.mxu1  ;;  %8566 = vmatpush1.bf16.msra.mxu0 %v8495_v17  ;;  %8583 = vmatprep.mubr.bf16.mxu0 %v13602_v28  ;;  %v8525_v17 = vsel %vm134_vm1, %v8483_v38, 0  ;;  %v8488_v60 = vsel %vm8472_vm11, %v8465_v33, %v8467_v8 }
 0x2d2   :  { %v13248_v57 = vpop.f32.mrf.mxu0  ;;  %9449 = vmatprep.subr.msk.bf16.mxu0 %vm134_vm1, %v8478_v56  ;;  %v8471_v2 = vpop.permute.xlu0 %8470 }
 0x2d3   :  { %v9565_v0 = vpop.f32.mrf.mxu1 }
 0x2d4   :  { %v13254_v48 = vpop.f32.mrf.mxu0  ;;  %9593 = vmatmul.mubr.msk.bf16.vlgmr.msra.gmra.mxu1 %vm130_vm2, %v13085_v62  ;;  %v8482_v62 = vsel %vm8472_vm11, %v8453_v6, %v13231_v21  ;;  %v8486_v6 = vsel %vm8472_vm11, %v8461_v45, %v8463_v23  ;;  %v8485_v21 = vsel %vm8472_vm11, %v8459_v1, %v8461_v45  ;;  %v8469_v56 = vpop.permute.xlu1 %8468  ;;  %v8487_v1 = vsel %vm8472_vm11, %v8463_v23, %v8465_v33 }
 0x2d5   :  { %v13262_v3 = vpop.f32.mrf.mxu1  ;;  %8607 = vmatpush1.bf16.msra.mxu1 %v8501_v42  ;;  %8624 = vmatprep.mubr.bf16.mxu1 %v13602_v28  ;;  %v8531_v0 = vsel %vm134_vm1, %v8485_v21, 0  ;;  %v8537_v51 = vsel %vm134_vm1, %v8487_v1, 0  ;;  %v8489_v23 = vsel %vm8472_vm11, %v8467_v8, %v8469_v56  ;;  %v8549_v8 = vsel %vm134_vm1, %v8471_v2, 0 }
 0x2d6   :  { %v5771_v58 = vpop.f32.mrf.mxu0  ;;  %9451 = vmatprep.subr.msk.bf16.mxu1 %vm134_vm1, %v8480_v49 }
 0x2d7   :  { %v13273_v24 = vpop.f32.mrf.mxu1  ;;  %v8490_v58 = vsel %vm8472_vm11, %v8469_v56, %v8471_v2 }
 0x2d8   :  { %v5772_v27 = vpop.f32.mrf.mxu0  ;;  %9446 = vmatmul.mubr.msk.bf16.vlgmr.msra.gmra.mxu0 %vm130_vm2, %v13269_v54 }
 0x2d9   :  { %v5812_v29 = vpop.f32.mrf.mxu1  ;;  %8648 = vmatpush1.bf16.msra.mxu0 %v8507_v32  ;;  %8665 = vmatprep.mubr.bf16.mxu0 %v13602_v28 }
 0x2da   :  { %v13280_v7 = vpop.f32.mrf.mxu0  ;;  %9453 = vmatprep.subr.msk.bf16.mxu0 %vm134_vm1, %v8482_v62 }
 0x2db   :  { %v5813_v12 = vpop.f32.mrf.mxu1 }
 0x2dc   :  { %v13286_v61 = vpop.f32.mrf.mxu0  ;;  %9448 = vmatmul.mubr.msk.bf16.vlgmr.msra.gmra.mxu1 %vm130_vm2, %v13269_v54  ;;  %v8543_v12 = vsel %vm134_vm1, %v8489_v23, 0 }
 0x2dd   :  { %v13292_v16 = vpop.f32.mrf.mxu1  ;;  %8689 = vmatpush1.bf16.msra.mxu1 %v8513_v36  ;;  %8706 = vmatprep.mubr.bf16.mxu1 %v13602_v28 }
 0x2de   :  { %v5853_v55 = vpop.f32.mrf.mxu0  ;;  %9455 = vmatprep.subr.msk.bf16.mxu1 %vm134_vm1, %v8484_v47 }
 0x2df   :  { %v13298_v37 = vpop.f32.mrf.mxu1 }
 0x2e0   :  { %v5854_v53 = vpop.f32.mrf.mxu0  ;;  %9450 = vmatmul.mubr.msk.bf16.vlgmr.msra.gmra.mxu0 %vm130_vm2, %v13269_v54 }
 0x2e1   :  { %v5894_v22 = vpop.f32.mrf.mxu1  ;;  %8730 = vmatpush1.bf16.msra.mxu0 %v8519_v59  ;;  %8747 = vmatprep.mubr.bf16.mxu0 %v13602_v28 }
 0x2e2   :  { %v13304_v14 = vpop.f32.mrf.mxu0  ;;  %9457 = vmatprep.subr.msk.bf16.mxu0 %vm134_vm1, %v8486_v6 }
 0x2e3   :  { %v5895_v11 = vpop.f32.mrf.mxu1 }
 0x2e4   :  { %v13310_v10 = vpop.f32.mrf.mxu0  ;;  %9452 = vmatmul.mubr.msk.bf16.vlgmr.msra.gmra.mxu1 %vm130_vm2, %v13269_v54 }
 0x2e5   :  { %v13315_v42 = vpop.f32.mrf.mxu1  ;;  %8771 = vmatpush1.bf16.msra.mxu1 %v8525_v17  ;;  %8788 = vmatprep.mubr.bf16.mxu1 %v13602_v28 }
 0x2e6   :  { %v5935_v18 = vpop.f32.mrf.mxu0  ;;  %9459 = vmatprep.subr.msk.bf16.mxu1 %vm134_vm1, %v8488_v60  ;;  %v6143_v60 = vadd.f32 %v13254_v48, %v13069_v31  ;;  %v6146_v48 = vadd.f32 %v13280_v7, %v13106_v63  ;;  %v6149_v63 = vadd.f32 %v13298_v37, %v13133_v34  ;;  %v6152_v37 = vadd.f32 %v13315_v42, %v13165_v44 }
 0x2e7   :  { %v13321_v25 = vpop.f32.mrf.mxu1 }
 0x2e8   :  { %v5936_v49 = vpop.f32.mrf.mxu0  ;;  %9454 = vmatmul.mubr.msk.bf16.vlgmr.msra.gmra.mxu0 %vm130_vm2, %v13269_v54 }
 0x2e9   :  { %v5976_v32 = vpop.f32.mrf.mxu1  ;;  %8812 = vmatpush1.bf16.msra.mxu0 %v8531_v0  ;;  %8829 = vmatprep.mubr.bf16.mxu0 %v13602_v28  ;;  %v6144_v0 = vadd.f32 %v13262_v3, %v13080_v13 }
 0x2ea   :  { %v13326_v27 = vpop.f32.mrf.mxu0  ;;  %9461 = vmatprep.subr.msk.bf16.mxu0 %vm134_vm1, %v8490_v58 }
 0x2eb   :  { %v5977_v62 = vpop.f32.mrf.mxu1  ;;  %v6154_v44 = vadd.f32 %v13326_v27, %v13186_v46 }
 0x2ec   :  { %v13332_v45 = vpop.f32.mrf.mxu0  ;;  %9456 = vmatmul.mubr.msk.bf16.vlgmr.msra.gmra.mxu1 %vm130_vm2, %v13269_v54 }
 0x2ed   :  { %v13336_v36 = vpop.f32.mrf.mxu1  ;;  %8853 = vmatpush1.bf16.msra.mxu1 %v8537_v51  ;;  %8870 = vmatprep.mubr.bf16.mxu1 %v13602_v28  ;;  %v6147_v51 = vadd.f32 %v13286_v61, %v13112_v5  ;;  %v6150_v5 = vadd.f32 %v13304_v14, %v13144_v30 }
 0x2ee   :  { %v6017_v29 = vpop.f32.mrf.mxu0  ;;  %9596 = vmatprep.subr.bf16.mxu1 %v13599_v35  ;;  %v6156_v46 = vadd.f32 %v13336_v36, %v13200_v50 }
 0x2ef   :  { %v13342_v52 = vpop.f32.mrf.mxu1 }
 0x2f0   :  { %v6018_v47 = vpop.f32.mrf.mxu0  ;;  %9458 = vmatmul.mubr.msk.bf16.vlgmr.msra.gmra.mxu0 %vm130_vm2, %v13269_v54 }
 0x2f1   :  { %v6058_v55 = vpop.f32.mrf.mxu1  ;;  %8894 = vmatpush1.bf16.msra.mxu0 %v8543_v12  ;;  %8911 = vmatprep.mubr.bf16.mxu0 %v13602_v28  ;;  %v6142_v28 = vadd.f32 %v13248_v57, %v13061_v41  ;;  %v6145_v41 = vadd.f32 %v13273_v24, %v13093_v39  ;;  %v6148_v39 = vadd.f32 %v13292_v16, %v13127_v9 }
 0x2f2   :  { %v13345_v33 = vpop.f32.mrf.mxu0  ;;  %v6151_v9 = vadd.f32 %v13310_v10, %v13154_v26 }
 0x2f3   :  { %v6059_v59 = vpop.f32.mrf.mxu1  ;;  %v6158_v50 = vadd.f32 %v13345_v33, %v13216_v19 }
 0x2f4   :  { %v13351_v53 = vpop.f32.mrf.mxu0  ;;  %9460 = vmatmul.mubr.msk.bf16.vlgmr.msra.gmra.mxu1 %vm130_vm2, %v13269_v54 }
 0x2f5   :  { %v13353_v6 = vpop.f32.mrf.mxu1  ;;  %9597 = vmatpush3.bf16.msra.mxu1 %v8549_v8  ;;  %9598 = vmatprep.mubr.msk.bf16.mxu1 %vm9830_vm3, %v13599_v35 }
 0x2f6   :  { %v6099_v38 = vpop.f32.mrf.mxu0  ;;  %v6160_v19 = vadd.f32 %v13353_v6, %v13236_v20 }
 0x2f7   :  { %v9570_v17 = vpop.f32.mrf.mxu1 }
 0x2f8   :  { %v6100_v22 = vpop.f32.mrf.mxu0  ;;  %9462 = vmatmul.mubr.msk.bf16.vlgmr.msra.gmra.mxu0 %vm130_vm2, %v13269_v54 }
 0x2f9   :  { %v6139_v11 = vpop.f32.mrf.mxu1 }
 0x2fa   :  { %v6314_v21 = vpop.f32.mrf.mxu0 }
 0x2fb   :  { %v6689_v56 = vadd.f32 %v6314_v21, %v6142_v28  ;;  %v9571_v2 = vpop.f32.mrf.mxu1 }
 0x2fc   :  { %v6316_v18 = vpop.f32.mrf.mxu0  ;;  %9599 = vmatmul.mubr.msk.bf16.vlgmr.msra.gmra.mxu1 %vm130_vm2, %v13269_v54 }
 0x2fd   :  { %v6690_v35 = vadd.f32 %v6316_v18, %v6143_v60  ;;  %9747 = vtanh.f32 %v6689_v56  ;;  %v6355_v1 = vpop.f32.mrf.mxu1  ;;  %v6153_v60 = vadd.f32 %v13321_v25, %v13171_v15  ;;  %v6155_v15 = vadd.f32 %v13332_v45, %v13192_v43 }
 0x2fe   :  { %v6318_v49 = vpop.f32.mrf.mxu0  ;;  %v6691_v57 = vadd.f32 %v6355_v1, %v6144_v0  ;;  %v6157_v43 = vadd.f32 %v13342_v52, %v13208_v4  ;;  %v6159_v4 = vadd.f32 %v13351_v53, %v13223_v40 }
 0x2ff   :  { %9749 = vtanh.f32 %v6690_v35  ;;  %v6357_v31 = vpop.f32.mrf.mxu1 }
 0x300   :  { %v6319_v58 = vpop.f32.mrf.mxu0  ;;  %v6692_v32 = vadd.f32 %v6357_v31, %v6145_v41  ;;  %9751 = vtanh.f32 %v6691_v57 }
 0x301   :  { %v6359_v13 = vpop.f32.mrf.mxu1 }
 0x302   :  { %v6396_v3 = vpop.f32.mrf.mxu0  ;;  %9753 = vtanh.f32 %v6692_v32 }
 0x303   :  { %v6693_v62 = vadd.f32 %v6396_v3, %v6146_v48  ;;  %v6360_v54 = vpop.f32.mrf.mxu1 }
 0x304   :  { %v6398_v23 = vpop.f32.mrf.mxu0 }
 0x305   :  { %v6694_v24 = vadd.f32 %v6398_v23, %v6147_v51  ;;  %9755 = vtanh.f32 %v6693_v62  ;;  %v6437_v12 = vpop.f32.mrf.mxu1 }
 0x306   :  { %v6400_v29 = vpop.f32.mrf.mxu0  ;;  %v6695_v7 = vadd.f32 %v6437_v12, %v6148_v39 }
 0x307   :  { %9757 = vtanh.f32 %v6694_v24  ;;  %v6439_v55 = vpop.f32.mrf.mxu1 }
 0x308   :  { %v6401_v47 = vpop.f32.mrf.mxu0  ;;  %v6696_v61 = vadd.f32 %v6439_v55, %v6149_v63  ;;  %9759 = vtanh.f32 %v6695_v7 }
 0x309   :  { %v6441_v8 = vpop.f32.mrf.mxu1 }
 0x30a   :  { %v6478_v59 = vpop.f32.mrf.mxu0  ;;  %v9748_v38 = vpop.eup %9747  ;;  %9761 = vtanh.f32 %v6696_v61 }
 0x30b   :  { %v6697_v16 = vadd.f32 %v6478_v59, %v6150_v5  ;;  %v6442_v17 = vpop.f32.mrf.mxu1 }
 0x30c   :  { %v9750_v22 = vpop.eup %9749  ;;  %v6480_v34 = vpop.f32.mrf.mxu0 }
 0x30d   :  { %v6745_v28 = vcombine.low %v9748_v38, %v9750_v22  ;;  %v6698_v11 = vadd.f32 %v6480_v34, %v6151_v9  ;;  %9763 = vtanh.f32 %v6697_v16  ;;  %v6519_v14 = vpop.f32.mrf.mxu1  ;;  %v9752_v21 = vpop.eup %9751 }
 0x30e   :  { %v6482_v30 = vpop.f32.mrf.mxu0  ;;  %v6699_v26 = vadd.f32 %v6519_v14, %v6152_v37 }
 0x30f   :  { %9355 = vst [vmem:[%s13552_s2 + $0x98] sm:$0x77] %v6745_v28  ;;  %9765 = vtanh.f32 %v6698_v11  ;;  %v9754_v10 = vpop.eup %9753  ;;  %v6521_v2 = vpop.f32.mrf.mxu1 }
 0x310   :  { %v6483_v56 = vpop.f32.mrf.mxu0  ;;  %v6746_v42 = vcombine.low %v9752_v21, %v9754_v10  ;;  %v6700_v18 = vadd.f32 %v6521_v2, %v6153_v60  ;;  %9767 = vtanh.f32 %v6699_v26 }
 0x311   :  { %v6523_v0 = vpop.f32.mrf.mxu1 }
 0x312   :  { %v6560_v35 = vpop.f32.mrf.mxu0  ;;  %v9756_v49 = vpop.eup %9755  ;;  %9356 = vst [vmem:[%s13552_s2 + $0xa0] sm:$0x77] %v6746_v42  ;;  %9769 = vtanh.f32 %v6700_v18 }
 0x313   :  { %v6701_v25 = vadd.f32 %v6560_v35, %v6154_v44  ;;  %v6524_v41 = vpop.f32.mrf.mxu1 }
 0x314   :  { %v9758_v1 = vpop.eup %9757  ;;  %v6562_v57 = vpop.f32.mrf.mxu0 }
 0x315   :  { %v6747_v27 = vcombine.low %v9756_v49, %v9758_v1  ;;  %v6702_v58 = vadd.f32 %v6562_v57, %v6155_v15  ;;  %9771 = vtanh.f32 %v6701_v25  ;;  %v6601_v48 = vpop.f32.mrf.mxu1  ;;  %v9760_v32 = vpop.eup %9759 }
 0x316   :  { %v6564_v31 = vpop.f32.mrf.mxu0  ;;  %v6703_v45 = vadd.f32 %v6601_v48, %v6156_v46 }
 0x317   :  { %9357 = vst [vmem:[%s13552_s2 + $0xa8] sm:$0x77] %v6747_v27  ;;  %9773 = vtanh.f32 %v6702_v58  ;;  %v9762_v13 = vpop.eup %9761  ;;  %v6603_v51 = vpop.f32.mrf.mxu1 }
 0x318   :  { %v6565_v3 = vpop.f32.mrf.mxu0  ;;  %v6748_v36 = vcombine.low %v9760_v32, %v9762_v13  ;;  %v6704_v62 = vadd.f32 %v6603_v51, %v6157_v43  ;;  %9775 = vtanh.f32 %v6703_v45 }
 0x319   :  { %v6605_v54 = vpop.f32.mrf.mxu1 }
 0x31a   :  { %v6642_v23 = vpop.f32.mrf.mxu0  ;;  %v9764_v39 = vpop.eup %9763  ;;  %9358 = vst [vmem:[%s13552_s2 + $0xb0] sm:$0x77] %v6748_v36  ;;  %9777 = vtanh.f32 %v6704_v62 }
 0x31b   :  { %v6705_v52 = vadd.f32 %v6642_v23, %v6158_v50  ;;  %v6606_v29 = vpop.f32.mrf.mxu1 }
 0x31c   :  { %v9766_v24 = vpop.eup %9765  ;;  %v6644_v12 = vpop.f32.mrf.mxu0 }
 0x31d   :  { %v6749_v33 = vcombine.low %v9764_v39, %v9766_v24  ;;  %v6706_v63 = vadd.f32 %v6644_v12, %v6159_v4  ;;  %9779 = vtanh.f32 %v6705_v52  ;;  %v6683_v47 = vpop.f32.mrf.mxu1  ;;  %v9768_v55 = vpop.eup %9767 }
 0x31e   :  { %v6646_v7 = vpop.f32.mrf.mxu0  ;;  %v6707_v40 = vadd.f32 %v6683_v47, %v6160_v19 }
 0x31f   :  { %9359 = vst [vmem:[%s13552_s2 + $0xb8] sm:$0x77] %v6749_v33  ;;  %9781 = vtanh.f32 %v6706_v63  ;;  %v9770_v53 = vpop.eup %9769  ;;  %v9576_v61 = vpop.f32.mrf.mxu1 }
 0x320   :  { %v6647_v5 = vpop.f32.mrf.mxu0  ;;  %v6750_v8 = vcombine.low %v9768_v55, %v9770_v53  ;;  %9783 = vtanh.f32 %v6707_v40 }
 0x321   :  { %v6686_v59 = vpop.f32.mrf.mxu1 }
 0x322   :  { %v6986_v38 = vpop.f32.mrf.mxu0  ;;  %v9772_v20 = vpop.eup %9771  ;;  %9360 = vst [vmem:[%s13552_s2 + $0xc0] sm:$0x77] %v6750_v8 }
 0x323   :  { %v9577_v9 = vpop.f32.mrf.mxu1 }
 0x324   :  { %v9774_v6 = vpop.eup %9773  ;;  %v6988_v16 = vpop.f32.mrf.mxu0 }
 0x325   :  { %v6751_v22 = vcombine.low %v9772_v20, %v9774_v6  ;;  %v7027_v34 = vpop.f32.mrf.mxu1  ;;  %v9776_v37 = vpop.eup %9775 }
 0x326   :  { %v6990_v17 = vpop.f32.mrf.mxu0 }
 0x327   :  { %9361 = vst [vmem:[%s13552_s2 + $0xc8] sm:$0x77] %v6751_v22  ;;  %v9778_v28 = vpop.eup %9777  ;;  %v7029_v30 = vpop.f32.mrf.mxu1 }
 0x328   :  { %v6991_v11 = vpop.f32.mrf.mxu0  ;;  %v6752_v14 = vcombine.low %v9776_v37, %v9778_v28 }
 0x329   :  { %v7031_v21 = vpop.f32.mrf.mxu1 }
 0x32a   :  { %v7068_v60 = vpop.f32.mrf.mxu0  ;;  %v9780_v26 = vpop.eup %9779  ;;  %9362 = vst [vmem:[%s13552_s2 + $0xd0] sm:$0x77] %v6752_v14 }
 0x32b   :  { %v7032_v56 = vpop.f32.mrf.mxu1 }
 0x32c   :  { %v9782_v10 = vpop.eup %9781  ;;  %v7070_v2 = vpop.f32.mrf.mxu0 }
 0x32d   :  { %v6753_v44 = vcombine.low %v9780_v26, %v9782_v10  ;;  %v9784_v42 = vpop.eup %9783  ;;  %v7109_v0 = vpop.f32.mrf.mxu1 }
 0x32e   :  { %v7072_v18 = vpop.f32.mrf.mxu0  ;;  %9364 = vst.msk [vmem:[%s13552_s2 + $0xe0] sm:$0x7] %vm2228_vm8, %v9784_v42 }
 0x32f   :  { %9363 = vst [vmem:[%s13552_s2 + $0xd8] sm:$0x77] %v6753_v44  ;;  %v7111_v49 = vpop.f32.mrf.mxu1 }
 0x330   :  { %v7073_v35 = vpop.f32.mrf.mxu0 }
 0x331   :  { %v7113_v15 = vpop.f32.mrf.mxu1 }
 0x332   :  { %v7150_v25 = vpop.f32.mrf.mxu0 }
 0x333   :  { %v7114_v1 = vpop.f32.mrf.mxu1 }
 0x334   :  { %v7152_v41 = vpop.f32.mrf.mxu0 }
 0x335   :  { %v7191_v46 = vpop.f32.mrf.mxu1 }
 0x336   :  { %v7154_v57 = vpop.f32.mrf.mxu0 }
 0x337   :  { %v7193_v58 = vpop.f32.mrf.mxu1 }
 0x338   :  { %v7155_v27 = vpop.f32.mrf.mxu0 }
 0x339   :  { %v7195_v31 = vpop.f32.mrf.mxu1 }
 0x33a   :  { %v7232_v48 = vpop.f32.mrf.mxu0 }
 0x33b   :  { %v7196_v32 = vpop.f32.mrf.mxu1 }
 0x33c   :  { %v7234_v43 = vpop.f32.mrf.mxu0 }
 0x33d   :  { %v7273_v13 = vpop.f32.mrf.mxu1 }
 0x33e   :  { %v7236_v45 = vpop.f32.mrf.mxu0 }
 0x33f   :  { %v7275_v51 = vpop.f32.mrf.mxu1 }
 0x340   :  { %v7237_v3 = vpop.f32.mrf.mxu0 }
 0x341   :  { %v7277_v50 = vpop.f32.mrf.mxu1 }
 0x342   :  { %v7314_v36 = vpop.f32.mrf.mxu0 }
 0x343   :  { %v7278_v62 = vpop.f32.mrf.mxu1 }
 0x344   :  { %v7316_v54 = vpop.f32.mrf.mxu0 }
 0x345   :  { %v7355_v39 = vpop.f32.mrf.mxu1 }
 0x346   :  { %v7318_v23 = vpop.f32.mrf.mxu0 }
 0x347   :  { %v9582_v52 = vpop.f32.mrf.mxu1 }
 0x348   :  { %v7319_v4 = vpop.f32.mrf.mxu0 }
 0x349   :  { %v7358_v24 = vpop.f32.mrf.mxu1 }
 0x34a   :  { %v7511_v29 = vpop.f32.mrf.mxu0 }
 0x34b   :  { %v13432_v12 = vadd.f32 %v7511_v29, %v6986_v38  ;;  %v9583_v19 = vpop.f32.mrf.mxu1 }
 0x34c   :  { %v7513_v33 = vpop.f32.mrf.mxu0 }
 0x34d   :  { %v13434_v63 = vadd.f32 %v7513_v33, %v6988_v16  ;;  %v7552_v47 = vpop.f32.mrf.mxu1 }
 0x34e   :  { %v7515_v7 = vpop.f32.mrf.mxu0  ;;  %v13436_v55 = vadd.f32 %v7552_v47, %v7027_v34 }
 0x34f   :  { %v7554_v53 = vpop.f32.mrf.mxu1 }
 0x350   :  { %v7516_v40 = vpop.f32.mrf.mxu0  ;;  %v13438_v5 = vadd.f32 %v7554_v53, %v7029_v30 }
 0x351   :  { %v7556_v61 = vpop.f32.mrf.mxu1 }
 0x352   :  { %v7593_v8 = vpop.f32.mrf.mxu0 }
 0x353   :  { %v13440_v59 = vadd.f32 %v7593_v8, %v7068_v60  ;;  %v7557_v20 = vpop.f32.mrf.mxu1 }
 0x354   :  { %v7595_v6 = vpop.f32.mrf.mxu0 }
 0x355   :  { %v13442_v38 = vadd.f32 %v7595_v6, %v7070_v2  ;;  %v7634_v22 = vpop.f32.mrf.mxu1 }
 0x356   :  { %v7597_v9 = vpop.f32.mrf.mxu0  ;;  %v13444_v16 = vadd.f32 %v7634_v22, %v7109_v0 }
 0x357   :  { %v7636_v37 = vpop.f32.mrf.mxu1 }
 0x358   :  { %v7598_v17 = vpop.f32.mrf.mxu0  ;;  %v13446_v34 = vadd.f32 %v7636_v37, %v7111_v49 }
 0x359   :  { %v7638_v28 = vpop.f32.mrf.mxu1 }
 0x35a   :  { %v7675_v11 = vpop.f32.mrf.mxu0 }
 0x35b   :  { %v13448_v30 = vadd.f32 %v7675_v11, %v7150_v25  ;;  %v7639_v14 = vpop.f32.mrf.mxu1 }
 0x35c   :  { %v7677_v21 = vpop.f32.mrf.mxu0 }
 0x35d   :  { %v13450_v60 = vadd.f32 %v7677_v21, %v7152_v41  ;;  %v7716_v10 = vpop.f32.mrf.mxu1 }
 0x35e   :  { %v7679_v26 = vpop.f32.mrf.mxu0  ;;  %v13452_v56 = vadd.f32 %v7716_v10, %v7191_v46 }
 0x35f   :  { %v7718_v44 = vpop.f32.mrf.mxu1 }
 0x360   :  { %v7680_v2 = vpop.f32.mrf.mxu0  ;;  %v13454_v42 = vadd.f32 %v7718_v44, %v7193_v58 }
 0x361   :  { %v7720_v18 = vpop.f32.mrf.mxu1 }
 0x362   :  { %v7757_v0 = vpop.f32.mrf.mxu0 }
 0x363   :  { %v13456_v35 = vadd.f32 %v7757_v0, %v7232_v48  ;;  %v7721_v49 = vpop.f32.mrf.mxu1 }
 0x364   :  { %v7759_v15 = vpop.f32.mrf.mxu0 }
 0x365   :  { %v13458_v25 = vadd.f32 %v7759_v15, %v7234_v43  ;;  %v7798_v57 = vpop.f32.mrf.mxu1 }
 0x366   :  { %v7761_v1 = vpop.f32.mrf.mxu0  ;;  %v13460_v41 = vadd.f32 %v7798_v57, %v7273_v13 }
 0x367   :  { %v7800_v31 = vpop.f32.mrf.mxu1 }
 0x368   :  { %v7762_v27 = vpop.f32.mrf.mxu0  ;;  %v13462_v46 = vadd.f32 %v7800_v31, %v7275_v51 }
 0x369   :  { %v7802_v32 = vpop.f32.mrf.mxu1 }
 0x36a   :  { %v7839_v45 = vpop.f32.mrf.mxu0 }
 0x36b   :  { %v13464_v58 = vadd.f32 %v7839_v45, %v7314_v36  ;;  %v7803_v3 = vpop.f32.mrf.mxu1 }
 0x36c   :  { %v7841_v50 = vpop.f32.mrf.mxu0 }
 0x36d   :  { %v13466_v48 = vadd.f32 %v7841_v50, %v7316_v54  ;;  %v7880_v23 = vpop.f32.mrf.mxu1 }
 0x36e   :  { %v7843_v62 = vpop.f32.mrf.mxu0  ;;  %v13468_v43 = vadd.f32 %v7880_v23, %v7355_v39 }
 0x36f   :  { %v9588_v52 = vpop.f32.mrf.mxu1 }
 0x370   :  { %v7844_v4 = vpop.f32.mrf.mxu0 }
 0x371   :  { %v7883_v13 = vpop.f32.mrf.mxu1 }
 0x372   :  { %v8038_v24 = vpop.f32.mrf.mxu0 }
 0x373   :  { %v9589_v29 = vpop.f32.mrf.mxu1  ;;  %v8413_v50 = vadd.f32 %v8038_v24, %v13432_v12 }
 0x374   :  { %v8040_v19 = vpop.f32.mrf.mxu0 }
 0x375   :  { %v8079_v33 = vpop.f32.mrf.mxu1  ;;  %v8414_v4 = vadd.f32 %v8040_v19, %v13434_v63 }
 0x376   :  { %v8042_v51 = vpop.f32.mrf.mxu0 }
 0x377   :  { %v8081_v47 = vpop.f32.mrf.mxu1  ;;  %v8415_v51 = vadd.f32 %v8079_v33, %v13436_v55 }
 0x378   :  { %v8043_v7 = vpop.f32.mrf.mxu0 }
 0x379   :  { %v8083_v36 = vpop.f32.mrf.mxu1 }
 0x37a   :  { %v8120_v40 = vpop.f32.mrf.mxu0 }
 0x37b   :  { %v8084_v53 = vpop.f32.mrf.mxu1  ;;  %v8417_v12 = vadd.f32 %v8120_v40, %v13440_v59 }
 0x37c   :  { %v8122_v61 = vpop.f32.mrf.mxu0 }
 0x37d   :  { %v8161_v8 = vpop.f32.mrf.mxu1 }
 0x37e   :  { %v8124_v54 = vpop.f32.mrf.mxu0 }
 0x37f   :  { %v8163_v6 = vpop.f32.mrf.mxu1  ;;  %v8416_v54 = vadd.f32 %v8081_v47, %v13438_v5 }
 0x380   :  { %v8125_v20 = vpop.f32.mrf.mxu0 }
 0x381   :  { %v8165_v39 = vpop.f32.mrf.mxu1 }
 0x382   :  { %v8202_v9 = vpop.f32.mrf.mxu0 }
 0x383   :  { %v8166_v22 = vpop.f32.mrf.mxu1 }
 0x384   :  { %v13470_v17 = vpop.f32.mrf.mxu0 }
 0x385   :  { %v13472_v28 = vpop.f32.mrf.mxu1 }
 0x386   :  { %v8206_v37 = vpop.f32.mrf.mxu0 }
 0x387   :  { %v13474_v14 = vpop.f32.mrf.mxu1  ;;  %v8418_v37 = vadd.f32 %v8122_v61, %v13442_v38 }
 0x388   :  { %v8207_v11 = vpop.f32.mrf.mxu0 }
 0x389   :  { %v8247_v21 = vpop.f32.mrf.mxu1 }
 0x38a   :  { %v13476_v26 = vpop.f32.mrf.mxu0  ;;  %v8419_v21 = vadd.f32 %v8161_v8, %v13444_v16  ;;  %v8422_v16 = vadd.f32 %v13470_v17, %v13450_v60 }
 0x38b   :  { %v8248_v10 = vpop.f32.mrf.mxu1 }
 0x38c   :  { %v13478_v2 = vpop.f32.mrf.mxu0 }
 0x38d   :  { %v13480_v18 = vpop.f32.mrf.mxu1 }
 0x38e   :  { %v8288_v44 = vpop.f32.mrf.mxu0 }
 0x38f   :  { %v13482_v49 = vpop.f32.mrf.mxu1  ;;  %v8420_v44 = vadd.f32 %v8163_v6, %v13446_v34  ;;  %v8423_v34 = vadd.f32 %v13472_v28, %v13452_v56  ;;  %v8425_v56 = vadd.f32 %v13476_v26, %v13456_v35  ;;  %v8427_v35 = vadd.f32 %v13480_v18, %v13460_v41 }
 0x390   :  { %v8289_v0 = vpop.f32.mrf.mxu0 }
 0x391   :  { %v8329_v15 = vpop.f32.mrf.mxu1 }
 0x392   :  { %v13484_v1 = vpop.f32.mrf.mxu0  ;;  %v8421_v15 = vadd.f32 %v8202_v9, %v13448_v30 }
 0x393   :  { %v8330_v57 = vpop.f32.mrf.mxu1  ;;  %v8429_v41 = vadd.f32 %v13484_v1, %v13464_v58 }
 0x394   :  { %v13486_v27 = vpop.f32.mrf.mxu0 }
 0x395   :  { %v13488_v32 = vpop.f32.mrf.mxu1 }
 0x396   :  { %v8370_v31 = vpop.f32.mrf.mxu0  ;;  %v8431_v58 = vadd.f32 %v13488_v32, %v13468_v43 }
 0x397   :  { %v9594_v3 = vpop.f32.mrf.mxu1 }
 0x398   :  { %v8371_v45 = vpop.f32.mrf.mxu0 }
 0x399   :  { %v8410_v62 = vpop.f32.mrf.mxu1 }
 0x39a   :  { %v8585_v23 = vpop.f32.mrf.mxu0 }
 0x39b   :  { %v8960_v52 = vadd.f32 %v8585_v23, %v8413_v50  ;;  %v9595_v13 = vpop.f32.mrf.mxu1 }
 0x39c   :  { %v8587_v29 = vpop.f32.mrf.mxu0 }
 0x39d   :  { %v8961_v7 = vadd.f32 %v8587_v29, %v8414_v4  ;;  %9785 = vtanh.f32 %v8960_v52  ;;  %v8626_v53 = vpop.f32.mrf.mxu1  ;;  %v8424_v4 = vadd.f32 %v13474_v14, %v13454_v42  ;;  %v8426_v42 = vadd.f32 %v13478_v2, %v13458_v25 }
 0x39e   :  { %v8589_v36 = vpop.f32.mrf.mxu0  ;;  %v8962_v20 = vadd.f32 %v8626_v53, %v8415_v51  ;;  %v8428_v25 = vadd.f32 %v13482_v49, %v13462_v46  ;;  %v8430_v46 = vadd.f32 %v13486_v27, %v13466_v48 }
 0x39f   :  { %9787 = vtanh.f32 %v8961_v7  ;;  %v8628_v22 = vpop.f32.mrf.mxu1 }
 0x3a0   :  { %v8590_v39 = vpop.f32.mrf.mxu0  ;;  %v8963_v24 = vadd.f32 %v8628_v22, %v8416_v54  ;;  %9789 = vtanh.f32 %v8962_v20 }
 0x3a1   :  { %v8630_v63 = vpop.f32.mrf.mxu1 }
 0x3a2   :  { %v8667_v19 = vpop.f32.mrf.mxu0  ;;  %9791 = vtanh.f32 %v8963_v24 }
 0x3a3   :  { %v8964_v55 = vadd.f32 %v8667_v19, %v8417_v12  ;;  %v8631_v33 = vpop.f32.mrf.mxu1 }
 0x3a4   :  { %v8669_v11 = vpop.f32.mrf.mxu0 }
 0x3a5   :  { %v8965_v10 = vadd.f32 %v8669_v11, %v8418_v37  ;;  %9793 = vtanh.f32 %v8964_v55  ;;  %v8708_v47 = vpop.f32.mrf.mxu1 }
 0x3a6   :  { %v8671_v5 = vpop.f32.mrf.mxu0  ;;  %v8966_v59 = vadd.f32 %v8708_v47, %v8419_v21 }
 0x3a7   :  { %9795 = vtanh.f32 %v8965_v10  ;;  %v8710_v0 = vpop.f32.mrf.mxu1 }
 0x3a8   :  { %v8672_v40 = vpop.f32.mrf.mxu0  ;;  %v8967_v57 = vadd.f32 %v8710_v0, %v8420_v44  ;;  %9797 = vtanh.f32 %v8966_v59 }
 0x3a9   :  { %v8712_v38 = vpop.f32.mrf.mxu1 }
 0x3aa   :  { %v8749_v61 = vpop.f32.mrf.mxu0  ;;  %v9786_v31 = vpop.eup %9785  ;;  %9799 = vtanh.f32 %v8967_v57 }
 0x3ab   :  { %v8968_v8 = vadd.f32 %v8749_v61, %v8421_v15  ;;  %v8713_v3 = vpop.f32.mrf.mxu1 }
 0x3ac   :  { %v9788_v45 = vpop.eup %9787  ;;  %v8751_v50 = vpop.f32.mrf.mxu0 }
 0x3ad   :  { %v9016_v6 = vcombine.low %v9786_v31, %v9788_v45  ;;  %v8969_v62 = vadd.f32 %v8751_v50, %v8422_v16  ;;  %9801 = vtanh.f32 %v8968_v8  ;;  %v8790_v9 = vpop.f32.mrf.mxu1  ;;  %v9790_v23 = vpop.eup %9789 }
 0x3ae   :  { %v8753_v30 = vpop.f32.mrf.mxu0  ;;  %v8970_v60 = vadd.f32 %v8790_v9, %v8423_v34 }
 0x3af   :  { %9464 = vst [vmem:[%s13552_s2 + $0xe4] sm:$0x77] %v9016_v6  ;;  %9803 = vtanh.f32 %v8969_v62  ;;  %v9792_v17 = vpop.eup %9791  ;;  %v8792_v13 = vpop.f32.mrf.mxu1 }
 0x3b0   :  { %v8754_v52 = vpop.f32.mrf.mxu0  ;;  %v9017_v28 = vcombine.low %v9790_v23, %v9792_v17  ;;  %v8971_v29 = vadd.f32 %v8792_v13, %v8424_v4  ;;  %9805 = vtanh.f32 %v8970_v60 }
 0x3b1   :  { %v8794_v51 = vpop.f32.mrf.mxu1 }
 0x3b2   :  { %v8831_v7 = vpop.f32.mrf.mxu0  ;;  %v9794_v36 = vpop.eup %9793  ;;  %9465 = vst [vmem:[%s13552_s2 + $0xec] sm:$0x77] %v9017_v28  ;;  %9807 = vtanh.f32 %v8971_v29 }
 0x3b3   :  { %v8972_v14 = vadd.f32 %v8831_v7, %v8425_v56  ;;  %v8795_v54 = vpop.f32.mrf.mxu1 }
 0x3b4   :  { %v9796_v53 = vpop.eup %9795  ;;  %v8833_v20 = vpop.f32.mrf.mxu0 }
 0x3b5   :  { %v9018_v26 = vcombine.low %v9794_v36, %v9796_v53  ;;  %v8973_v39 = vadd.f32 %v8833_v20, %v8426_v42  ;;  %9809 = vtanh.f32 %v8972_v14  ;;  %v8872_v12 = vpop.f32.mrf.mxu1  ;;  %v9798_v24 = vpop.eup %9797 }
 0x3b6   :  { %v8835_v22 = vpop.f32.mrf.mxu0  ;;  %v8974_v2 = vadd.f32 %v8872_v12, %v8427_v35 }
 0x3b7   :  { %9466 = vst [vmem:[%s13552_s2 + $0xf4] sm:$0x77] %v9018_v26  ;;  %9811 = vtanh.f32 %v8973_v39  ;;  %v9800_v63 = vpop.eup %9799  ;;  %v8874_v37 = vpop.f32.mrf.mxu1 }
 0x3b8   :  { %v8836_v19 = vpop.f32.mrf.mxu0  ;;  %v9019_v18 = vcombine.low %v9798_v24, %v9800_v63  ;;  %v8975_v55 = vadd.f32 %v8874_v37, %v8428_v25  ;;  %9813 = vtanh.f32 %v8974_v2 }
 0x3b9   :  { %v8876_v33 = vpop.f32.mrf.mxu1 }
 0x3ba   :  { %v8913_v11 = vpop.f32.mrf.mxu0  ;;  %v9802_v21 = vpop.eup %9801  ;;  %9467 = vst [vmem:[%s13552_s2 + $0xfc] sm:$0x77] %v9019_v18  ;;  %9815 = vtanh.f32 %v8975_v55 }
 0x3bb   :  { %v8976_v49 = vadd.f32 %v8913_v11, %v8429_v41  ;;  %v8877_v5 = vpop.f32.mrf.mxu1 }
 0x3bc   :  { %v9804_v10 = vpop.eup %9803  ;;  %v8915_v47 = vpop.f32.mrf.mxu0 }
 0x3bd   :  { %v9020_v1 = vcombine.low %v9802_v21, %v9804_v10  ;;  %v8977_v44 = vadd.f32 %v8915_v47, %v8430_v46  ;;  %9817 = vtanh.f32 %v8976_v49  ;;  %v8954_v40 = vpop.f32.mrf.mxu1  ;;  %v9806_v0 = vpop.eup %9805 }
 0x3be   :  { %v8917_v59 = vpop.f32.mrf.mxu0  ;;  %v8978_v48 = vadd.f32 %v8954_v40, %v8431_v58 }
 0x3bf   :  { %9468 = vst [vmem:[%s13552_s2 + $0x104] sm:$0x77] %v9020_v1  ;;  %9819 = vtanh.f32 %v8977_v44  ;;  %v9808_v27 = vpop.eup %9807  ;;  %v9600_v57 = vpop.f32.mrf.mxu1 }
 0x3c0   :  { %v8918_v15 = vpop.f32.mrf.mxu0  ;;  %v9021_v38 = vcombine.low %v9806_v0, %v9808_v27  ;;  %9821 = vtanh.f32 %v8978_v48 }
 0x3c1   :  { %v8957_v61 = vpop.f32.mrf.mxu1 }
 0x3c2   :  { %v9810_v31 = vpop.eup %9809  ;;  %9469 = vst [vmem:[%s13552_s2 + $0x10c] sm:$0x77] %v9021_v38 }
 0x3c3   :  { %v9601_v32 = vpop.f32.mrf.mxu1 }
 0x3c4   :  { %v9812_v43 = vpop.eup %9811 }
 0x3c5   :  { %v9022_v16 = vcombine.low %v9810_v31, %v9812_v43  ;;  %v9814_v8 = vpop.eup %9813 }
 0x3c7   :  { %9470 = vst [vmem:[%s13552_s2 + $0x114] sm:$0x77] %v9022_v16  ;;  %v9816_v45 = vpop.eup %9815 }
 0x3c8   :  { %v9023_v3 = vcombine.low %v9814_v8, %v9816_v45 }
 0x3ca   :  { %v9818_v50 = vpop.eup %9817  ;;  %9471 = vst [vmem:[%s13552_s2 + $0x11c] sm:$0x77] %v9023_v3 }
 0x3cc   :  { %v9820_v34 = vpop.eup %9819 }
 0x3cd   :  { %v9024_v6 = vcombine.low %v9818_v50, %v9820_v34  ;;  %v9822_v62 = vpop.eup %9821 }
 0x3ce   :  { %9473 = vst.msk [vmem:[%s13552_s2 + $0x12c] sm:$0x7] %vm2228_vm8, %v9822_v62 }
 0x3cf   :  { %9472 = vst [vmem:[%s13552_s2 + $0x124] sm:$0x77] %v9024_v6 }

</bundles_post_ra>
